<compile_context>
chip_gen: v7x
topology: tpu7x:2x2x1
jax: 0.10.0
libtpu: 0.0.40
codegen_flags: <defaults>
</compile_context>

<pallas_src>
import functools

import jax
import jax.numpy as jnp
from jax.experimental import pallas as pl
from jax.experimental.pallas import tpu as pltpu

EPS = 1e-3


def _fused_kernel(xa_ref, xb_ref, w_ref, gb_ref, o_ref, *, inv_p):
    # xa/xb:  (Cin, P)   full residual inputs (resident: constant index map)
    # w_ref:  (Tc, Cin)  weight tile for this Cout block
    # gb_ref: (Tc, 2)    column 0 = gamma, column 1 = beta
    # o_ref:  (Tc, P)
    x = xa_ref[...] + xb_ref[...]                                       # elementwise add (VPU)
    y = jnp.dot(w_ref[...], x, preferred_element_type=jnp.float32)      # 1x1 conv == matmul (MXU)

    # BatchNorm (training mode): per-channel (row) batch mean / biased variance
    # over the P spatial positions, single pass, variance clamped to >= 0.
    mean = jnp.sum(y, axis=1, keepdims=True) * inv_p                    # (Tc, 1)
    var = jnp.sum(y * y, axis=1, keepdims=True) * inv_p - mean * mean   # (Tc, 1)
    var = jnp.maximum(var, 0.0)

    gamma = gb_ref[:, 0:1]                                              # (Tc, 1)
    beta = gb_ref[:, 1:2]                                               # (Tc, 1)
    a = gamma * jax.lax.rsqrt(var + EPS)                                # (Tc, 1)
    b = beta - mean * a                                                 # (Tc, 1)
    o_ref[...] = (y * a + b).astype(o_ref.dtype)                        # affine epilogue


def _num_cout_tiles():
    """1 Cout tile (grid=1) everywhere except v7x, where 2 tiles feed both TCs."""
    try:
        kind = jax.devices()[0].device_kind.lower()
        if "v7" in kind:
            return 2
    except Exception:
        pass
    return 1


def fused_add_conv1x1_bn(x289, x274, w, gamma, beta):
    """x289, x274: [N, Cin, H, W]; w: [Cout, Cin, 1, 1]; gamma, beta: [Cout]."""
    n, cin, h, wd = x289.shape
    cout = w.shape[0]
    p = n * h * wd

    # NCHW -> (Cin, P).  With N == 1 this is a pure reshape (no data movement).
    if n == 1:
        xa = x289.reshape(cin, p)
        xb = x274.reshape(cin, p)
    else:
        xa = jnp.transpose(x289, (1, 0, 2, 3)).reshape(cin, p)
        xb = jnp.transpose(x274, (1, 0, 2, 3)).reshape(cin, p)

    wmat = w.reshape(cout, cin)                                   # (Cout, Cin)
    gb = jnp.concatenate(
        [gamma.reshape(cout, 1), beta.reshape(cout, 1)], axis=1
    ).astype(jnp.float32)                                         # (Cout, 2)

    num_tiles = _num_cout_tiles()
    if cout % num_tiles != 0 or (cout // num_tiles) % 8 != 0:
        num_tiles = 1
    tc = cout // num_tiles                                        # 864 (or 432 on v7x)

    cost = pl.CostEstimate(
        flops=2 * cout * cin * p + cin * p + 5 * cout * p,        # matmul + add + BN epilogue
        transcendentals=cout,                                     # rsqrt per channel
        bytes_accessed=(2 * cin * p + cout * cin + 2 * cout + cout * p) * 4,
    )

    out = pl.pallas_call(
        functools.partial(_fused_kernel, inv_p=1.0 / p),
        out_shape=jax.ShapeDtypeStruct((cout, p), jnp.float32),
        grid=(num_tiles,),
        in_specs=[
            pl.BlockSpec((cin, p), lambda i: (0, 0)),      # xa: full, resident
            pl.BlockSpec((cin, p), lambda i: (0, 0)),      # xb: full, resident
            pl.BlockSpec((tc, cin), lambda i: (i, 0)),     # weight tile along Cout
            pl.BlockSpec((tc, 2), lambda i: (i, 0)),       # packed gamma/beta tile
        ],
        out_specs=pl.BlockSpec((tc, p), lambda i: (i, 0)),
        compiler_params=pltpu.CompilerParams(
            dimension_semantics=("parallel",)),            # Cout tiles independent (megacore)
        cost_estimate=cost,
    )(xa, xb, wmat, gb)

    # (Cout, P) -> NCHW.  With N == 1 this is a pure reshape.
    if n == 1:
        return out.reshape(1, cout, h, wd)
    return jnp.transpose(out.reshape(cout, n, h, wd), (1, 0, 2, 3))


def _reference(x289, x274, w, gamma, beta):
    x = x289 + x274
    y = jax.lax.conv_general_dilated(
        x, w, window_strides=(1, 1), padding="VALID",
        dimension_numbers=("NCHW", "OIHW", "NCHW"))
    mean = jnp.mean(y, axis=(0, 2, 3), keepdims=True)
    var = jnp.var(y, axis=(0, 2, 3), keepdims=True)
    yhat = (y - mean) * jax.lax.rsqrt(var + EPS)
    return yhat * gamma.reshape(1, -1, 1, 1) + beta.reshape(1, -1, 1, 1)


if __name__ == "__main__":
    key = jax.random.PRNGKey(0)
    k1, k2, k3, k4, k5 = jax.random.split(key, 5)

    N, CIN, H, W = 1, 144, 14, 14
    COUT = 864

    x289 = jax.random.normal(k1, (N, CIN, H, W), dtype=jnp.float32)
    x274 = jax.random.normal(k2, (N, CIN, H, W), dtype=jnp.float32)
    conv_w = jax.random.normal(k3, (COUT, CIN, 1, 1), dtype=jnp.float32) * 0.05
    gamma = 1.0 + 0.1 * jax.random.normal(k4, (COUT,), dtype=jnp.float32)
    beta = 0.1 * jax.random.normal(k5, (COUT,), dtype=jnp.float32)

    out = fused_add_conv1x1_bn(x289, x274, conv_w, gamma, beta)
    out = jax.block_until_ready(out)

    ref = jax.block_until_ready(_reference(x289, x274, conv_w, gamma, beta))
    assert out.shape == (N, COUT, H, W)
    assert jnp.max(jnp.abs(out - ref)) < 2e-3, "mismatch vs reference"

    print("KERNEL_OK")
</pallas_src>

<mosaic_0001>
module attributes {stable_mosaic.version = 11 : i64} {
  func.func @_fused_kernel(%arg0: i32, %arg1: memref<144x196xf32, #tpu.memory_space<vmem>>, %arg2: memref<144x196xf32, #tpu.memory_space<vmem>>, %arg3: memref<864x144xf32, #tpu.memory_space<vmem>>, %arg4: memref<864x2xf32, #tpu.memory_space<vmem>>, %arg5: memref<864x196xf32, #tpu.memory_space<vmem>>) attributes {dimension_semantics = [#tpu.dimension_semantics<parallel>], iteration_bounds = array<i64: 1>, scalar_prefetch = 0 : i64, scratch_operands = 0 : i64, tpu.core_type = #tpu.core_type<tc>, window_params = [{pipeline_mode = #tpu.pipeline_mode<synchronous>, transform_indices = @transform_0, window_bounds = array<i64: 144, 196>}, {pipeline_mode = #tpu.pipeline_mode<synchronous>, transform_indices = @transform_1, window_bounds = array<i64: 144, 196>}, {transform_indices = @transform_2, window_bounds = array<i64: 864, 144>}, {transform_indices = @transform_3, window_bounds = array<i64: 864, 2>}, {transform_indices = @transform_4, window_bounds = array<i64: 864, 196>}]} {
    %c0 = arith.constant 0 : index
    %c0_0 = arith.constant 0 : index
    %0 = vector.load %arg1[%c0, %c0_0] : memref<144x196xf32, #tpu.memory_space<vmem>>, vector<144x196xf32>
    %c0_1 = arith.constant 0 : index
    %c0_2 = arith.constant 0 : index
    %1 = vector.load %arg2[%c0_1, %c0_2] : memref<144x196xf32, #tpu.memory_space<vmem>>, vector<144x196xf32>
    %2 = arith.addf %0, %1 : vector<144x196xf32>
    %c0_3 = arith.constant 0 : index
    %c0_4 = arith.constant 0 : index
    %3 = vector.load %arg3[%c0_3, %c0_4] : memref<864x144xf32, #tpu.memory_space<vmem>>, vector<864x144xf32>
    %cst = arith.constant dense<0.000000e+00> : vector<864x196xf32>
    %4 = tpu.matmul %3, %2, %cst {dimension_numbers = #tpu.dot_dimension_numbers<[1], [0], [0], [1], [0, 0, 1, 1], [], []>} : vector<864x144xf32>, vector<144x196xf32>, vector<864x196xf32> -> vector<864x196xf32>
    %cst_5 = arith.constant dense<0.000000e+00> : vector<864xf32>
    %5 = vector.multi_reduction <add>, %4, %cst_5 [1] : vector<864x196xf32> to vector<864xf32>
    %6 = vector.shape_cast %5 : vector<864xf32> to vector<864x1xf32>
    %cst_6 = arith.constant 0.00510204071 : f32
    %7 = vector.broadcast %cst_6 : f32 to vector<864x1xf32>
    %8 = arith.mulf %6, %7 : vector<864x1xf32>
    %9 = arith.mulf %4, %4 : vector<864x196xf32>
    %cst_7 = arith.constant dense<0.000000e+00> : vector<864xf32>
    %10 = vector.multi_reduction <add>, %9, %cst_7 [1] : vector<864x196xf32> to vector<864xf32>
    %11 = vector.shape_cast %10 : vector<864xf32> to vector<864x1xf32>
    %cst_8 = arith.constant 0.00510204071 : f32
    %12 = vector.broadcast %cst_8 : f32 to vector<864x1xf32>
    %13 = arith.mulf %11, %12 : vector<864x1xf32>
    %14 = arith.mulf %8, %8 : vector<864x1xf32>
    %15 = arith.subf %13, %14 : vector<864x1xf32>
    %cst_9 = arith.constant 0.000000e+00 : f32
    %16 = vector.broadcast %cst_9 : f32 to vector<864x1xf32>
    %17 = arith.maximumf %15, %16 : vector<864x1xf32>
    %c0_10 = arith.constant 0 : index
    %c0_11 = arith.constant 0 : index
    %18 = vector.load %arg4[%c0_10, %c0_11] : memref<864x2xf32, #tpu.memory_space<vmem>>, vector<864x1xf32>
    %c0_12 = arith.constant 0 : index
    %c1 = arith.constant 1 : index
    %19 = vector.load %arg4[%c0_12, %c1] : memref<864x2xf32, #tpu.memory_space<vmem>>, vector<864x1xf32>
    %cst_13 = arith.constant 1.000000e-03 : f32
    %20 = vector.broadcast %cst_13 : f32 to vector<864x1xf32>
    %21 = arith.addf %17, %20 : vector<864x1xf32>
    %22 = math.rsqrt %21 : vector<864x1xf32>
    %23 = arith.mulf %18, %22 : vector<864x1xf32>
    %24 = arith.mulf %8, %23 : vector<864x1xf32>
    %25 = arith.subf %19, %24 : vector<864x1xf32>
    %26 = vector.broadcast %23 : vector<864x1xf32> to vector<864x196xf32>
    %27 = arith.mulf %4, %26 : vector<864x196xf32>
    %28 = vector.broadcast %25 : vector<864x1xf32> to vector<864x196xf32>
    %29 = arith.addf %27, %28 : vector<864x196xf32>
    %c0_14 = arith.constant 0 : index
    %c0_15 = arith.constant 0 : index
    %30 = vector.load %arg5[%c0_14, %c0_15] : memref<864x196xf32, #tpu.memory_space<vmem>>, vector<864x196xf32>
    tpu.vector_store %arg5[%c0_14, %c0_15], %29 {strides = array<i32>} : memref<864x196xf32, #tpu.memory_space<vmem>>, vector<864x196xf32>,
    return
  }
  func.func @transform_0(%arg0: i32) -> (i32, i32) {
    %c0_i32 = arith.constant 0 : i32
    %c0_i32_0 = arith.constant 0 : i32
    %c0_i32_1 = arith.constant 0 : i32
    return %c0_i32, %c0_i32_0 : i32, i32
  }
  func.func @transform_1(%arg0: i32) -> (i32, i32) {
    %c0_i32 = arith.constant 0 : i32
    %c0_i32_0 = arith.constant 0 : i32
    %c0_i32_1 = arith.constant 0 : i32
    return %c0_i32, %c0_i32_0 : i32, i32
  }
  func.func @transform_2(%arg0: i32) -> (i32, i32) {
    %c0_i32 = arith.constant 0 : i32
    %c0_i32_0 = arith.constant 0 : i32
    return %arg0, %c0_i32 : i32, i32
  }
  func.func @transform_3(%arg0: i32) -> (i32, i32) {
    %c0_i32 = arith.constant 0 : i32
    %c0_i32_0 = arith.constant 0 : i32
    return %arg0, %c0_i32 : i32, i32
  }
  func.func @transform_4(%arg0: i32) -> (i32, i32) {
    %c0_i32 = arith.constant 0 : i32
    %c0_i32_0 = arith.constant 0 : i32
    return %arg0, %c0_i32 : i32, i32
  }
}

</mosaic_0001>

<bundles_post_ra>
// kernel: tpu_custom_call.1
= control target key start
LH: loop header
LB: loop body
LE: loop exit
PB: predicated region body
PF: predicated region fallthrough
CT: control target
= control target key end

     0   :  { %vm341_vm0 = vcmask 130048   ;;  %vm1379_vm1 = vcmask 556032   ;;  %s6305_s9 = smov 1   ;;  %s13466_s0 = inlined_call_operand.vmem [shape: f32[144,196], index: 0, kind: input, shape index: {}]   ;;  %s13467_s1 = inlined_call_operand.vmem [shape: f32[144,196], index: 1, kind: input, shape index: {}]   ;;  %s13468_s2 = inlined_call_operand.vmem [shape: f32[864,144], index: 2, kind: input, shape index: {}]   ;;  %s13469_s3 = inlined_call_operand.vmem [shape: f32[864,2], index: 3, kind: input, shape index: {}]   ;;  %s13470_s4 = inlined_call_operand.vmem [shape: f32[864,196], index: 4, kind: output, shape index: {}]  }
   0x1   :  { %v18_v0 = vld [vmem:[%s13466_s0 + $0x8] sm:$0xff]  ;;  %v20_v1 = vld [vmem:[%s13466_s0 + $0x18] sm:$0xff]  ;;  %v17_v5 = vld [vmem:[%s13466_s0] sm:$0xff] }
   0x2   :  { %v54_v2 = vld [vmem:[%s13467_s1 + $0x8] sm:$0xff]  ;;  %v56_v3 = vld [vmem:[%s13467_s1 + $0x18] sm:$0xff]  ;;  %v19_v6 = vld [vmem:[%s13466_s0 + $0x10] sm:$0xff] }
   0x3   :  { %v90_v4 = vadd.f32 %v54_v2, %v18_v0  ;;  %v92_v7 = vadd.f32 %v56_v3, %v20_v1  ;;  %v53_v8 = vld [vmem:[%s13467_s1] sm:$0xff]  ;;  %v55_v9 = vld [vmem:[%s13467_s1 + $0x10] sm:$0xff]  ;;  %v22_v10 = vld [vmem:[%s13466_s0 + $0x28] sm:$0xff] }
   0x4   :  { %v89_v11 = vadd.f32 %v53_v8, %v17_v5  ;;  %v91_v12 = vadd.f32 %v55_v9, %v19_v6  ;;  %v24_v13 = vld [vmem:[%s13466_s0 + $0x38] sm:$0xff]  ;;  %v58_v14 = vld [vmem:[%s13467_s1 + $0x28] sm:$0xff]  ;;  %v21_v19 = vld [vmem:[%s13466_s0 + $0x20] sm:$0xff] }
   0x5   :  { %v60_v15 = vld [vmem:[%s13467_s1 + $0x38] sm:$0xff]  ;;  %v5920_v16 = vpack.c.bf16 %v92_v7, %v90_v4  ;;  %v94_v17 = vadd.f32 %v58_v14, %v22_v10  ;;  %v23_v20 = vld [vmem:[%s13466_s0 + $0x30] sm:$0xff]  ;;  %v57_v21 = vld [vmem:[%s13467_s1 + $0x20] sm:$0xff] }
   0x6   :  { %v96_v18 = vadd.f32 %v60_v15, %v24_v13  ;;  %v5922_v22 = vpack.c.bf16 %v91_v12, %v89_v11  ;;  %v59_v23 = vld [vmem:[%s13467_s1 + $0x30] sm:$0xff]  ;;  %v93_v24 = vadd.f32 %v57_v21, %v21_v19  ;;  %v26_v25 = vld [vmem:[%s13466_s0 + $0x48] sm:$0xff]  ;;  %v28_v26 = vld [vmem:[%s13466_s0 + $0x58] sm:$0xff] }
   0x7   :  { %5921 = vmatprep.subr.bf16.mxu0 %v5920_v16  ;;  %5956 = vmatprep.subr.bf16.mxu1 %v5920_v16  ;;  %v95_v28 = vadd.f32 %v59_v23, %v23_v20  ;;  %v62_v29 = vld [vmem:[%s13467_s1 + $0x48] sm:$0xff]  ;;  %v64_v30 = vld [vmem:[%s13467_s1 + $0x58] sm:$0xff]  ;;  %v25_v31 = vld [vmem:[%s13466_s0 + $0x40] sm:$0xff] }
   0x8   :  { %v5924_v27 = vpack.c.bf16 %v96_v18, %v94_v17  ;;  %5923 = vmatpush1.bf16.msra.mxu0 %v5922_v22  ;;  %5965 = vmatpush1.bf16.msra.mxu1 %v5922_v22  ;;  %v98_v32 = vadd.f32 %v62_v29, %v26_v25  ;;  %v100_v33 = vadd.f32 %v64_v30, %v28_v26  ;;  %v27_v34 = vld [vmem:[%s13466_s0 + $0x50] sm:$0xff]  ;;  %v61_v35 = vld [vmem:[%s13467_s1 + $0x40] sm:$0xff]  ;;  %v30_v40 = vld [vmem:[%s13466_s0 + $0x68] sm:$0xff] }
   0x9   :  { %v63_v36 = vld [vmem:[%s13467_s1 + $0x50] sm:$0xff]  ;;  %v5926_v37 = vpack.c.bf16 %v95_v28, %v93_v24  ;;  %v97_v38 = vadd.f32 %v61_v35, %v25_v31  ;;  %v32_v41 = vld [vmem:[%s13466_s0 + $0x78] sm:$0xff]  ;;  %v66_v42 = vld [vmem:[%s13467_s1 + $0x68] sm:$0xff] }
   0xa   :  { %5925 = vmatprep.subr.bf16.mxu0 %v5924_v27  ;;  %5957 = vmatprep.subr.bf16.mxu1 %v5924_v27  ;;  %v99_v39 = vadd.f32 %v63_v36, %v27_v34  ;;  %v5928_v43 = vpack.c.bf16 %v100_v33, %v98_v32  ;;  %v68_v44 = vld [vmem:[%s13467_s1 + $0x78] sm:$0xff]  ;;  %v102_v45 = vadd.f32 %v66_v42, %v30_v40  ;;  %v29_v46 = vld [vmem:[%s13466_s0 + $0x60] sm:$0xff]  ;;  %v31_v47 = vld [vmem:[%s13466_s0 + $0x70] sm:$0xff] }
   0xb   :  { %v104_v48 = vadd.f32 %v68_v44, %v32_v41  ;;  %v65_v49 = vld [vmem:[%s13467_s1 + $0x60] sm:$0xff]  ;;  %v67_v50 = vld [vmem:[%s13467_s1 + $0x70] sm:$0xff]  ;;  %v34_v51 = vld [vmem:[%s13466_s0 + $0x88] sm:$0xff] }
   0xc   :  { %5927 = vmatpush1.bf16.msra.mxu0 %v5926_v37  ;;  %5966 = vmatpush1.bf16.msra.mxu1 %v5926_v37  ;;  %v5930_v52 = vpack.c.bf16 %v99_v39, %v97_v38  ;;  %v101_v53 = vadd.f32 %v65_v49, %v29_v46  ;;  %v103_v54 = vadd.f32 %v67_v50, %v31_v47  ;;  %v36_v55 = vld [vmem:[%s13466_s0 + $0x98] sm:$0xff]  ;;  %v70_v56 = vld [vmem:[%s13467_s1 + $0x88] sm:$0xff]  ;;  %v33_v61 = vld [vmem:[%s13466_s0 + $0x80] sm:$0xff] }
   0xd   :  { %v72_v57 = vld [vmem:[%s13467_s1 + $0x98] sm:$0xff]  ;;  %5929 = vmatprep.subr.bf16.mxu0 %v5928_v43  ;;  %5958 = vmatprep.subr.bf16.mxu1 %v5928_v43  ;;  %v5932_v58 = vpack.c.bf16 %v104_v48, %v102_v45  ;;  %v106_v59 = vadd.f32 %v70_v56, %v34_v51  ;;  %v35_v62 = vld [vmem:[%s13466_s0 + $0x90] sm:$0xff]  ;;  %v69_v63 = vld [vmem:[%s13467_s1 + $0x80] sm:$0xff] }
   0xe   :  { %v108_v60 = vadd.f32 %v72_v57, %v36_v55  ;;  %v71_v0 = vld [vmem:[%s13467_s1 + $0x90] sm:$0xff]  ;;  %v38_v1 = vld [vmem:[%s13466_s0 + $0xa8] sm:$0xff]  ;;  %v40_v2 = vld [vmem:[%s13466_s0 + $0xb8] sm:$0xff]  ;;  %v5934_v5 = vpack.c.bf16 %v103_v54, %v101_v53  ;;  %v105_v6 = vadd.f32 %v69_v63, %v33_v61 }
   0xf   :  { %v74_v3 = vld [vmem:[%s13467_s1 + $0xa8] sm:$0xff]  ;;  %v76_v4 = vld [vmem:[%s13467_s1 + $0xb8] sm:$0xff]  ;;  %v107_v7 = vadd.f32 %v71_v0, %v35_v62  ;;  %v37_v8 = vld [vmem:[%s13466_s0 + $0xa0] sm:$0xff] }
  0x10   :  { %5931 = vmatpush1.bf16.msra.mxu0 %v5930_v52  ;;  %5967 = vmatpush1.bf16.msra.mxu1 %v5930_v52  ;;  %v39_v9 = vld [vmem:[%s13466_s0 + $0xb0] sm:$0xff]  ;;  %v5936_v10 = vpack.c.bf16 %v108_v60, %v106_v59  ;;  %v110_v11 = vadd.f32 %v74_v3, %v38_v1  ;;  %v112_v12 = vadd.f32 %v76_v4, %v40_v2  ;;  %v73_v13 = vld [vmem:[%s13467_s1 + $0xa0] sm:$0xff]  ;;  %v42_v15 = vld [vmem:[%s13466_s0 + $0xc8] sm:$0xff] }
  0x11   :  { %5933 = vmatprep.subr.bf16.mxu0 %v5932_v58  ;;  %5959 = vmatprep.subr.bf16.mxu1 %v5932_v58  ;;  %v75_v14 = vld [vmem:[%s13467_s1 + $0xb0] sm:$0xff]  ;;  %v44_v16 = vld [vmem:[%s13466_s0 + $0xd8] sm:$0xff]  ;;  %v78_v17 = vld [vmem:[%s13467_s1 + $0xc8] sm:$0xff]  ;;  %v5938_v19 = vpack.c.bf16 %v107_v7, %v105_v6  ;;  %v109_v20 = vadd.f32 %v73_v13, %v37_v8 }
  0x12   :  { %v80_v18 = vld [vmem:[%s13467_s1 + $0xd8] sm:$0xff]  ;;  %v111_v21 = vadd.f32 %v75_v14, %v39_v9  ;;  %v41_v22 = vld [vmem:[%s13466_s0 + $0xc0] sm:$0xff]  ;;  %v43_v23 = vld [vmem:[%s13466_s0 + $0xd0] sm:$0xff]  ;;  %v5940_v24 = vpack.c.bf16 %v112_v12, %v110_v11  ;;  %v114_v25 = vadd.f32 %v78_v17, %v42_v15 }
  0x13   :  { %v116_v26 = vadd.f32 %v80_v18, %v44_v16  ;;  %v77_v27 = vld [vmem:[%s13467_s1 + $0xc0] sm:$0xff]  ;;  %v79_v28 = vld [vmem:[%s13467_s1 + $0xd0] sm:$0xff]  ;;  %v46_v29 = vld [vmem:[%s13466_s0 + $0xe8] sm:$0xff] }
  0x14   :  { %5935 = vmatpush1.bf16.msra.mxu0 %v5934_v5  ;;  %5968 = vmatpush1.bf16.msra.mxu1 %v5934_v5  ;;  %v48_v30 = vld [vmem:[%s13466_s0 + $0xf8] sm:$0xff]  ;;  %v82_v31 = vld [vmem:[%s13467_s1 + $0xe8] sm:$0xff]  ;;  %v45_v33 = vld [vmem:[%s13466_s0 + $0xe0] sm:$0xff]  ;;  %v5942_v34 = vpack.c.bf16 %v111_v21, %v109_v20  ;;  %v113_v35 = vadd.f32 %v77_v27, %v41_v22  ;;  %v115_v36 = vadd.f32 %v79_v28, %v43_v23 }
  0x15   :  { %5937 = vmatprep.subr.bf16.mxu0 %v5936_v10  ;;  %5960 = vmatprep.subr.bf16.mxu1 %v5936_v10  ;;  %v84_v32 = vld [vmem:[%s13467_s1 + $0xf8] sm:$0xff]  ;;  %v47_v37 = vld [vmem:[%s13466_s0 + $0xf0] sm:$0xff]  ;;  %v81_v38 = vld [vmem:[%s13467_s1 + $0xe0] sm:$0xff]  ;;  %v5944_v40 = vpack.c.bf16 %v116_v26, %v114_v25  ;;  %v118_v41 = vadd.f32 %v82_v31, %v46_v29 }
  0x16   :  { %v83_v39 = vld [vmem:[%s13467_s1 + $0xf0] sm:$0xff]  ;;  %v120_v42 = vadd.f32 %v84_v32, %v48_v30  ;;  %v50_v43 = vld [vmem:[%s13466_s0 + $0x108] sm:$0xff]  ;;  %v52_v46 = vld [vmem:[%s13466_s0 + $0x118] sm:$0xff]  ;;  %v5946_v49 = vpack.c.bf16 %v115_v36, %v113_v35  ;;  %v117_v50 = vadd.f32 %v81_v38, %v45_v33 }
  0x17   :  { %v126_v44 = vld [vmem:[%s13468_s2 + $0x8] sm:$0xff]  ;;  %v88_v48 = vld [vmem:[%s13467_s1 + $0x118] sm:$0xff]  ;;  %v119_v51 = vadd.f32 %v83_v39, %v47_v37  ;;  %v49_v52 = vld [vmem:[%s13466_s0 + $0x100] sm:$0xff] }
  0x18   :  { %5939 = vmatpush1.bf16.msra.mxu0 %v5938_v19  ;;  %5969 = vmatpush1.bf16.msra.mxu1 %v5938_v19  ;;  %v234_v45 = vld [vmem:[%s13468_s2 + $0x368] sm:$0xff]  ;;  %v5948_v53 = vpack.c.bf16 %v120_v42, %v118_v41  ;;  %v124_v55 = vadd.f32 %v88_v48, %v52_v46  ;;  %v51_v56 = vld [vmem:[%s13466_s0 + $0x110] sm:$0xff]  ;;  %v85_v57 = vld [vmem:[%s13467_s1 + $0x100] sm:$0xff] }
  0x19   :  { %5941 = vmatprep.subr.bf16.mxu0 %v5940_v24  ;;  %5961 = vmatprep.subr.bf16.mxu1 %v5940_v24  ;;  %v86_v47 = vld [vmem:[%s13467_s1 + $0x108] sm:$0xff]  ;;  %v87_v58 = vld [vmem:[%s13467_s1 + $0x110] sm:$0xff]  ;;  %v5950_v59 = vpack.c.bf16 %v119_v51, %v117_v50  ;;  %v121_v60 = vadd.f32 %v85_v57, %v49_v52  ;;  %v125_v0 = vld [vmem:[%s13468_s2] sm:$0xff] }
  0x1a   :  { %5812 = vmatprep.mubr.msk.f32.mxu0 %vm341_vm0, %v126_v44  ;;  %5866 = vmatprep.mubr.msk.f32.mxu1 %vm341_vm0, %v234_v45  ;;  %v122_v54 = vadd.f32 %v86_v47, %v50_v43  ;;  %v123_v61 = vadd.f32 %v87_v58, %v51_v56  ;;  %v233_v1 = vld [vmem:[%s13468_s2 + $0x360] sm:$0xff]  ;;  %v128_v2 = vld [vmem:[%s13468_s2 + $0x18] sm:$0xff]  ;;  %v127_v4 = vld [vmem:[%s13468_s2 + $0x10] sm:$0xff] }
  0x1b   :  { %v236_v3 = vld [vmem:[%s13468_s2 + $0x378] sm:$0xff]  ;;  %v235_v5 = vld [vmem:[%s13468_s2 + $0x370] sm:$0xff]  ;;  %v130_v6 = vld [vmem:[%s13468_s2 + $0x28] sm:$0xff] }
  0x1c   :  { %5943 = vmatpush1.bf16.msra.mxu0 %v5942_v34  ;;  %5970 = vmatpush1.bf16.msra.mxu1 %v5942_v34  ;;  %v5952_v62 = vpack.c.bf16 %v124_v55, %v122_v54  ;;  %v5954_v63 = vpack.c.bf16 %v123_v61, %v121_v60  ;;  %v238_v7 = vld [vmem:[%s13468_s2 + $0x388] sm:$0xff]  ;;  %v129_v8 = vld [vmem:[%s13468_s2 + $0x20] sm:$0xff]  ;;  %v132_v10 = vld [vmem:[%s13468_s2 + $0x38] sm:$0xff] }
  0x1d   :  { %5945 = vmatprep.subr.bf16.mxu0 %v5944_v40  ;;  %5962 = vmatprep.subr.bf16.mxu1 %v5944_v40  ;;  %v237_v9 = vld [vmem:[%s13468_s2 + $0x380] sm:$0xff]  ;;  %v240_v11 = vld [vmem:[%s13468_s2 + $0x398] sm:$0xff]  ;;  %v131_v12 = vld [vmem:[%s13468_s2 + $0x30] sm:$0xff] }
  0x1e   :  { %v239_v13 = vld [vmem:[%s13468_s2 + $0x390] sm:$0xff]  ;;  %v134_v14 = vld [vmem:[%s13468_s2 + $0x48] sm:$0xff]  ;;  %v133_v16 = vld [vmem:[%s13468_s2 + $0x40] sm:$0xff] }
  0x1f   :  { %v242_v15 = vld [vmem:[%s13468_s2 + $0x3a8] sm:$0xff]  ;;  %v241_v17 = vld [vmem:[%s13468_s2 + $0x3a0] sm:$0xff]  ;;  %v136_v18 = vld [vmem:[%s13468_s2 + $0x58] sm:$0xff] }
  0x20   :  { %5947 = vmatpush1.bf16.msra.mxu0 %v5946_v49  ;;  %5971 = vmatpush1.bf16.msra.mxu1 %v5946_v49  ;;  %v244_v19 = vld [vmem:[%s13468_s2 + $0x3b8] sm:$0xff]  ;;  %v135_v20 = vld [vmem:[%s13468_s2 + $0x50] sm:$0xff]  ;;  %v138_v22 = vld [vmem:[%s13468_s2 + $0x68] sm:$0xff] }
  0x21   :  { %5949 = vmatprep.subr.bf16.mxu0 %v5948_v53  ;;  %5963 = vmatprep.subr.bf16.mxu1 %v5948_v53  ;;  %v243_v21 = vld [vmem:[%s13468_s2 + $0x3b0] sm:$0xff]  ;;  %v246_v23 = vld [vmem:[%s13468_s2 + $0x3c8] sm:$0xff]  ;;  %v137_v24 = vld [vmem:[%s13468_s2 + $0x60] sm:$0xff] }
  0x22   :  { %v245_v25 = vld [vmem:[%s13468_s2 + $0x3c0] sm:$0xff]  ;;  %v140_v26 = vld [vmem:[%s13468_s2 + $0x78] sm:$0xff]  ;;  %v139_v28 = vld [vmem:[%s13468_s2 + $0x70] sm:$0xff] }
  0x23   :  { %v248_v27 = vld [vmem:[%s13468_s2 + $0x3d8] sm:$0xff]  ;;  %v247_v29 = vld [vmem:[%s13468_s2 + $0x3d0] sm:$0xff]  ;;  %v142_v30 = vld [vmem:[%s13468_s2 + $0x88] sm:$0xff] }
  0x24   :  { %5951 = vmatpush1.bf16.msra.mxu0 %v5950_v59  ;;  %5972 = vmatpush1.bf16.msra.mxu1 %v5950_v59  ;;  %v250_v31 = vld [vmem:[%s13468_s2 + $0x3e8] sm:$0xff]  ;;  %v141_v32 = vld [vmem:[%s13468_s2 + $0x80] sm:$0xff]  ;;  %v144_v34 = vld [vmem:[%s13468_s2 + $0x98] sm:$0xff] }
  0x25   :  { %5953 = vmatprep.subr.bf16.mxu0 %v5952_v62  ;;  %5964 = vmatprep.subr.bf16.mxu1 %v5952_v62  ;;  %v249_v33 = vld [vmem:[%s13468_s2 + $0x3e0] sm:$0xff]  ;;  %v252_v35 = vld [vmem:[%s13468_s2 + $0x3f8] sm:$0xff]  ;;  %v143_v36 = vld [vmem:[%s13468_s2 + $0x90] sm:$0xff] }
  0x26   :  { %v251_v37 = vld [vmem:[%s13468_s2 + $0x3f0] sm:$0xff]  ;;  %v146_v38 = vld [vmem:[%s13468_s2 + $0xa8] sm:$0xff]  ;;  %v145_v40 = vld [vmem:[%s13468_s2 + $0xa0] sm:$0xff] }
  0x27   :  { %v254_v39 = vld [vmem:[%s13468_s2 + $0x408] sm:$0xff]  ;;  %v253_v41 = vld [vmem:[%s13468_s2 + $0x400] sm:$0xff]  ;;  %v148_v42 = vld [vmem:[%s13468_s2 + $0xb8] sm:$0xff] }
  0x28   :  { %5955 = vmatpush1.bf16.msra.mxu0 %v5954_v63  ;;  %5973 = vmatpush1.bf16.msra.mxu1 %v5954_v63  ;;  %v256_v43 = vld [vmem:[%s13468_s2 + $0x418] sm:$0xff]  ;;  %v147_v44 = vld [vmem:[%s13468_s2 + $0xb0] sm:$0xff]  ;;  %v150_v46 = vld [vmem:[%s13468_s2 + $0xc8] sm:$0xff] }
  0x29   :  { %v255_v45 = vld [vmem:[%s13468_s2 + $0x410] sm:$0xff]  ;;  %v258_v47 = vld [vmem:[%s13468_s2 + $0x428] sm:$0xff]  ;;  %v149_v48 = vld [vmem:[%s13468_s2 + $0xc0] sm:$0xff] }
  0x2a   :  { %v257_v49 = vld [vmem:[%s13468_s2 + $0x420] sm:$0xff]  ;;  %v152_v50 = vld [vmem:[%s13468_s2 + $0xd8] sm:$0xff]  ;;  %v151_v52 = vld [vmem:[%s13468_s2 + $0xd0] sm:$0xff] }
  0x2b   :  { %731 = vmatmul.mubr.f32.vlgmr.msra.gmra.mrb[0].mxu0 %v125_v0  ;;  %1055 = vmatmul.mubr.f32.vlgmr.msra.gmra.mrb[0].mxu1 %v233_v1  ;;  %v260_v51 = vld [vmem:[%s13468_s2 + $0x438] sm:$0xff]  ;;  %v259_v53 = vld [vmem:[%s13468_s2 + $0x430] sm:$0xff]  ;;  %v154_v54 = vld [vmem:[%s13468_s2 + $0xe8] sm:$0xff] }
  0x2c   :  { %5813 = vmatprep.mubr.msk.f32.mxu0 %vm341_vm0, %v128_v2  ;;  %5867 = vmatprep.mubr.msk.f32.mxu1 %vm341_vm0, %v236_v3  ;;  %v262_v55 = vld [vmem:[%s13468_s2 + $0x448] sm:$0xff]  ;;  %v153_v56 = vld [vmem:[%s13468_s2 + $0xe0] sm:$0xff]  ;;  %v156_v58 = vld [vmem:[%s13468_s2 + $0xf8] sm:$0xff] }
  0x2d   :  { %v261_v57 = vld [vmem:[%s13468_s2 + $0x440] sm:$0xff]  ;;  %v264_v59 = vld [vmem:[%s13468_s2 + $0x458] sm:$0xff]  ;;  %v155_v60 = vld [vmem:[%s13468_s2 + $0xf0] sm:$0xff] }
  0x2e   :  { %v263_v61 = vld [vmem:[%s13468_s2 + $0x450] sm:$0xff]  ;;  %v158_v62 = vld [vmem:[%s13468_s2 + $0x108] sm:$0xff]  ;;  %v157_v0 = vld [vmem:[%s13468_s2 + $0x100] sm:$0xff] }
  0x2f   :  { %737 = vmatmul.mubr.f32.gmra.mrb[2].mxu0 %v127_v4  ;;  %1061 = vmatmul.mubr.f32.gmra.mrb[2].mxu1 %v235_v5  ;;  %v266_v63 = vld [vmem:[%s13468_s2 + $0x468] sm:$0xff]  ;;  %v265_v1 = vld [vmem:[%s13468_s2 + $0x460] sm:$0xff]  ;;  %v160_v2 = vld [vmem:[%s13468_s2 + $0x118] sm:$0xff] }
  0x30   :  { %5814 = vmatprep.mubr.msk.f32.mxu0 %vm341_vm0, %v130_v6  ;;  %5868 = vmatprep.mubr.msk.f32.mxu1 %vm341_vm0, %v238_v7  ;;  %v268_v3 = vld [vmem:[%s13468_s2 + $0x478] sm:$0xff]  ;;  %v159_v4 = vld [vmem:[%s13468_s2 + $0x110] sm:$0xff]  ;;  %v162_v6 = vld [vmem:[%s13468_s2 + $0x128] sm:$0xff] }
  0x31   :  { %v267_v5 = vld [vmem:[%s13468_s2 + $0x470] sm:$0xff]  ;;  %v270_v7 = vld [vmem:[%s13468_s2 + $0x488] sm:$0xff] }
  0x33   :  { %743 = vmatmul.mubr.f32.gmra.mrb[4].mxu0 %v129_v8  ;;  %1067 = vmatmul.mubr.f32.gmra.mrb[4].mxu1 %v237_v9  ;;  %v161_v8 = vld [vmem:[%s13468_s2 + $0x120] sm:$0xff] }
  0x34   :  { %5815 = vmatprep.mubr.msk.f32.mxu0 %vm341_vm0, %v132_v10  ;;  %5869 = vmatprep.mubr.msk.f32.mxu1 %vm341_vm0, %v240_v11  ;;  %v269_v9 = vld [vmem:[%s13468_s2 + $0x480] sm:$0xff]  ;;  %v164_v10 = vld [vmem:[%s13468_s2 + $0x138] sm:$0xff] }
  0x35   :  { %v272_v11 = vld [vmem:[%s13468_s2 + $0x498] sm:$0xff] }
  0x37   :  { %749 = vmatmul.mubr.f32.gmra.mrb[6].mxu0 %v131_v12  ;;  %1073 = vmatmul.mubr.f32.gmra.mrb[6].mxu1 %v239_v13  ;;  %v163_v12 = vld [vmem:[%s13468_s2 + $0x130] sm:$0xff] }
  0x38   :  { %5816 = vmatprep.mubr.msk.f32.mxu0 %vm341_vm0, %v134_v14  ;;  %5870 = vmatprep.mubr.msk.f32.mxu1 %vm341_vm0, %v242_v15  ;;  %v271_v13 = vld [vmem:[%s13468_s2 + $0x490] sm:$0xff]  ;;  %v166_v14 = vld [vmem:[%s13468_s2 + $0x148] sm:$0xff] }
  0x39   :  { %v274_v15 = vld [vmem:[%s13468_s2 + $0x4a8] sm:$0xff] }
  0x3b   :  { %755 = vmatmul.mubr.f32.gmra.mrb[8].mxu0 %v133_v16  ;;  %1079 = vmatmul.mubr.f32.gmra.mrb[8].mxu1 %v241_v17  ;;  %v165_v16 = vld [vmem:[%s13468_s2 + $0x140] sm:$0xff] }
  0x3c   :  { %5817 = vmatprep.mubr.msk.f32.mxu0 %vm341_vm0, %v136_v18  ;;  %5871 = vmatprep.mubr.msk.f32.mxu1 %vm341_vm0, %v244_v19  ;;  %v273_v17 = vld [vmem:[%s13468_s2 + $0x4a0] sm:$0xff]  ;;  %v168_v18 = vld [vmem:[%s13468_s2 + $0x158] sm:$0xff] }
  0x3d   :  { %v276_v19 = vld [vmem:[%s13468_s2 + $0x4b8] sm:$0xff] }
  0x3f   :  { %761 = vmatmul.mubr.f32.gmra.mrb[10].mxu0 %v135_v20  ;;  %1085 = vmatmul.mubr.f32.gmra.mrb[10].mxu1 %v243_v21  ;;  %v167_v20 = vld [vmem:[%s13468_s2 + $0x150] sm:$0xff] }
  0x40   :  { %5818 = vmatprep.mubr.msk.f32.mxu0 %vm341_vm0, %v138_v22  ;;  %5872 = vmatprep.mubr.msk.f32.mxu1 %vm341_vm0, %v246_v23  ;;  %v275_v21 = vld [vmem:[%s13468_s2 + $0x4b0] sm:$0xff]  ;;  %v170_v22 = vld [vmem:[%s13468_s2 + $0x168] sm:$0xff] }
  0x41   :  { %v278_v23 = vld [vmem:[%s13468_s2 + $0x4c8] sm:$0xff] }
  0x43   :  { %767 = vmatmul.mubr.f32.gmra.mrb[12].mxu0 %v137_v24  ;;  %1091 = vmatmul.mubr.f32.gmra.mrb[12].mxu1 %v245_v25  ;;  %v169_v24 = vld [vmem:[%s13468_s2 + $0x160] sm:$0xff] }
  0x44   :  { %5819 = vmatprep.mubr.msk.f32.mxu0 %vm341_vm0, %v140_v26  ;;  %5873 = vmatprep.mubr.msk.f32.mxu1 %vm341_vm0, %v248_v27  ;;  %v277_v25 = vld [vmem:[%s13468_s2 + $0x4c0] sm:$0xff]  ;;  %v172_v26 = vld [vmem:[%s13468_s2 + $0x178] sm:$0xff] }
  0x45   :  { %v280_v27 = vld [vmem:[%s13468_s2 + $0x4d8] sm:$0xff] }
  0x47   :  { %773 = vmatmul.mubr.f32.gmra.mrb[14].mxu0 %v139_v28  ;;  %1097 = vmatmul.mubr.f32.gmra.mrb[14].mxu1 %v247_v29  ;;  %v171_v28 = vld [vmem:[%s13468_s2 + $0x170] sm:$0xff] }
  0x48   :  { %5820 = vmatprep.mubr.msk.f32.mxu0 %vm341_vm0, %v142_v30  ;;  %5874 = vmatprep.mubr.msk.f32.mxu1 %vm341_vm0, %v250_v31  ;;  %v279_v29 = vld [vmem:[%s13468_s2 + $0x4d0] sm:$0xff]  ;;  %v174_v30 = vld [vmem:[%s13468_s2 + $0x188] sm:$0xff] }
  0x49   :  { %v282_v31 = vld [vmem:[%s13468_s2 + $0x4e8] sm:$0xff] }
  0x4b   :  { %779 = vmatmul.mubr.f32.gmra.mrb[16].mxu0 %v141_v32  ;;  %1103 = vmatmul.mubr.f32.gmra.mrb[16].mxu1 %v249_v33  ;;  %v173_v32 = vld [vmem:[%s13468_s2 + $0x180] sm:$0xff] }
  0x4c   :  { %5821 = vmatprep.mubr.msk.f32.mxu0 %vm341_vm0, %v144_v34  ;;  %5875 = vmatprep.mubr.msk.f32.mxu1 %vm341_vm0, %v252_v35  ;;  %v281_v33 = vld [vmem:[%s13468_s2 + $0x4e0] sm:$0xff]  ;;  %v176_v34 = vld [vmem:[%s13468_s2 + $0x198] sm:$0xff] }
  0x4d   :  { %v284_v35 = vld [vmem:[%s13468_s2 + $0x4f8] sm:$0xff] }
  0x4f   :  { %785 = vmatmul.mubr.f32.gmra.mrb[18].mxu0 %v143_v36  ;;  %1109 = vmatmul.mubr.f32.gmra.mrb[18].mxu1 %v251_v37  ;;  %v175_v36 = vld [vmem:[%s13468_s2 + $0x190] sm:$0xff] }
  0x50   :  { %5822 = vmatprep.mubr.msk.f32.mxu0 %vm341_vm0, %v146_v38  ;;  %5876 = vmatprep.mubr.msk.f32.mxu1 %vm341_vm0, %v254_v39  ;;  %v283_v37 = vld [vmem:[%s13468_s2 + $0x4f0] sm:$0xff]  ;;  %v178_v38 = vld [vmem:[%s13468_s2 + $0x1a8] sm:$0xff] }
  0x51   :  { %v286_v39 = vld [vmem:[%s13468_s2 + $0x508] sm:$0xff] }
  0x53   :  { %791 = vmatmul.mubr.f32.gmra.mrb[20].mxu0 %v145_v40  ;;  %1115 = vmatmul.mubr.f32.gmra.mrb[20].mxu1 %v253_v41  ;;  %v177_v40 = vld [vmem:[%s13468_s2 + $0x1a0] sm:$0xff] }
  0x54   :  { %5823 = vmatprep.mubr.msk.f32.mxu0 %vm341_vm0, %v148_v42  ;;  %5877 = vmatprep.mubr.msk.f32.mxu1 %vm341_vm0, %v256_v43  ;;  %v285_v41 = vld [vmem:[%s13468_s2 + $0x500] sm:$0xff]  ;;  %v180_v42 = vld [vmem:[%s13468_s2 + $0x1b8] sm:$0xff] }
  0x55   :  { %v288_v43 = vld [vmem:[%s13468_s2 + $0x518] sm:$0xff] }
  0x57   :  { %797 = vmatmul.mubr.f32.gmra.mrb[22].mxu0 %v147_v44  ;;  %1121 = vmatmul.mubr.f32.gmra.mrb[22].mxu1 %v255_v45  ;;  %v179_v44 = vld [vmem:[%s13468_s2 + $0x1b0] sm:$0xff] }
  0x58   :  { %5824 = vmatprep.mubr.msk.f32.mxu0 %vm341_vm0, %v150_v46  ;;  %5878 = vmatprep.mubr.msk.f32.mxu1 %vm341_vm0, %v258_v47  ;;  %v287_v45 = vld [vmem:[%s13468_s2 + $0x510] sm:$0xff]  ;;  %v182_v46 = vld [vmem:[%s13468_s2 + $0x1c8] sm:$0xff] }
  0x59   :  { %v290_v47 = vld [vmem:[%s13468_s2 + $0x528] sm:$0xff] }
  0x5b   :  { %803 = vmatmul.mubr.f32.gmra.mrb[24].mxu0 %v149_v48  ;;  %1127 = vmatmul.mubr.f32.gmra.mrb[24].mxu1 %v257_v49  ;;  %v181_v48 = vld [vmem:[%s13468_s2 + $0x1c0] sm:$0xff] }
  0x5c   :  { %5825 = vmatprep.mubr.msk.f32.mxu0 %vm341_vm0, %v152_v50  ;;  %5879 = vmatprep.mubr.msk.f32.mxu1 %vm341_vm0, %v260_v51  ;;  %v289_v49 = vld [vmem:[%s13468_s2 + $0x520] sm:$0xff]  ;;  %v184_v50 = vld [vmem:[%s13468_s2 + $0x1d8] sm:$0xff] }
  0x5d   :  { %v292_v51 = vld [vmem:[%s13468_s2 + $0x538] sm:$0xff] }
  0x5f   :  { %809 = vmatmul.mubr.f32.gmra.mrb[26].mxu0 %v151_v52  ;;  %1133 = vmatmul.mubr.f32.gmra.mrb[26].mxu1 %v259_v53  ;;  %v183_v52 = vld [vmem:[%s13468_s2 + $0x1d0] sm:$0xff] }
  0x60   :  { %5826 = vmatprep.mubr.msk.f32.mxu0 %vm341_vm0, %v154_v54  ;;  %5880 = vmatprep.mubr.msk.f32.mxu1 %vm341_vm0, %v262_v55  ;;  %v291_v53 = vld [vmem:[%s13468_s2 + $0x530] sm:$0xff]  ;;  %v186_v54 = vld [vmem:[%s13468_s2 + $0x1e8] sm:$0xff] }
  0x61   :  { %v294_v55 = vld [vmem:[%s13468_s2 + $0x548] sm:$0xff] }
  0x63   :  { %815 = vmatmul.mubr.f32.gmra.mrb[28].mxu0 %v153_v56  ;;  %1139 = vmatmul.mubr.f32.gmra.mrb[28].mxu1 %v261_v57  ;;  %v185_v56 = vld [vmem:[%s13468_s2 + $0x1e0] sm:$0xff] }
  0x64   :  { %5827 = vmatprep.mubr.msk.f32.mxu0 %vm341_vm0, %v156_v58  ;;  %5881 = vmatprep.mubr.msk.f32.mxu1 %vm341_vm0, %v264_v59  ;;  %v293_v57 = vld [vmem:[%s13468_s2 + $0x540] sm:$0xff]  ;;  %v188_v58 = vld [vmem:[%s13468_s2 + $0x1f8] sm:$0xff] }
  0x65   :  { %v296_v59 = vld [vmem:[%s13468_s2 + $0x558] sm:$0xff] }
  0x67   :  { %821 = vmatmul.mubr.f32.gmra.mrb[30].mxu0 %v155_v60  ;;  %1145 = vmatmul.mubr.f32.gmra.mrb[30].mxu1 %v263_v61  ;;  %v187_v60 = vld [vmem:[%s13468_s2 + $0x1f0] sm:$0xff] }
  0x68   :  { %5828 = vmatprep.mubr.msk.f32.mxu0 %vm341_vm0, %v158_v62  ;;  %5882 = vmatprep.mubr.msk.f32.mxu1 %vm341_vm0, %v266_v63  ;;  %v295_v61 = vld [vmem:[%s13468_s2 + $0x550] sm:$0xff]  ;;  %v190_v62 = vld [vmem:[%s13468_s2 + $0x208] sm:$0xff]  ;;  %v189_v63 = vld [vmem:[%s13468_s2 + $0x200] sm:$0xff] }
  0x6b   :  { %827 = vmatmul.mubr.f32.gmra.mrb[32].mxu0 %v157_v0  ;;  %1151 = vmatmul.mubr.f32.gmra.mrb[32].mxu1 %v265_v1  ;;  %v192_v0 = vld [vmem:[%s13468_s2 + $0x218] sm:$0xff]  ;;  %v298_v1 = vld [vmem:[%s13468_s2 + $0x568] sm:$0xff] }
  0x6c   :  { %5829 = vmatprep.mubr.msk.f32.mxu0 %vm341_vm0, %v160_v2  ;;  %5883 = vmatprep.mubr.msk.f32.mxu1 %vm341_vm0, %v268_v3  ;;  %v191_v2 = vld [vmem:[%s13468_s2 + $0x210] sm:$0xff]  ;;  %v297_v3 = vld [vmem:[%s13468_s2 + $0x560] sm:$0xff] }
  0x6f   :  { %833 = vmatmul.mubr.f32.gmra.mrb[34].mxu0 %v159_v4  ;;  %1157 = vmatmul.mubr.f32.gmra.mrb[34].mxu1 %v267_v5  ;;  %v300_v4 = vld [vmem:[%s13468_s2 + $0x578] sm:$0xff]  ;;  %v299_v5 = vld [vmem:[%s13468_s2 + $0x570] sm:$0xff] }
  0x70   :  { %5830 = vmatprep.mubr.msk.f32.mxu0 %vm341_vm0, %v162_v6  ;;  %5884 = vmatprep.mubr.msk.f32.mxu1 %vm341_vm0, %v270_v7  ;;  %v194_v6 = vld [vmem:[%s13468_s2 + $0x228] sm:$0xff]  ;;  %v193_v7 = vld [vmem:[%s13468_s2 + $0x220] sm:$0xff] }
  0x73   :  { %839 = vmatmul.mubr.f32.gmra.mrb[36].mxu0 %v161_v8  ;;  %1163 = vmatmul.mubr.f32.gmra.mrb[36].mxu1 %v269_v9  ;;  %v196_v8 = vld [vmem:[%s13468_s2 + $0x238] sm:$0xff]  ;;  %v302_v9 = vld [vmem:[%s13468_s2 + $0x588] sm:$0xff] }
  0x74   :  { %5831 = vmatprep.mubr.msk.f32.mxu0 %vm341_vm0, %v164_v10  ;;  %5885 = vmatprep.mubr.msk.f32.mxu1 %vm341_vm0, %v272_v11  ;;  %v195_v10 = vld [vmem:[%s13468_s2 + $0x230] sm:$0xff]  ;;  %v301_v11 = vld [vmem:[%s13468_s2 + $0x580] sm:$0xff] }
  0x77   :  { %845 = vmatmul.mubr.f32.gmra.mrb[38].mxu0 %v163_v12  ;;  %1169 = vmatmul.mubr.f32.gmra.mrb[38].mxu1 %v271_v13  ;;  %v304_v12 = vld [vmem:[%s13468_s2 + $0x598] sm:$0xff]  ;;  %v303_v13 = vld [vmem:[%s13468_s2 + $0x590] sm:$0xff] }
  0x78   :  { %5832 = vmatprep.mubr.msk.f32.mxu0 %vm341_vm0, %v166_v14  ;;  %5886 = vmatprep.mubr.msk.f32.mxu1 %vm341_vm0, %v274_v15  ;;  %v198_v14 = vld [vmem:[%s13468_s2 + $0x248] sm:$0xff]  ;;  %v197_v15 = vld [vmem:[%s13468_s2 + $0x240] sm:$0xff] }
  0x7b   :  { %851 = vmatmul.mubr.f32.gmra.mrb[40].mxu0 %v165_v16  ;;  %1175 = vmatmul.mubr.f32.gmra.mrb[40].mxu1 %v273_v17  ;;  %v200_v16 = vld [vmem:[%s13468_s2 + $0x258] sm:$0xff]  ;;  %v306_v17 = vld [vmem:[%s13468_s2 + $0x5a8] sm:$0xff] }
  0x7c   :  { %5833 = vmatprep.mubr.msk.f32.mxu0 %vm341_vm0, %v168_v18  ;;  %5887 = vmatprep.mubr.msk.f32.mxu1 %vm341_vm0, %v276_v19  ;;  %v199_v18 = vld [vmem:[%s13468_s2 + $0x250] sm:$0xff]  ;;  %v305_v19 = vld [vmem:[%s13468_s2 + $0x5a0] sm:$0xff] }
  0x7f   :  { %857 = vmatmul.mubr.f32.gmra.mrb[42].mxu0 %v167_v20  ;;  %1181 = vmatmul.mubr.f32.gmra.mrb[42].mxu1 %v275_v21  ;;  %v308_v20 = vld [vmem:[%s13468_s2 + $0x5b8] sm:$0xff]  ;;  %v307_v21 = vld [vmem:[%s13468_s2 + $0x5b0] sm:$0xff] }
  0x80   :  { %5834 = vmatprep.mubr.msk.f32.mxu0 %vm341_vm0, %v170_v22  ;;  %5888 = vmatprep.mubr.msk.f32.mxu1 %vm341_vm0, %v278_v23  ;;  %v202_v22 = vld [vmem:[%s13468_s2 + $0x268] sm:$0xff]  ;;  %v201_v23 = vld [vmem:[%s13468_s2 + $0x260] sm:$0xff] }
  0x83   :  { %863 = vmatmul.mubr.f32.gmra.mrb[44].mxu0 %v169_v24  ;;  %1187 = vmatmul.mubr.f32.gmra.mrb[44].mxu1 %v277_v25  ;;  %v204_v24 = vld [vmem:[%s13468_s2 + $0x278] sm:$0xff]  ;;  %v310_v25 = vld [vmem:[%s13468_s2 + $0x5c8] sm:$0xff] }
  0x84   :  { %5835 = vmatprep.mubr.msk.f32.mxu0 %vm341_vm0, %v172_v26  ;;  %5889 = vmatprep.mubr.msk.f32.mxu1 %vm341_vm0, %v280_v27  ;;  %v203_v26 = vld [vmem:[%s13468_s2 + $0x270] sm:$0xff]  ;;  %v309_v27 = vld [vmem:[%s13468_s2 + $0x5c0] sm:$0xff] }
  0x87   :  { %869 = vmatmul.mubr.f32.gmra.mrb[46].mxu0 %v171_v28  ;;  %1193 = vmatmul.mubr.f32.gmra.mrb[46].mxu1 %v279_v29  ;;  %v312_v28 = vld [vmem:[%s13468_s2 + $0x5d8] sm:$0xff]  ;;  %v311_v29 = vld [vmem:[%s13468_s2 + $0x5d0] sm:$0xff] }
  0x88   :  { %5836 = vmatprep.mubr.msk.f32.mxu0 %vm341_vm0, %v174_v30  ;;  %5890 = vmatprep.mubr.msk.f32.mxu1 %vm341_vm0, %v282_v31  ;;  %v206_v30 = vld [vmem:[%s13468_s2 + $0x288] sm:$0xff]  ;;  %v205_v31 = vld [vmem:[%s13468_s2 + $0x280] sm:$0xff] }
  0x8b   :  { %875 = vmatmul.mubr.f32.gmra.mrb[48].mxu0 %v173_v32  ;;  %1199 = vmatmul.mubr.f32.gmra.mrb[48].mxu1 %v281_v33  ;;  %v208_v32 = vld [vmem:[%s13468_s2 + $0x298] sm:$0xff]  ;;  %v314_v33 = vld [vmem:[%s13468_s2 + $0x5e8] sm:$0xff] }
  0x8c   :  { %5837 = vmatprep.mubr.msk.f32.mxu0 %vm341_vm0, %v176_v34  ;;  %5891 = vmatprep.mubr.msk.f32.mxu1 %vm341_vm0, %v284_v35  ;;  %v207_v34 = vld [vmem:[%s13468_s2 + $0x290] sm:$0xff]  ;;  %v313_v35 = vld [vmem:[%s13468_s2 + $0x5e0] sm:$0xff] }
  0x8f   :  { %881 = vmatmul.mubr.f32.gmra.mrb[50].mxu0 %v175_v36  ;;  %1205 = vmatmul.mubr.f32.gmra.mrb[50].mxu1 %v283_v37  ;;  %v316_v36 = vld [vmem:[%s13468_s2 + $0x5f8] sm:$0xff]  ;;  %v315_v37 = vld [vmem:[%s13468_s2 + $0x5f0] sm:$0xff] }
  0x90   :  { %5838 = vmatprep.mubr.msk.f32.mxu0 %vm341_vm0, %v178_v38  ;;  %5892 = vmatprep.mubr.msk.f32.mxu1 %vm341_vm0, %v286_v39 }
  0x93   :  { %887 = vmatmul.mubr.f32.gmra.mrb[52].mxu0 %v177_v40  ;;  %1211 = vmatmul.mubr.f32.gmra.mrb[52].mxu1 %v285_v41 }
  0x94   :  { %5839 = vmatprep.mubr.msk.f32.mxu0 %vm341_vm0, %v180_v42  ;;  %5893 = vmatprep.mubr.msk.f32.mxu1 %vm341_vm0, %v288_v43 }
  0x97   :  { %893 = vmatmul.mubr.f32.gmra.mrb[54].mxu0 %v179_v44  ;;  %1217 = vmatmul.mubr.f32.gmra.mrb[54].mxu1 %v287_v45 }
  0x98   :  { %5840 = vmatprep.mubr.msk.f32.mxu0 %vm341_vm0, %v182_v46  ;;  %5894 = vmatprep.mubr.msk.f32.mxu1 %vm341_vm0, %v290_v47 }
  0x9b   :  { %899 = vmatmul.mubr.f32.gmra.mrb[56].mxu0 %v181_v48  ;;  %1223 = vmatmul.mubr.f32.gmra.mrb[56].mxu1 %v289_v49 }
  0x9c   :  { %5841 = vmatprep.mubr.msk.f32.mxu0 %vm341_vm0, %v184_v50  ;;  %5895 = vmatprep.mubr.msk.f32.mxu1 %vm341_vm0, %v292_v51 }
  0x9f   :  { %905 = vmatmul.mubr.f32.gmra.mrb[58].mxu0 %v183_v52  ;;  %1229 = vmatmul.mubr.f32.gmra.mrb[58].mxu1 %v291_v53 }
  0xa0   :  { %5842 = vmatprep.mubr.msk.f32.mxu0 %vm341_vm0, %v186_v54  ;;  %5896 = vmatprep.mubr.msk.f32.mxu1 %vm341_vm0, %v294_v55 }
  0xa3   :  { %911 = vmatmul.mubr.f32.gmra.mrb[60].mxu0 %v185_v56  ;;  %1235 = vmatmul.mubr.f32.gmra.mrb[60].mxu1 %v293_v57 }
  0xa4   :  { %5843 = vmatprep.mubr.msk.f32.mxu0 %vm341_vm0, %v188_v58  ;;  %5897 = vmatprep.mubr.msk.f32.mxu1 %vm341_vm0, %v296_v59 }
  0xa7   :  { %917 = vmatmul.mubr.f32.gmra.mrb[62].mxu0 %v187_v60  ;;  %1241 = vmatmul.mubr.f32.gmra.mrb[62].mxu1 %v295_v61 }
  0xa8   :  { %5844 = vmatprep.mubr.msk.f32.mxu0 %vm341_vm0, %v190_v62  ;;  %5898 = vmatprep.mubr.msk.f32.mxu1 %vm341_vm0, %v298_v1 }
  0xab   :  { %923 = vmatmul.mubr.f32.gmra.mrb[64].mxu0 %v189_v63  ;;  %1247 = vmatmul.mubr.f32.gmra.mrb[64].mxu1 %v297_v3 }
  0xac   :  { %5845 = vmatprep.mubr.msk.f32.mxu0 %vm341_vm0, %v192_v0  ;;  %5899 = vmatprep.mubr.msk.f32.mxu1 %vm341_vm0, %v300_v4 }
  0xaf   :  { %929 = vmatmul.mubr.f32.gmra.mrb[66].mxu0 %v191_v2  ;;  %1253 = vmatmul.mubr.f32.gmra.mrb[66].mxu1 %v299_v5 }
  0xb0   :  { %5846 = vmatprep.mubr.msk.f32.mxu0 %vm341_vm0, %v194_v6  ;;  %5900 = vmatprep.mubr.msk.f32.mxu1 %vm341_vm0, %v302_v9 }
  0xb3   :  { %935 = vmatmul.mubr.f32.gmra.mrb[68].mxu0 %v193_v7  ;;  %1259 = vmatmul.mubr.f32.gmra.mrb[68].mxu1 %v301_v11 }
  0xb4   :  { %5847 = vmatprep.mubr.msk.f32.mxu0 %vm341_vm0, %v196_v8  ;;  %5901 = vmatprep.mubr.msk.f32.mxu1 %vm341_vm0, %v304_v12 }
  0xb7   :  { %941 = vmatmul.mubr.f32.gmra.mrb[70].mxu0 %v195_v10  ;;  %1265 = vmatmul.mubr.f32.gmra.mrb[70].mxu1 %v303_v13 }
  0xb8   :  { %5848 = vmatprep.mubr.msk.f32.mxu0 %vm341_vm0, %v198_v14  ;;  %5902 = vmatprep.mubr.msk.f32.mxu1 %vm341_vm0, %v306_v17 }
  0xbb   :  { %947 = vmatmul.mubr.f32.gmra.mrb[72].mxu0 %v197_v15  ;;  %1271 = vmatmul.mubr.f32.gmra.mrb[72].mxu1 %v305_v19 }
  0xbc   :  { %5849 = vmatprep.mubr.msk.f32.mxu0 %vm341_vm0, %v200_v16  ;;  %5903 = vmatprep.mubr.msk.f32.mxu1 %vm341_vm0, %v308_v20 }
  0xbf   :  { %953 = vmatmul.mubr.f32.gmra.mrb[74].mxu0 %v199_v18  ;;  %1277 = vmatmul.mubr.f32.gmra.mrb[74].mxu1 %v307_v21 }
  0xc0   :  { %5850 = vmatprep.mubr.msk.f32.mxu0 %vm341_vm0, %v202_v22  ;;  %5904 = vmatprep.mubr.msk.f32.mxu1 %vm341_vm0, %v310_v25 }
  0xc3   :  { %959 = vmatmul.mubr.f32.gmra.mrb[76].mxu0 %v201_v23  ;;  %1283 = vmatmul.mubr.f32.gmra.mrb[76].mxu1 %v309_v27 }
  0xc4   :  { %5851 = vmatprep.mubr.msk.f32.mxu0 %vm341_vm0, %v204_v24  ;;  %5905 = vmatprep.mubr.msk.f32.mxu1 %vm341_vm0, %v312_v28 }
  0xc7   :  { %965 = vmatmul.mubr.f32.gmra.mrb[78].mxu0 %v203_v26  ;;  %1289 = vmatmul.mubr.f32.gmra.mrb[78].mxu1 %v311_v29 }
  0xc8   :  { %5852 = vmatprep.mubr.msk.f32.mxu0 %vm341_vm0, %v206_v30  ;;  %5906 = vmatprep.mubr.msk.f32.mxu1 %vm341_vm0, %v314_v33 }
  0xcb   :  { %971 = vmatmul.mubr.f32.gmra.mrb[80].mxu0 %v205_v31  ;;  %1295 = vmatmul.mubr.f32.gmra.mrb[80].mxu1 %v313_v35 }
  0xcc   :  { %5853 = vmatprep.mubr.msk.f32.mxu0 %vm341_vm0, %v208_v32  ;;  %5907 = vmatprep.mubr.msk.f32.mxu1 %vm341_vm0, %v316_v36 }
  0xcf   :  { %977 = vmatmul.mubr.f32.gmra.mrb[82].mxu0 %v207_v34  ;;  %1301 = vmatmul.mubr.f32.gmra.mrb[82].mxu1 %v315_v37 }
  0xfe   :  { %v7137_v38 = vpop.f32.mrb[0].mxu0  ;;  %v7139_v39 = vpop.f32.mrb[0].mxu1 }
  0xff   :  { %13893 = vst [vmem:[#allocation2_spill] sm:$0xff] %v7137_v38  ;;  %13894 = vst [vmem:[#allocation3_spill] sm:$0xff] %v7139_v39  ;;  %v7141_v40 = vpop.f32.mrb[1].mxu0  ;;  %v7143_v41 = vpop.f32.mrb[1].mxu1  ;;  %v1920_v42 = vmul.f32 %v7137_v38, %v7137_v38  ;;  %v2028_v49 = vmul.f32 %v7139_v39, %v7139_v39 }
 0x100   :  { %13895 = vst [vmem:[#allocation4_spill] sm:$0xff] %v7141_v40  ;;  %13896 = vst [vmem:[#allocation5_spill] sm:$0xff] %v7143_v41  ;;  %v1921_v43 = vmul.f32 %v7141_v40, %v7141_v40  ;;  %v2029_v44 = vmul.f32 %v7143_v41, %v7143_v41  ;;  %v1380_v45 = vsel %vm1379_vm1, %v7141_v40, 0.0  ;;  %v1596_v46 = vsel %vm1379_vm1, %v7143_v41, 0.0 }
 0x101   :  { %v1381_v47 = vadd.f32 %v1380_v45, %v7137_v38  ;;  %v1597_v48 = vadd.f32 %v1596_v46, %v7139_v39 }
 0x102   :  { %v7159_v50 = vpop.f32.mrb[2].mxu0  ;;  %v7161_v51 = vpop.f32.mrb[2].mxu1  ;;  %v2136_v52 = vsel %vm1379_vm1, %v1921_v43, 0.0  ;;  %v2352_v53 = vsel %vm1379_vm1, %v2029_v44, 0.0 }
 0x103   :  { %13897 = vst [vmem:[#allocation6_spill] sm:$0xff] %v7159_v50  ;;  %13898 = vst [vmem:[#allocation7_spill] sm:$0xff] %v7161_v51  ;;  %v7165_v54 = vpop.f32.mrb[3].mxu1  ;;  %1382 = vadd.xlane.f32.xlu0 %v1381_v47  ;;  %v7167_v55 = vpop.f32.mrb[3].mxu0  ;;  %v2137_v56 = vadd.f32 %v2136_v52, %v1920_v42  ;;  %v1922_v57 = vmul.f32 %v7159_v50, %v7159_v50  ;;  %v2353_v58 = vadd.f32 %v2352_v53, %v2028_v49 }
 0x104   :  { %13899 = vst [vmem:[#allocation8_spill] sm:$0xff] %v7165_v54  ;;  %13900 = vst [vmem:[#allocation9_spill] sm:$0xff] %v7167_v55  ;;  %v2031_v59 = vmul.f32 %v7165_v54, %v7165_v54  ;;  %v1923_v60 = vmul.f32 %v7167_v55, %v7167_v55  ;;  %v1600_v61 = vsel %vm1379_vm1, %v7165_v54, 0.0  ;;  %v1384_v62 = vsel %vm1379_vm1, %v7167_v55, 0.0 }
 0x105   :  { %v1601_v63 = vadd.f32 %v1600_v61, %v7161_v51  ;;  %v2030_v0 = vmul.f32 %v7161_v51, %v7161_v51  ;;  %v1385_v1 = vadd.f32 %v1384_v62, %v7159_v50 }
 0x106   :  { %v2140_v2 = vsel %vm1379_vm1, %v1923_v60, 0.0  ;;  %v7184_v3 = vpop.f32.mrb[4].mxu0  ;;  %v2356_v4 = vsel %vm1379_vm1, %v2031_v59, 0.0  ;;  %v7187_v5 = vpop.f32.mrb[4].mxu1 }
 0x107   :  { %13901 = vst [vmem:[#allocation10_spill] sm:$0xff] %v7184_v3  ;;  %13902 = vst [vmem:[#allocation11_spill] sm:$0xff] %v7187_v5  ;;  %1602 = vadd.xlane.f32.xlu1 %v1601_v63  ;;  %1598 = vadd.xlane.f32.xlu0 %v1597_v48  ;;  %v2141_v6 = vadd.f32 %v2140_v2, %v1922_v57  ;;  %v7189_v7 = vpop.f32.mrb[5].mxu0  ;;  %v2357_v8 = vadd.f32 %v2356_v4, %v2030_v0  ;;  %v7191_v9 = vpop.f32.mrb[5].mxu1 }
 0x108   :  { %13903 = vst [vmem:[#allocation12_spill] sm:$0xff] %v7189_v7  ;;  %13904 = vst [vmem:[#allocation13_spill] sm:$0xff] %v7191_v9  ;;  %v1924_v10 = vmul.f32 %v7184_v3, %v7184_v3  ;;  %v1925_v11 = vmul.f32 %v7189_v7, %v7189_v7  ;;  %v2033_v12 = vmul.f32 %v7191_v9, %v7191_v9  ;;  %v1388_v13 = vsel %vm1379_vm1, %v7189_v7, 0.0 }
 0x109   :  { %v1604_v14 = vsel %vm1379_vm1, %v7191_v9, 0.0  ;;  %v1389_v15 = vadd.f32 %v1388_v13, %v7184_v3  ;;  %v2032_v17 = vmul.f32 %v7187_v5, %v7187_v5 }
 0x10a   :  { %v1605_v16 = vadd.f32 %v1604_v14, %v7187_v5  ;;  %v7207_v18 = vpop.f32.mrb[6].mxu0  ;;  %v7209_v19 = vpop.f32.mrb[6].mxu1  ;;  %v2144_v20 = vsel %vm1379_vm1, %v1925_v11, 0.0  ;;  %v2360_v21 = vsel %vm1379_vm1, %v2033_v12, 0.0 }
 0x10b   :  { %13905 = vst [vmem:[#allocation14_spill] sm:$0xff] %v7207_v18  ;;  %13906 = vst [vmem:[#allocation15_spill] sm:$0xff] %v7209_v19  ;;  %2138 = vadd.xlane.f32.xlu0 %v2137_v56  ;;  %2142 = vadd.xlane.f32.xlu1 %v2141_v6  ;;  %v7213_v22 = vpop.f32.mrb[7].mxu0  ;;  %v7215_v23 = vpop.f32.mrb[7].mxu1  ;;  %v7217_v24 = vadd.f32 %v2144_v20, %v1924_v10  ;;  %v7219_v25 = vadd.f32 %v2360_v21, %v2032_v17 }
 0x10c   :  { %13907 = vst [vmem:[#allocation16_spill] sm:$0xff] %v7213_v22  ;;  %13908 = vst [vmem:[#allocation17_spill] sm:$0xff] %v7215_v23  ;;  %v1926_v26 = vmul.f32 %v7207_v18, %v7207_v18  ;;  %v1927_v27 = vmul.f32 %v7213_v22, %v7213_v22  ;;  %v2035_v28 = vmul.f32 %v7215_v23, %v7215_v23  ;;  %v1392_v29 = vsel %vm1379_vm1, %v7213_v22, 0.0 }
 0x10d   :  { %v1608_v30 = vsel %vm1379_vm1, %v7215_v23, 0.0  ;;  %v1393_v31 = vadd.f32 %v1392_v29, %v7207_v18  ;;  %v2034_v33 = vmul.f32 %v7209_v19, %v7209_v19 }
 0x10e   :  { %v1609_v32 = vadd.f32 %v1608_v30, %v7209_v19  ;;  %v7235_v34 = vpop.f32.mrb[8].mxu0  ;;  %v2148_v35 = vsel %vm1379_vm1, %v1927_v27, 0.0  ;;  %v7238_v36 = vpop.f32.mrb[8].mxu1  ;;  %v2364_v37 = vsel %vm1379_vm1, %v2035_v28, 0.0 }
 0x10f   :  { %13909 = vst [vmem:[#allocation18_spill] sm:$0xff] %v7235_v34  ;;  %13910 = vst [vmem:[#allocation19_spill] sm:$0xff] %v7238_v36  ;;  %2354 = vadd.xlane.f32.xlu0 %v2353_v58  ;;  %2358 = vadd.xlane.f32.xlu1 %v2357_v8  ;;  %v7241_v42 = vpop.f32.mrb[9].mxu0  ;;  %v7243_v43 = vadd.f32 %v2148_v35, %v1926_v26  ;;  %v7245_v44 = vpop.f32.mrb[9].mxu1  ;;  %v7247_v45 = vadd.f32 %v2364_v37, %v2034_v33 }
 0x110   :  { %13911 = vst [vmem:[#allocation20_spill] sm:$0xff] %v7241_v42  ;;  %13912 = vst [vmem:[#allocation21_spill] sm:$0xff] %v7245_v44  ;;  %v1928_v46 = vmul.f32 %v7235_v34, %v7235_v34  ;;  %v1929_v47 = vmul.f32 %v7241_v42, %v7241_v42  ;;  %v2037_v48 = vmul.f32 %v7245_v44, %v7245_v44  ;;  %v1396_v49 = vsel %vm1379_vm1, %v7241_v42, 0.0 }
 0x111   :  { %v1612_v52 = vsel %vm1379_vm1, %v7245_v44, 0.0  ;;  %v7260_v53 = vadd.f32 %v1396_v49, %v7235_v34  ;;  %v2036_v57 = vmul.f32 %v7238_v36, %v7238_v36 }
 0x112   :  { %v7263_v56 = vadd.f32 %v1612_v52, %v7238_v36  ;;  %v7267_v58 = vpop.f32.mrb[10].mxu0  ;;  %v7269_v59 = vpop.f32.mrb[10].mxu1  ;;  %v2152_v60 = vsel %vm1379_vm1, %v1929_v47, 0.0  ;;  %v2368_v61 = vsel %vm1379_vm1, %v2037_v48, 0.0  ;;  %v318_v36 = vld [vmem:[%s13468_s2 + $0x608] sm:$0xff] }
 0x113   :  { %13913 = vst [vmem:[#allocation22_spill] sm:$0xff] %v7267_v58  ;;  %13914 = vst [vmem:[#allocation23_spill] sm:$0xff] %v7269_v59  ;;  %1386 = vadd.xlane.f32.xlu0 %v1385_v1  ;;  %1390 = vadd.xlane.f32.xlu1 %v1389_v15  ;;  %v7273_v62 = vpop.f32.mrb[11].mxu0  ;;  %v7275_v63 = vpop.f32.mrb[11].mxu1  ;;  %v7277_v0 = vadd.f32 %v2152_v60, %v1928_v46  ;;  %v7279_v2 = vadd.f32 %v2368_v61, %v2036_v57 }
 0x114   :  { %13915 = vst [vmem:[#allocation24_spill] sm:$0xff] %v7273_v62  ;;  %13916 = vst [vmem:[#allocation25_spill] sm:$0xff] %v7275_v63  ;;  %v1930_v4 = vmul.f32 %v7267_v58, %v7267_v58  ;;  %v1931_v6 = vmul.f32 %v7273_v62, %v7273_v62  ;;  %v2039_v8 = vmul.f32 %v7275_v63, %v7275_v63  ;;  %v1400_v1 = vsel %vm1379_vm1, %v7273_v62, 0.0 }
 0x115   :  { %v1616_v10 = vsel %vm1379_vm1, %v7275_v63, 0.0  ;;  %v7292_v11 = vadd.f32 %v1400_v1, %v7267_v58  ;;  %v2038_v13 = vmul.f32 %v7269_v59, %v7269_v59  ;;  %5908 = vmatprep.mubr.msk.f32.mxu1 %vm341_vm0, %v318_v36 }
 0x116   :  { %v7295_v12 = vadd.f32 %v1616_v10, %v7269_v59  ;;  %v7299_v14 = vpop.f32.mrb[12].mxu0  ;;  %v2156_v15 = vsel %vm1379_vm1, %v1931_v6, 0.0  ;;  %v7302_v17 = vpop.f32.mrb[12].mxu1  ;;  %v2372_v20 = vsel %vm1379_vm1, %v2039_v8, 0.0 }
 0x117   :  { %13917 = vst [vmem:[#allocation26_spill] sm:$0xff] %v7299_v14  ;;  %13918 = vst [vmem:[#allocation27_spill] sm:$0xff] %v7302_v17  ;;  %1606 = vadd.xlane.f32.xlu0 %v1605_v16  ;;  %1394 = vadd.xlane.f32.xlu1 %v1393_v31  ;;  %v7305_v21 = vpop.f32.mrb[13].mxu0  ;;  %v7307_v26 = vadd.f32 %v2156_v15, %v1930_v4  ;;  %v7309_v27 = vpop.f32.mrb[13].mxu1  ;;  %v7311_v28 = vadd.f32 %v2372_v20, %v2038_v13 }
 0x118   :  { %13919 = vst [vmem:[#allocation28_spill] sm:$0xff] %v7305_v21  ;;  %13920 = vst [vmem:[#allocation29_spill] sm:$0xff] %v7309_v27  ;;  %v1932_v29 = vmul.f32 %v7299_v14, %v7299_v14  ;;  %v1933_v30 = vmul.f32 %v7305_v21, %v7305_v21  ;;  %v2041_v33 = vmul.f32 %v7309_v27, %v7309_v27  ;;  %v1404_v16 = vsel %vm1379_vm1, %v7305_v21, 0.0 }
 0x119   :  { %v1620_v31 = vsel %vm1379_vm1, %v7309_v27, 0.0  ;;  %v7324_v35 = vadd.f32 %v1404_v16, %v7299_v14  ;;  %v2040_v46 = vmul.f32 %v7302_v17, %v7302_v17 }
 0x11a   :  { %v7327_v37 = vadd.f32 %v1620_v31, %v7302_v17  ;;  %v7331_v47 = vpop.f32.mrb[14].mxu0  ;;  %v7333_v48 = vpop.f32.mrb[14].mxu1  ;;  %v2160_v49 = vsel %vm1379_vm1, %v1933_v30, 0.0  ;;  %v2376_v52 = vsel %vm1379_vm1, %v2041_v33, 0.0 }
 0x11b   :  { %13921 = vst [vmem:[#allocation30_spill] sm:$0xff] %v7331_v47  ;;  %13922 = vst [vmem:[#allocation31_spill] sm:$0xff] %v7333_v48  ;;  %2146 = vadd.xlane.f32.xlu0 %v7217_v24  ;;  %1610 = vadd.xlane.f32.xlu1 %v1609_v32  ;;  %v7338_v57 = vpop.f32.mrb[15].mxu0  ;;  %v7340_v60 = vpop.f32.mrb[15].mxu1  ;;  %v7342_v61 = vadd.f32 %v2160_v49, %v1932_v29  ;;  %v7344_v4 = vadd.f32 %v2376_v52, %v2040_v46 }
 0x11c   :  { %13923 = vst [vmem:[#allocation32_spill] sm:$0xff] %v7338_v57  ;;  %13924 = vst [vmem:[#allocation33_spill] sm:$0xff] %v7340_v60  ;;  %v1934_v6 = vmul.f32 %v7331_v47, %v7331_v47  ;;  %v1935_v8 = vmul.f32 %v7338_v57, %v7338_v57  ;;  %v2043_v1 = vmul.f32 %v7340_v60, %v7340_v60  ;;  %v1408_v24 = vsel %vm1379_vm1, %v7338_v57, 0.0 }
 0x11d   :  { %v1624_v32 = vsel %vm1379_vm1, %v7340_v60, 0.0  ;;  %v7357_v10 = vadd.f32 %v1408_v24, %v7331_v47  ;;  %v2042_v15 = vmul.f32 %v7333_v48, %v7333_v48 }
 0x11e   :  { %v7360_v13 = vadd.f32 %v1624_v32, %v7333_v48  ;;  %v7364_v20 = vpop.f32.mrb[16].mxu0  ;;  %v2164_v29 = vsel %vm1379_vm1, %v1935_v8, 0.0  ;;  %v7367_v30 = vpop.f32.mrb[16].mxu1  ;;  %v2380_v33 = vsel %vm1379_vm1, %v2043_v1, 0.0 }
 0x11f   :  { %13925 = vst [vmem:[#allocation34_spill] sm:$0xff] %v7364_v20  ;;  %13926 = vst [vmem:[#allocation35_spill] sm:$0xff] %v7367_v30  ;;  %2362 = vadd.xlane.f32.xlu0 %v7219_v25  ;;  %2150 = vadd.xlane.f32.xlu1 %v7243_v43  ;;  %v7372_v16 = vpop.f32.mrb[17].mxu0  ;;  %v7374_v31 = vadd.f32 %v2164_v29, %v1934_v6  ;;  %v7376_v46 = vpop.f32.mrb[17].mxu1  ;;  %v7378_v49 = vadd.f32 %v2380_v33, %v2042_v15 }
 0x120   :  { %13927 = vst [vmem:[#allocation36_spill] sm:$0xff] %v7372_v16  ;;  %13928 = vst [vmem:[#allocation37_spill] sm:$0xff] %v7376_v46  ;;  %v1936_v52 = vmul.f32 %v7364_v20, %v7364_v20  ;;  %v1937_v8 = vmul.f32 %v7372_v16, %v7372_v16  ;;  %v2045_v1 = vmul.f32 %v7376_v46, %v7376_v46  ;;  %v1412_v25 = vsel %vm1379_vm1, %v7372_v16, 0.0 }
 0x121   :  { %v1628_v43 = vsel %vm1379_vm1, %v7376_v46, 0.0  ;;  %v7391_v6 = vadd.f32 %v1412_v25, %v7364_v20  ;;  %v2044_v32 = vmul.f32 %v7367_v30, %v7367_v30 }
 0x122   :  { %v7394_v24 = vadd.f32 %v1628_v43, %v7367_v30  ;;  %v7398_v15 = vpop.f32.mrb[18].mxu0  ;;  %v7400_v29 = vpop.f32.mrb[18].mxu1  ;;  %v2168_v33 = vsel %vm1379_vm1, %v1937_v8, 0.0  ;;  %v2384_v60 = vsel %vm1379_vm1, %v2045_v1, 0.0 }
 0x123   :  { %13929 = vst [vmem:[#allocation38_spill] sm:$0xff] %v7398_v15  ;;  %13930 = vst [vmem:[#allocation39_spill] sm:$0xff] %v7400_v29  ;;  %2366 = vadd.xlane.f32.xlu1 %v7247_v45  ;;  %1398 = vadd.xlane.f32.xlu0 %v7260_v53  ;;  %v7406_v25 = vpop.f32.mrb[19].mxu0  ;;  %v7408_v48 = vpop.f32.mrb[19].mxu1  ;;  %v7410_v43 = vadd.f32 %v2168_v33, %v1936_v52  ;;  %v7412_v63 = vadd.f32 %v2384_v60, %v2044_v32 }
 0x124   :  { %13931 = vst [vmem:[#allocation40_spill] sm:$0xff] %v7406_v25  ;;  %13932 = vst [vmem:[#allocation41_spill] sm:$0xff] %v7408_v48  ;;  %v1938_v59 = vmul.f32 %v7398_v15, %v7398_v15  ;;  %v1939_v8 = vmul.f32 %v7406_v25, %v7406_v25  ;;  %v2047_v1 = vmul.f32 %v7408_v48, %v7408_v48  ;;  %v1416_v45 = vsel %vm1379_vm1, %v7406_v25, 0.0 }
 0x125   :  { %v1632_v53 = vsel %vm1379_vm1, %v7408_v48, 0.0  ;;  %v7425_v52 = vadd.f32 %v1416_v45, %v7398_v15  ;;  %v2046_v32 = vmul.f32 %v7400_v29, %v7400_v29 }
 0x126   :  { %v7428_v60 = vadd.f32 %v1632_v53, %v7400_v29  ;;  %v7432_v33 = vpop.f32.mrb[20].mxu0  ;;  %v2172_v23 = vsel %vm1379_vm1, %v1939_v8, 0.0  ;;  %v7435_v19 = vpop.f32.mrb[20].mxu1  ;;  %v2388_v54 = vsel %vm1379_vm1, %v2047_v1, 0.0 }
 0x127   :  { %13933 = vst [vmem:[#allocation42_spill] sm:$0xff] %v7432_v33  ;;  %13934 = vst [vmem:[#allocation43_spill] sm:$0xff] %v7435_v19  ;;  %1614 = vadd.xlane.f32.xlu0 %v7263_v56  ;;  %1402 = vadd.xlane.f32.xlu1 %v7292_v11  ;;  %v7440_v45 = vpop.f32.mrb[21].mxu0  ;;  %v7442_v48 = vadd.f32 %v2172_v23, %v1938_v59  ;;  %v7444_v53 = vpop.f32.mrb[21].mxu1  ;;  %v7446_v51 = vadd.f32 %v2388_v54, %v2046_v32  ;;  %v210_v32 = vld [vmem:[%s13468_s2 + $0x2a8] sm:$0xff] }
 0x128   :  { %13935 = vst [vmem:[#allocation44_spill] sm:$0xff] %v7440_v45  ;;  %13936 = vst [vmem:[#allocation45_spill] sm:$0xff] %v7444_v53  ;;  %v1940_v29 = vmul.f32 %v7432_v33, %v7432_v33  ;;  %v1941_v8 = vmul.f32 %v7440_v45, %v7440_v45  ;;  %v2049_v1 = vmul.f32 %v7444_v53, %v7444_v53  ;;  %v1420_v56 = vsel %vm1379_vm1, %v7440_v45, 0.0 }
 0x129   :  { %v1636_v23 = vsel %vm1379_vm1, %v7444_v53, 0.0  ;;  %v7459_v59 = vadd.f32 %v1420_v56, %v7432_v33  ;;  %v2048_v11 = vmul.f32 %v7435_v19, %v7435_v19  ;;  %5854 = vmatprep.mubr.msk.f32.mxu0 %vm341_vm0, %v210_v32  ;;  %v209_v56 = vld [vmem:[%s13468_s2 + $0x2a0] sm:$0xff] }
 0x12a   :  { %v7462_v54 = vadd.f32 %v1636_v23, %v7435_v19  ;;  %v7469_v46 = vpop.f32.mrb[22].mxu0  ;;  %v7471_v30 = vpop.f32.mrb[22].mxu1  ;;  %v2176_v27 = vsel %vm1379_vm1, %v1941_v8, 0.0  ;;  %v2392_v53 = vsel %vm1379_vm1, %v2049_v1, 0.0  ;;  %983 = vmatmul.mubr.f32.gmra.mrb[84].mxu0 %v209_v56 }
 0x12b   :  { %13937 = vst [vmem:[#allocation46_spill] sm:$0xff] %v7469_v46  ;;  %13938 = vst [vmem:[#allocation47_spill] sm:$0xff] %v7471_v30  ;;  %2154 = vadd.xlane.f32.xlu0 %v7277_v0  ;;  %1618 = vadd.xlane.f32.xlu1 %v7295_v12  ;;  %v7481_v23 = vpop.f32.mrb[23].mxu0  ;;  %v7483_v19 = vpop.f32.mrb[23].mxu1  ;;  %v7485_v17 = vadd.f32 %v2176_v27, %v1940_v29  ;;  %v7487_v44 = vadd.f32 %v2392_v53, %v2048_v11  ;;  %v212_v11 = vld [vmem:[%s13468_s2 + $0x2b8] sm:$0xff] }
 0x12c   :  { %13939 = vst [vmem:[#allocation48_spill] sm:$0xff] %v7481_v23  ;;  %13940 = vst [vmem:[#allocation49_spill] sm:$0xff] %v7483_v19  ;;  %v1942_v8 = vmul.f32 %v7469_v46, %v7469_v46  ;;  %v1943_v1 = vmul.f32 %v7481_v23, %v7481_v23  ;;  %v2051_v32 = vmul.f32 %v7483_v19, %v7483_v19  ;;  %v1424_v0 = vsel %vm1379_vm1, %v7481_v23, 0.0 }
 0x12d   :  { %v1640_v12 = vsel %vm1379_vm1, %v7483_v19, 0.0  ;;  %v7500_v27 = vadd.f32 %v1424_v0, %v7469_v46  ;;  %v2050_v53 = vmul.f32 %v7471_v30, %v7471_v30  ;;  %5855 = vmatprep.mubr.msk.f32.mxu0 %vm341_vm0, %v212_v11  ;;  %v211_v19 = vld [vmem:[%s13468_s2 + $0x2b0] sm:$0xff] }
 0x12e   :  { %v7503_v29 = vadd.f32 %v1640_v12, %v7471_v30  ;;  %v7513_v9 = vpop.f32.mrb[24].mxu0  ;;  %v2180_v56 = vsel %vm1379_vm1, %v1943_v1, 0.0  ;;  %v7516_v0 = vpop.f32.mrb[24].mxu1  ;;  %v2396_v12 = vsel %vm1379_vm1, %v2051_v32, 0.0  ;;  %v317_v30 = vld [vmem:[%s13468_s2 + $0x600] sm:$0xff]  ;;  %989 = vmatmul.mubr.f32.gmra.mrb[86].mxu0 %v211_v19 }
 0x12f   :  { %13941 = vst [vmem:[#allocation50_spill] sm:$0xff] %v7513_v9  ;;  %13942 = vst [vmem:[#allocation51_spill] sm:$0xff] %v7516_v0  ;;  %2370 = vadd.xlane.f32.xlu0 %v7279_v2  ;;  %2158 = vadd.xlane.f32.xlu1 %v7307_v26  ;;  %v7529_v1 = vpop.f32.mrb[25].mxu0  ;;  %v7531_v5 = vadd.f32 %v2180_v56, %v1942_v8  ;;  %v7533_v32 = vpop.f32.mrb[25].mxu1  ;;  %v7535_v11 = vadd.f32 %v2396_v12, %v2050_v53  ;;  %v320_v12 = vld [vmem:[%s13468_s2 + $0x618] sm:$0xff] }
 0x130   :  { %13943 = vst [vmem:[#allocation52_spill] sm:$0xff] %v7529_v1  ;;  %13944 = vst [vmem:[#allocation53_spill] sm:$0xff] %v7533_v32  ;;  %v1944_v36 = vmul.f32 %v7513_v9, %v7513_v9  ;;  %v1945_v41 = vmul.f32 %v7529_v1, %v7529_v1  ;;  %v2053_v39 = vmul.f32 %v7533_v32, %v7533_v32  ;;  %v1428_v2 = vsel %vm1379_vm1, %v7529_v1, 0.0 }
 0x131   :  { %v1644_v26 = vsel %vm1379_vm1, %v7533_v32, 0.0  ;;  %1307 = vmatmul.mubr.f32.gmra.mrb[84].mxu1 %v317_v30  ;;  %v7548_v8 = vadd.f32 %v1428_v2, %v7513_v9  ;;  %v2052_v56 = vmul.f32 %v7516_v0, %v7516_v0  ;;  %v319_v2 = vld [vmem:[%s13468_s2 + $0x610] sm:$0xff] }
 0x132   :  { %v7551_v53 = vadd.f32 %v1644_v26, %v7516_v0  ;;  %v7558_v23 = vpop.f32.mrb[26].mxu0  ;;  %v7560_v46 = vpop.f32.mrb[26].mxu1  ;;  %v2184_v19 = vsel %vm1379_vm1, %v1945_v41, 0.0  ;;  %v2400_v30 = vsel %vm1379_vm1, %v2053_v39, 0.0  ;;  %5909 = vmatprep.mubr.msk.f32.mxu1 %vm341_vm0, %v320_v12 }
 0x133   :  { %13945 = vst [vmem:[#allocation54_spill] sm:$0xff] %v7558_v23  ;;  %13946 = vst [vmem:[#allocation55_spill] sm:$0xff] %v7560_v46  ;;  %2374 = vadd.xlane.f32.xlu1 %v7311_v28  ;;  %1406 = vadd.xlane.f32.xlu0 %v7324_v35  ;;  %v7570_v26 = vpop.f32.mrb[27].mxu0  ;;  %v7572_v32 = vpop.f32.mrb[27].mxu1  ;;  %v7574_v0 = vadd.f32 %v2184_v19, %v1944_v36  ;;  %v7576_v25 = vadd.f32 %v2400_v30, %v2052_v56 }
 0x134   :  { %13947 = vst [vmem:[#allocation56_spill] sm:$0xff] %v7570_v26  ;;  %13948 = vst [vmem:[#allocation57_spill] sm:$0xff] %v7572_v32  ;;  %v1946_v39 = vmul.f32 %v7558_v23, %v7558_v23  ;;  %v1947_v41 = vmul.f32 %v7570_v26, %v7570_v26  ;;  %v2055_v12 = vmul.f32 %v7572_v32, %v7572_v32  ;;  %v1432_v28 = vsel %vm1379_vm1, %v7570_v26, 0.0 }
 0x135   :  { %v1648_v35 = vsel %vm1379_vm1, %v7572_v32, 0.0  ;;  %1313 = vmatmul.mubr.f32.gmra.mrb[86].mxu1 %v319_v2  ;;  %v7589_v36 = vadd.f32 %v1432_v28, %v7558_v23  ;;  %v2054_v19 = vmul.f32 %v7560_v46, %v7560_v46 }
 0x136   :  { %v7592_v56 = vadd.f32 %v1648_v35, %v7560_v46  ;;  %v7596_v30 = vpop.f32.mrb[28].mxu0  ;;  %v2188_v15 = vsel %vm1379_vm1, %v1947_v41, 0.0  ;;  %v7599_v57 = vpop.f32.mrb[28].mxu1  ;;  %v2404_v26 = vsel %vm1379_vm1, %v2055_v12, 0.0 }
 0x137   :  { %13949 = vst [vmem:[#allocation58_spill] sm:$0xff] %v7596_v30  ;;  %13950 = vst [vmem:[#allocation59_spill] sm:$0xff] %v7599_v57  ;;  %1622 = vadd.xlane.f32.xlu0 %v7327_v37  ;;  %1410 = vadd.xlane.f32.xlu1 %v7357_v10  ;;  %v7604_v2 = vpop.f32.mrb[29].mxu0  ;;  %v7606_v28 = vadd.f32 %v2188_v15, %v1946_v39  ;;  %v7608_v35 = vpop.f32.mrb[29].mxu1  ;;  %v7610_v32 = vadd.f32 %v2404_v26, %v2054_v19 }
 0x138   :  { %13951 = vst [vmem:[#allocation60_spill] sm:$0xff] %v7604_v2  ;;  %13952 = vst [vmem:[#allocation61_spill] sm:$0xff] %v7608_v35  ;;  %v1948_v46 = vmul.f32 %v7596_v30, %v7596_v30  ;;  %v1949_v41 = vmul.f32 %v7604_v2, %v7604_v2  ;;  %v2057_v12 = vmul.f32 %v7608_v35, %v7608_v35  ;;  %v1436_v37 = vsel %vm1379_vm1, %v7604_v2, 0.0 }
 0x139   :  { %v1652_v10 = vsel %vm1379_vm1, %v7608_v35, 0.0  ;;  %v7623_v15 = vadd.f32 %v1436_v37, %v7596_v30  ;;  %v2056_v39 = vmul.f32 %v7599_v57, %v7599_v57 }
 0x13a   :  { %v7626_v26 = vadd.f32 %v1652_v10, %v7599_v57  ;;  %v7630_v19 = vpop.f32.mrb[30].mxu0  ;;  %v7632_v23 = vpop.f32.mrb[30].mxu1  ;;  %v2192_v47 = vsel %vm1379_vm1, %v1949_v41, 0.0  ;;  %v2408_v62 = vsel %vm1379_vm1, %v2057_v12, 0.0  ;;  %v214_v41 = vld [vmem:[%s13468_s2 + $0x2c8] sm:$0xff] }
 0x13b   :  { %13953 = vst [vmem:[#allocation62_spill] sm:$0xff] %v7630_v19  ;;  %13954 = vst [vmem:[#allocation63_spill] sm:$0xff] %v7632_v23  ;;  %2162 = vadd.xlane.f32.xlu0 %v7342_v61  ;;  %1626 = vadd.xlane.f32.xlu1 %v7360_v13  ;;  %v7638_v37 = vpop.f32.mrb[31].mxu0  ;;  %v7640_v35 = vpop.f32.mrb[31].mxu1  ;;  %v7642_v10 = vadd.f32 %v2192_v47, %v1948_v46  ;;  %v7644_v58 = vadd.f32 %v2408_v62, %v2056_v39  ;;  %v213_v47 = vld [vmem:[%s13468_s2 + $0x2c0] sm:$0xff] }
 0x13c   :  { %13955 = vst [vmem:[#allocation64_spill] sm:$0xff] %v7638_v37  ;;  %13956 = vst [vmem:[#allocation65_spill] sm:$0xff] %v7640_v35  ;;  %v1950_v57 = vmul.f32 %v7630_v19, %v7630_v19  ;;  %v1951_v61 = vmul.f32 %v7638_v37, %v7638_v37  ;;  %v2059_v13 = vmul.f32 %v7640_v35, %v7640_v35  ;;  %v1440_v12 = vsel %vm1379_vm1, %v7638_v37, 0.0 }
 0x13d   :  { %v1656_v62 = vsel %vm1379_vm1, %v7640_v35, 0.0  ;;  %5856 = vmatprep.mubr.msk.f32.mxu0 %vm341_vm0, %v214_v41  ;;  %v7664_v46 = vadd.f32 %v1440_v12, %v7630_v19  ;;  %v2058_v22 = vmul.f32 %v7632_v23, %v7632_v23 }
 0x13e   :  { %v7667_v39 = vadd.f32 %v1656_v62, %v7632_v23  ;;  %995 = vmatmul.mubr.f32.gmra.mrb[88].mxu0 %v213_v47  ;;  %v7671_v37 = vpop.f32.mrb[32].mxu0  ;;  %v2196_v35 = vsel %vm1379_vm1, %v1951_v61, 0.0  ;;  %v7674_v18 = vpop.f32.mrb[32].mxu1  ;;  %v2412_v41 = vsel %vm1379_vm1, %v2059_v13, 0.0  ;;  %v322_v61 = vld [vmem:[%s13468_s2 + $0x628] sm:$0xff] }
 0x13f   :  { %13957 = vst [vmem:[#allocation66_spill] sm:$0xff] %v7671_v37  ;;  %13958 = vst [vmem:[#allocation67_spill] sm:$0xff] %v7674_v18  ;;  %2378 = vadd.xlane.f32.xlu0 %v7344_v4  ;;  %2166 = vadd.xlane.f32.xlu1 %v7374_v31  ;;  %v7679_v12 = vpop.f32.mrb[33].mxu0  ;;  %v7681_v62 = vadd.f32 %v2196_v35, %v1950_v57  ;;  %v7683_v19 = vpop.f32.mrb[33].mxu1  ;;  %v7685_v23 = vadd.f32 %v2412_v41, %v2058_v22  ;;  %v321_v35 = vld [vmem:[%s13468_s2 + $0x620] sm:$0xff] }
 0x140   :  { %13959 = vst [vmem:[#allocation68_spill] sm:$0xff] %v7679_v12  ;;  %13960 = vst [vmem:[#allocation69_spill] sm:$0xff] %v7683_v19  ;;  %v1952_v47 = vmul.f32 %v7671_v37, %v7671_v37  ;;  %v1953_v4 = vmul.f32 %v7679_v12, %v7679_v12  ;;  %v2061_v31 = vmul.f32 %v7683_v19, %v7683_v19  ;;  %v1444_v57 = vsel %vm1379_vm1, %v7679_v12, 0.0 }
 0x141   :  { %v1660_v22 = vsel %vm1379_vm1, %v7683_v19, 0.0  ;;  %5910 = vmatprep.mubr.msk.f32.mxu1 %vm341_vm0, %v322_v61  ;;  %v7705_v13 = vadd.f32 %v1444_v57, %v7671_v37  ;;  %v2060_v7 = vmul.f32 %v7674_v18, %v7674_v18 }
 0x142   :  { %v7708_v41 = vadd.f32 %v1660_v22, %v7674_v18  ;;  %1319 = vmatmul.mubr.f32.gmra.mrb[88].mxu1 %v321_v35  ;;  %v7712_v3 = vpop.f32.mrb[34].mxu0  ;;  %v7714_v40 = vpop.f32.mrb[34].mxu1  ;;  %v2200_v61 = vsel %vm1379_vm1, %v1953_v4, 0.0  ;;  %v2416_v19 = vsel %vm1379_vm1, %v2061_v31, 0.0 }
 0x143   :  { %13961 = vst [vmem:[#allocation70_spill] sm:$0xff] %v7712_v3  ;;  %13962 = vst [vmem:[#allocation71_spill] sm:$0xff] %v7714_v40  ;;  %2382 = vadd.xlane.f32.xlu1 %v7378_v49  ;;  %1414 = vadd.xlane.f32.xlu0 %v7391_v6  ;;  %v7720_v57 = vpop.f32.mrb[35].mxu0  ;;  %v7722_v22 = vpop.f32.mrb[35].mxu1  ;;  %v7724_v38 = vadd.f32 %v2200_v61, %v1952_v47  ;;  %v7726_v18 = vadd.f32 %v2416_v19, %v2060_v7 }
 0x144   :  { %13963 = vst [vmem:[#allocation72_spill] sm:$0xff] %v7720_v57  ;;  %13964 = vst [vmem:[#allocation73_spill] sm:$0xff] %v7722_v22  ;;  %v1954_v35 = vmul.f32 %v7712_v3, %v7712_v3  ;;  %v1955_v4 = vmul.f32 %v7720_v57, %v7720_v57  ;;  %v2063_v31 = vmul.f32 %v7722_v22, %v7722_v22  ;;  %v1448_v49 = vsel %vm1379_vm1, %v7720_v57, 0.0 }
 0x145   :  { %v1664_v6 = vsel %vm1379_vm1, %v7722_v22, 0.0  ;;  %v7739_v47 = vadd.f32 %v1448_v49, %v7712_v3  ;;  %v2062_v19 = vmul.f32 %v7714_v40, %v7714_v40 }
 0x146   :  { %v7742_v7 = vadd.f32 %v1664_v6, %v7714_v40  ;;  %v7746_v61 = vpop.f32.mrb[36].mxu0  ;;  %v2204_v12 = vsel %vm1379_vm1, %v1955_v4, 0.0  ;;  %v7749_v37 = vpop.f32.mrb[36].mxu1  ;;  %v2420_v57 = vsel %vm1379_vm1, %v2063_v31, 0.0 }
 0x147   :  { %13965 = vst [vmem:[#allocation74_spill] sm:$0xff] %v7746_v61  ;;  %13966 = vst [vmem:[#allocation75_spill] sm:$0xff] %v7749_v37  ;;  %1630 = vadd.xlane.f32.xlu0 %v7394_v24  ;;  %1418 = vadd.xlane.f32.xlu1 %v7425_v52  ;;  %v7754_v49 = vpop.f32.mrb[37].mxu0  ;;  %v7756_v22 = vadd.f32 %v2204_v12, %v1954_v35  ;;  %v7758_v6 = vpop.f32.mrb[37].mxu1  ;;  %v7760_v3 = vadd.f32 %v2420_v57, %v2062_v19 }
 0x148   :  { %13967 = vst [vmem:[#allocation76_spill] sm:$0xff] %v7754_v49  ;;  %13968 = vst [vmem:[#allocation77_spill] sm:$0xff] %v7758_v6  ;;  %v1956_v40 = vmul.f32 %v7746_v61, %v7746_v61  ;;  %v1957_v4 = vmul.f32 %v7754_v49, %v7754_v49  ;;  %v2065_v31 = vmul.f32 %v7758_v6, %v7758_v6  ;;  %v1452_v24 = vsel %vm1379_vm1, %v7754_v49, 0.0 }
 0x149   :  { %v1668_v52 = vsel %vm1379_vm1, %v7758_v6, 0.0  ;;  %v7773_v12 = vadd.f32 %v1452_v24, %v7746_v61  ;;  %v2064_v35 = vmul.f32 %v7749_v37, %v7749_v37 }
 0x14a   :  { %v7776_v57 = vadd.f32 %v1668_v52, %v7749_v37  ;;  %v7780_v19 = vpop.f32.mrb[38].mxu0  ;;  %v7782_v2 = vpop.f32.mrb[38].mxu1  ;;  %v2208_v30 = vsel %vm1379_vm1, %v1957_v4, 0.0  ;;  %v2424_v49 = vsel %vm1379_vm1, %v2065_v31, 0.0 }
 0x14b   :  { %13969 = vst [vmem:[#allocation78_spill] sm:$0xff] %v7780_v19  ;;  %13970 = vst [vmem:[#allocation79_spill] sm:$0xff] %v7782_v2  ;;  %2170 = vadd.xlane.f32.xlu0 %v7410_v43  ;;  %1634 = vadd.xlane.f32.xlu1 %v7428_v60  ;;  %v7788_v24 = vpop.f32.mrb[39].mxu0  ;;  %v7790_v6 = vpop.f32.mrb[39].mxu1  ;;  %v7792_v52 = vadd.f32 %v2208_v30, %v1956_v40  ;;  %v7794_v61 = vadd.f32 %v2424_v49, %v2064_v35 }
 0x14c   :  { %13971 = vst [vmem:[#allocation80_spill] sm:$0xff] %v7788_v24  ;;  %13972 = vst [vmem:[#allocation81_spill] sm:$0xff] %v7790_v6  ;;  %v1958_v37 = vmul.f32 %v7780_v19, %v7780_v19  ;;  %v1959_v4 = vmul.f32 %v7788_v24, %v7788_v24  ;;  %v2067_v31 = vmul.f32 %v7790_v6, %v7790_v6  ;;  %v1456_v43 = vsel %vm1379_vm1, %v7788_v24, 0.0 }
 0x14d   :  { %v1672_v60 = vsel %vm1379_vm1, %v7790_v6, 0.0  ;;  %v7807_v40 = vadd.f32 %v1456_v43, %v7780_v19  ;;  %v2066_v49 = vmul.f32 %v7782_v2, %v7782_v2 }
 0x14e   :  { %v7810_v30 = vadd.f32 %v1672_v60, %v7782_v2  ;;  %v7814_v35 = vpop.f32.mrb[40].mxu0  ;;  %v2212_v1 = vsel %vm1379_vm1, %v1959_v4, 0.0  ;;  %v7817_v9 = vpop.f32.mrb[40].mxu1  ;;  %v2428_v24 = vsel %vm1379_vm1, %v2067_v31, 0.0 }
 0x14f   :  { %13973 = vst [vmem:[#allocation82_spill] sm:$0xff] %v7814_v35  ;;  %13974 = vst [vmem:[#allocation83_spill] sm:$0xff] %v7817_v9  ;;  %2386 = vadd.xlane.f32.xlu0 %v7412_v63  ;;  %2174 = vadd.xlane.f32.xlu1 %v7442_v48  ;;  %v7822_v43 = vpop.f32.mrb[41].mxu0  ;;  %v7824_v6 = vadd.f32 %v2212_v1, %v1958_v37  ;;  %v7826_v60 = vpop.f32.mrb[41].mxu1  ;;  %v7828_v19 = vadd.f32 %v2428_v24, %v2066_v49 }
 0x150   :  { %13975 = vst [vmem:[#allocation84_spill] sm:$0xff] %v7822_v43  ;;  %13976 = vst [vmem:[#allocation85_spill] sm:$0xff] %v7826_v60  ;;  %v1960_v2 = vmul.f32 %v7814_v35, %v7814_v35  ;;  %v1961_v4 = vmul.f32 %v7822_v43, %v7822_v43  ;;  %v2069_v31 = vmul.f32 %v7826_v60, %v7826_v60  ;;  %v1460_v63 = vsel %vm1379_vm1, %v7822_v43, 0.0 }
 0x151   :  { %v1676_v48 = vsel %vm1379_vm1, %v7826_v60, 0.0  ;;  %v7841_v1 = vadd.f32 %v1460_v63, %v7814_v35  ;;  %v2068_v24 = vmul.f32 %v7817_v9, %v7817_v9 }
 0x152   :  { %v7844_v37 = vadd.f32 %v1676_v48, %v7817_v9  ;;  %v7848_v49 = vpop.f32.mrb[42].mxu0  ;;  %v7850_v45 = vpop.f32.mrb[42].mxu1  ;;  %v2216_v33 = vsel %vm1379_vm1, %v1961_v4, 0.0  ;;  %v2432_v43 = vsel %vm1379_vm1, %v2069_v31, 0.0 }
 0x153   :  { %13977 = vst [vmem:[#allocation86_spill] sm:$0xff] %v7848_v49  ;;  %13978 = vst [vmem:[#allocation87_spill] sm:$0xff] %v7850_v45  ;;  %2390 = vadd.xlane.f32.xlu1 %v7446_v51  ;;  %1422 = vadd.xlane.f32.xlu0 %v7459_v59  ;;  %v7856_v63 = vpop.f32.mrb[43].mxu0  ;;  %v7858_v60 = vpop.f32.mrb[43].mxu1  ;;  %v7860_v48 = vadd.f32 %v2216_v33, %v1960_v2  ;;  %v7862_v35 = vadd.f32 %v2432_v43, %v2068_v24 }
 0x154   :  { %13979 = vst [vmem:[#allocation88_spill] sm:$0xff] %v7856_v63  ;;  %13980 = vst [vmem:[#allocation89_spill] sm:$0xff] %v7858_v60  ;;  %v1962_v9 = vmul.f32 %v7848_v49, %v7848_v49  ;;  %v1963_v4 = vmul.f32 %v7856_v63, %v7856_v63  ;;  %v2071_v31 = vmul.f32 %v7858_v60, %v7858_v60  ;;  %v1464_v51 = vsel %vm1379_vm1, %v7856_v63, 0.0 }
 0x155   :  { %v1680_v59 = vsel %vm1379_vm1, %v7858_v60, 0.0  ;;  %v7875_v33 = vadd.f32 %v1464_v51, %v7848_v49  ;;  %v2070_v43 = vmul.f32 %v7850_v45, %v7850_v45 }
 0x156   :  { %v7878_v2 = vadd.f32 %v1680_v59, %v7850_v45  ;;  %v7882_v24 = vpop.f32.mrb[44].mxu0  ;;  %v2220_v16 = vsel %vm1379_vm1, %v1963_v4, 0.0  ;;  %v7885_v20 = vpop.f32.mrb[44].mxu1  ;;  %v2436_v63 = vsel %vm1379_vm1, %v2071_v31, 0.0 }
 0x157   :  { %13981 = vst [vmem:[#allocation90_spill] sm:$0xff] %v7882_v24  ;;  %13982 = vst [vmem:[#allocation91_spill] sm:$0xff] %v7885_v20  ;;  %1638 = vadd.xlane.f32.xlu0 %v7462_v54  ;;  %1426 = vadd.xlane.f32.xlu1 %v7500_v27  ;;  %v7890_v51 = vpop.f32.mrb[45].mxu0  ;;  %v7892_v60 = vadd.f32 %v2220_v16, %v1962_v9  ;;  %v7894_v59 = vpop.f32.mrb[45].mxu1  ;;  %v7896_v49 = vadd.f32 %v2436_v63, %v2070_v43 }
 0x158   :  { %13983 = vst [vmem:[#allocation92_spill] sm:$0xff] %v7890_v51  ;;  %13984 = vst [vmem:[#allocation93_spill] sm:$0xff] %v7894_v59  ;;  %v1964_v45 = vmul.f32 %v7882_v24, %v7882_v24  ;;  %v1965_v4 = vmul.f32 %v7890_v51, %v7890_v51  ;;  %v2073_v31 = vmul.f32 %v7894_v59, %v7894_v59  ;;  %v1468_v54 = vsel %vm1379_vm1, %v7890_v51, 0.0 }
 0x159   :  { %v1684_v9 = vsel %vm1379_vm1, %v7894_v59, 0.0  ;;  %v7909_v16 = vadd.f32 %v1468_v54, %v7882_v24  ;;  %v2072_v63 = vmul.f32 %v7885_v20, %v7885_v20 }
 0x15a   :  { %v7912_v27 = vadd.f32 %v1684_v9, %v7885_v20  ;;  %v7916_v43 = vpop.f32.mrb[46].mxu0  ;;  %v7918_v21 = vpop.f32.mrb[46].mxu1  ;;  %v2224_v14 = vsel %vm1379_vm1, %v1965_v4, 0.0  ;;  %v2440_v51 = vsel %vm1379_vm1, %v2073_v31, 0.0 }
 0x15b   :  { %13985 = vst [vmem:[#allocation94_spill] sm:$0xff] %v7916_v43  ;;  %13986 = vst [vmem:[#allocation95_spill] sm:$0xff] %v7918_v21  ;;  %2178 = vadd.xlane.f32.xlu0 %v7485_v17  ;;  %1642 = vadd.xlane.f32.xlu1 %v7503_v29  ;;  %v7924_v54 = vpop.f32.mrb[47].mxu0  ;;  %v7926_v59 = vpop.f32.mrb[47].mxu1  ;;  %v7928_v9 = vadd.f32 %v2224_v14, %v1964_v45  ;;  %v7930_v24 = vadd.f32 %v2440_v51, %v2072_v63 }
 0x15c   :  { %13987 = vst [vmem:[#allocation96_spill] sm:$0xff] %v7924_v54  ;;  %13988 = vst [vmem:[#allocation97_spill] sm:$0xff] %v7926_v59  ;;  %v1966_v20 = vmul.f32 %v7916_v43, %v7916_v43  ;;  %v1967_v4 = vmul.f32 %v7924_v54, %v7924_v54  ;;  %v2075_v31 = vmul.f32 %v7926_v59, %v7926_v59  ;;  %v1472_v17 = vsel %vm1379_vm1, %v7924_v54, 0.0 }
 0x15d   :  { %v1688_v29 = vsel %vm1379_vm1, %v7926_v59, 0.0  ;;  %v7943_v14 = vadd.f32 %v1472_v17, %v7916_v43  ;;  %v2074_v51 = vmul.f32 %v7918_v21, %v7918_v21 }
 0x15e   :  { %v7946_v45 = vadd.f32 %v1688_v29, %v7918_v21  ;;  %v7950_v63 = vpop.f32.mrb[48].mxu0  ;;  %v2228_v42 = vsel %vm1379_vm1, %v1967_v4, 0.0  ;;  %v7953_v34 = vpop.f32.mrb[48].mxu1  ;;  %v2444_v54 = vsel %vm1379_vm1, %v2075_v31, 0.0 }
 0x15f   :  { %13989 = vst [vmem:[#allocation98_spill] sm:$0xff] %v7950_v63  ;;  %13990 = vst [vmem:[#allocation99_spill] sm:$0xff] %v7953_v34  ;;  %2394 = vadd.xlane.f32.xlu0 %v7487_v44  ;;  %2182 = vadd.xlane.f32.xlu1 %v7531_v5  ;;  %v1968_v17 = vmul.f32 %v7950_v63, %v7950_v63  ;;  %v7960_v29 = vpop.f32.mrb[49].mxu0  ;;  %v7962_v59 = vadd.f32 %v2228_v42, %v1966_v20  ;;  %v7964_v21 = vpop.f32.mrb[49].mxu1 }
 0x160   :  { %13991 = vst [vmem:[#allocation100_spill] sm:$0xff] %v7960_v29  ;;  %13993 = vst [vmem:[#allocation102_spill] sm:$0xff] %v7964_v21  ;;  %v1969_v4 = vmul.f32 %v7960_v29, %v7960_v29  ;;  %v1692_v43 = vsel %vm1379_vm1, %v7964_v21, 0.0  ;;  %v2077_v44 = vmul.f32 %v7964_v21, %v7964_v21  ;;  %v7972_v31 = vadd.f32 %v2444_v54, %v2074_v51 }
 0x161   :  { %13992 = vst [vmem:[#allocation101_spill] sm:$0xff] %v7962_v59  ;;  %v2076_v5 = vmul.f32 %v7953_v34, %v7953_v34  ;;  %v1476_v42 = vsel %vm1379_vm1, %v7960_v29, 0.0  ;;  %v7979_v20 = vadd.f32 %v1692_v43, %v7953_v34 }
 0x162   :  { %v7981_v55 = vpop.f32.mrb[50].mxu0  ;;  %v7984_v50 = vadd.f32 %v1476_v42, %v7950_v63  ;;  %v7986_v59 = vpop.f32.mrb[50].mxu1  ;;  %v2232_v21 = vsel %vm1379_vm1, %v1969_v4, 0.0  ;;  %v2448_v54 = vsel %vm1379_vm1, %v2077_v44, 0.0 }
 0x163   :  { %13994 = vst [vmem:[#allocation103_spill] sm:$0xff] %v7979_v20  ;;  %13995 = vst [vmem:[#allocation104_spill] sm:$0xff] %v7981_v55  ;;  %2398 = vadd.xlane.f32.xlu1 %v7535_v11  ;;  %1430 = vadd.xlane.f32.xlu0 %v7548_v8  ;;  %v1970_v51 = vmul.f32 %v7981_v55, %v7981_v55  ;;  %v7994_v43 = vpop.f32.mrb[51].mxu0  ;;  %v7996_v34 = vpop.f32.mrb[51].mxu1  ;;  %v7998_v29 = vadd.f32 %v2232_v21, %v1968_v17 }
 0x164   :  { %13996 = vst [vmem:[#allocation105_spill] sm:$0xff] %v7984_v50  ;;  %13997 = vst [vmem:[#allocation106_spill] sm:$0xff] %v7986_v59  ;;  %v1971_v42 = vmul.f32 %v7994_v43, %v7994_v43  ;;  %v1696_v4 = vsel %vm1379_vm1, %v7996_v34, 0.0  ;;  %v2079_v11 = vmul.f32 %v7996_v34, %v7996_v34  ;;  %v1480_v8 = vsel %vm1379_vm1, %v7994_v43, 0.0 }
 0x165   :  { %13998 = vst [vmem:[#allocation107_spill] sm:$0xff] %v7994_v43  ;;  %13999 = vst [vmem:[#allocation108_spill] sm:$0xff] %v7996_v34  ;;  %v2078_v44 = vmul.f32 %v7986_v59, %v7986_v59  ;;  %v8011_v63 = vadd.f32 %v1480_v8, %v7981_v55  ;;  %v8014_v21 = vadd.f32 %v1696_v4, %v7986_v59 }
 0x166   :  { %14000 = vst [vmem:[#allocation109_spill] sm:$0xff] %v7998_v29  ;;  %v8016_v17 = vadd.f32 %v2448_v54, %v2076_v5  ;;  %v8018_v29 = vpop.f32.mrb[52].mxu0  ;;  %v2236_v20 = vsel %vm1379_vm1, %v1971_v42, 0.0  ;;  %v8021_v50 = vpop.f32.mrb[52].mxu1  ;;  %v2452_v34 = vsel %vm1379_vm1, %v2079_v11, 0.0 }
 0x167   :  { %14002 = vst [vmem:[#allocation111_spill] sm:$0xff] %v8018_v29  ;;  %14003 = vst [vmem:[#allocation112_spill] sm:$0xff] %v8021_v50  ;;  %1646 = vadd.xlane.f32.xlu0 %v7551_v53  ;;  %1434 = vadd.xlane.f32.xlu1 %v7589_v36  ;;  %v1972_v8 = vmul.f32 %v8018_v29, %v8018_v29  ;;  %v8028_v43 = vpop.f32.mrb[53].mxu0  ;;  %v8030_v4 = vadd.f32 %v2236_v20, %v1970_v51  ;;  %v8032_v5 = vpop.f32.mrb[53].mxu1 }
 0x168   :  { %14001 = vst [vmem:[#allocation110_spill] sm:$0xff] %v8016_v17  ;;  %14004 = vst [vmem:[#allocation113_spill] sm:$0xff] %v8028_v43  ;;  %v1484_v54 = vsel %vm1379_vm1, %v8028_v43, 0.0  ;;  %v1973_v42 = vmul.f32 %v8028_v43, %v8028_v43  ;;  %v1700_v53 = vsel %vm1379_vm1, %v8032_v5, 0.0  ;;  %v2081_v36 = vmul.f32 %v8032_v5, %v8032_v5 }
 0x169   :  { %14005 = vst [vmem:[#allocation114_spill] sm:$0xff] %v8030_v4  ;;  %14006 = vst [vmem:[#allocation115_spill] sm:$0xff] %v8032_v5  ;;  %v2080_v11 = vmul.f32 %v8021_v50, %v8021_v50  ;;  %v8044_v59 = vadd.f32 %v2452_v34, %v2078_v44  ;;  %v8047_v20 = vadd.f32 %v1484_v54, %v8018_v29 }
 0x16a   :  { %v8050_v51 = vadd.f32 %v1700_v53, %v8021_v50  ;;  %v8052_v55 = vpop.f32.mrb[54].mxu0  ;;  %v8054_v43 = vpop.f32.mrb[54].mxu1  ;;  %v2240_v4 = vsel %vm1379_vm1, %v1973_v42, 0.0  ;;  %v2456_v17 = vsel %vm1379_vm1, %v2081_v36, 0.0 }
 0x16b   :  { %14008 = vst [vmem:[#allocation117_spill] sm:$0xff] %v8052_v55  ;;  %14009 = vst [vmem:[#allocation118_spill] sm:$0xff] %v8054_v43  ;;  %2186 = vadd.xlane.f32.xlu0 %v7574_v0  ;;  %1650 = vadd.xlane.f32.xlu1 %v7592_v56  ;;  %v1974_v34 = vmul.f32 %v8052_v55, %v8052_v55  ;;  %v8062_v44 = vpop.f32.mrb[55].mxu0  ;;  %v8064_v54 = vpop.f32.mrb[55].mxu1  ;;  %v8066_v53 = vadd.f32 %v2240_v4, %v1972_v8 }
 0x16c   :  { %14007 = vst [vmem:[#allocation116_spill] sm:$0xff] %v8050_v51  ;;  %14010 = vst [vmem:[#allocation119_spill] sm:$0xff] %v8062_v44  ;;  %v1488_v5 = vsel %vm1379_vm1, %v8062_v44, 0.0  ;;  %v1975_v42 = vmul.f32 %v8062_v44, %v8062_v44  ;;  %v1704_v0 = vsel %vm1379_vm1, %v8064_v54, 0.0  ;;  %v2083_v56 = vmul.f32 %v8064_v54, %v8064_v54 }
 0x16d   :  { %14011 = vst [vmem:[#allocation120_spill] sm:$0xff] %v8064_v54  ;;  %14012 = vst [vmem:[#allocation121_spill] sm:$0xff] %v8066_v53  ;;  %v2082_v36 = vmul.f32 %v8054_v43, %v8054_v43  ;;  %v8079_v50 = vadd.f32 %v1488_v5, %v8052_v55  ;;  %v8082_v8 = vadd.f32 %v1704_v0, %v8054_v43 }
 0x16e   :  { %v8084_v4 = vadd.f32 %v2456_v17, %v2080_v11  ;;  %v8086_v29 = vpop.f32.mrb[56].mxu0  ;;  %v2244_v44 = vsel %vm1379_vm1, %v1975_v42, 0.0  ;;  %v8089_v53 = vpop.f32.mrb[56].mxu1  ;;  %v2460_v51 = vsel %vm1379_vm1, %v2083_v56, 0.0 }
 0x16f   :  { %14014 = vst [vmem:[#allocation123_spill] sm:$0xff] %v8086_v29  ;;  %14015 = vst [vmem:[#allocation124_spill] sm:$0xff] %v8089_v53  ;;  %2402 = vadd.xlane.f32.xlu0 %v7576_v25  ;;  %2190 = vadd.xlane.f32.xlu1 %v7606_v28  ;;  %v1976_v5 = vmul.f32 %v8086_v29, %v8086_v29  ;;  %v8096_v54 = vpop.f32.mrb[57].mxu0  ;;  %v8098_v0 = vadd.f32 %v2244_v44, %v1974_v34  ;;  %v8100_v17 = vpop.f32.mrb[57].mxu1 }
 0x170   :  { %14013 = vst [vmem:[#allocation122_spill] sm:$0xff] %v8084_v4  ;;  %14016 = vst [vmem:[#allocation125_spill] sm:$0xff] %v8096_v54  ;;  %v1492_v11 = vsel %vm1379_vm1, %v8096_v54, 0.0  ;;  %v1977_v42 = vmul.f32 %v8096_v54, %v8096_v54  ;;  %v1708_v25 = vsel %vm1379_vm1, %v8100_v17, 0.0  ;;  %v2085_v28 = vmul.f32 %v8100_v17, %v8100_v17 }
 0x171   :  { %14017 = vst [vmem:[#allocation126_spill] sm:$0xff] %v8098_v0  ;;  %14018 = vst [vmem:[#allocation127_spill] sm:$0xff] %v8100_v17  ;;  %v2084_v56 = vmul.f32 %v8089_v53, %v8089_v53  ;;  %v8112_v43 = vadd.f32 %v2460_v51, %v2082_v36  ;;  %v8115_v34 = vadd.f32 %v1492_v11, %v8086_v29  ;;  %v216_v17 = vld [vmem:[%s13468_s2 + $0x2d8] sm:$0xff] }
 0x172   :  { %v8118_v44 = vadd.f32 %v1708_v25, %v8089_v53  ;;  %v8120_v55 = vpop.f32.mrb[58].mxu0  ;;  %v8122_v54 = vpop.f32.mrb[58].mxu1  ;;  %v2248_v0 = vsel %vm1379_vm1, %v1977_v42, 0.0  ;;  %v2464_v4 = vsel %vm1379_vm1, %v2085_v28, 0.0  ;;  %v215_v42 = vld [vmem:[%s13468_s2 + $0x2d0] sm:$0xff]  ;;  %5857 = vmatprep.mubr.msk.f32.mxu0 %vm341_vm0, %v216_v17 }
 0x173   :  { %14019 = vst [vmem:[#allocation128_spill] sm:$0xff] %v8115_v34  ;;  %14021 = vst [vmem:[#allocation130_spill] sm:$0xff] %v8120_v55  ;;  %2406 = vadd.xlane.f32.xlu1 %v7610_v32  ;;  %1438 = vadd.xlane.f32.xlu0 %v7623_v15  ;;  %v1978_v51 = vmul.f32 %v8120_v55, %v8120_v55  ;;  %v8133_v36 = vpop.f32.mrb[59].mxu0  ;;  %v8135_v11 = vpop.f32.mrb[59].mxu1  ;;  %v8137_v25 = vadd.f32 %v2248_v0, %v1976_v5 }
 0x174   :  { %14020 = vst [vmem:[#allocation129_spill] sm:$0xff] %v8118_v44  ;;  %14022 = vst [vmem:[#allocation131_spill] sm:$0xff] %v8122_v54  ;;  %v1496_v28 = vsel %vm1379_vm1, %v8133_v36, 0.0  ;;  %v1979_v32 = vmul.f32 %v8133_v36, %v8133_v36  ;;  %v1712_v15 = vsel %vm1379_vm1, %v8135_v11, 0.0  ;;  %v2087_v53 = vmul.f32 %v8135_v11, %v8135_v11  ;;  %1001 = vmatmul.mubr.f32.gmra.mrb[90].mxu0 %v215_v42 }
 0x175   :  { %14023 = vst [vmem:[#allocation132_spill] sm:$0xff] %v8133_v36  ;;  %14024 = vst [vmem:[#allocation133_spill] sm:$0xff] %v8135_v11  ;;  %v2086_v5 = vmul.f32 %v8122_v54, %v8122_v54  ;;  %v8154_v0 = vadd.f32 %v1496_v28, %v8120_v55  ;;  %v8157_v29 = vadd.f32 %v1712_v15, %v8122_v54  ;;  %v324_v11 = vld [vmem:[%s13468_s2 + $0x638] sm:$0xff] }
 0x176   :  { %14025 = vst [vmem:[#allocation134_spill] sm:$0xff] %v8137_v25  ;;  %v8159_v25 = vadd.f32 %v2464_v4, %v2084_v56  ;;  %v8161_v36 = vpop.f32.mrb[60].mxu0  ;;  %v2252_v44 = vsel %vm1379_vm1, %v1979_v32, 0.0  ;;  %v8164_v34 = vpop.f32.mrb[60].mxu1  ;;  %v2468_v17 = vsel %vm1379_vm1, %v2087_v53, 0.0  ;;  %v323_v53 = vld [vmem:[%s13468_s2 + $0x630] sm:$0xff]  ;;  %5911 = vmatprep.mubr.msk.f32.mxu1 %vm341_vm0, %v324_v11 }
 0x177   :  { %14026 = vst [vmem:[#allocation135_spill] sm:$0xff] %v8161_v36  ;;  %14027 = vst [vmem:[#allocation136_spill] sm:$0xff] %v8164_v34  ;;  %1654 = vadd.xlane.f32.xlu0 %v7626_v26  ;;  %1442 = vadd.xlane.f32.xlu1 %v7664_v46  ;;  %v1980_v4 = vmul.f32 %v8161_v36, %v8161_v36  ;;  %v8174_v56 = vpop.f32.mrb[61].mxu0  ;;  %v8176_v42 = vadd.f32 %v2252_v44, %v1978_v51  ;;  %v8178_v28 = vpop.f32.mrb[61].mxu1 }
 0x178   :  { %14028 = vst [vmem:[#allocation137_spill] sm:$0xff] %v8174_v56  ;;  %14030 = vst [vmem:[#allocation139_spill] sm:$0xff] %v8178_v28  ;;  %v1500_v32 = vsel %vm1379_vm1, %v8174_v56, 0.0  ;;  %v1981_v26 = vmul.f32 %v8174_v56, %v8174_v56  ;;  %v1716_v46 = vsel %vm1379_vm1, %v8178_v28, 0.0  ;;  %v2089_v15 = vmul.f32 %v8178_v28, %v8178_v28  ;;  %1325 = vmatmul.mubr.f32.gmra.mrb[90].mxu1 %v323_v53 }
 0x179   :  { %14029 = vst [vmem:[#allocation138_spill] sm:$0xff] %v8176_v42  ;;  %v2088_v44 = vmul.f32 %v8164_v34, %v8164_v34  ;;  %v8194_v51 = vadd.f32 %v2468_v17, %v2086_v5  ;;  %v8197_v54 = vadd.f32 %v1500_v32, %v8161_v36  ;;  %v8200_v55 = vadd.f32 %v1716_v46, %v8164_v34  ;;  %v218_v34 = vld [vmem:[%s13468_s2 + $0x2e8] sm:$0xff] }
 0x17a   :  { %v8202_v56 = vpop.f32.mrb[62].mxu0  ;;  %v8204_v42 = vpop.f32.mrb[62].mxu1  ;;  %v2256_v28 = vsel %vm1379_vm1, %v1981_v26, 0.0  ;;  %v2472_v11 = vsel %vm1379_vm1, %v2089_v15, 0.0  ;;  %5858 = vmatprep.mubr.msk.f32.mxu0 %vm341_vm0, %v218_v34 }
 0x17b   :  { %14031 = vst [vmem:[#allocation140_spill] sm:$0xff] %v8200_v55  ;;  %14032 = vst [vmem:[#allocation141_spill] sm:$0xff] %v8202_v56  ;;  %2194 = vadd.xlane.f32.xlu0 %v7642_v10  ;;  %1658 = vadd.xlane.f32.xlu1 %v7667_v39  ;;  %v1982_v5 = vmul.f32 %v8202_v56, %v8202_v56  ;;  %v8212_v17 = vpop.f32.mrb[63].mxu0  ;;  %v2090_v53 = vmul.f32 %v8204_v42, %v8204_v42  ;;  %v8216_v32 = vpop.f32.mrb[63].mxu1 }
 0x17c   :  { %14033 = vst [vmem:[#allocation142_spill] sm:$0xff] %v8204_v42  ;;  %14034 = vst [vmem:[#allocation143_spill] sm:$0xff] %v8212_v17  ;;  %v8218_v46 = vadd.f32 %v2256_v28, %v1980_v4  ;;  %v1504_v26 = vsel %vm1379_vm1, %v8212_v17, 0.0  ;;  %v1983_v10 = vmul.f32 %v8212_v17, %v8212_v17  ;;  %v1720_v39 = vsel %vm1379_vm1, %v8216_v32, 0.0  ;;  %v217_v28 = vld [vmem:[%s13468_s2 + $0x2e0] sm:$0xff] }
 0x17d   :  { %14035 = vst [vmem:[#allocation144_spill] sm:$0xff] %v8216_v32  ;;  %v2091_v15 = vmul.f32 %v8216_v32, %v8216_v32  ;;  %v8232_v36 = vadd.f32 %v1504_v26, %v8202_v56  ;;  %v8235_v4 = vadd.f32 %v1720_v39, %v8204_v42  ;;  %v8241_v17 = vadd.f32 %v2472_v11, %v2088_v44 }
 0x17e   :  { %14036 = vst [vmem:[#allocation145_spill] sm:$0xff] %v8218_v46  ;;  %v8243_v46 = vpop.f32.mrb[64].mxu0  ;;  %1007 = vmatmul.mubr.f32.gmra.mrb[92].mxu0 %v217_v28  ;;  %v2260_v32 = vsel %vm1379_vm1, %v1983_v10, 0.0 }
 0x17f   :  { %14037 = vst [vmem:[#allocation146_spill] sm:$0xff] %v8243_v46  ;;  %v2476_v55 = vsel %vm1379_vm1, %v2091_v15, 0.0  ;;  %2410 = vadd.xlane.f32.xlu0 %v7644_v58  ;;  %2198 = vadd.xlane.f32.xlu1 %v7681_v62  ;;  %v8249_v26 = vpop.f32.mrb[65].mxu0  ;;  %v8251_v34 = vadd.f32 %v2260_v32, %v1982_v5  ;;  %v1984_v44 = vmul.f32 %v8243_v46, %v8243_v46  ;;  %v326_v58 = vld [vmem:[%s13468_s2 + $0x648] sm:$0xff]  ;;  %v8264_v62 = vpop.f32.mrb[64].mxu1 }
 0x180   :  { %14038 = vst [vmem:[#allocation147_spill] sm:$0xff] %v8249_v26  ;;  %v8253_v39 = vadd.f32 %v2476_v55, %v2090_v53  ;;  %v1508_v11 = vsel %vm1379_vm1, %v8249_v26, 0.0  ;;  %v1985_v10 = vmul.f32 %v8249_v26, %v8249_v26  ;;  %14039 = vst [vmem:[#allocation148_spill] sm:$0xff] %v8264_v62  ;;  %5912 = vmatprep.mubr.msk.f32.mxu1 %vm341_vm0, %v326_v58  ;;  %v325_v55 = vld [vmem:[%s13468_s2 + $0x640] sm:$0xff]  ;;  %v8275_v32 = vpop.f32.mrb[65].mxu1 }
 0x181   :  { %v8271_v5 = vadd.f32 %v1508_v11, %v8243_v46  ;;  %14041 = vst [vmem:[#allocation150_spill] sm:$0xff] %v8275_v32  ;;  %1331 = vmatmul.mubr.f32.gmra.mrb[92].mxu1 %v325_v55  ;;  %v1724_v58 = vsel %vm1379_vm1, %v8275_v32, 0.0  ;;  %v2093_v11 = vmul.f32 %v8275_v32, %v8275_v32  ;;  %v2092_v56 = vmul.f32 %v8264_v62, %v8264_v62 }
 0x182   :  { %v8273_v53 = vpop.f32.mrb[66].mxu0  ;;  %v2264_v15 = vsel %vm1379_vm1, %v1985_v10, 0.0  ;;  %v8296_v55 = vpop.f32.mrb[66].mxu1  ;;  %v8299_v26 = vadd.f32 %v1724_v58, %v8264_v62 }
 0x183   :  { %14040 = vst [vmem:[#allocation149_spill] sm:$0xff] %v8273_v53  ;;  %2414 = vadd.xlane.f32.xlu1 %v7685_v23  ;;  %1446 = vadd.xlane.f32.xlu0 %v7705_v13  ;;  %v8280_v28 = vpop.f32.mrb[67].mxu0  ;;  %v8286_v42 = vadd.f32 %v2264_v15, %v1984_v44  ;;  %v1986_v10 = vmul.f32 %v8273_v53, %v8273_v53  ;;  %14044 = vst [vmem:[#allocation153_spill] sm:$0xff] %v8296_v55  ;;  %v2480_v15 = vsel %vm1379_vm1, %v2093_v11, 0.0  ;;  %v8305_v32 = vpop.f32.mrb[67].mxu1 }
 0x184   :  { %14042 = vst [vmem:[#allocation151_spill] sm:$0xff] %v8280_v28  ;;  %v1512_v23 = vsel %vm1379_vm1, %v8280_v28, 0.0  ;;  %v1987_v13 = vmul.f32 %v8280_v28, %v8280_v28  ;;  %14045 = vst [vmem:[#allocation154_spill] sm:$0xff] %v8305_v32  ;;  %v8307_v46 = vadd.f32 %v2480_v15, %v2092_v56  ;;  %v1728_v28 = vsel %vm1379_vm1, %v8305_v32, 0.0 }
 0x185   :  { %14043 = vst [vmem:[#allocation152_spill] sm:$0xff] %v8286_v42  ;;  %v8302_v44 = vadd.f32 %v1512_v23, %v8273_v53  ;;  %v2095_v58 = vmul.f32 %v8305_v32, %v8305_v32  ;;  %v2094_v11 = vmul.f32 %v8296_v55, %v8296_v55  ;;  %v8321_v56 = vadd.f32 %v1728_v28, %v8296_v55 }
 0x186   :  { %v2268_v42 = vsel %vm1379_vm1, %v1987_v13, 0.0 }
 0x187   :  { %1662 = vadd.xlane.f32.xlu0 %v7708_v41  ;;  %1450 = vadd.xlane.f32.xlu1 %v7739_v47  ;;  %v8316_v23 = vadd.f32 %v2268_v42, %v1986_v10  ;;  %v2484_v13 = vsel %vm1379_vm1, %v2095_v58, 0.0  ;;  %v8328_v41 = vpop.f32.mrb[68].mxu0  ;;  %v8343_v58 = vpop.f32.mrb[68].mxu1 }
 0x188   :  { %v8324_v15 = vadd.f32 %v2484_v13, %v2094_v11  ;;  %14048 = vst [vmem:[#allocation157_spill] sm:$0xff] %v8328_v41  ;;  %v8330_v47 = vpop.f32.mrb[69].mxu0  ;;  %14051 = vst [vmem:[#allocation160_spill] sm:$0xff] %v8343_v58  ;;  %v8350_v13 = vpop.f32.mrb[69].mxu1 }
 0x189   :  { %14046 = vst [vmem:[#allocation155_spill] sm:$0xff] %v8316_v23  ;;  %14049 = vst [vmem:[#allocation158_spill] sm:$0xff] %v8330_v47  ;;  %v1516_v42 = vsel %vm1379_vm1, %v8330_v47, 0.0  ;;  %v1989_v28 = vmul.f32 %v8330_v47, %v8330_v47  ;;  %v1732_v62 = vsel %vm1379_vm1, %v8350_v13, 0.0  ;;  %v2096_v47 = vmul.f32 %v8343_v58, %v8343_v58 }
 0x18a   :  { %14047 = vst [vmem:[#allocation156_spill] sm:$0xff] %v8324_v15  ;;  %v8345_v11 = vpop.f32.mrb[70].mxu0  ;;  %14054 = vst [vmem:[#allocation163_spill] sm:$0xff] %v8350_v13 }
 0x18b   :  { %2202 = vadd.xlane.f32.xlu0 %v7724_v38  ;;  %1666 = vadd.xlane.f32.xlu1 %v7742_v7  ;;  %v1988_v38 = vmul.f32 %v8328_v41, %v8328_v41  ;;  %v8341_v7 = vadd.f32 %v1516_v42, %v8328_v41  ;;  %14052 = vst [vmem:[#allocation161_spill] sm:$0xff] %v8345_v11 }
 0x18d   :  { %14050 = vst [vmem:[#allocation159_spill] sm:$0xff] %v8341_v7 }
 0x18f   :  { %2418 = vadd.xlane.f32.xlu0 %v7726_v18  ;;  %2206 = vadd.xlane.f32.xlu1 %v7756_v22  ;;  %v2272_v18 = vsel %vm1379_vm1, %v1989_v28, 0.0  ;;  %v8348_v22 = vpop.f32.mrb[71].mxu0 }
 0x190   :  { %v1383_v10 = vpop.xlane.xlu0 %1382  ;;  %14053 = vst [vmem:[#allocation162_spill] sm:$0xff] %v8348_v22  ;;  %v8352_v32 = vadd.f32 %v2272_v18, %v1988_v38  ;;  %v1520_v42 = vsel %vm1379_vm1, %v8348_v22, 0.0  ;;  %v1991_v55 = vmul.f32 %v8348_v22, %v8348_v22  ;;  %v1990_v38 = vmul.f32 %v8345_v11, %v8345_v11  ;;  %v8373_v22 = vpop.f32.mrb[70].mxu1 }
 0x191   :  { %v8371_v18 = vmul.f32 0.0051020407, %v1383_v10  ;;  %14057 = vst [vmem:[#allocation166_spill] sm:$0xff] %v8373_v22  ;;  %v8376_v41 = vadd.f32 %v1520_v42, %v8345_v11  ;;  %v8379_v7 = vpop.f32.mrb[71].mxu1 }
 0x192   :  { %14055 = vst [vmem:[#allocation164_spill] sm:$0xff] %v8352_v32  ;;  %v2276_v32 = vsel %vm1379_vm1, %v1991_v55, 0.0  ;;  %14058 = vst [vmem:[#allocation167_spill] sm:$0xff] %v8379_v7  ;;  %v2099_v10 = vmul.f32 %v8379_v7, %v8379_v7 }
 0x193   :  { %2422 = vadd.xlane.f32.xlu1 %v7760_v3  ;;  %1454 = vadd.xlane.f32.xlu0 %v7773_v12  ;;  %v2097_v3 = vmul.f32 %v8350_v13, %v8350_v13  ;;  %v8369_v12 = vadd.f32 %v1732_v62, %v8343_v58  ;;  %14056 = vst [vmem:[#allocation165_spill] sm:$0xff] %v8371_v18  ;;  %v1736_v62 = vsel %vm1379_vm1, %v8379_v7, 0.0 }
 0x194   :  { %v1603_v28 = vpop.xlane.xlu1 %1602  ;;  %v1599_v53 = vpop.xlane.xlu0 %1598  ;;  %v8382_v23 = vadd.f32 %v2276_v32, %v1990_v38  ;;  %v2098_v58 = vmul.f32 %v8373_v22, %v8373_v22  ;;  %v8395_v32 = vadd.f32 %v1736_v62, %v8373_v22 }
 0x195   :  { %v2488_v15 = vsel %vm1379_vm1, %v2097_v3, 0.0  ;;  %v8390_v42 = vmul.f32 0.0051020407, %v1603_v28  ;;  %v2492_v28 = vsel %vm1379_vm1, %v2099_v10, 0.0  ;;  %v8426_v10 = vpop.f32.mrb[72].mxu0 }
 0x196   :  { %14059 = vst [vmem:[#allocation168_spill] sm:$0xff] %v8382_v23  ;;  %v8397_v38 = vadd.f32 %v2488_v15, %v2096_v47  ;;  %v8408_v7 = vadd.f32 %v2492_v28, %v2098_v58  ;;  %14069 = vst [vmem:[#allocation178_spill] sm:$0xff] %v8426_v10  ;;  %v8428_v28 = vpop.f32.mrb[73].mxu0 }
 0x197   :  { %1670 = vadd.xlane.f32.xlu0 %v7776_v57  ;;  %1458 = vadd.xlane.f32.xlu1 %v7807_v40  ;;  %14060 = vst [vmem:[#allocation169_spill] sm:$0xff] %v8390_v42  ;;  %v8401_v57 = vmul.f32 %v8371_v18, %v8371_v18  ;;  %v8403_v40 = vmul.f32 0.0051020407, %v1599_v53  ;;  %v8416_v62 = vmul.f32 %v8390_v42, %v8390_v42  ;;  %14070 = vst [vmem:[#allocation179_spill] sm:$0xff] %v8428_v28 }
 0x198   :  { %v2139_v13 = vpop.xlane.xlu0 %2138  ;;  %v2143_v55 = vpop.xlane.xlu1 %2142  ;;  %14064 = vst [vmem:[#allocation173_spill] sm:$0xff] %v8408_v7 }
 0x199   :  { %14061 = vst [vmem:[#allocation170_spill] sm:$0xff] %v8401_v57  ;;  %14062 = vst [vmem:[#allocation171_spill] sm:$0xff] %v8403_v40  ;;  %v8405_v3 = vmul.f32 0.0051020407, %v2139_v13  ;;  %v8420_v53 = vmul.f32 %v8403_v40, %v8403_v40  ;;  %v8445_v40 = vpop.f32.mrb[72].mxu1 }
 0x19a   :  { %14065 = vst [vmem:[#allocation174_spill] sm:$0xff] %v8416_v62  ;;  %14073 = vst [vmem:[#allocation182_spill] sm:$0xff] %v8445_v40  ;;  %v8453_v62 = vmul.f32 0.0051020407, %v2143_v55 }
 0x19b   :  { %14063 = vst [vmem:[#allocation172_spill] sm:$0xff] %v8405_v3  ;;  %2210 = vadd.xlane.f32.xlu0 %v7792_v52  ;;  %1674 = vadd.xlane.f32.xlu1 %v7810_v30  ;;  %14066 = vst [vmem:[#allocation175_spill] sm:$0xff] %v8420_v53  ;;  %v1993_v52 = vmul.f32 %v8428_v28, %v8428_v28  ;;  %v8447_v30 = vpop.f32.mrb[74].mxu0 }
 0x19c   :  { %v2355_v15 = vpop.xlane.xlu0 %2354  ;;  %v2359_v47 = vpop.xlane.xlu1 %2358  ;;  %14074 = vst [vmem:[#allocation183_spill] sm:$0xff] %v8447_v30  ;;  %14077 = vst [vmem:[#allocation186_spill] sm:$0xff] %v8453_v62 }
 0x19d   :  { %v8422_v13 = vmul.f32 0.0051020407, %v2355_v15  ;;  %v8424_v58 = vmul.f32 0.0051020407, %v2359_v47  ;;  %v1524_v15 = vsel %vm1379_vm1, %v8428_v28, 0.0 }
 0x19e   :  { %v8439_v22 = vadd.f32 %v1524_v15, %v8426_v10 }
 0x19f   :  { %14067 = vst [vmem:[#allocation176_spill] sm:$0xff] %v8422_v13  ;;  %14068 = vst [vmem:[#allocation177_spill] sm:$0xff] %v8424_v58  ;;  %2426 = vadd.xlane.f32.xlu0 %v7794_v61  ;;  %2214 = vadd.xlane.f32.xlu1 %v7824_v6  ;;  %v8449_v61 = vpop.f32.mrb[75].mxu0  ;;  %v8451_v6 = vpop.f32.mrb[73].mxu1  ;;  %v1992_v13 = vmul.f32 %v8426_v10, %v8426_v10 }
 0x1a0   :  { %v1387_v11 = vpop.xlane.xlu0 %1386  ;;  %v1391_v47 = vpop.xlane.xlu1 %1390  ;;  %14071 = vst [vmem:[#allocation180_spill] sm:$0xff] %v8439_v22  ;;  %14075 = vst [vmem:[#allocation184_spill] sm:$0xff] %v8449_v61 }
 0x1a1   :  { %v8441_v42 = vmul.f32 0.0051020407, %v1387_v11  ;;  %14076 = vst [vmem:[#allocation185_spill] sm:$0xff] %v8451_v6  ;;  %v8459_v15 = vmul.f32 0.0051020407, %v1391_v47  ;;  %v1528_v11 = vsel %vm1379_vm1, %v8449_v61, 0.0 }
 0x1a2   :  { %v8469_v18 = vpop.f32.mrb[74].mxu1  ;;  %v2280_v47 = vsel %vm1379_vm1, %v1993_v52, 0.0  ;;  %v8481_v10 = vadd.f32 %v1528_v11, %v8447_v30  ;;  %v2100_v52 = vmul.f32 %v8445_v40, %v8445_v40 }
 0x1a3   :  { %14072 = vst [vmem:[#allocation181_spill] sm:$0xff] %v8441_v42  ;;  %v8457_v58 = vmul.f32 %v8441_v42, %v8441_v42  ;;  %14079 = vst [vmem:[#allocation188_spill] sm:$0xff] %v8459_v15  ;;  %2430 = vadd.xlane.f32.xlu1 %v7828_v19  ;;  %1462 = vadd.xlane.f32.xlu0 %v7841_v1  ;;  %v1995_v19 = vmul.f32 %v8449_v61, %v8449_v61  ;;  %v1740_v1 = vsel %vm1379_vm1, %v8451_v6, 0.0  ;;  %v8478_v57 = vpop.f32.mrb[75].mxu1 }
 0x1a4   :  { %v1607_v28 = vpop.xlane.xlu0 %1606  ;;  %v1395_v53 = vpop.xlane.xlu1 %1394  ;;  %14080 = vst [vmem:[#allocation189_spill] sm:$0xff] %v8469_v18  ;;  %v2101_v42 = vmul.f32 %v8451_v6, %v8451_v6  ;;  %14081 = vst [vmem:[#allocation190_spill] sm:$0xff] %v8478_v57  ;;  %v8485_v55 = vmul.f32 %v8459_v15, %v8459_v15  ;;  %v1994_v61 = vmul.f32 %v8447_v30, %v8447_v30  ;;  %v1744_v6 = vsel %vm1379_vm1, %v8478_v57, 0.0 }
 0x1a5   :  { %14078 = vst [vmem:[#allocation187_spill] sm:$0xff] %v8457_v58  ;;  %14082 = vst [vmem:[#allocation191_spill] sm:$0xff] %v8481_v10  ;;  %v2102_v58 = vmul.f32 %v8469_v18, %v8469_v18  ;;  %v2103_v15 = vmul.f32 %v8478_v57, %v8478_v57  ;;  %v8504_v62 = vmul.f32 0.0051020407, %v1607_v28  ;;  %v8506_v10 = vmul.f32 0.0051020407, %v1395_v53 }
 0x1a6   :  { %14083 = vst [vmem:[#allocation192_spill] sm:$0xff] %v8485_v55  ;;  %v8511_v22 = vadd.f32 %v1744_v6, %v8469_v18  ;;  %v2496_v7 = vsel %vm1379_vm1, %v2101_v42, 0.0  ;;  %v2284_v23 = vsel %vm1379_vm1, %v1995_v19, 0.0 }
 0x1a7   :  { %1678 = vadd.xlane.f32.xlu0 %v7844_v37  ;;  %1466 = vadd.xlane.f32.xlu1 %v7875_v33  ;;  %v8500_v37 = vadd.f32 %v1740_v1, %v8445_v40  ;;  %v8502_v33 = vadd.f32 %v2280_v47, %v1992_v13  ;;  %14084 = vst [vmem:[#allocation193_spill] sm:$0xff] %v8504_v62  ;;  %14085 = vst [vmem:[#allocation194_spill] sm:$0xff] %v8506_v10  ;;  %v2500_v57 = vsel %vm1379_vm1, %v2103_v15, 0.0 }
 0x1a8   :  { %v2147_v3 = vpop.xlane.xlu0 %2146  ;;  %v1611_v11 = vpop.xlane.xlu1 %1610  ;;  %v8520_v53 = vadd.f32 %v2496_v7, %v2100_v52  ;;  %v8524_v6 = vadd.f32 %v2284_v23, %v1994_v61  ;;  %v8526_v42 = vadd.f32 %v2500_v57, %v2102_v58  ;;  %v8530_v15 = vmul.f32 %v8504_v62, %v8504_v62 }
 0x1a9   :  { %v8508_v30 = vmul.f32 0.0051020407, %v2147_v3  ;;  %v8522_v3 = vmul.f32 0.0051020407, %v1611_v11  ;;  %v8534_v47 = vmul.f32 %v8506_v10, %v8506_v10  ;;  %v8540_v7 = vpop.f32.mrb[76].mxu0  ;;  %v8561_v23 = vpop.f32.mrb[76].mxu1 }
 0x1aa   :  { %14088 = vst [vmem:[#allocation197_spill] sm:$0xff] %v8530_v15  ;;  %14092 = vst [vmem:[#allocation201_spill] sm:$0xff] %v8540_v7  ;;  %v8542_v19 = vpop.f32.mrb[77].mxu0 }
 0x1ab   :  { %14086 = vst [vmem:[#allocation195_spill] sm:$0xff] %v8508_v30  ;;  %2218 = vadd.xlane.f32.xlu0 %v7860_v48  ;;  %1682 = vadd.xlane.f32.xlu1 %v7878_v2  ;;  %14087 = vst [vmem:[#allocation196_spill] sm:$0xff] %v8522_v3  ;;  %v1532_v58 = vsel %vm1379_vm1, %v8542_v19, 0.0  ;;  %v8563_v57 = vpop.f32.mrb[78].mxu0 }
 0x1ac   :  { %v2363_v13 = vpop.xlane.xlu0 %2362  ;;  %v2151_v28 = vpop.xlane.xlu1 %2150  ;;  %14089 = vst [vmem:[#allocation198_spill] sm:$0xff] %v8534_v47  ;;  %14093 = vst [vmem:[#allocation202_spill] sm:$0xff] %v8542_v19  ;;  %v8553_v11 = vadd.f32 %v1532_v58, %v8540_v7  ;;  %v1997_v58 = vmul.f32 %v8542_v19, %v8542_v19 }
 0x1ad   :  { %v8536_v48 = vmul.f32 0.0051020407, %v2363_v13  ;;  %v8538_v2 = vmul.f32 0.0051020407, %v2151_v28  ;;  %v8557_v13 = vmul.f32 %v8522_v3, %v8522_v3  ;;  %14096 = vst [vmem:[#allocation205_spill] sm:$0xff] %v8561_v23  ;;  %14097 = vst [vmem:[#allocation206_spill] sm:$0xff] %v8563_v57 }
 0x1af   :  { %14090 = vst [vmem:[#allocation199_spill] sm:$0xff] %v8536_v48  ;;  %14091 = vst [vmem:[#allocation200_spill] sm:$0xff] %v8538_v2  ;;  %2434 = vadd.xlane.f32.xlu0 %v7862_v35  ;;  %2222 = vadd.xlane.f32.xlu1 %v7892_v60  ;;  %v8565_v35 = vpop.f32.mrb[79].mxu0  ;;  %v8567_v60 = vpop.f32.mrb[77].mxu1 }
 0x1b0   :  { %v2367_v61 = vpop.xlane.xlu1 %2366  ;;  %v1399_v52 = vpop.xlane.xlu0 %1398  ;;  %14094 = vst [vmem:[#allocation203_spill] sm:$0xff] %v8557_v13  ;;  %14098 = vst [vmem:[#allocation207_spill] sm:$0xff] %v8565_v35  ;;  %v1536_v1 = vsel %vm1379_vm1, %v8565_v35, 0.0  ;;  %v1999_v19 = vmul.f32 %v8565_v35, %v8565_v35  ;;  %v1748_v62 = vsel %vm1379_vm1, %v8567_v60, 0.0 }
 0x1b1   :  { %v8559_v28 = vmul.f32 0.0051020407, %v2367_v61  ;;  %14099 = vst [vmem:[#allocation208_spill] sm:$0xff] %v8567_v60  ;;  %v8571_v18 = vmul.f32 0.0051020407, %v1399_v52  ;;  %v220_v61 = vld [vmem:[%s13468_s2 + $0x2f8] sm:$0xff]  ;;  %v8620_v10 = vadd.f32 %v1748_v62, %v8561_v23  ;;  %v8632_v30 = vadd.f32 %v1536_v1, %v8563_v57 }
 0x1b2   :  { %5859 = vmatprep.mubr.msk.f32.mxu0 %vm341_vm0, %v220_v61  ;;  %v219_v52 = vld [vmem:[%s13468_s2 + $0x2f0] sm:$0xff]  ;;  %v2105_v61 = vmul.f32 %v8567_v60, %v8567_v60  ;;  %v328_v60 = vld [vmem:[%s13468_s2 + $0x658] sm:$0xff] }
 0x1b3   :  { %14095 = vst [vmem:[#allocation204_spill] sm:$0xff] %v8559_v28  ;;  %14100 = vst [vmem:[#allocation209_spill] sm:$0xff] %v8571_v18  ;;  %2438 = vadd.xlane.f32.xlu1 %v7896_v49  ;;  %1470 = vadd.xlane.f32.xlu0 %v7909_v16  ;;  %v1996_v49 = vmul.f32 %v8540_v7, %v8540_v7  ;;  %v8586_v16 = vpop.f32.mrb[78].mxu1  ;;  %v8600_v7 = vmul.f32 %v8571_v18, %v8571_v18  ;;  %v2288_v28 = vsel %vm1379_vm1, %v1997_v58, 0.0  ;;  %v327_v58 = vld [vmem:[%s13468_s2 + $0x650] sm:$0xff] }
 0x1b4   :  { %v1615_v40 = vpop.xlane.xlu0 %1614  ;;  %v1403_v3 = vpop.xlane.xlu1 %1402  ;;  %1013 = vmatmul.mubr.f32.gmra.mrb[94].mxu0 %v219_v52  ;;  %14101 = vst [vmem:[#allocation210_spill] sm:$0xff] %v8586_v16  ;;  %v2104_v52 = vmul.f32 %v8561_v23, %v8561_v23  ;;  %v1998_v18 = vmul.f32 %v8563_v57, %v8563_v57  ;;  %5913 = vmatprep.mubr.msk.f32.mxu1 %vm341_vm0, %v328_v60  ;;  %v2504_v62 = vsel %vm1379_vm1, %v2105_v61, 0.0  ;;  %v2292_v23 = vsel %vm1379_vm1, %v1999_v19, 0.0 }
 0x1b5   :  { %v8596_v13 = vpop.f32.mrb[79].mxu1  ;;  %14103 = vst [vmem:[#allocation212_spill] sm:$0xff] %v8600_v7  ;;  %v8625_v47 = vmul.f32 0.0051020407, %v1615_v40  ;;  %v8627_v2 = vmul.f32 0.0051020407, %v1403_v3  ;;  %1337 = vmatmul.mubr.f32.gmra.mrb[94].mxu1 %v327_v58 }
 0x1b6   :  { %14102 = vst [vmem:[#allocation211_spill] sm:$0xff] %v8596_v13  ;;  %v1752_v35 = vsel %vm1379_vm1, %v8596_v13, 0.0  ;;  %v8645_v3 = vadd.f32 %v2504_v62, %v2104_v52  ;;  %v14114_v62 = vld [vmem:[#allocation101_spill] sm:$0xff] }
 0x1b7   :  { %1686 = vadd.xlane.f32.xlu0 %v7912_v27  ;;  %1474 = vadd.xlane.f32.xlu1 %v7943_v14  ;;  %v2106_v27 = vmul.f32 %v8586_v16, %v8586_v16  ;;  %v2107_v14 = vmul.f32 %v8596_v13, %v8596_v13  ;;  %14104 = vst [vmem:[#allocation213_spill] sm:$0xff] %v8625_v47  ;;  %14105 = vst [vmem:[#allocation214_spill] sm:$0xff] %v8627_v2 }
 0x1b8   :  { %v2155_v15 = vpop.xlane.xlu0 %2154  ;;  %v1619_v48 = vpop.xlane.xlu1 %1618  ;;  %v8634_v13 = vadd.f32 %v2288_v28, %v1996_v49  ;;  %v8637_v60 = vadd.f32 %v1752_v35, %v8586_v16  ;;  %v8650_v49 = vadd.f32 %v2292_v23, %v1998_v18  ;;  %v8656_v19 = vmul.f32 %v8625_v47, %v8625_v47  ;;  %v222_v18 = vld [vmem:[%s13468_s2 + $0x308] sm:$0xff]  ;;  %v221_v23 = vld [vmem:[%s13468_s2 + $0x300] sm:$0xff] }
 0x1b9   :  { %v8629_v55 = vmul.f32 0.0051020407, %v2155_v15  ;;  %v2508_v1 = vsel %vm1379_vm1, %v2107_v14, 0.0  ;;  %v8648_v15 = vmul.f32 0.0051020407, %v1619_v48  ;;  %v8666_v48 = vpop.f32.mrb[80].mxu0  ;;  %5860 = vmatprep.mubr.msk.f32.mxu0 %vm341_vm0, %v222_v18 }
 0x1ba   :  { %v8652_v61 = vadd.f32 %v2508_v1, %v2106_v27  ;;  %14108 = vst [vmem:[#allocation217_spill] sm:$0xff] %v8656_v19  ;;  %14112 = vst [vmem:[#allocation221_spill] sm:$0xff] %v8666_v48  ;;  %v8668_v14 = vpop.f32.mrb[81].mxu0  ;;  %1019 = vmatmul.mubr.f32.gmra.mrb[96].mxu0 %v221_v23  ;;  %v330_v18 = vld [vmem:[%s13468_s2 + $0x668] sm:$0xff]  ;;  %v14122_v23 = vld [vmem:[#allocation105_spill] sm:$0xff] }
 0x1bb   :  { %14106 = vst [vmem:[#allocation215_spill] sm:$0xff] %v8629_v55  ;;  %2226 = vadd.xlane.f32.xlu0 %v7928_v9  ;;  %1690 = vadd.xlane.f32.xlu1 %v7946_v45  ;;  %14107 = vst [vmem:[#allocation216_spill] sm:$0xff] %v8648_v15  ;;  %v8660_v9 = vmul.f32 %v8627_v2, %v8627_v2  ;;  %v1540_v1 = vsel %vm1379_vm1, %v8668_v14, 0.0  ;;  %v8690_v27 = vmul.f32 %v8648_v15, %v8648_v15 }
 0x1bc   :  { %v2371_v28 = vpop.xlane.xlu0 %2370  ;;  %v2159_v35 = vpop.xlane.xlu1 %2158  ;;  %14113 = vst [vmem:[#allocation222_spill] sm:$0xff] %v8668_v14  ;;  %v8686_v40 = vadd.f32 %v1540_v1, %v8666_v48  ;;  %v329_v1 = vld [vmem:[%s13468_s2 + $0x660] sm:$0xff]  ;;  %5914 = vmatprep.mubr.msk.f32.mxu1 %vm341_vm0, %v330_v18 }
 0x1bd   :  { %14109 = vst [vmem:[#allocation218_spill] sm:$0xff] %v8660_v9  ;;  %v8662_v45 = vmul.f32 0.0051020407, %v2371_v28  ;;  %v8664_v52 = vmul.f32 0.0051020407, %v2159_v35  ;;  %14116 = vst [vmem:[#allocation223_spill] sm:$0xff] %v8690_v27  ;;  %v2000_v9 = vmul.f32 %v8666_v48, %v8666_v48  ;;  %1343 = vmatmul.mubr.f32.gmra.mrb[96].mxu1 %v329_v1 }
 0x1be   :  { %14115 = vst [vmem:[#allocation101_spill] sm:$0xff] %v8686_v40  ;;  %v14128_v48 = vld [vmem:[#allocation103_spill] sm:$0xff] }
 0x1bf   :  { %14110 = vst [vmem:[#allocation219_spill] sm:$0xff] %v8662_v45  ;;  %14111 = vst [vmem:[#allocation220_spill] sm:$0xff] %v8664_v52  ;;  %2442 = vadd.xlane.f32.xlu0 %v7930_v24  ;;  %2230 = vadd.xlane.f32.xlu1 %v14114_v62  ;;  %v8694_v24 = vpop.f32.mrb[80].mxu1  ;;  %v8696_v62 = vpop.f32.mrb[82].mxu0  ;;  %v2001_v45 = vmul.f32 %v8668_v14, %v8668_v14 }
 0x1c0   :  { %v2375_v28 = vpop.xlane.xlu1 %2374  ;;  %v1407_v35 = vpop.xlane.xlu0 %1406  ;;  %14118 = vst [vmem:[#allocation225_spill] sm:$0xff] %v8694_v24  ;;  %14119 = vst [vmem:[#allocation226_spill] sm:$0xff] %v8696_v62  ;;  %v2108_v1 = vmul.f32 %v8694_v24, %v8694_v24 }
 0x1c1   :  { %v8692_v16 = vmul.f32 0.0051020407, %v2375_v28  ;;  %v8698_v58 = vpop.f32.mrb[83].mxu0  ;;  %v8700_v57 = vpop.f32.mrb[81].mxu1  ;;  %v8717_v2 = vmul.f32 0.0051020407, %v1407_v35 }
 0x1c2   :  { %14120 = vst [vmem:[#allocation227_spill] sm:$0xff] %v8698_v58  ;;  %14121 = vst [vmem:[#allocation228_spill] sm:$0xff] %v8700_v57  ;;  %v1544_v15 = vsel %vm1379_vm1, %v8698_v58, 0.0  ;;  %v8721_v28 = vpop.f32.mrb[82].mxu1  ;;  %v2109_v27 = vmul.f32 %v8700_v57, %v8700_v57 }
 0x1c3   :  { %14117 = vst [vmem:[#allocation224_spill] sm:$0xff] %v8692_v16  ;;  %2446 = vadd.xlane.f32.xlu1 %v7972_v31  ;;  %1478 = vadd.xlane.f32.xlu0 %v14122_v23  ;;  %14123 = vst [vmem:[#allocation105_spill] sm:$0xff] %v8717_v2  ;;  %v2003_v31 = vmul.f32 %v8698_v58, %v8698_v58  ;;  %v1756_v23 = vsel %vm1379_vm1, %v8700_v57, 0.0  ;;  %v8729_v14 = vpop.f32.mrb[83].mxu1  ;;  %v8732_v35 = vadd.f32 %v1544_v15, %v8696_v62 }
 0x1c4   :  { %v1623_v47 = vpop.xlane.xlu0 %1622  ;;  %v1411_v19 = vpop.xlane.xlu1 %1410  ;;  %14124 = vst [vmem:[#allocation229_spill] sm:$0xff] %v8721_v28  ;;  %14125 = vst [vmem:[#allocation230_spill] sm:$0xff] %v8729_v14  ;;  %v2002_v58 = vmul.f32 %v8696_v62, %v8696_v62  ;;  %v1760_v57 = vsel %vm1379_vm1, %v8729_v14, 0.0  ;;  %v2110_v15 = vmul.f32 %v8721_v28, %v8721_v28  ;;  %v8754_v7 = vmul.f32 %v8717_v2, %v8717_v2  ;;  %v14129_v2 = vld [vmem:[#allocation109_spill] sm:$0xff] }
 0x1c5   :  { %14126 = vst [vmem:[#allocation231_spill] sm:$0xff] %v8732_v35  ;;  %v8734_v18 = vmul.f32 0.0051020407, %v1623_v47  ;;  %v2111_v47 = vmul.f32 %v8729_v14, %v8729_v14  ;;  %v8756_v62 = vmul.f32 0.0051020407, %v1411_v19  ;;  %v8763_v40 = vadd.f32 %v1760_v57, %v8721_v28 }
 0x1c6   :  { %v2512_v14 = vsel %vm1379_vm1, %v2109_v27, 0.0 }
 0x1c7   :  { %14127 = vst [vmem:[#allocation232_spill] sm:$0xff] %v8734_v18  ;;  %1694 = vadd.xlane.f32.xlu0 %v14128_v48  ;;  %1482 = vadd.xlane.f32.xlu1 %v8011_v63  ;;  %v8749_v48 = vadd.f32 %v1756_v23, %v8694_v24  ;;  %v2296_v63 = vsel %vm1379_vm1, %v2001_v45, 0.0  ;;  %v2300_v23 = vsel %vm1379_vm1, %v2003_v31, 0.0  ;;  %v2516_v24 = vsel %vm1379_vm1, %v2111_v47, 0.0 }
 0x1c8   :  { %v2163_v16 = vpop.xlane.xlu0 %2162  ;;  %v1627_v52 = vpop.xlane.xlu1 %1626  ;;  %v8760_v35 = vadd.f32 %v2296_v63, %v2000_v9  ;;  %v8776_v19 = vmul.f32 %v8734_v18, %v8734_v18  ;;  %v8778_v27 = vadd.f32 %v2300_v23, %v2002_v58  ;;  %v8780_v31 = vadd.f32 %v2516_v24, %v2110_v15  ;;  %v14133_v58 = vld [vmem:[#allocation110_spill] sm:$0xff] }
 0x1c9   :  { %v8758_v55 = vmul.f32 0.0051020407, %v2163_v16  ;;  %v8772_v16 = vadd.f32 %v2512_v14, %v2108_v1  ;;  %v8784_v47 = vmul.f32 %v8756_v62, %v8756_v62  ;;  %v8786_v63 = vmul.f32 0.0051020407, %v1627_v52  ;;  %v14134_v24 = vld [vmem:[#allocation114_spill] sm:$0xff] }
 0x1ca   :  { %14130 = vst [vmem:[#allocation103_spill] sm:$0xff] %v8776_v19 }
 0x1cb   :  { %2234 = vadd.xlane.f32.xlu0 %v14129_v2  ;;  %1698 = vadd.xlane.f32.xlu1 %v8014_v21  ;;  %14131 = vst [vmem:[#allocation109_spill] sm:$0xff] %v8786_v63  ;;  %v8800_v52 = vmul.f32 %v8786_v63, %v8786_v63 }
 0x1cc   :  { %v2379_v57 = vpop.xlane.xlu0 %2378  ;;  %v2167_v9 = vpop.xlane.xlu1 %2166 }
 0x1cd   :  { %v8788_v2 = vmul.f32 0.0051020407, %v2379_v57  ;;  %v8790_v21 = vmul.f32 0.0051020407, %v2167_v9  ;;  %14135 = vst [vmem:[#allocation110_spill] sm:$0xff] %v8800_v52 }
 0x1cf   :  { %14132 = vst [vmem:[#allocation233_spill] sm:$0xff] %v8788_v2  ;;  %2450 = vadd.xlane.f32.xlu0 %v14133_v58  ;;  %2238 = vadd.xlane.f32.xlu1 %v14134_v24  ;;  %v14137_v24 = vld [vmem:[#allocation116_spill] sm:$0xff] }
 0x1d0   :  { %v2383_v15 = vpop.xlane.xlu1 %2382  ;;  %v1415_v23 = vpop.xlane.xlu0 %1414 }
 0x1d1   :  { %v8802_v57 = vmul.f32 0.0051020407, %v2383_v15  ;;  %v8808_v58 = vmul.f32 0.0051020407, %v1415_v23  ;;  %v14140_v23 = vld [vmem:[#allocation121_spill] sm:$0xff] }
 0x1d3   :  { %14136 = vst [vmem:[#allocation114_spill] sm:$0xff] %v8802_v57  ;;  %2454 = vadd.xlane.f32.xlu1 %v8044_v59  ;;  %1486 = vadd.xlane.f32.xlu0 %v8047_v20  ;;  %v8816_v63 = vmul.f32 %v8808_v58, %v8808_v58  ;;  %v14144_v20 = vld [vmem:[#allocation122_spill] sm:$0xff] }
 0x1d4   :  { %v1631_v14 = vpop.xlane.xlu0 %1630  ;;  %v1419_v1 = vpop.xlane.xlu1 %1418 }
 0x1d5   :  { %v8812_v45 = vmul.f32 0.0051020407, %v1631_v14  ;;  %v8818_v9 = vmul.f32 0.0051020407, %v1419_v1 }
 0x1d7   :  { %1702 = vadd.xlane.f32.xlu0 %v14137_v24  ;;  %1490 = vadd.xlane.f32.xlu1 %v8079_v50  ;;  %14138 = vst [vmem:[#allocation116_spill] sm:$0xff] %v8812_v45  ;;  %14139 = vst [vmem:[#allocation234_spill] sm:$0xff] %v8818_v9  ;;  %v8828_v50 = vmul.f32 %v8812_v45, %v8812_v45  ;;  %v8832_v18 = vmul.f32 %v8818_v9, %v8818_v9  ;;  %v14145_v45 = vld [vmem:[#allocation126_spill] sm:$0xff] }
 0x1d8   :  { %v2171_v28 = vpop.xlane.xlu0 %2170  ;;  %v1635_v15 = vpop.xlane.xlu1 %1634 }
 0x1d9   :  { %v8820_v59 = vmul.f32 0.0051020407, %v2171_v28  ;;  %14141 = vst [vmem:[#allocation121_spill] sm:$0xff] %v8828_v50  ;;  %v8834_v1 = vmul.f32 0.0051020407, %v1635_v15 }
 0x1db   :  { %2242 = vadd.xlane.f32.xlu0 %v14140_v23  ;;  %1706 = vadd.xlane.f32.xlu1 %v8082_v8  ;;  %14142 = vst [vmem:[#allocation235_spill] sm:$0xff] %v8834_v1  ;;  %v8848_v15 = vmul.f32 %v8834_v1, %v8834_v1  ;;  %v14148_v23 = vld [vmem:[#allocation128_spill] sm:$0xff] }
 0x1dc   :  { %v2387_v14 = vpop.xlane.xlu0 %2386  ;;  %v2175_v24 = vpop.xlane.xlu1 %2174 }
 0x1dd   :  { %v8836_v28 = vmul.f32 0.0051020407, %v2387_v14  ;;  %v8838_v52 = vmul.f32 0.0051020407, %v2175_v24  ;;  %14146 = vst [vmem:[#allocation122_spill] sm:$0xff] %v8848_v15 }
 0x1df   :  { %14143 = vst [vmem:[#allocation236_spill] sm:$0xff] %v8836_v28  ;;  %2458 = vadd.xlane.f32.xlu0 %v14144_v20  ;;  %2246 = vadd.xlane.f32.xlu1 %v14145_v45  ;;  %v14150_v45 = vld [vmem:[#allocation129_spill] sm:$0xff] }
 0x1e0   :  { %v2391_v57 = vpop.xlane.xlu1 %2390  ;;  %v1423_v19 = vpop.xlane.xlu0 %1422 }
 0x1e1   :  { %v8850_v14 = vmul.f32 0.0051020407, %v2391_v57  ;;  %v8856_v20 = vmul.f32 0.0051020407, %v1423_v19  ;;  %v14159_v19 = vld [vmem:[#allocation138_spill] sm:$0xff] }
 0x1e3   :  { %14147 = vst [vmem:[#allocation126_spill] sm:$0xff] %v8850_v14  ;;  %2462 = vadd.xlane.f32.xlu1 %v8112_v43  ;;  %1494 = vadd.xlane.f32.xlu0 %v14148_v23  ;;  %14149 = vst [vmem:[#allocation128_spill] sm:$0xff] %v8856_v20  ;;  %v8864_v2 = vmul.f32 %v8856_v20, %v8856_v20  ;;  %v14153_v23 = vld [vmem:[#allocation134_spill] sm:$0xff] }
 0x1e4   :  { %v1639_v8 = vpop.xlane.xlu0 %1638  ;;  %v1427_v50 = vpop.xlane.xlu1 %1426 }
 0x1e5   :  { %v8860_v28 = vmul.f32 0.0051020407, %v1639_v8  ;;  %v8866_v24 = vmul.f32 0.0051020407, %v1427_v50 }
 0x1e7   :  { %1710 = vadd.xlane.f32.xlu0 %v14150_v45  ;;  %1498 = vadd.xlane.f32.xlu1 %v8154_v0  ;;  %14151 = vst [vmem:[#allocation129_spill] sm:$0xff] %v8860_v28  ;;  %14152 = vst [vmem:[#allocation237_spill] sm:$0xff] %v8866_v24  ;;  %v8876_v0 = vmul.f32 %v8860_v28, %v8860_v28  ;;  %v8880_v15 = vmul.f32 %v8866_v24, %v8866_v24 }
 0x1e8   :  { %v2179_v1 = vpop.xlane.xlu0 %2178  ;;  %v1643_v57 = vpop.xlane.xlu1 %1642 }
 0x1e9   :  { %v8868_v43 = vmul.f32 0.0051020407, %v2179_v1  ;;  %14154 = vst [vmem:[#allocation134_spill] sm:$0xff] %v8876_v0  ;;  %14155 = vst [vmem:[#allocation238_spill] sm:$0xff] %v8880_v15  ;;  %v8882_v50 = vmul.f32 0.0051020407, %v1643_v57 }
 0x1eb   :  { %2250 = vadd.xlane.f32.xlu0 %v14153_v23  ;;  %1714 = vadd.xlane.f32.xlu1 %v8157_v29  ;;  %14156 = vst [vmem:[#allocation239_spill] sm:$0xff] %v8882_v50  ;;  %v8896_v57 = vmul.f32 %v8882_v50, %v8882_v50 }
 0x1ec   :  { %v2395_v8 = vpop.xlane.xlu0 %2394  ;;  %v2183_v45 = vpop.xlane.xlu1 %2182 }
 0x1ed   :  { %v8884_v1 = vmul.f32 0.0051020407, %v2395_v8  ;;  %v8886_v14 = vmul.f32 0.0051020407, %v2183_v45  ;;  %14160 = vst [vmem:[#allocation138_spill] sm:$0xff] %v8896_v57  ;;  %v14163_v45 = vld [vmem:[#allocation140_spill] sm:$0xff] }
 0x1ef   :  { %14157 = vst [vmem:[#allocation240_spill] sm:$0xff] %v8884_v1  ;;  %14158 = vst [vmem:[#allocation241_spill] sm:$0xff] %v8886_v14  ;;  %2466 = vadd.xlane.f32.xlu0 %v8159_v25  ;;  %2254 = vadd.xlane.f32.xlu1 %v14159_v19  ;;  %v224_v25 = vld [vmem:[%s13468_s2 + $0x318] sm:$0xff] }
 0x1f0   :  { %v2399_v28 = vpop.xlane.xlu1 %2398  ;;  %v1431_v20 = vpop.xlane.xlu0 %1430  ;;  %5861 = vmatprep.mubr.msk.f32.mxu0 %vm341_vm0, %v224_v25 }
 0x1f1   :  { %v8898_v8 = vmul.f32 0.0051020407, %v2399_v28  ;;  %v8907_v19 = vmul.f32 0.0051020407, %v1431_v20  ;;  %v223_v28 = vld [vmem:[%s13468_s2 + $0x310] sm:$0xff]  ;;  %v332_v20 = vld [vmem:[%s13468_s2 + $0x678] sm:$0xff] }
 0x1f2   :  { %1025 = vmatmul.mubr.f32.gmra.mrb[98].mxu0 %v223_v28  ;;  %5915 = vmatprep.mubr.msk.f32.mxu1 %vm341_vm0, %v332_v20 }
 0x1f3   :  { %14161 = vst [vmem:[#allocation242_spill] sm:$0xff] %v8898_v8  ;;  %2470 = vadd.xlane.f32.xlu1 %v8194_v51  ;;  %1502 = vadd.xlane.f32.xlu0 %v8197_v54  ;;  %14162 = vst [vmem:[#allocation243_spill] sm:$0xff] %v8907_v19  ;;  %v8922_v25 = vmul.f32 %v8907_v19, %v8907_v19 }
 0x1f4   :  { %v1647_v23 = vpop.xlane.xlu0 %1646  ;;  %v1435_v29 = vpop.xlane.xlu1 %1434 }
 0x1f5   :  { %v8915_v54 = vmul.f32 0.0051020407, %v1647_v23  ;;  %14165 = vst [vmem:[#allocation244_spill] sm:$0xff] %v8922_v25  ;;  %v8924_v57 = vmul.f32 0.0051020407, %v1435_v29 }
 0x1f7   :  { %1718 = vadd.xlane.f32.xlu0 %v14163_v45  ;;  %1506 = vadd.xlane.f32.xlu1 %v8232_v36  ;;  %14164 = vst [vmem:[#allocation140_spill] sm:$0xff] %v8915_v54  ;;  %14166 = vst [vmem:[#allocation245_spill] sm:$0xff] %v8924_v57  ;;  %v331_v36 = vld [vmem:[%s13468_s2 + $0x670] sm:$0xff]  ;;  %v14168_v45 = vld [vmem:[#allocation145_spill] sm:$0xff]  ;;  %v8938_v29 = vmul.f32 %v8915_v54, %v8915_v54  ;;  %v8942_v20 = vmul.f32 %v8924_v57, %v8924_v57 }
 0x1f8   :  { %v2187_v51 = vpop.xlane.xlu0 %2186  ;;  %v1651_v50 = vpop.xlane.xlu1 %1650  ;;  %1349 = vmatmul.mubr.f32.gmra.mrb[98].mxu1 %v331_v36 }
 0x1f9   :  { %v8926_v8 = vmul.f32 0.0051020407, %v2187_v51  ;;  %14169 = vst [vmem:[#allocation145_spill] sm:$0xff] %v8938_v29  ;;  %14170 = vst [vmem:[#allocation247_spill] sm:$0xff] %v8942_v20  ;;  %v8944_v0 = vmul.f32 0.0051020407, %v1651_v50 }
 0x1fa   :  { %v334_v20 = vld [vmem:[%s13468_s2 + $0x688] sm:$0xff] }
 0x1fb   :  { %14167 = vst [vmem:[#allocation246_spill] sm:$0xff] %v8926_v8  ;;  %2258 = vadd.xlane.f32.xlu0 %v14168_v45  ;;  %1722 = vadd.xlane.f32.xlu1 %v8235_v4  ;;  %14171 = vst [vmem:[#allocation248_spill] sm:$0xff] %v8944_v0  ;;  %v226_v4 = vld [vmem:[%s13468_s2 + $0x328] sm:$0xff]  ;;  %v8967_v45 = vmul.f32 %v8944_v0, %v8944_v0 }
 0x1fc   :  { %v2403_v28 = vpop.xlane.xlu0 %2402  ;;  %v2191_v51 = vpop.xlane.xlu1 %2190  ;;  %5862 = vmatprep.mubr.msk.f32.mxu0 %vm341_vm0, %v226_v4  ;;  %5916 = vmatprep.mubr.msk.f32.mxu1 %vm341_vm0, %v334_v20 }
 0x1fd   :  { %v8946_v36 = vmul.f32 0.0051020407, %v2403_v28  ;;  %v8948_v1 = vmul.f32 0.0051020407, %v2191_v51  ;;  %v8959_v50 = vpop.f32.mrb[84].mxu0  ;;  %v225_v28 = vld [vmem:[%s13468_s2 + $0x320] sm:$0xff] }
 0x1fe   :  { %14174 = vst [vmem:[#allocation251_spill] sm:$0xff] %v8959_v50  ;;  %14175 = vst [vmem:[#allocation252_spill] sm:$0xff] %v8967_v45  ;;  %v8971_v23 = vpop.f32.mrb[85].mxu0  ;;  %1031 = vmatmul.mubr.f32.gmra.mrb[100].mxu0 %v225_v28  ;;  %v2004_v29 = vmul.f32 %v8959_v50, %v8959_v50 }
 0x1ff   :  { %14172 = vst [vmem:[#allocation249_spill] sm:$0xff] %v8946_v36  ;;  %14173 = vst [vmem:[#allocation250_spill] sm:$0xff] %v8948_v1  ;;  %2474 = vadd.xlane.f32.xlu0 %v8241_v17  ;;  %2262 = vadd.xlane.f32.xlu1 %v8251_v34  ;;  %v1548_v17 = vsel %vm1379_vm1, %v8971_v23, 0.0  ;;  %v2005_v34 = vmul.f32 %v8971_v23, %v8971_v23 }
 0x200   :  { %v2407_v51 = vpop.xlane.xlu1 %2406  ;;  %v1439_v57 = vpop.xlane.xlu0 %1438  ;;  %14177 = vst [vmem:[#allocation254_spill] sm:$0xff] %v8971_v23  ;;  %v8989_v0 = vadd.f32 %v1548_v17, %v8959_v50 }
 0x201   :  { %v8969_v54 = vmul.f32 0.0051020407, %v2407_v51  ;;  %v8984_v51 = vpop.f32.mrb[86].mxu0  ;;  %v8997_v4 = vmul.f32 0.0051020407, %v1439_v57  ;;  %v2304_v45 = vsel %vm1379_vm1, %v2005_v34, 0.0 }
 0x202   :  { %14178 = vst [vmem:[#allocation255_spill] sm:$0xff] %v8984_v51  ;;  %v2006_v57 = vmul.f32 %v8984_v51, %v8984_v51  ;;  %v9027_v24 = vadd.f32 %v2304_v45, %v2004_v29 }
 0x203   :  { %14176 = vst [vmem:[#allocation253_spill] sm:$0xff] %v8969_v54  ;;  %2478 = vadd.xlane.f32.xlu1 %v8253_v39  ;;  %1510 = vadd.xlane.f32.xlu0 %v8271_v5  ;;  %v333_v39 = vld [vmem:[%s13468_s2 + $0x680] sm:$0xff]  ;;  %14180 = vst [vmem:[#allocation257_spill] sm:$0xff] %v8997_v4  ;;  %v8999_v5 = vpop.f32.mrb[87].mxu0  ;;  %v9031_v25 = vmul.f32 %v8997_v4, %v8997_v4 }
 0x204   :  { %v8986_v28 = vpop.f32.mrb[84].mxu1  ;;  %v1655_v1 = vpop.xlane.xlu0 %1654  ;;  %14181 = vst [vmem:[#allocation258_spill] sm:$0xff] %v8999_v5  ;;  %1355 = vmatmul.mubr.f32.gmra.mrb[100].mxu1 %v333_v39  ;;  %v1552_v54 = vsel %vm1379_vm1, %v8999_v5, 0.0 }
 0x205   :  { %14179 = vst [vmem:[#allocation256_spill] sm:$0xff] %v8986_v28  ;;  %v1443_v23 = vpop.xlane.xlu1 %1442  ;;  %v9002_v17 = vmul.f32 0.0051020407, %v1655_v1  ;;  %v9006_v36 = vpop.f32.mrb[85].mxu1  ;;  %v2112_v20 = vmul.f32 %v8986_v28, %v8986_v28  ;;  %v2007_v1 = vmul.f32 %v8999_v5, %v8999_v5 }
 0x206   :  { %14183 = vst [vmem:[#allocation260_spill] sm:$0xff] %v9006_v36  ;;  %v9008_v50 = vmul.f32 0.0051020407, %v1443_v23  ;;  %v1764_v23 = vsel %vm1379_vm1, %v9006_v36, 0.0 }
 0x207   :  { %14182 = vst [vmem:[#allocation259_spill] sm:$0xff] %v9002_v17  ;;  %1726 = vadd.xlane.f32.xlu0 %v8299_v26  ;;  %1514 = vadd.xlane.f32.xlu1 %v8302_v44  ;;  %v2113_v26 = vmul.f32 %v9006_v36, %v9006_v36  ;;  %v9025_v44 = vadd.f32 %v1552_v54, %v8984_v51  ;;  %v14188_v51 = vld [vmem:[#allocation152_spill] sm:$0xff] }
 0x208   :  { %14184 = vst [vmem:[#allocation261_spill] sm:$0xff] %v9008_v50  ;;  %v9018_v34 = vpop.f32.mrb[86].mxu1  ;;  %v2195_v39 = vpop.xlane.xlu0 %2194  ;;  %v9044_v29 = vadd.f32 %v1764_v23, %v8986_v28  ;;  %v9061_v23 = vmul.f32 %v9008_v50, %v9008_v50 }
 0x209   :  { %14185 = vst [vmem:[#allocation262_spill] sm:$0xff] %v9018_v34  ;;  %v1659_v19 = vpop.xlane.xlu1 %1658  ;;  %v9033_v5 = vmul.f32 0.0051020407, %v2195_v39  ;;  %v2114_v8 = vmul.f32 %v9018_v34, %v9018_v34  ;;  %v9037_v15 = vpop.f32.mrb[87].mxu1  ;;  %v2520_v45 = vsel %vm1379_vm1, %v2113_v26, 0.0  ;;  %v9049_v39 = vmul.f32 %v9002_v17, %v9002_v17 }
 0x20a   :  { %14186 = vst [vmem:[#allocation263_spill] sm:$0xff] %v9037_v15  ;;  %v1768_v14 = vsel %vm1379_vm1, %v9037_v15, 0.0  ;;  %v2115_v54 = vmul.f32 %v9037_v15, %v9037_v15  ;;  %v2308_v15 = vsel %vm1379_vm1, %v2007_v1, 0.0  ;;  %14189 = vst [vmem:[#allocation152_spill] sm:$0xff] %v9061_v23  ;;  %v9063_v17 = vadd.f32 %v2520_v45, %v2112_v20  ;;  %v14197_v45 = vld [vmem:[#allocation156_spill] sm:$0xff] }
 0x20b   :  { %14187 = vst [vmem:[#allocation264_spill] sm:$0xff] %v9049_v39  ;;  %2266 = vadd.xlane.f32.xlu0 %v14188_v51  ;;  %1730 = vadd.xlane.f32.xlu1 %v8321_v56  ;;  %v9056_v4 = vadd.f32 %v1768_v14, %v9018_v34  ;;  %v9065_v9 = vadd.f32 %v2308_v15, %v2006_v57  ;;  %v9068_v51 = vmul.f32 0.0051020407, %v1659_v19  ;;  %v14192_v15 = vld [vmem:[#allocation155_spill] sm:$0xff] }
 0x20c   :  { %v2411_v26 = vpop.xlane.xlu0 %2410  ;;  %v2524_v36 = vsel %vm1379_vm1, %v2115_v54, 0.0 }
 0x20d   :  { %v2199_v28 = vpop.xlane.xlu1 %2198  ;;  %14190 = vst [vmem:[#allocation265_spill] sm:$0xff] %v9068_v51  ;;  %v9070_v56 = vmul.f32 0.0051020407, %v2411_v26  ;;  %v9074_v34 = vadd.f32 %v2524_v36, %v2114_v8  ;;  %v9084_v19 = vmul.f32 %v9068_v51, %v9068_v51 }
 0x20e   :  { %v9072_v14 = vmul.f32 0.0051020407, %v2199_v28 }
 0x20f   :  { %2482 = vadd.xlane.f32.xlu0 %v8307_v46  ;;  %2270 = vadd.xlane.f32.xlu1 %v14192_v15  ;;  %14193 = vst [vmem:[#allocation155_spill] sm:$0xff] %v9084_v19  ;;  %v14198_v46 = vld [vmem:[#allocation159_spill] sm:$0xff] }
 0x210   :  { %14191 = vst [vmem:[#allocation266_spill] sm:$0xff] %v9072_v14  ;;  %v1447_v20 = vpop.xlane.xlu0 %1446 }
 0x211   :  { %v2415_v57 = vpop.xlane.xlu1 %2414  ;;  %v9088_v8 = vpop.f32.mrb[88].mxu0  ;;  %v9103_v1 = vmul.f32 0.0051020407, %v1447_v20 }
 0x212   :  { %v9086_v28 = vmul.f32 0.0051020407, %v2415_v57  ;;  %14195 = vst [vmem:[#allocation268_spill] sm:$0xff] %v9088_v8  ;;  %v9090_v36 = vpop.f32.mrb[89].mxu0 }
 0x213   :  { %14196 = vst [vmem:[#allocation269_spill] sm:$0xff] %v9090_v36  ;;  %2486 = vadd.xlane.f32.xlu1 %v14197_v45  ;;  %1518 = vadd.xlane.f32.xlu0 %v14198_v46  ;;  %v1556_v26 = vsel %vm1379_vm1, %v9090_v36, 0.0  ;;  %v2008_v45 = vmul.f32 %v9088_v8, %v9088_v8  ;;  %v2009_v20 = vmul.f32 %v9090_v36, %v9090_v36  ;;  %v14203_v36 = vld [vmem:[#allocation164_spill] sm:$0xff] }
 0x214   :  { %14194 = vst [vmem:[#allocation267_spill] sm:$0xff] %v9086_v28  ;;  %v9098_v15 = vpop.xlane.xlu0 %1662  ;;  %v9101_v57 = vadd.f32 %v1556_v26, %v9088_v8 }
 0x215   :  { %v1451_v50 = vpop.xlane.xlu1 %1450  ;;  %v9105_v51 = vpop.f32.mrb[88].mxu1  ;;  %v2312_v14 = vsel %vm1379_vm1, %v2009_v20, 0.0 }
 0x216   :  { %14199 = vst [vmem:[#allocation156_spill] sm:$0xff] %v9105_v51  ;;  %v9107_v23 = vpop.f32.mrb[89].mxu1  ;;  %v9139_v39 = vadd.f32 %v2312_v14, %v2008_v45  ;;  %v14205_v14 = vld [vmem:[#allocation173_spill] sm:$0xff]  ;;  %v14206_v45 = vld [vmem:[#allocation180_spill] sm:$0xff] }
 0x217   :  { %14200 = vst [vmem:[#allocation159_spill] sm:$0xff] %v9107_v23  ;;  %1734 = vadd.xlane.f32.xlu0 %v8369_v12  ;;  %1522 = vadd.xlane.f32.xlu1 %v8376_v41  ;;  %v1772_v46 = vsel %vm1379_vm1, %v9107_v23, 0.0  ;;  %v9124_v12 = vmul.f32 %v9103_v1, %v9103_v1  ;;  %v9126_v41 = vmul.f32 0.0051020407, %v1451_v50  ;;  %v2117_v8 = vmul.f32 %v9107_v23, %v9107_v23 }
 0x218   :  { %v2203_v54 = vpop.xlane.xlu0 %2202  ;;  %v9120_v26 = vadd.f32 %v1772_v46, %v9105_v51  ;;  %v2116_v46 = vmul.f32 %v9105_v51, %v9105_v51  ;;  %v14207_v51 = vld [vmem:[#allocation191_spill] sm:$0xff] }
 0x219   :  { %v9115_v19 = vpop.xlane.xlu1 %1666  ;;  %14202 = vst [vmem:[#allocation271_spill] sm:$0xff] %v9126_v41  ;;  %v9128_v28 = vmul.f32 0.0051020407, %v2203_v54  ;;  %v9143_v54 = vmul.f32 %v9126_v41, %v9126_v41  ;;  %v2528_v20 = vsel %vm1379_vm1, %v2117_v8, 0.0 }
 0x21a   :  { %14201 = vst [vmem:[#allocation270_spill] sm:$0xff] %v9115_v19 }
 0x21b   :  { %2274 = vadd.xlane.f32.xlu0 %v14203_v36  ;;  %1738 = vadd.xlane.f32.xlu1 %v8395_v32  ;;  %v14204_v32 = vld [vmem:[#allocation168_spill] sm:$0xff]  ;;  %v9152_v36 = vadd.f32 %v2528_v20, %v2116_v46 }
 0x21d   :  { %v2207_v50 = vpop.xlane.xlu1 %2206 }
 0x21e   :  { %v9145_v23 = vmul.f32 0.0051020407, %v2207_v50 }
 0x21f   :  { %2490 = vadd.xlane.f32.xlu0 %v8397_v38  ;;  %2278 = vadd.xlane.f32.xlu1 %v14204_v32  ;;  %v228_v38 = vld [vmem:[%s13468_s2 + $0x338] sm:$0xff] }
 0x220   :  { %5863 = vmatprep.mubr.msk.f32.mxu0 %vm341_vm0, %v228_v38 }
 0x223   :  { %2494 = vadd.xlane.f32.xlu1 %v14205_v14  ;;  %1526 = vadd.xlane.f32.xlu0 %v14206_v45 }
 0x227   :  { %1742 = vadd.xlane.f32.xlu0 %v8500_v37  ;;  %1530 = vadd.xlane.f32.xlu1 %v14207_v51  ;;  %v14208_v37 = vld [vmem:[#allocation101_spill] sm:$0xff]  ;;  %v14214_v51 = vld [vmem:[#allocation170_spill] sm:$0xff] }
 0x22b   :  { %2282 = vadd.xlane.f32.xlu0 %v8502_v33  ;;  %1746 = vadd.xlane.f32.xlu1 %v8511_v22  ;;  %v227_v22 = vld [vmem:[%s13468_s2 + $0x330] sm:$0xff]  ;;  %v230_v33 = vld [vmem:[%s13468_s2 + $0x348] sm:$0xff] }
 0x22c   :  { %1037 = vmatmul.mubr.f32.gmra.mrb[102].mxu0 %v227_v22 }
 0x22d   :  { %5864 = vmatprep.mubr.msk.f32.mxu0 %vm341_vm0, %v230_v33 }
 0x22f   :  { %2498 = vadd.xlane.f32.xlu0 %v8520_v53  ;;  %2286 = vadd.xlane.f32.xlu1 %v8524_v6  ;;  %v229_v53 = vld [vmem:[%s13468_s2 + $0x340] sm:$0xff]  ;;  %v14209_v6 = vld [vmem:[#allocation231_spill] sm:$0xff] }
 0x230   :  { %1043 = vmatmul.mubr.f32.gmra.mrb[104].mxu0 %v229_v53 }
 0x233   :  { %2502 = vadd.xlane.f32.xlu1 %v8526_v42  ;;  %1534 = vadd.xlane.f32.xlu0 %v8553_v11  ;;  %v14210_v42 = vld [vmem:[#allocation186_spill] sm:$0xff]  ;;  %v14211_v11 = vld [vmem:[#allocation187_spill] sm:$0xff] }
 0x237   :  { %1750 = vadd.xlane.f32.xlu0 %v8620_v10  ;;  %1538 = vadd.xlane.f32.xlu1 %v8632_v30  ;;  %v336_v10 = vld [vmem:[%s13468_s2 + $0x698] sm:$0xff]  ;;  %v335_v30 = vld [vmem:[%s13468_s2 + $0x690] sm:$0xff] }
 0x238   :  { %5917 = vmatprep.mubr.msk.f32.mxu1 %vm341_vm0, %v336_v10 }
 0x239   :  { %1361 = vmatmul.mubr.f32.gmra.mrb[102].mxu1 %v335_v30 }
 0x23b   :  { %2290 = vadd.xlane.f32.xlu0 %v8634_v13  ;;  %1754 = vadd.xlane.f32.xlu1 %v8637_v60  ;;  %v14212_v13 = vsub.f32 %v14210_v42, %v14211_v11 }
 0x23d   :  { %v2893_v60 = vmax.f32 %v14212_v13, 0.0 }
 0x23f   :  { %2506 = vadd.xlane.f32.xlu0 %v8645_v3  ;;  %2294 = vadd.xlane.f32.xlu1 %v8650_v49  ;;  %v338_v3 = vld [vmem:[%s13468_s2 + $0x6a8] sm:$0xff]  ;;  %v337_v49 = vld [vmem:[%s13468_s2 + $0x6a0] sm:$0xff]  ;;  %v3109_v20 = vadd.f32 0.001, %v2893_v60 }
 0x240   :  { %5918 = vmatprep.mubr.msk.f32.mxu1 %vm341_vm0, %v338_v3  ;;  %v3001_v3 = vld [vmem:[%s13469_s3 + $0x8] sm:$0xff] }
 0x241   :  { %1367 = vmatmul.mubr.f32.gmra.mrb[104].mxu1 %v337_v49  ;;  %5981 = vrsqrt.f32 %v3109_v20 }
 0x243   :  { %2510 = vadd.xlane.f32.xlu1 %v8652_v61  ;;  %1542 = vadd.xlane.f32.xlu0 %v14208_v37  ;;  %v14213_v61 = vld [vmem:[#allocation172_spill] sm:$0xff] }
 0x247   :  { %1758 = vadd.xlane.f32.xlu0 %v8749_v48  ;;  %1546 = vadd.xlane.f32.xlu1 %v14209_v6  ;;  %v14215_v48 = vsub.f32 %v14213_v61, %v14214_v51  ;;  %v9208_v46 = vpop.f32.mrb[90].mxu0  ;;  %v3000_v51 = vld [vmem:[%s13469_s3] sm:$0xff] }
 0x248   :  { %14216 = vst [vmem:[#allocation164_spill] sm:$0xff] %v9208_v46  ;;  %v9212_v50 = vpop.f32.mrb[91].mxu0 }
 0x249   :  { %v2892_v8 = vmax.f32 %v14215_v48, 0.0  ;;  %14217 = vst [vmem:[#allocation168_spill] sm:$0xff] %v9212_v50  ;;  %v2011_v14 = vmul.f32 %v9212_v50, %v9212_v50  ;;  %v1560_v45 = vsel %vm1379_vm1, %v9212_v50, 0.0  ;;  %v14237_v50 = vld [vmem:[#allocation200_spill] sm:$0xff] }
 0x24a   :  { %v9232_v22 = vadd.f32 %v1560_v45, %v9208_v46  ;;  %v14226_v45 = vld [vmem:[#allocation181_spill] sm:$0xff] }
 0x24b   :  { %2298 = vadd.xlane.f32.xlu0 %v8760_v35  ;;  %1762 = vadd.xlane.f32.xlu1 %v8763_v40  ;;  %v3108_v32 = vadd.f32 0.001, %v2892_v8  ;;  %v9220_v38 = vpop.f32.mrb[90].mxu1  ;;  %v2010_v40 = vmul.f32 %v9208_v46, %v9208_v46  ;;  %v2316_v10 = vsel %vm1379_vm1, %v2011_v14, 0.0  ;;  %v5982_v60 = vpop.eup %5981 }
 0x24c   :  { %14218 = vst [vmem:[#allocation173_spill] sm:$0xff] %v9220_v38  ;;  %v9224_v35 = vpop.f32.mrb[91].mxu1  ;;  %v2118_v30 = vmul.f32 %v9220_v38, %v9220_v38  ;;  %v9264_v8 = vmul.f32 %v5982_v60, %v3001_v3 }
 0x24d   :  { %5983 = vrsqrt.f32 %v3108_v32  ;;  %14219 = vst [vmem:[#allocation180_spill] sm:$0xff] %v9224_v35  ;;  %v9237_v37 = vadd.f32 %v2316_v10, %v2010_v40  ;;  %v14227_v10 = vld [vmem:[#allocation165_spill] sm:$0xff] }
 0x24e   :  { %14224 = vst [vmem:[#allocation187_spill] sm:$0xff] %v9264_v8  ;;  %v3433_v40 = vmul.f32 %v9264_v8, %v14226_v45  ;;  %v14248_v8 = vld [vmem:[#allocation212_spill] sm:$0xff] }
 0x24f   :  { %2514 = vadd.xlane.f32.xlu0 %v8772_v16  ;;  %2302 = vadd.xlane.f32.xlu1 %v8778_v27  ;;  %v1776_v16 = vsel %vm1379_vm1, %v9224_v35, 0.0  ;;  %v2119_v27 = vmul.f32 %v9224_v35, %v9224_v35 }
 0x250   :  { %v9240_v33 = vadd.f32 %v1776_v16, %v9220_v38 }
 0x251   :  { %v9243_v53 = vpop.f32.mrb[92].mxu0 }
 0x252   :  { %14220 = vst [vmem:[#allocation191_spill] sm:$0xff] %v9243_v53  ;;  %v9249_v11 = vpop.f32.mrb[93].mxu0  ;;  %v2012_v16 = vmul.f32 %v9243_v53, %v9243_v53 }
 0x253   :  { %2518 = vadd.xlane.f32.xlu1 %v8780_v31  ;;  %v2532_v31 = vsel %vm1379_vm1, %v2119_v27, 0.0  ;;  %14222 = vst [vmem:[#allocation231_spill] sm:$0xff] %v9249_v11  ;;  %v1564_v49 = vsel %vm1379_vm1, %v9249_v11, 0.0  ;;  %v2013_v14 = vmul.f32 %v9249_v11, %v9249_v11 }
 0x254   :  { %v9245_v6 = vpop.f32.mrb[92].mxu1  ;;  %v9247_v42 = vadd.f32 %v2532_v31, %v2118_v30  ;;  %v9262_v48 = vadd.f32 %v1564_v49, %v9243_v53  ;;  %v9281_v31 = vpop.xlane.xlu1 %2422 }
 0x255   :  { %14221 = vst [vmem:[#allocation101_spill] sm:$0xff] %v9245_v6  ;;  %v9251_v13 = vpop.f32.mrb[93].mxu1  ;;  %14228 = vst [vmem:[#allocation170_spill] sm:$0xff] %v9281_v31  ;;  %v2320_v3 = vsel %vm1379_vm1, %v2013_v14, 0.0  ;;  %v9287_v49 = vpop.xlane.xlu0 %2418  ;;  %v231_v14 = vld [vmem:[%s13468_s2 + $0x350] sm:$0xff] }
 0x256   :  { %14223 = vst [vmem:[#allocation186_spill] sm:$0xff] %v9251_v13  ;;  %v1780_v32 = vsel %vm1379_vm1, %v9251_v13, 0.0  ;;  %v2121_v60 = vmul.f32 %v9251_v13, %v9251_v13 }
 0x257   :  { %v5984_v61 = vpop.eup %5983  ;;  %v9277_v27 = vadd.f32 %v1780_v32, %v9245_v6 }
 0x258   :  { %v9266_v20 = vmul.f32 %v5984_v61, %v3000_v51  ;;  %v2120_v61 = vmul.f32 %v9245_v6, %v9245_v6  ;;  %v9292_v51 = vadd.f32 %v2320_v3, %v2012_v16  ;;  %v2536_v32 = vsel %vm1379_vm1, %v2121_v60, 0.0  ;;  %v340_v16 = vld [vmem:[%s13468_s2 + $0x6b8] sm:$0xff]  ;;  %v9315_v3 = vpop.xlane.xlu1 %1458 }
 0x259   :  { %5919 = vmatprep.mubr.msk.f32.mxu1 %vm341_vm0, %v340_v16  ;;  %v14231_v16 = vld [vmem:[#allocation195_spill] sm:$0xff] }
 0x25a   :  { %14225 = vst [vmem:[#allocation172_spill] sm:$0xff] %v9266_v20  ;;  %v3432_v30 = vmul.f32 %v9266_v20, %v14227_v10  ;;  %v9295_v45 = vadd.f32 %v2536_v32, %v2120_v61  ;;  %v9304_v10 = vpop.xlane.xlu0 %1454 }
 0x25c   :  { %v9320_v32 = vpop.xlane.xlu1 %1674 }
 0x25d   :  { %14229 = vst [vmem:[#allocation181_spill] sm:$0xff] %v9320_v32 }
 0x25e   :  { %v9313_v60 = vpop.xlane.xlu0 %1670 }
 0x262   :  { %v9317_v61 = vpop.xlane.xlu0 %2210 }
 0x264   :  { %3650 = vrot.lane.b32.xlu1 %v3433_v40, %s6305_s9  ;;  %v232_v40 = vld [vmem:[%s13468_s2 + $0x358] sm:$0xff] }
 0x265   :  { %3648 = vrot.lane.b32.xlu0 %v3432_v30, %s6305_s9  ;;  %5865 = vmatprep.mubr.msk.f32.mxu0 %vm341_vm0, %v232_v40  ;;  %v339_v30 = vld [vmem:[%s13468_s2 + $0x6b0] sm:$0xff] }
 0x266   :  { %1049 = vmatmul.mubr.f32.gmra.mrb[106].mxu0 %v231_v14  ;;  %1373 = vmatmul.mubr.f32.gmra.mrb[106].mxu1 %v339_v30  ;;  %v9322_v40 = vpop.xlane.xlu0 %2426  ;;  %v14232_v30 = vld [vmem:[#allocation192_spill] sm:$0xff] }
 0x267   :  { %v14233_v19 = vsub.f32 %v14231_v16, %v14232_v30  ;;  %v14238_v16 = vld [vmem:[#allocation198_spill] sm:$0xff] }
 0x269   :  { %v2894_v35 = vmax.f32 %v14233_v19, 0.0  ;;  %v14239_v19 = vsub.f32 %v14237_v50, %v14238_v16 }
 0x26a   :  { %v9347_v46 = vpop.xlane.xlu0 %1462 }
 0x26b   :  { %v3110_v6 = vadd.f32 0.001, %v2894_v35  ;;  %v2895_v30 = vmax.f32 %v14239_v19, 0.0 }
 0x26d   :  { %5985 = vrsqrt.f32 %v3110_v6 }
 0x26e   :  { %v9359_v50 = vpop.xlane.xlu0 %1678 }
 0x26f   :  { %14242 = vst [vmem:[#allocation273_spill] sm:$0xff] %v9359_v50 }
 0x284   :  { %1550 = vadd.xlane.f32.xlu0 %v8989_v0 }
 0x287   :  { %v9326_v14 = vpop.f32.mrb[94].mxu0 }
 0x288   :  { %1766 = vadd.xlane.f32.xlu0 %v9044_v29  ;;  %1554 = vadd.xlane.f32.xlu1 %v9025_v44  ;;  %14230 = vst [vmem:[#allocation165_spill] sm:$0xff] %v9326_v14  ;;  %v9331_v38 = vpop.f32.mrb[95].mxu0  ;;  %v9340_v29 = vpop.xlane.xlu1 %2214 }
 0x289   :  { %14234 = vst [vmem:[#allocation195_spill] sm:$0xff] %v9331_v38  ;;  %v1568_v13 = vsel %vm1379_vm1, %v9331_v38, 0.0  ;;  %14235 = vst [vmem:[#allocation192_spill] sm:$0xff] %v9340_v29  ;;  %v9342_v44 = vpop.f32.mrb[94].mxu1  ;;  %v2015_v35 = vmul.f32 %v9331_v38, %v9331_v38 }
 0x28a   :  { %v9338_v0 = vadd.f32 %v1568_v13, %v9326_v14  ;;  %14236 = vst [vmem:[#allocation272_spill] sm:$0xff] %v9342_v44  ;;  %v9349_v11 = vpop.f32.mrb[95].mxu1  ;;  %v2122_v19 = vmul.f32 %v9342_v44, %v9342_v44 }
 0x28b   :  { %14240 = vst [vmem:[#allocation200_spill] sm:$0xff] %v9349_v11  ;;  %v2123_v6 = vmul.f32 %v9349_v11, %v9349_v11 }
 0x28c   :  { %2306 = vadd.xlane.f32.xlu0 %v9027_v24  ;;  %1770 = vadd.xlane.f32.xlu1 %v9056_v4  ;;  %v1784_v24 = vsel %vm1379_vm1, %v9349_v11, 0.0  ;;  %v3111_v4 = vadd.f32 0.001, %v2895_v30  ;;  %v9357_v13 = vpop.xlane.xlu1 %2430 }
 0x28d   :  { %14241 = vst [vmem:[#allocation198_spill] sm:$0xff] %v9357_v13  ;;  %v9370_v16 = vpop.f32.mrb[96].mxu0 }
 0x28e   :  { %14243 = vst [vmem:[#allocation274_spill] sm:$0xff] %v9370_v16  ;;  %5987 = vrsqrt.f32 %v3111_v4  ;;  %v9374_v30 = vpop.f32.mrb[97].mxu0  ;;  %v2540_v4 = vsel %vm1379_vm1, %v2123_v6, 0.0 }
 0x28f   :  { %14244 = vst [vmem:[#allocation275_spill] sm:$0xff] %v9374_v30  ;;  %v9392_v53 = vadd.f32 %v2540_v4, %v2122_v19  ;;  %v14253_v4 = vld [vmem:[#allocation188_spill] sm:$0xff] }
 0x290   :  { %2522 = vadd.xlane.f32.xlu0 %v9063_v17  ;;  %2310 = vadd.xlane.f32.xlu1 %v9065_v9  ;;  %v2014_v17 = vmul.f32 %v9326_v14, %v9326_v14  ;;  %v9366_v9 = vadd.f32 %v1784_v24, %v9342_v44  ;;  %v9385_v11 = vpop.f32.mrb[96].mxu1  ;;  %v9388_v14 = vpop.xlane.xlu0 %2218 }
 0x291   :  { %14245 = vst [vmem:[#allocation276_spill] sm:$0xff] %v9385_v11  ;;  %v9390_v44 = vpop.f32.mrb[97].mxu1 }
 0x292   :  { %14246 = vst [vmem:[#allocation277_spill] sm:$0xff] %v9390_v44  ;;  %v1788_v6 = vsel %vm1379_vm1, %v9390_v44, 0.0 }
 0x294   :  { %2526 = vadd.xlane.f32.xlu1 %v9074_v34  ;;  %1558 = vadd.xlane.f32.xlu0 %v9101_v57  ;;  %v2324_v34 = vsel %vm1379_vm1, %v2015_v35, 0.0  ;;  %v1572_v57 = vsel %vm1379_vm1, %v9374_v30, 0.0  ;;  %v14247_v35 = vld [vmem:[#allocation215_spill] sm:$0xff]  ;;  %v9405_v19 = vpop.xlane.xlu0 %2434 }
 0x295   :  { %v9380_v24 = vadd.f32 %v2324_v34, %v2014_v17  ;;  %v9383_v38 = vadd.f32 %v1572_v57, %v9370_v16  ;;  %v14249_v20 = vsub.f32 %v14247_v35, %v14248_v8  ;;  %v3002_v17 = vld [vmem:[%s13469_s3 + $0x10] sm:$0xff]  ;;  %14251 = vst [vmem:[#allocation212_spill] sm:$0xff] %v9405_v19  ;;  %v3003_v8 = vld [vmem:[%s13469_s3 + $0x18] sm:$0xff] }
 0x297   :  { %v2896_v41 = vmax.f32 %v14249_v20, 0.0  ;;  %v9414_v20 = vadd.f32 %v1788_v6, %v9385_v11  ;;  %v2124_v6 = vmul.f32 %v9385_v11, %v9385_v11 }
 0x298   :  { %1774 = vadd.xlane.f32.xlu0 %v9120_v26  ;;  %v5986_v26 = vpop.eup %5985 }
 0x299   :  { %v3112_v34 = vadd.f32 0.001, %v2896_v41  ;;  %v9401_v57 = vmul.f32 %v5986_v26, %v3002_v17  ;;  %v5988_v13 = vpop.eup %5987  ;;  %v9416_v41 = vpop.xlane.xlu1 %1466  ;;  %v2125_v17 = vmul.f32 %v9390_v44, %v9390_v44 }
 0x29a   :  { %14252 = vst [vmem:[#allocation278_spill] sm:$0xff] %v9416_v41  ;;  %v9420_v26 = vmul.f32 %v5988_v13, %v3003_v8  ;;  %v9436_v8 = vpop.xlane.xlu0 %1470 }
 0x29b   :  { %14250 = vst [vmem:[#allocation215_spill] sm:$0xff] %v9401_v57  ;;  %5989 = vrsqrt.f32 %v3112_v34  ;;  %v3434_v35 = vmul.f32 %v9401_v57, %v14253_v4  ;;  %v2544_v4 = vsel %vm1379_vm1, %v2125_v17, 0.0 }
 0x29c   :  { %2314 = vadd.xlane.f32.xlu0 %v9139_v39  ;;  %v2017_v39 = vmul.f32 %v9374_v30, %v9374_v30  ;;  %14254 = vst [vmem:[#allocation188_spill] sm:$0xff] %v9420_v26  ;;  %v14255_v30 = vld [vmem:[#allocation194_spill] sm:$0xff] }
 0x29d   :  { %v3435_v19 = vmul.f32 %v9420_v26, %v14255_v30  ;;  %v9434_v13 = vpop.xlane.xlu1 %1682 }
 0x29e   :  { %v2328_v34 = vsel %vm1379_vm1, %v2017_v39, 0.0  ;;  %14256 = vst [vmem:[#allocation194_spill] sm:$0xff] %v9434_v13  ;;  %v3004_v39 = vld [vmem:[%s13469_s3 + $0x20] sm:$0xff]  ;;  %v9445_v11 = vpop.xlane.xlu0 %1686 }
 0x29f   :  { %14257 = vst [vmem:[#allocation279_spill] sm:$0xff] %v9445_v11 }
 0x2a0   :  { %2530 = vadd.xlane.f32.xlu0 %v9152_v36  ;;  %v2016_v36 = vmul.f32 %v9370_v16, %v9370_v16 }
 0x2a2   :  { %v9432_v41 = vadd.f32 %v2328_v34, %v2016_v36  ;;  %v14259_v36 = vld [vmem:[#allocation209_spill] sm:$0xff]  ;;  %v9451_v16 = vpop.xlane.xlu0 %2226 }
 0x2a5   :  { %3652 = vrot.lane.b32.xlu1 %v3434_v35, %s6305_s9  ;;  %v9440_v35 = vadd.f32 %v2544_v4, %v2124_v6  ;;  %v5990_v44 = vpop.eup %5989  ;;  %v9458_v6 = vpop.xlane.xlu1 %2222 }
 0x2a6   :  { %v9447_v30 = vmul.f32 %v5990_v44, %v3004_v39  ;;  %14261 = vst [vmem:[#allocation281_spill] sm:$0xff] %v9458_v6 }
 0x2a8   :  { %14258 = vst [vmem:[#allocation280_spill] sm:$0xff] %v9447_v30  ;;  %v3436_v34 = vmul.f32 %v9447_v30, %v14259_v36 }
 0x2a9   :  { %3654 = vrot.lane.b32.xlu1 %v3435_v19, %s6305_s9  ;;  %v9454_v19 = vpop.xlane.xlu0 %2442  ;;  %v9468_v39 = vpop.xlane.xlu1 %2438 }
 0x2aa   :  { %14260 = vst [vmem:[#allocation209_spill] sm:$0xff] %v9454_v19  ;;  %14265 = vst [vmem:[#allocation285_spill] sm:$0xff] %v9468_v39  ;;  %v14269_v19 = vld [vmem:[#allocation218_spill] sm:$0xff] }
 0x2ad   :  { %v9456_v17 = vpop.xlane.xlu0 %1478 }
 0x2b1   :  { %v9460_v4 = vpop.xlane.xlu0 %1694 }
 0x2b2   :  { %14262 = vst [vmem:[#allocation282_spill] sm:$0xff] %v9460_v4  ;;  %v14268_v4 = vld [vmem:[#allocation220_spill] sm:$0xff] }
 0x2b3   :  { %v14270_v11 = vsub.f32 %v14268_v4, %v14269_v19 }
 0x2b5   :  { %v2897_v6 = vmax.f32 %v14270_v11, 0.0 }
 0x2b6   :  { %3656 = vrot.lane.b32.xlu0 %v3436_v34, %s6305_s9  ;;  %v9473_v34 = vpop.xlane.xlu0 %2234 }
 0x2b7   :  { %v3113_v29 = vadd.f32 0.001, %v2897_v6 }
 0x2b9   :  { %5991 = vrsqrt.f32 %v3113_v29 }
 0x2ba   :  { %v9495_v31 = vpop.xlane.xlu0 %2450 }
 0x2bb   :  { %14272 = vst [vmem:[#allocation218_spill] sm:$0xff] %v9495_v31 }
 0x2c5   :  { %v9462_v57 = vpop.f32.mrb[98].mxu0 }
 0x2c6   :  { %14263 = vst [vmem:[#allocation283_spill] sm:$0xff] %v9462_v57  ;;  %v9464_v26 = vpop.f32.mrb[99].mxu0 }
 0x2c7   :  { %14264 = vst [vmem:[#allocation284_spill] sm:$0xff] %v9464_v26  ;;  %v1576_v44 = vsel %vm1379_vm1, %v9464_v26, 0.0  ;;  %v2019_v50 = vmul.f32 %v9464_v26, %v9464_v26 }
 0x2c8   :  { %v9471_v36 = vadd.f32 %v1576_v44, %v9462_v57  ;;  %v2018_v44 = vmul.f32 %v9462_v57, %v9462_v57 }
 0x2c9   :  { %v2332_v11 = vsel %vm1379_vm1, %v2019_v50, 0.0 }
 0x2ca   :  { %v9498_v19 = vadd.f32 %v2332_v11, %v2018_v44 }
 0x2cb   :  { %v9476_v30 = vpop.f32.mrb[98].mxu1 }
 0x2cc   :  { %14266 = vst [vmem:[#allocation286_spill] sm:$0xff] %v9476_v30  ;;  %v9478_v13 = vpop.f32.mrb[99].mxu1  ;;  %v2126_v50 = vmul.f32 %v9476_v30, %v9476_v30 }
 0x2cd   :  { %1562 = vadd.xlane.f32.xlu1 %v9232_v22  ;;  %14267 = vst [vmem:[#allocation287_spill] sm:$0xff] %v9478_v13  ;;  %v1792_v39 = vsel %vm1379_vm1, %v9478_v13, 0.0  ;;  %v9493_v22 = vpop.xlane.xlu1 %1474 }
 0x2ce   :  { %v9490_v32 = vadd.f32 %v1792_v39, %v9476_v30  ;;  %14271 = vst [vmem:[#allocation220_spill] sm:$0xff] %v9493_v22  ;;  %v2127_v39 = vmul.f32 %v9478_v13, %v9478_v13  ;;  %v14278_v30 = vsub.f32 %v8758_v55, %v8754_v7  ;;  %v5992_v22 = vpop.eup %5991  ;;  %v3005_v55 = vld [vmem:[%s13469_s3 + $0x28] sm:$0xff] }
 0x2d0   :  { %v2548_v11 = vsel %vm1379_vm1, %v2127_v39, 0.0 }
 0x2d1   :  { %1778 = vadd.xlane.f32.xlu1 %v9240_v33  ;;  %v9502_v4 = vpop.f32.mrb[100].mxu0  ;;  %v9510_v6 = vpop.xlane.xlu1 %1690  ;;  %v9531_v57 = vadd.f32 %v2548_v11, %v2126_v50 }
 0x2d2   :  { %14273 = vst [vmem:[#allocation288_spill] sm:$0xff] %v9502_v4  ;;  %v9506_v26 = vpop.f32.mrb[101].mxu0  ;;  %14275 = vst [vmem:[#allocation290_spill] sm:$0xff] %v9510_v6  ;;  %v2020_v39 = vmul.f32 %v9502_v4, %v9502_v4 }
 0x2d3   :  { %14274 = vst [vmem:[#allocation289_spill] sm:$0xff] %v9506_v26  ;;  %v1580_v33 = vsel %vm1379_vm1, %v9506_v26, 0.0 }
 0x2d5   :  { %2318 = vadd.xlane.f32.xlu1 %v9237_v37  ;;  %1566 = vadd.xlane.f32.xlu0 %v9262_v48  ;;  %v9515_v37 = vadd.f32 %v1580_v33, %v9502_v4  ;;  %v9517_v48 = vpop.xlane.xlu0 %1486  ;;  %v2898_v33 = vmax.f32 %v14278_v30, 0.0  ;;  %v9552_v30 = vmul.f32 %v5992_v22, %v3005_v55  ;;  %v3006_v55 = vld [vmem:[%s13469_s3 + $0x30] sm:$0xff] }
 0x2d7   :  { %v9521_v44 = vpop.f32.mrb[100].mxu1  ;;  %v3114_v6 = vadd.f32 0.001, %v2898_v33  ;;  %14281 = vst [vmem:[#allocation295_spill] sm:$0xff] %v9552_v30  ;;  %v14282_v33 = vld [vmem:[#allocation214_spill] sm:$0xff] }
 0x2d8   :  { %14276 = vst [vmem:[#allocation291_spill] sm:$0xff] %v9521_v44  ;;  %v9523_v29 = vpop.f32.mrb[101].mxu1 }
 0x2d9   :  { %2534 = vadd.xlane.f32.xlu1 %v9247_v42  ;;  %1782 = vadd.xlane.f32.xlu0 %v9277_v27  ;;  %14277 = vst [vmem:[#allocation292_spill] sm:$0xff] %v9523_v29  ;;  %v1796_v13 = vsel %vm1379_vm1, %v9523_v29, 0.0  ;;  %v2021_v27 = vmul.f32 %v9506_v26, %v9506_v26  ;;  %v9539_v31 = vpop.xlane.xlu0 %1702  ;;  %5993 = vrsqrt.f32 %v3114_v6  ;;  %v2129_v11 = vmul.f32 %v9523_v29, %v9523_v29 }
 0x2da   :  { %v9535_v42 = vadd.f32 %v1796_v13, %v9521_v44  ;;  %14279 = vst [vmem:[#allocation293_spill] sm:$0xff] %v9539_v31  ;;  %v9550_v13 = vpop.xlane.xlu1 %2230  ;;  %v3437_v26 = vmul.f32 %v9552_v30, %v14282_v33 }
 0x2db   :  { %v2336_v7 = vsel %vm1379_vm1, %v2021_v27, 0.0  ;;  %14280 = vst [vmem:[#allocation294_spill] sm:$0xff] %v9550_v13  ;;  %v2552_v6 = vsel %vm1379_vm1, %v2129_v11, 0.0 }
 0x2dd   :  { %2322 = vadd.xlane.f32.xlu0 %v9292_v51  ;;  %v9548_v51 = vadd.f32 %v2336_v7, %v2020_v39  ;;  %v9554_v50 = vpop.xlane.xlu0 %2242 }
 0x2de   :  { %v9562_v4 = vpop.xlane.xlu1 %2446 }
 0x2df   :  { %14283 = vst [vmem:[#allocation214_spill] sm:$0xff] %v9562_v4 }
 0x2e1   :  { %2538 = vadd.xlane.f32.xlu0 %v9295_v45  ;;  %v2128_v45 = vmul.f32 %v9521_v44, %v9521_v44  ;;  %v9566_v27 = vpop.xlane.xlu0 %2458  ;;  %v14287_v44 = vld [vmem:[#allocation105_spill] sm:$0xff] }
 0x2e2   :  { %14284 = vst [vmem:[#allocation296_spill] sm:$0xff] %v9566_v27  ;;  %v9573_v7 = vpop.xlane.xlu1 %1482 }
 0x2e3   :  { %v9568_v22 = vadd.f32 %v2552_v6, %v2128_v45  ;;  %v5994_v39 = vpop.eup %5993  ;;  %14285 = vst [vmem:[#allocation297_spill] sm:$0xff] %v9573_v7 }
 0x2e4   :  { %v9577_v33 = vmul.f32 %v5994_v39, %v3006_v55 }
 0x2e5   :  { %v9575_v29 = vpop.xlane.xlu0 %1494 }
 0x2e6   :  { %14286 = vst [vmem:[#allocation298_spill] sm:$0xff] %v9577_v33  ;;  %v9581_v30 = vpop.xlane.xlu1 %1698 }
 0x2e7   :  { %14288 = vst [vmem:[#allocation105_spill] sm:$0xff] %v9581_v30 }
 0x2e9   :  { %v9583_v11 = vpop.xlane.xlu0 %1710 }
 0x2ea   :  { %3658 = vrot.lane.b32.xlu1 %v3437_v26, %s6305_s9  ;;  %v3438_v26 = vmul.f32 %v9577_v33, %v14287_v44  ;;  %14289 = vst [vmem:[#allocation299_spill] sm:$0xff] %v9583_v11  ;;  %v9586_v45 = vpop.xlane.xlu1 %2238 }
 0x2eb   :  { %14290 = vst [vmem:[#allocation300_spill] sm:$0xff] %v9586_v45 }
 0x2ed   :  { %v9588_v6 = vpop.xlane.xlu0 %2250 }
 0x2ee   :  { %v9590_v27 = vpop.xlane.xlu1 %2454 }
 0x2ef   :  { %14291 = vst [vmem:[#allocation301_spill] sm:$0xff] %v9590_v27 }
 0x2f1   :  { %v9592_v31 = vpop.xlane.xlu0 %2466 }
 0x2f2   :  { %14292 = vst [vmem:[#allocation302_spill] sm:$0xff] %v9592_v31  ;;  %v9594_v7 = vpop.xlane.xlu1 %1490 }
 0x2f3   :  { %14293 = vst [vmem:[#allocation303_spill] sm:$0xff] %v9594_v7 }
 0x2f5   :  { %v9596_v39 = vpop.xlane.xlu0 %1502 }
 0x2f6   :  { %v9598_v55 = vpop.xlane.xlu1 %1706 }
 0x2f7   :  { %3660 = vrot.lane.b32.xlu0 %v3438_v26, %s6305_s9  ;;  %14294 = vst [vmem:[#allocation304_spill] sm:$0xff] %v9598_v55  ;;  %v14297_v26 = vsub.f32 %v8790_v21, %v8784_v47 }
 0x2f9   :  { %v9601_v44 = vpop.xlane.xlu0 %1718  ;;  %v2899_v30 = vmax.f32 %v14297_v26, 0.0 }
 0x2fa   :  { %14295 = vst [vmem:[#allocation305_spill] sm:$0xff] %v9601_v44  ;;  %v9620_v7 = vpop.xlane.xlu1 %2246 }
 0x2fb   :  { %v3115_v44 = vadd.f32 0.001, %v2899_v30  ;;  %14299 = vst [vmem:[#allocation308_spill] sm:$0xff] %v9620_v7 }
 0x2fd   :  { %v9623_v21 = vpop.xlane.xlu0 %2258  ;;  %5995 = vrsqrt.f32 %v3115_v44 }
 0x2ff   :  { %v9603_v33 = vpop.f32.mrb[102].mxu0 }
 0x300   :  { %14296 = vst [vmem:[#allocation306_spill] sm:$0xff] %v9603_v33  ;;  %v9608_v11 = vpop.f32.mrb[103].mxu0  ;;  %v2022_v27 = vmul.f32 %v9603_v33, %v9603_v33 }
 0x301   :  { %14298 = vst [vmem:[#allocation307_spill] sm:$0xff] %v9608_v11  ;;  %v1584_v31 = vsel %vm1379_vm1, %v9608_v11, 0.0  ;;  %v2023_v55 = vmul.f32 %v9608_v11, %v9608_v11 }
 0x303   :  { %v2340_v47 = vsel %vm1379_vm1, %v2023_v55, 0.0 }
 0x304   :  { %v9625_v26 = vadd.f32 %v2340_v47, %v2022_v27  ;;  %v9639_v27 = vpop.xlane.xlu1 %2462  ;;  %v9649_v47 = vpop.f32.mrb[104].mxu0 }
 0x305   :  { %14302 = vst [vmem:[#allocation311_spill] sm:$0xff] %v9639_v27  ;;  %14304 = vst [vmem:[#allocation313_spill] sm:$0xff] %v9649_v47 }
 0x307   :  { %v5996_v27 = vpop.eup %5995 }
 0x30c   :  { %v9629_v45 = vpop.f32.mrb[102].mxu1 }
 0x30d   :  { %14300 = vst [vmem:[#allocation309_spill] sm:$0xff] %v9629_v45 }
 0x30e   :  { %1570 = vadd.xlane.f32.xlu1 %v9338_v0  ;;  %v9618_v0 = vadd.f32 %v1584_v31, %v9603_v33  ;;  %v2130_v31 = vmul.f32 %v9629_v45, %v9629_v45 }
 0x312   :  { %1786 = vadd.xlane.f32.xlu1 %v9366_v9  ;;  %v9633_v9 = vpop.f32.mrb[103].mxu1 }
 0x313   :  { %14301 = vst [vmem:[#allocation310_spill] sm:$0xff] %v9633_v9  ;;  %v1800_v30 = vsel %vm1379_vm1, %v9633_v9, 0.0  ;;  %v2131_v55 = vmul.f32 %v9633_v9, %v9633_v9  ;;  %v14305_v9 = vsub.f32 %v8820_v59, %v8816_v63 }
 0x315   :  { %v2556_v44 = vsel %vm1379_vm1, %v2131_v55, 0.0  ;;  %v2900_v33 = vmax.f32 %v14305_v9, 0.0  ;;  %v9665_v55 = vpop.xlane.xlu1 %1498 }
 0x316   :  { %2326 = vadd.xlane.f32.xlu1 %v9380_v24  ;;  %1574 = vadd.xlane.f32.xlu0 %v9383_v38  ;;  %v9644_v38 = vadd.f32 %v1800_v30, %v9629_v45  ;;  %v9646_v24 = vpop.xlane.xlu0 %2474  ;;  %v9651_v11 = vadd.f32 %v2556_v44, %v2130_v31  ;;  %v9663_v45 = vpop.f32.mrb[104].mxu1  ;;  %14308 = vst [vmem:[#allocation316_spill] sm:$0xff] %v9665_v55 }
 0x317   :  { %14303 = vst [vmem:[#allocation312_spill] sm:$0xff] %v9646_v24  ;;  %14307 = vst [vmem:[#allocation315_spill] sm:$0xff] %v9663_v45  ;;  %v2024_v31 = vmul.f32 %v9649_v47, %v9649_v47  ;;  %v9669_v44 = vpop.f32.mrb[105].mxu1  ;;  %v3116_v63 = vadd.f32 0.001, %v2900_v33 }
 0x318   :  { %14309 = vst [vmem:[#allocation317_spill] sm:$0xff] %v9669_v44 }
 0x319   :  { %5997 = vrsqrt.f32 %v3116_v63  ;;  %v9690_v4 = vpop.xlane.xlu1 %1714 }
 0x31a   :  { %2542 = vadd.xlane.f32.xlu1 %v9392_v53  ;;  %1790 = vadd.xlane.f32.xlu0 %v9414_v20  ;;  %v9657_v53 = vpop.f32.mrb[105].mxu0  ;;  %v9671_v59 = vpop.xlane.xlu0 %1510  ;;  %14311 = vst [vmem:[#allocation319_spill] sm:$0xff] %v9690_v4 }
 0x31b   :  { %14306 = vst [vmem:[#allocation314_spill] sm:$0xff] %v9657_v53  ;;  %v1588_v20 = vsel %vm1379_vm1, %v9657_v53, 0.0  ;;  %v2025_v30 = vmul.f32 %v9657_v53, %v9657_v53  ;;  %v3007_v53 = vld [vmem:[%s13469_s3 + $0x38] sm:$0xff] }
 0x31c   :  { %v9676_v9 = vadd.f32 %v1588_v20, %v9649_v47  ;;  %v9688_v7 = vmul.f32 %v5996_v27, %v3007_v53  ;;  %v2132_v47 = vmul.f32 %v9663_v45, %v9663_v45 }
 0x31d   :  { %v2344_v33 = vsel %vm1379_vm1, %v2025_v30, 0.0 }
 0x31e   :  { %2330 = vadd.xlane.f32.xlu0 %v9432_v41  ;;  %v1804_v41 = vsel %vm1379_vm1, %v9669_v44, 0.0  ;;  %v9686_v55 = vadd.f32 %v2344_v33, %v2024_v31  ;;  %14310 = vst [vmem:[#allocation318_spill] sm:$0xff] %v9688_v7  ;;  %v9692_v20 = vpop.xlane.xlu0 %1726  ;;  %v9702_v31 = vpop.xlane.xlu1 %2254  ;;  %v3008_v33 = vld [vmem:[%s13469_s3 + $0x40] sm:$0xff] }
 0x31f   :  { %v9683_v24 = vadd.f32 %v1804_v41, %v9663_v45  ;;  %14312 = vst [vmem:[#allocation320_spill] sm:$0xff] %v9692_v20  ;;  %v3439_v41 = vmul.f32 %v9688_v7, %v8756_v62  ;;  %14313 = vst [vmem:[#allocation321_spill] sm:$0xff] %v9702_v31 }
 0x322   :  { %2546 = vadd.xlane.f32.xlu0 %v9440_v35  ;;  %v2133_v35 = vmul.f32 %v9669_v44, %v9669_v44  ;;  %v9706_v53 = vpop.xlane.xlu0 %2266  ;;  %v9711_v44 = vpop.xlane.xlu1 %2470 }
 0x323   :  { %v5998_v63 = vpop.eup %5997  ;;  %14314 = vst [vmem:[#allocation322_spill] sm:$0xff] %v9711_v44 }
 0x324   :  { %v2560_v30 = vsel %vm1379_vm1, %v2133_v35, 0.0  ;;  %v9713_v45 = vmul.f32 %v5998_v63, %v3008_v33 }
 0x325   :  { %v9704_v27 = vadd.f32 %v2560_v30, %v2132_v47 }
 0x326   :  { %14315 = vst [vmem:[#allocation323_spill] sm:$0xff] %v9713_v45  ;;  %v9715_v62 = vpop.xlane.xlu0 %2482  ;;  %v3440_v35 = vmul.f32 %v9713_v45, %v8808_v58 }
 0x327   :  { %14316 = vst [vmem:[#allocation324_spill] sm:$0xff] %v9715_v62 }
 0x32a   :  { %v9722_v47 = vpop.xlane.xlu0 %1518 }
 0x32b   :  { %3662 = vrot.lane.b32.xlu1 %v3439_v41, %s6305_s9  ;;  %v9719_v41 = vpop.xlane.xlu1 %1506  ;;  %14318 = vst [vmem:[#allocation326_spill] sm:$0xff] %v9722_v47 }
 0x32c   :  { %14317 = vst [vmem:[#allocation325_spill] sm:$0xff] %v9719_v41  ;;  %v14330_v41 = vsub.f32 %v8838_v52, %v8832_v18 }
 0x32e   :  { %v9726_v7 = vpop.xlane.xlu0 %1734 }
 0x32f   :  { %v9724_v30 = vpop.xlane.xlu1 %1722  ;;  %14320 = vst [vmem:[#allocation328_spill] sm:$0xff] %v9726_v7 }
 0x330   :  { %14319 = vst [vmem:[#allocation327_spill] sm:$0xff] %v9724_v30 }
 0x332   :  { %v9730_v44 = vpop.xlane.xlu0 %2274 }
 0x333   :  { %v9728_v4 = vpop.xlane.xlu1 %2262  ;;  %14322 = vst [vmem:[#allocation330_spill] sm:$0xff] %v9730_v44 }
 0x334   :  { %14321 = vst [vmem:[#allocation329_spill] sm:$0xff] %v9728_v4 }
 0x336   :  { %v9736_v62 = vpop.xlane.xlu0 %2490 }
 0x337   :  { %v9732_v63 = vpop.xlane.xlu1 %2478  ;;  %14325 = vst [vmem:[#allocation333_spill] sm:$0xff] %v9736_v62 }
 0x338   :  { %3664 = vrot.lane.b32.xlu0 %v3440_v35, %s6305_s9  ;;  %14323 = vst [vmem:[#allocation331_spill] sm:$0xff] %v9732_v63 }
 0x339   :  { %v9734_v33 = vpop.f32.mrb[106].mxu0  ;;  %v9742_v45 = vpop.f32.mrb[106].mxu1 }
 0x33a   :  { %14324 = vst [vmem:[#allocation332_spill] sm:$0xff] %v9734_v33  ;;  %v9738_v58 = vpop.f32.mrb[107].mxu0  ;;  %14327 = vst [vmem:[#allocation335_spill] sm:$0xff] %v9742_v45  ;;  %v9747_v7 = vpop.f32.mrb[107].mxu1  ;;  %v2134_v18 = vmul.f32 %v9742_v45, %v9742_v45 }
 0x33b   :  { %14326 = vst [vmem:[#allocation334_spill] sm:$0xff] %v9738_v58  ;;  %v1592_v35 = vsel %vm1379_vm1, %v9738_v58, 0.0  ;;  %14328 = vst [vmem:[#allocation336_spill] sm:$0xff] %v9747_v7  ;;  %v2027_v63 = vmul.f32 %v9738_v58, %v9738_v58  ;;  %v1808_v62 = vsel %vm1379_vm1, %v9747_v7, 0.0  ;;  %v9754_v20 = vpop.xlane.xlu1 %1514  ;;  %v9762_v31 = vpop.xlane.xlu0 %1526 }
 0x33c   :  { %v9745_v30 = vadd.f32 %v1592_v35, %v9734_v33  ;;  %14329 = vst [vmem:[#allocation337_spill] sm:$0xff] %v9754_v20  ;;  %v9757_v4 = vadd.f32 %v1808_v62, %v9742_v45  ;;  %v2901_v35 = vmax.f32 %v14330_v41, 0.0  ;;  %v2135_v62 = vmul.f32 %v9747_v7, %v9747_v7 }
 0x33d   :  { %v2348_v58 = vsel %vm1379_vm1, %v2027_v63, 0.0 }
 0x33e   :  { %v3117_v13 = vadd.f32 0.001, %v2901_v35  ;;  %v2564_v52 = vsel %vm1379_vm1, %v2135_v62, 0.0 }
 0x33f   :  { %v9768_v44 = vpop.xlane.xlu1 %1730  ;;  %v9774_v47 = vpop.xlane.xlu0 %1742  ;;  %v9787_v63 = vadd.f32 %v2564_v52, %v2134_v18 }
 0x340   :  { %14331 = vst [vmem:[#allocation338_spill] sm:$0xff] %v9768_v44  ;;  %14332 = vst [vmem:[#allocation339_spill] sm:$0xff] %v9774_v47  ;;  %5999 = vrsqrt.f32 %v3117_v13 }
 0x343   :  { %v9785_v41 = vpop.xlane.xlu0 %2282 }
 0x34a   :  { %v6000_v35 = vpop.eup %5999 }
 0x34f   :  { %1578 = vadd.xlane.f32.xlu1 %v9471_v36  ;;  %v2026_v36 = vmul.f32 %v9734_v33, %v9734_v33 }
 0x351   :  { %v9772_v20 = vadd.f32 %v2348_v58, %v2026_v36  ;;  %v9795_v36 = vpop.xlane.xlu0 %2498 }
 0x352   :  { %14335 = vst [vmem:[#allocation341_spill] sm:$0xff] %v9795_v36 }
 0x353   :  { %1794 = vadd.xlane.f32.xlu1 %v9490_v32  ;;  %v9783_v32 = vpop.xlane.xlu1 %2270 }
 0x357   :  { %2334 = vadd.xlane.f32.xlu1 %v9498_v19  ;;  %1582 = vadd.xlane.f32.xlu0 %v9515_v37  ;;  %v14333_v19 = vsub.f32 %v8868_v43, %v8864_v2  ;;  %v9793_v58 = vpop.xlane.xlu1 %2486  ;;  %v9805_v2 = vpop.xlane.xlu0 %1534  ;;  %v14337_v43 = vld [vmem:[#allocation234_spill] sm:$0xff] }
 0x358   :  { %14334 = vst [vmem:[#allocation340_spill] sm:$0xff] %v9793_v58 }
 0x359   :  { %v2902_v37 = vmax.f32 %v14333_v19, 0.0  ;;  %v3010_v19 = vld [vmem:[%s13469_s3 + $0x50] sm:$0xff] }
 0x35b   :  { %2550 = vadd.xlane.f32.xlu1 %v9531_v57  ;;  %1798 = vadd.xlane.f32.xlu0 %v9535_v42  ;;  %v3118_v13 = vadd.f32 0.001, %v2902_v37  ;;  %v3009_v57 = vld [vmem:[%s13469_s3 + $0x48] sm:$0xff]  ;;  %v9803_v62 = vpop.xlane.xlu1 %1522  ;;  %v9812_v52 = vpop.xlane.xlu0 %1750 }
 0x35c   :  { %v9801_v42 = vmul.f32 %v6000_v35, %v3009_v57  ;;  %14339 = vst [vmem:[#allocation343_spill] sm:$0xff] %v9812_v52  ;;  %v14342_v57 = vld [vmem:[#allocation128_spill] sm:$0xff] }
 0x35d   :  { %6001 = vrsqrt.f32 %v3118_v13 }
 0x35e   :  { %14336 = vst [vmem:[#allocation342_spill] sm:$0xff] %v9801_v42 }
 0x35f   :  { %2338 = vadd.xlane.f32.xlu0 %v9548_v51  ;;  %v3441_v51 = vmul.f32 %v9801_v42, %v14337_v43  ;;  %v9810_v18 = vpop.xlane.xlu1 %1738  ;;  %v9821_v35 = vpop.xlane.xlu0 %2290 }
 0x360   :  { %14338 = vst [vmem:[#allocation234_spill] sm:$0xff] %v9810_v18 }
 0x363   :  { %2554 = vadd.xlane.f32.xlu0 %v9568_v22  ;;  %v9819_v13 = vpop.xlane.xlu1 %2278  ;;  %v9828_v7 = vpop.xlane.xlu0 %2506 }
 0x364   :  { %14341 = vst [vmem:[#allocation345_spill] sm:$0xff] %v9819_v13  ;;  %14344 = vst [vmem:[#allocation346_spill] sm:$0xff] %v9828_v7  ;;  %v9991_v13 = vmul.f32 0.0051020407, %v9456_v17 }
 0x367   :  { %v6002_v22 = vpop.eup %6001  ;;  %v9832_v33 = vpop.xlane.xlu0 %1542 }
 0x368   :  { %v9817_v37 = vmul.f32 %v6002_v22, %v3010_v19 }
 0x36a   :  { %14340 = vst [vmem:[#allocation344_spill] sm:$0xff] %v9817_v37  ;;  %v3442_v43 = vmul.f32 %v9817_v37, %v14342_v57  ;;  %v14349_v57 = vld [vmem:[#allocation241_spill] sm:$0xff] }
 0x36b   :  { %v9836_v22 = vpop.xlane.xlu0 %1758 }
 0x36c   :  { %3666 = vrot.lane.b32.xlu1 %v3441_v51, %s6305_s9  ;;  %v9826_v51 = vpop.xlane.xlu1 %2494  ;;  %14347 = vst [vmem:[#allocation349_spill] sm:$0xff] %v9836_v22 }
 0x36d   :  { %14343 = vst [vmem:[#allocation128_spill] sm:$0xff] %v9826_v51 }
 0x36f   :  { %v9840_v18 = vpop.xlane.xlu0 %2298 }
 0x370   :  { %v9830_v45 = vpop.xlane.xlu1 %1530 }
 0x371   :  { %14345 = vst [vmem:[#allocation347_spill] sm:$0xff] %v9830_v45  ;;  %v14393_v45 = vld [vmem:[#allocation203_spill] sm:$0xff] }
 0x373   :  { %v9848_v44 = vpop.xlane.xlu0 %2514 }
 0x374   :  { %v9834_v42 = vpop.xlane.xlu1 %1746 }
 0x375   :  { %14346 = vst [vmem:[#allocation348_spill] sm:$0xff] %v9834_v42 }
 0x377   :  { %v9855_v22 = vpop.permute.xlu0 %3648 }
 0x378   :  { %v9838_v19 = vpop.xlane.xlu1 %2286  ;;  %14355 = vst [vmem:[#allocation352_spill] sm:$0xff] %v9855_v22 }
 0x379   :  { %3668 = vrot.lane.b32.xlu0 %v3442_v43, %s6305_s9  ;;  %14348 = vst [vmem:[#allocation350_spill] sm:$0xff] %v9838_v19  ;;  %v14350_v43 = vld [vmem:[#allocation238_spill] sm:$0xff]  ;;  %v14392_v19 = vld [vmem:[#allocation204_spill] sm:$0xff] }
 0x37a   :  { %v14351_v37 = vsub.f32 %v14349_v57, %v14350_v43  ;;  %14353 = vst [vmem:[#allocation238_spill] sm:$0xff] %v9848_v44  ;;  %v14357_v57 = vld [vmem:[#allocation246_spill] sm:$0xff] }
 0x37c   :  { %v2903_v51 = vmax.f32 %v14351_v37, 0.0  ;;  %v9846_v58 = vpop.xlane.xlu1 %2502 }
 0x37d   :  { %14352 = vst [vmem:[#allocation241_spill] sm:$0xff] %v9846_v58  ;;  %v14361_v58 = vld [vmem:[#allocation175_spill] sm:$0xff] }
 0x37e   :  { %v3119_v7 = vadd.f32 0.001, %v2903_v51 }
 0x380   :  { %v9851_v42 = vpop.xlane.xlu1 %1538  ;;  %6003 = vrsqrt.f32 %v3119_v7 }
 0x381   :  { %14354 = vst [vmem:[#allocation351_spill] sm:$0xff] %v9851_v42 }
 0x384   :  { %v9861_v37 = vpop.xlane.xlu1 %1754 }
 0x385   :  { %14356 = vst [vmem:[#allocation353_spill] sm:$0xff] %v9861_v37 }
 0x388   :  { %v9872_v42 = vpop.xlane.xlu1 %2294 }
 0x390   :  { %1586 = vadd.xlane.f32.xlu1 %v9618_v0  ;;  %v9859_v0 = vpop.xlane.xlu0 %1550 }
 0x394   :  { %1802 = vadd.xlane.f32.xlu1 %v9644_v38  ;;  %v14358_v38 = vld [vmem:[#allocation244_spill] sm:$0xff]  ;;  %v9870_v7 = vpop.xlane.xlu0 %1766 }
 0x395   :  { %v14359_v51 = vsub.f32 %v14357_v57, %v14358_v38  ;;  %14363 = vst [vmem:[#allocation246_spill] sm:$0xff] %v9870_v7  ;;  %14364 = vst [vmem:[#allocation244_spill] sm:$0xff] %v9872_v42  ;;  %v14371_v42 = vld [vmem:[#allocation237_spill] sm:$0xff] }
 0x397   :  { %v2904_v43 = vmax.f32 %v14359_v51, 0.0 }
 0x398   :  { %2342 = vadd.xlane.f32.xlu1 %v9625_v26  ;;  %1590 = vadd.xlane.f32.xlu0 %v9676_v9  ;;  %v14360_v26 = vld [vmem:[#allocation176_spill] sm:$0xff]  ;;  %v9883_v51 = vpop.xlane.xlu0 %2306 }
 0x399   :  { %v14362_v9 = vsub.f32 %v14360_v26, %v14361_v58  ;;  %v3120_v22 = vadd.f32 0.001, %v2904_v43  ;;  %v9885_v43 = vpop.xlane.xlu1 %2510  ;;  %v14368_v26 = vld [vmem:[#allocation199_spill] sm:$0xff] }
 0x39a   :  { %14367 = vst [vmem:[#allocation175_spill] sm:$0xff] %v9885_v43 }
 0x39b   :  { %v2946_v44 = vmax.f32 %v14362_v9, 0.0  ;;  %6005 = vrsqrt.f32 %v3120_v22  ;;  %v14369_v9 = vld [vmem:[#allocation197_spill] sm:$0xff]  ;;  %v9893_v22 = vmul.f32 0.0051020407, %v9304_v10  ;;  %v3012_v10 = vld [vmem:[%s13469_s3 + $0x60] sm:$0xff] }
 0x39c   :  { %2558 = vadd.xlane.f32.xlu1 %v9651_v11  ;;  %1806 = vadd.xlane.f32.xlu0 %v9683_v24  ;;  %v6004_v11 = vpop.eup %6003  ;;  %v3011_v24 = vld [vmem:[%s13469_s3 + $0x58] sm:$0xff] }
 0x39d   :  { %v3162_v57 = vadd.f32 0.001, %v2946_v44  ;;  %v9881_v58 = vmul.f32 %v6004_v11, %v3011_v24  ;;  %v2586_v24 = vmul.f32 0.0051020407, %v9317_v61 }
 0x39f   :  { %14366 = vst [vmem:[#allocation176_spill] sm:$0xff] %v9881_v58  ;;  %6007 = vrsqrt.f32 %v3162_v57  ;;  %v3443_v44 = vmul.f32 %v9881_v58, %v14371_v42  ;;  %v9900_v57 = vpop.xlane.xlu0 %2522  ;;  %v2694_v42 = vmul.f32 %v9893_v22, %v9893_v22  ;;  %v3054_v58 = vld [vmem:[%s13469_s3 + $0x1b0] sm:$0xff] }
 0x3a0   :  { %2346 = vadd.xlane.f32.xlu0 %v9686_v55  ;;  %v14365_v55 = vsub.f32 %v9033_v5, %v9031_v25  ;;  %v14372_v5 = vsub.f32 %v9128_v28, %v9124_v12  ;;  %14373 = vst [vmem:[#allocation199_spill] sm:$0xff] %v9900_v57 }
 0x3a2   :  { %v2906_v38 = vmax.f32 %v14365_v55, 0.0  ;;  %v2908_v11 = vmax.f32 %v14372_v5, 0.0  ;;  %v9902_v55 = vpop.xlane.xlu1 %1546 }
 0x3a3   :  { %14374 = vst [vmem:[#allocation197_spill] sm:$0xff] %v9902_v55  ;;  %v9917_v5 = vpop.xlane.xlu0 %1558 }
 0x3a4   :  { %2562 = vadd.xlane.f32.xlu0 %v9704_v27  ;;  %v14370_v27 = vsub.f32 %v14368_v26, %v14369_v9  ;;  %v3122_v7 = vadd.f32 0.001, %v2906_v38  ;;  %v3124_v12 = vadd.f32 0.001, %v2908_v11  ;;  %v2802_v9 = vsub.f32 %v2586_v24, %v2694_v42  ;;  %v14380_v24 = vld [vmem:[#allocation243_spill] sm:$0xff] }
 0x3a5   :  { %v6006_v38 = vpop.eup %6005  ;;  %v2588_v11 = vmul.f32 0.0051020407, %v9388_v14 }
 0x3a6   :  { %v2948_v37 = vmax.f32 %v14370_v27, 0.0  ;;  %6009 = vrsqrt.f32 %v3122_v7  ;;  %v14376_v7 = vld [vmem:[#allocation217_spill] sm:$0xff]  ;;  %v9912_v61 = vmul.f32 %v6006_v38, %v3012_v10  ;;  %v9922_v43 = vpop.xlane.xlu1 %1762 }
 0x3a7   :  { %v14382_v10 = vld [vmem:[#allocation233_spill] sm:$0xff] }
 0x3a8   :  { %v3164_v25 = vadd.f32 0.001, %v2948_v37  ;;  %v14375_v37 = vld [vmem:[#allocation219_spill] sm:$0xff]  ;;  %14378 = vst [vmem:[#allocation237_spill] sm:$0xff] %v9912_v61  ;;  %v3444_v38 = vmul.f32 %v9912_v61, %v14380_v24 }
 0x3a9   :  { %v14377_v26 = vsub.f32 %v14375_v37, %v14376_v7  ;;  %v6008_v27 = vpop.eup %6007  ;;  %14379 = vst [vmem:[#allocation219_spill] sm:$0xff] %v9922_v43  ;;  %v2910_v37 = vmax.f32 %v2802_v9, 0.0  ;;  %v14383_v7 = vld [vmem:[#allocation103_spill] sm:$0xff]  ;;  %v9938_v9 = vpop.xlane.xlu0 %1774 }
 0x3aa   :  { %6011 = vrsqrt.f32 %v3164_v25  ;;  %v9927_v42 = vmul.f32 %v6008_v27, %v3054_v58  ;;  %14385 = vst [vmem:[#allocation243_spill] sm:$0xff] %v9938_v9  ;;  %v14386_v58 = vld [vmem:[#allocation177_spill] sm:$0xff]  ;;  %v14387_v27 = vld [vmem:[#allocation174_spill] sm:$0xff] }
 0x3ab   :  { %v2950_v28 = vmax.f32 %v14377_v26, 0.0  ;;  %6013 = vrsqrt.f32 %v3124_v12  ;;  %v14384_v26 = vsub.f32 %v14382_v10, %v14383_v7  ;;  %v3126_v14 = vadd.f32 0.001, %v2910_v37  ;;  %v9943_v10 = vpop.xlane.xlu1 %2302  ;;  %v14390_v7 = vld [vmem:[#allocation171_spill] sm:$0xff] }
 0x3ac   :  { %14381 = vst [vmem:[#allocation217_spill] sm:$0xff] %v9927_v42  ;;  %v14388_v24 = vsub.f32 %v14386_v58, %v14387_v27  ;;  %14389 = vst [vmem:[#allocation233_spill] sm:$0xff] %v9943_v10  ;;  %v14395_v58 = vld [vmem:[#allocation224_spill] sm:$0xff]  ;;  %v14396_v27 = vld [vmem:[#allocation223_spill] sm:$0xff] }
 0x3ad   :  { %3670 = vrot.lane.b32.xlu1 %v3443_v44, %s6305_s9  ;;  %v9915_v44 = vmul.f32 0.0051020407, %v9347_v46  ;;  %v3166_v25 = vadd.f32 0.001, %v2950_v28  ;;  %v2952_v57 = vmax.f32 %v14384_v26, 0.0  ;;  %v3014_v28 = vld [vmem:[%s13469_s3 + $0x70] sm:$0xff]  ;;  %v3486_v26 = vmul.f32 %v9927_v42, %v14390_v7 }
 0x3ae   :  { %v2947_v61 = vmax.f32 %v14388_v24, 0.0  ;;  %v14397_v24 = vsub.f32 %v14395_v58, %v14396_v27  ;;  %v14403_v58 = vld [vmem:[#allocation236_spill] sm:$0xff]  ;;  %v14404_v27 = vld [vmem:[#allocation121_spill] sm:$0xff] }
 0x3af   :  { %v2696_v55 = vmul.f32 %v9915_v44, %v9915_v44  ;;  %6015 = vrsqrt.f32 %v3166_v25  ;;  %v3168_v37 = vadd.f32 0.001, %v2952_v57  ;;  %v14399_v57 = vld [vmem:[#allocation110_spill] sm:$0xff] }
 0x3b0   :  { %v6010_v46 = vpop.eup %6009  ;;  %v2951_v9 = vmax.f32 %v14397_v24, 0.0  ;;  %6017 = vrsqrt.f32 %v3126_v14 }
 0x3b1   :  { %v2804_v12 = vsub.f32 %v2588_v11, %v2696_v55  ;;  %v9947_v43 = vmul.f32 %v6010_v46, %v3014_v28  ;;  %v9953_v55 = vmul.f32 0.0051020407, %v9436_v8  ;;  %v3056_v11 = vld [vmem:[%s13469_s3 + $0x1c0] sm:$0xff]  ;;  %v2590_v28 = vmul.f32 0.0051020407, %v9451_v16 }
 0x3b2   :  { %6019 = vrsqrt.f32 %v3168_v37  ;;  %v3167_v24 = vadd.f32 0.001, %v2951_v9 }
 0x3b3   :  { %14391 = vst [vmem:[#allocation103_spill] sm:$0xff] %v9947_v43  ;;  %v2912_v46 = vmax.f32 %v2804_v12, 0.0  ;;  %v2698_v16 = vmul.f32 %v9953_v55, %v9953_v55  ;;  %v3016_v12 = vld [vmem:[%s13469_s3 + $0x80] sm:$0xff] }
 0x3b4   :  { %v6012_v52 = vpop.eup %6011 }
 0x3b5   :  { %v9968_v10 = vmul.f32 %v6012_v52, %v3056_v11  ;;  %v6014_v36 = vpop.eup %6013  ;;  %v14407_v52 = vld [vmem:[#allocation122_spill] sm:$0xff]  ;;  %v3128_v37 = vadd.f32 0.001, %v2912_v46 }
 0x3b7   :  { %14402 = vst [vmem:[#allocation177_spill] sm:$0xff] %v9968_v10 }
 0x3ba   :  { %3672 = vrot.lane.b32.xlu0 %v3444_v38, %s6305_s9  ;;  %v14394_v38 = vsub.f32 %v14392_v19, %v14393_v45  ;;  %v3163_v45 = vadd.f32 0.001, %v2947_v61  ;;  %v14398_v19 = vld [vmem:[#allocation114_spill] sm:$0xff]  ;;  %v9975_v61 = vpop.xlane.xlu0 %2314 }
 0x3bb   :  { %v14400_v7 = vsub.f32 %v14398_v19, %v14399_v57  ;;  %v14406_v19 = vld [vmem:[#allocation126_spill] sm:$0xff] }
 0x3bc   :  { %v2949_v25 = vmax.f32 %v14394_v38, 0.0  ;;  %v14401_v38 = vld [vmem:[#allocation257_spill] sm:$0xff]  ;;  %v14408_v11 = vsub.f32 %v14406_v19, %v14407_v52  ;;  %6021 = vrsqrt.f32 %v3163_v45  ;;  %v3058_v19 = vld [vmem:[%s13469_s3 + $0x1d0] sm:$0xff]  ;;  %v2700_v52 = vmul.f32 %v9991_v13, %v9991_v13 }
 0x3bd   :  { %v2953_v8 = vmax.f32 %v14400_v7, 0.0  ;;  %v3446_v42 = vmul.f32 %v9947_v43, %v14401_v38  ;;  %v2806_v7 = vsub.f32 %v2590_v28, %v2698_v16  ;;  %v6016_v43 = vpop.eup %6015  ;;  %v2592_v28 = vmul.f32 0.0051020407, %v9473_v34  ;;  %v14415_v16 = vld [vmem:[#allocation134_spill] sm:$0xff]  ;;  %v3018_v34 = vld [vmem:[%s13469_s3 + $0x90] sm:$0xff] }
 0x3be   :  { %3756 = vrot.lane.b32.xlu0 %v3486_v26, %s6305_s9  ;;  %v3165_v47 = vadd.f32 0.001, %v2949_v25  ;;  %v14405_v26 = vsub.f32 %v14403_v58, %v14404_v27  ;;  %v2955_v57 = vmax.f32 %v14408_v11, 0.0  ;;  %v9983_v25 = vpop.xlane.xlu1 %2518  ;;  %v14410_v58 = vld [vmem:[#allocation193_spill] sm:$0xff]  ;;  %v10004_v45 = vmul.f32 %v6016_v43, %v3058_v19  ;;  %v14418_v43 = vld [vmem:[#allocation138_spill] sm:$0xff] }
 0x3bf   :  { %14409 = vst [vmem:[#allocation174_spill] sm:$0xff] %v9983_v25  ;;  %v3169_v38 = vadd.f32 0.001, %v2953_v8  ;;  %v3488_v27 = vmul.f32 %v9968_v10, %v14410_v58  ;;  %v2914_v46 = vmax.f32 %v2806_v7, 0.0  ;;  %v6018_v8 = vpop.eup %6017  ;;  %v3060_v58 = vld [vmem:[%s13469_s3 + $0x1e0] sm:$0xff] }
 0x3c0   :  { %v2954_v14 = vmax.f32 %v14405_v26, 0.0  ;;  %v9988_v26 = vmul.f32 %v6014_v36, %v3016_v12  ;;  %6023 = vrsqrt.f32 %v3165_v47  ;;  %v9998_v36 = vpop.xlane.xlu0 %2530  ;;  %14413 = vst [vmem:[#allocation203_spill] sm:$0xff] %v10004_v45  ;;  %v6020_v11 = vpop.eup %6019  ;;  %v14431_v10 = vld [vmem:[#allocation250_spill] sm:$0xff]  ;;  %v10087_v25 = vmul.f32 0.0051020407, %v9575_v29 }
 0x3c1   :  { %6025 = vrsqrt.f32 %v3167_v24  ;;  %v3130_v7 = vadd.f32 0.001, %v2914_v46  ;;  %v10033_v46 = vmul.f32 %v6020_v11, %v3060_v58  ;;  %v10053_v58 = vmul.f32 0.0051020407, %v9098_v15  ;;  %v14430_v15 = vld [vmem:[#allocation232_spill] sm:$0xff] }
 0x3c2   :  { %3676 = vrot.lane.b32.xlu0 %v3446_v42, %s6305_s9  ;;  %14411 = vst [vmem:[#allocation171_spill] sm:$0xff] %v9988_v26  ;;  %v3170_v9 = vadd.f32 0.001, %v2954_v14  ;;  %v3171_v42 = vadd.f32 0.001, %v2955_v57  ;;  %6027 = vrsqrt.f32 %v3128_v37  ;;  %v10000_v47 = vpop.permute.xlu1 %3650  ;;  %v3448_v17 = vmul.f32 %v9988_v26, %v9103_v1  ;;  %v14414_v14 = vld [vmem:[#allocation240_spill] sm:$0xff] }
 0x3c3   :  { %6029 = vrsqrt.f32 %v3169_v38  ;;  %14412 = vst [vmem:[#allocation204_spill] sm:$0xff] %v10000_v47  ;;  %v14416_v12 = vsub.f32 %v14414_v14, %v14415_v16  ;;  %v14417_v1 = vld [vmem:[#allocation242_spill] sm:$0xff]  ;;  %v2808_v38 = vsub.f32 %v2592_v28, %v2700_v52  ;;  %v10025_v14 = vmul.f32 %v6018_v8, %v3018_v34  ;;  %14424 = vst [vmem:[#allocation110_spill] sm:$0xff] %v10033_v46  ;;  %v3055_v8 = vld [vmem:[%s13469_s3 + $0x1b8] sm:$0xff] }
 0x3c4   :  { %6031 = vrsqrt.f32 %v3170_v9  ;;  %v14419_v57 = vsub.f32 %v14417_v1, %v14418_v43  ;;  %v14421_v9 = vld [vmem:[#allocation213_spill] sm:$0xff]  ;;  %v10030_v16 = vpop.permute.xlu0 %3656  ;;  %v2594_v43 = vmul.f32 0.0051020407, %v9554_v50  ;;  %v3020_v50 = vld [vmem:[%s13469_s3 + $0xa0] sm:$0xff]  ;;  %v3492_v47 = vmul.f32 %v10033_v46, %v14430_v15 }
 0x3c5   :  { %v2956_v24 = vmax.f32 %v14416_v12, 0.0  ;;  %6033 = vrsqrt.f32 %v3171_v42  ;;  %v3490_v19 = vmul.f32 %v10004_v45, %v14421_v9  ;;  %14422 = vst [vmem:[#allocation223_spill] sm:$0xff] %v10025_v14  ;;  %14423 = vst [vmem:[#allocation114_spill] sm:$0xff] %v10030_v16  ;;  %v2916_v1 = vmax.f32 %v2808_v38, 0.0  ;;  %v14426_v34 = vld [vmem:[#allocation145_spill] sm:$0xff] }
 0x3c6   :  { %3760 = vrot.lane.b32.xlu0 %v3488_v27, %s6305_s9  ;;  %v2957_v37 = vmax.f32 %v14419_v57, 0.0  ;;  %v10021_v27 = vpop.xlane.xlu1 %1554  ;;  %v6022_v12 = vpop.eup %6021  ;;  %6035 = vrsqrt.f32 %v3130_v7 }
 0x3c7   :  { %14420 = vst [vmem:[#allocation224_spill] sm:$0xff] %v10021_v27  ;;  %v3172_v42 = vadd.f32 0.001, %v2956_v24  ;;  %v14486_v27 = vld [vmem:[#allocation245_spill] sm:$0xff] }
 0x3c8   :  { %v3173_v52 = vadd.f32 0.001, %v2957_v37  ;;  %v10046_v7 = vpop.xlane.xlu0 %1566 }
 0x3c9   :  { %6037 = vrsqrt.f32 %v3172_v42  ;;  %v3057_v42 = vld [vmem:[%s13469_s3 + $0x1c8] sm:$0xff] }
 0x3ca   :  { %3680 = vrot.lane.b32.xlu0 %v3448_v17, %s6305_s9  ;;  %v10028_v17 = vmul.f32 0.0051020407, %v9517_v48  ;;  %v6024_v28 = vpop.eup %6023  ;;  %v14425_v48 = vld [vmem:[#allocation249_spill] sm:$0xff]  ;;  %6039 = vrsqrt.f32 %v3173_v52  ;;  %v2638_v52 = vmul.f32 0.0051020407, %v9287_v49  ;;  %v14439_v49 = vld [vmem:[#allocation266_spill] sm:$0xff] }
 0x3cb   :  { %v6026_v24 = vpop.eup %6025  ;;  %v14427_v57 = vsub.f32 %v14425_v48, %v14426_v34  ;;  %v10055_v48 = vpop.xlane.xlu1 %1770 }
 0x3cc   :  { %v6028_v11 = vpop.eup %6027  ;;  %v2702_v37 = vmul.f32 %v10028_v17, %v10028_v17  ;;  %14428 = vst [vmem:[#allocation257_spill] sm:$0xff] %v10055_v48 }
 0x3cd   :  { %v2958_v9 = vmax.f32 %v14427_v57, 0.0  ;;  %v6030_v38 = vpop.eup %6029  ;;  %v3132_v57 = vadd.f32 0.001, %v2916_v1  ;;  %v10078_v1 = vmul.f32 %v6028_v11, %v3020_v50  ;;  %v2746_v50 = vmul.f32 %v10053_v58, %v10053_v58 }
 0x3ce   :  { %3764 = vrot.lane.b32.xlu0 %v3490_v19, %s6305_s9  ;;  %v3450_v19 = vmul.f32 %v10025_v14, %v9893_v22  ;;  %v10058_v22 = vmul.f32 %v6022_v12, %v3055_v8  ;;  %v6032_v34 = vpop.eup %6031  ;;  %v2810_v16 = vsub.f32 %v2594_v43, %v2702_v37  ;;  %v3062_v12 = vld [vmem:[%s13469_s3 + $0x1f0] sm:$0xff]  ;;  %v3061_v8 = vld [vmem:[%s13469_s3 + $0x1e8] sm:$0xff]  ;;  %v3063_v43 = vld [vmem:[%s13469_s3 + $0x1f8] sm:$0xff] }
 0x3cf   :  { %v3174_v45 = vadd.f32 0.001, %v2958_v9  ;;  %v14432_v14 = vld [vmem:[#allocation247_spill] sm:$0xff]  ;;  %14434 = vst [vmem:[#allocation121_spill] sm:$0xff] %v10078_v1  ;;  %v14435_v37 = vld [vmem:[#allocation264_spill] sm:$0xff]  ;;  %v10090_v9 = vmul.f32 %v6024_v28, %v3057_v42  ;;  %6041 = vrsqrt.f32 %v3132_v57  ;;  %v10105_v28 = vpop.xlane.xlu0 %1782 }
 0x3d0   :  { %14429 = vst [vmem:[#allocation236_spill] sm:$0xff] %v10058_v22  ;;  %v14433_v26 = vsub.f32 %v14431_v10, %v14432_v14  ;;  %v14436_v15 = vsub.f32 %v9070_v56, %v14435_v37  ;;  %v10100_v56 = vmul.f32 %v6032_v34, %v3062_v12  ;;  %v10102_v37 = vmul.f32 %v6030_v38, %v3061_v8  ;;  %v14447_v12 = vld [vmem:[#allocation253_spill] sm:$0xff]  ;;  %v14448_v38 = vld [vmem:[#allocation252_spill] sm:$0xff] }
 0x3d1   :  { %1594 = vadd.xlane.f32.xlu1 %v9745_v30  ;;  %v3059_v30 = vld [vmem:[%s13469_s3 + $0x1d8] sm:$0xff]  ;;  %14437 = vst [vmem:[#allocation126_spill] sm:$0xff] %v10090_v9  ;;  %v2918_v29 = vmax.f32 %v2810_v16, 0.0  ;;  %14444 = vst [vmem:[#allocation134_spill] sm:$0xff] %v10105_v28  ;;  %6043 = vrsqrt.f32 %v3174_v45  ;;  %v14449_v8 = vsub.f32 %v14447_v12, %v14448_v38  ;;  %v3022_v45 = vld [vmem:[%s13469_s3 + $0xb0] sm:$0xff] }
 0x3d2   :  { %3684 = vrot.lane.b32.xlu0 %v3450_v19, %s6305_s9  ;;  %v6034_v19 = vpop.eup %6033  ;;  %v2905_v48 = vmax.f32 %v14433_v26, 0.0  ;;  %v2960_v46 = vmax.f32 %v14436_v15, 0.0  ;;  %v10092_v10 = vmul.f32 %v6026_v24, %v3059_v30  ;;  %v14440_v26 = vld [vmem:[#allocation152_spill] sm:$0xff]  ;;  %14442 = vst [vmem:[#allocation193_spill] sm:$0xff] %v10100_v56  ;;  %14443 = vst [vmem:[#allocation240_spill] sm:$0xff] %v10102_v37  ;;  %v2854_v30 = vsub.f32 %v2638_v52, %v2746_v50  ;;  %v10109_v15 = vpop.xlane.xlu1 %2310  ;;  %v14454_v12 = vld [vmem:[#allocation109_spill] sm:$0xff] }
 0x3d3   :  { %v14441_v14 = vsub.f32 %v14439_v49, %v14440_v26  ;;  %v10107_v24 = vmul.f32 %v6034_v19, %v3063_v43  ;;  %14446 = vst [vmem:[#allocation138_spill] sm:$0xff] %v10109_v15  ;;  %v6036_v34 = vpop.eup %6035  ;;  %v2959_v57 = vmax.f32 %v14449_v8, 0.0  ;;  %v14450_v19 = vld [vmem:[#allocation169_spill] sm:$0xff]  ;;  %v14451_v52 = vld [vmem:[#allocation196_spill] sm:$0xff]  ;;  %v3134_v26 = vadd.f32 0.001, %v2918_v29 }
 0x3d4   :  { %14438 = vst [vmem:[#allocation122_spill] sm:$0xff] %v10092_v10  ;;  %v3121_v42 = vadd.f32 0.001, %v2905_v48  ;;  %v3176_v16 = vadd.f32 0.001, %v2960_v46  ;;  %v10129_v43 = vmul.f32 %v10090_v9, %v14451_v52  ;;  %v14452_v46 = vld [vmem:[#allocation216_spill] sm:$0xff]  ;;  %v10142_v38 = vmul.f32 %v10102_v37, %v14454_v12  ;;  %v10156_v12 = vpop.xlane.xlu0 %2322 }
 0x3d5   :  { %1810 = vadd.xlane.f32.xlu1 %v9757_v4  ;;  %v2907_v11 = vmax.f32 %v14441_v14, 0.0  ;;  %v2596_v4 = vmul.f32 0.0051020407, %v9588_v6  ;;  %14445 = vst [vmem:[#allocation242_spill] sm:$0xff] %v10107_v24  ;;  %v2704_v6 = vmul.f32 %v10087_v25, %v10087_v25  ;;  %v10133_v49 = vmul.f32 %v10092_v10, %v14452_v46  ;;  %v14453_v50 = vld [vmem:[#allocation116_spill] sm:$0xff]  ;;  %v14456_v52 = vld [vmem:[#allocation235_spill] sm:$0xff] }
 0x3d6   :  { %3768 = vrot.lane.b32.xlu0 %v3492_v47, %s6305_s9  ;;  %v3452_v47 = vmul.f32 %v10078_v1, %v9915_v44  ;;  %v10125_v44 = vmul.f32 %v10058_v22, %v14450_v19  ;;  %6045 = vrsqrt.f32 %v3121_v42  ;;  %v2962_v8 = vmax.f32 %v2854_v30, 0.0 }
 0x3d7   :  { %v3123_v48 = vadd.f32 0.001, %v2907_v11  ;;  %v2812_v14 = vsub.f32 %v2596_v4, %v2704_v6  ;;  %v3494_v11 = vmul.f32 %v10100_v56, %v14453_v50  ;;  %v10144_v19 = vmul.f32 %v6036_v34, %v3022_v45  ;;  %v14457_v6 = vld [vmem:[#allocation267_spill] sm:$0xff] }
 0x3d8   :  { %v10148_v46 = vmul.f32 %v10107_v24, %v14456_v52  ;;  %v3175_v4 = vadd.f32 0.001, %v2959_v57  ;;  %6047 = vrsqrt.f32 %v3176_v16  ;;  %v14458_v50 = vld [vmem:[#allocation155_spill] sm:$0xff]  ;;  %v10154_v9 = vmul.f32 0.0051020407, %v9596_v39  ;;  %v10165_v57 = vpop.xlane.xlu1 %2526  ;;  %v14463_v16 = vld [vmem:[#allocation270_spill] sm:$0xff]  ;;  %v10200_v24 = vpop.xlane.xlu0 %2538 }
 0x3d9   :  { %2350 = vadd.xlane.f32.xlu1 %v9772_v20  ;;  %v6038_v20 = vpop.eup %6037  ;;  %14455 = vst [vmem:[#allocation213_spill] sm:$0xff] %v10144_v19  ;;  %v14459_v56 = vsub.f32 %v14457_v6, %v14458_v50  ;;  %6049 = vrsqrt.f32 %v3123_v48  ;;  %v14460_v42 = vsub.f32 %v9145_v23, %v9143_v54  ;;  %v10163_v34 = vmul.f32 0.0051020407, %v9313_v60  ;;  %14461 = vst [vmem:[#allocation249_spill] sm:$0xff] %v10165_v57  ;;  %v3065_v39 = vld [vmem:[%s13469_s3 + $0x208] sm:$0xff] }
 0x3da   :  { %3688 = vrot.lane.b32.xlu0 %v3452_v47, %s6305_s9  ;;  %v3064_v47 = vld [vmem:[%s13469_s3 + $0x200] sm:$0xff]  ;;  %v6040_v29 = vpop.eup %6039  ;;  %6051 = vrsqrt.f32 %v3134_v26  ;;  %v2920_v45 = vmax.f32 %v2812_v14, 0.0  ;;  %v2598_v23 = vmul.f32 0.0051020407, %v9623_v21  ;;  %v3178_v54 = vadd.f32 0.001, %v2962_v8 }
 0x3db   :  { %v2961_v10 = vmax.f32 %v14459_v56, 0.0  ;;  %v2909_v30 = vmax.f32 %v14460_v42, 0.0  ;;  %v10168_v56 = vmul.f32 %v6038_v20, %v3064_v47  ;;  %v10178_v60 = vmul.f32 0.0051020407, %v9315_v3  ;;  %v3024_v26 = vld [vmem:[%s13469_s3 + $0xc0] sm:$0xff]  ;;  %v3066_v3 = vld [vmem:[%s13469_s3 + $0x210] sm:$0xff] }
 0x3dc   :  { %v2640_v48 = vmul.f32 0.0051020407, %v9322_v40  ;;  %v3454_v20 = vmul.f32 %v10144_v19, %v9953_v55  ;;  %6053 = vrsqrt.f32 %v3175_v4  ;;  %v2706_v52 = vmul.f32 %v10154_v9, %v10154_v9  ;;  %v14465_v8 = vld [vmem:[#allocation170_spill] sm:$0xff]  ;;  %v14466_v4 = vld [vmem:[#allocation192_spill] sm:$0xff]  ;;  %14467 = vst [vmem:[#allocation250_spill] sm:$0xff] %v10200_v24  ;;  %v10206_v37 = vpop.permute.xlu1 %3652 }
 0x3dd   :  { %2566 = vadd.xlane.f32.xlu1 %v9787_v63  ;;  %14462 = vst [vmem:[#allocation145_spill] sm:$0xff] %v10168_v56  ;;  %v10174_v63 = vmul.f32 0.0051020407, %v14463_v16  ;;  %v3177_v47 = vadd.f32 0.001, %v2961_v10  ;;  %v10191_v21 = vmul.f32 %v6040_v29, %v3065_v39  ;;  %v2748_v10 = vmul.f32 %v10163_v34, %v10163_v34  ;;  %v14468_v29 = vld [vmem:[#allocation129_spill] sm:$0xff] }
 0x3de   :  { %3772 = vrot.lane.b32.xlu0 %v3494_v11, %s6305_s9  ;;  %v6042_v11 = vpop.eup %6041  ;;  %v3125_v14 = vadd.f32 0.001, %v2909_v30  ;;  %v2639_v55 = vmul.f32 0.0051020407, %v14465_v8  ;;  %v2587_v6 = vmul.f32 0.0051020407, %v14466_v4  ;;  %v2814_v16 = vsub.f32 %v2598_v23, %v2706_v52 }
 0x3df   :  { %14464 = vst [vmem:[#allocation232_spill] sm:$0xff] %v10191_v21  ;;  %v6044_v40 = vpop.eup %6043  ;;  %v2747_v50 = vmul.f32 %v10174_v63, %v10174_v63  ;;  %v3136_v42 = vadd.f32 0.001, %v2920_v45  ;;  %v3496_v39 = vmul.f32 %v10168_v56, %v14468_v29  ;;  %6055 = vrsqrt.f32 %v3178_v54  ;;  %14469 = vst [vmem:[#allocation247_spill] sm:$0xff] %v10206_v37  ;;  %v14472_v23 = vld [vmem:[#allocation239_spill] sm:$0xff]  ;;  %v14473_v56 = vld [vmem:[#allocation181_spill] sm:$0xff] }
 0x3e0   :  { %v2695_v30 = vmul.f32 %v10178_v60, %v10178_v60  ;;  %v2856_v8 = vsub.f32 %v2640_v48, %v2748_v10  ;;  %v10208_v4 = vmul.f32 %v6042_v11, %v3024_v26  ;;  %6057 = vrsqrt.f32 %v3177_v47  ;;  %v6046_v29 = vpop.eup %6045  ;;  %v14474_v47 = vld [vmem:[#allocation273_spill] sm:$0xff]  ;;  %v14475_v10 = vld [vmem:[#allocation198_spill] sm:$0xff]  ;;  %v14479_v37 = vld [vmem:[#allocation140_spill] sm:$0xff]  ;;  %v10254_v19 = vpop.permute.xlu1 %3654 }
 0x3e1   :  { %v10213_v45 = vmul.f32 %v6044_v40, %v3066_v3  ;;  %v10217_v52 = vmul.f32 %v10191_v21, %v14472_v23  ;;  %6059 = vrsqrt.f32 %v3125_v14  ;;  %v2855_v54 = vsub.f32 %v2639_v55, %v2747_v50  ;;  %v14476_v50 = vld [vmem:[#allocation278_spill] sm:$0xff]  ;;  %14482 = vst [vmem:[#allocation252_spill] sm:$0xff] %v10254_v19 }
 0x3e2   :  { %3692 = vrot.lane.b32.xlu0 %v3454_v20, %s6305_s9  ;;  %14470 = vst [vmem:[#allocation264_spill] sm:$0xff] %v10208_v4  ;;  %v10211_v20 = vmul.f32 0.0051020407, %v9671_v59  ;;  %v10220_v22 = vmul.f32 0.0051020407, %v14473_v56  ;;  %v2803_v48 = vsub.f32 %v2587_v6, %v2695_v30  ;;  %v3013_v59 = vld [vmem:[%s13469_s3 + $0x68] sm:$0xff]  ;;  %v6048_v11 = vpop.eup %6047  ;;  %6061 = vrsqrt.f32 %v3136_v42 }
 0x3e3   :  { %14471 = vst [vmem:[#allocation266_spill] sm:$0xff] %v10213_v45  ;;  %v10227_v26 = vmul.f32 0.0051020407, %v14474_v47  ;;  %v2922_v3 = vmax.f32 %v2814_v16, 0.0  ;;  %v2600_v40 = vmul.f32 0.0051020407, %v9706_v53  ;;  %v6050_v14 = vpop.eup %6049  ;;  %v3456_v30 = vmul.f32 %v10208_v4, %v9991_v13  ;;  %v10242_v16 = vpop.permute.xlu0 %3660 }
 0x3e4   :  { %v3068_v56 = vld [vmem:[%s13469_s3 + $0x220] sm:$0xff]  ;;  %v2964_v55 = vmax.f32 %v2856_v8, 0.0  ;;  %v2641_v6 = vmul.f32 0.0051020407, %v14475_v10  ;;  %v6052_v23 = vpop.eup %6051  ;;  %v14477_v47 = vld [vmem:[#allocation212_spill] sm:$0xff]  ;;  %v2708_v53 = vmul.f32 %v10211_v20, %v10211_v20  ;;  %14478 = vst [vmem:[#allocation152_spill] sm:$0xff] %v10242_v16  ;;  %v3498_v21 = vmul.f32 %v10213_v45, %v14479_v37 }
 0x3e5   :  { %v2642_v42 = vmul.f32 0.0051020407, %v14477_v47  ;;  %v3026_v8 = vld [vmem:[%s13469_s3 + $0xd0] sm:$0xff]  ;;  %v10249_v10 = vmul.f32 %v6046_v29, %v3013_v59  ;;  %v2749_v13 = vmul.f32 %v10220_v22, %v10220_v22  ;;  %v14481_v4 = vld [vmem:[#allocation281_spill] sm:$0xff]  ;;  %v10257_v16 = vmul.f32 %v6048_v11, %v3068_v56  ;;  %v14485_v24 = vld [vmem:[#allocation326_spill] sm:$0xff] }
 0x3e6   :  { %3776 = vrot.lane.b32.xlu0 %v3496_v39, %s6305_s9  ;;  %v10235_v39 = vmul.f32 0.0051020407, %v14476_v50  ;;  %v2963_v50 = vmax.f32 %v2855_v54, 0.0  ;;  %v2589_v47 = vmul.f32 0.0051020407, %v14481_v4  ;;  %v3015_v37 = vld [vmem:[%s13469_s3 + $0x78] sm:$0xff]  ;;  %v6054_v45 = vpop.eup %6053  ;;  %v2750_v29 = vmul.f32 %v10227_v26, %v10227_v26 }
 0x3e7   :  { %14480 = vst [vmem:[#allocation253_spill] sm:$0xff] %v10249_v10  ;;  %14483 = vst [vmem:[#allocation169_spill] sm:$0xff] %v10257_v16  ;;  %v2911_v1 = vmax.f32 %v2803_v48, 0.0  ;;  %v3138_v54 = vadd.f32 0.001, %v2922_v3  ;;  %v2816_v59 = vsub.f32 %v2600_v40, %v2708_v53  ;;  %v3067_v4 = vld [vmem:[%s13469_s3 + $0x218] sm:$0xff]  ;;  %v2857_v57 = vsub.f32 %v2641_v6, %v2749_v13  ;;  %v10274_v48 = vpop.xlane.xlu0 %1574  ;;  %v10280_v6 = vpop.xlane.xlu1 %1562 }
 0x3e8   :  { %v3180_v19 = vadd.f32 0.001, %v2964_v55  ;;  %v2697_v11 = vmul.f32 %v10235_v39, %v10235_v39  ;;  %v10269_v56 = vmul.f32 %v6052_v23, %v3026_v8  ;;  %v10272_v15 = vmul.f32 0.0051020407, %v14485_v24  ;;  %14488 = vst [vmem:[#allocation116_spill] sm:$0xff] %v10280_v6  ;;  %v14489_v23 = vld [vmem:[#allocation259_spill] sm:$0xff] }
 0x3e9   :  { %v3445_v3 = vmul.f32 %v10249_v10, %v14486_v27  ;;  %v10278_v40 = vmul.f32 %v6050_v14, %v3015_v37  ;;  %v6056_v53 = vpop.eup %6055  ;;  %v3179_v28 = vadd.f32 0.001, %v2963_v50  ;;  %v3500_v24 = vmul.f32 %v10257_v16, %v14489_v23  ;;  %v14491_v13 = vld [vmem:[#allocation330_spill] sm:$0xff]  ;;  %v14496_v16 = vld [vmem:[#allocation209_spill] sm:$0xff] }
 0x3ea   :  { %3696 = vrot.lane.b32.xlu0 %v3456_v30, %s6305_s9  ;;  %14484 = vst [vmem:[#allocation196_spill] sm:$0xff] %v10269_v56  ;;  %v2858_v30 = vsub.f32 %v2642_v42, %v2750_v29  ;;  %v2805_v55 = vsub.f32 %v2589_v47, %v2697_v11  ;;  %v3070_v42 = vld [vmem:[%s13469_s3 + $0x230] sm:$0xff]  ;;  %v10290_v27 = vmul.f32 %v6054_v45, %v3067_v4  ;;  %v6058_v14 = vpop.eup %6057  ;;  %v3127_v8 = vadd.f32 0.001, %v2911_v1  ;;  %v14492_v29 = vld [vmem:[#allocation279_spill] sm:$0xff] }
 0x3eb   :  { %14487 = vst [vmem:[#allocation216_spill] sm:$0xff] %v10278_v40  ;;  %6063 = vrsqrt.f32 %v3138_v54  ;;  %v2924_v50 = vmax.f32 %v2816_v59, 0.0  ;;  %v2602_v47 = vmul.f32 0.0051020407, %v14491_v13  ;;  %v6060_v37 = vpop.eup %6059  ;;  %v3458_v11 = vmul.f32 %v10269_v56, %v10028_v17  ;;  %v3069_v45 = vld [vmem:[%s13469_s3 + $0x228] sm:$0xff]  ;;  %v14495_v13 = vld [vmem:[#allocation220_spill] sm:$0xff] }
 0x3ec   :  { %14490 = vst [vmem:[#allocation109_spill] sm:$0xff] %v10290_v27  ;;  %6065 = vrsqrt.f32 %v3180_v19  ;;  %v6062_v4 = vpop.eup %6061  ;;  %v2966_v23 = vmax.f32 %v2858_v30, 0.0  ;;  %v2710_v1 = vmul.f32 %v10272_v15, %v10272_v15  ;;  %v3028_v19 = vld [vmem:[%s13469_s3 + $0xe0] sm:$0xff]  ;;  %v10308_v59 = vmul.f32 %v6056_v53, %v3070_v42  ;;  %v3017_v30 = vld [vmem:[%s13469_s3 + $0x88] sm:$0xff]  ;;  %v10319_v53 = vpop.xlane.xlu0 %1790 }
 0x3ed   :  { %6067 = vrsqrt.f32 %v3179_v28  ;;  %v2913_v17 = vmax.f32 %v2805_v55, 0.0  ;;  %v2644_v56 = vmul.f32 0.0051020407, %v14496_v16  ;;  %v3140_v10 = vadd.f32 0.001, %v2924_v50  ;;  %14497 = vst [vmem:[#allocation267_spill] sm:$0xff] %v10319_v53 }
 0x3ee   :  { %3780 = vrot.lane.b32.xlu0 %v3498_v21, %s6305_s9  ;;  %3758 = vrot.lane.b32.xlu1 %v10125_v44, %s6305_s9  ;;  %v2965_v21 = vmax.f32 %v2857_v57, 0.0  ;;  %v10294_v44 = vmul.f32 0.0051020407, %v14492_v29  ;;  %v14493_v57 = vld [vmem:[#allocation261_spill] sm:$0xff]  ;;  %14494 = vst [vmem:[#allocation235_spill] sm:$0xff] %v10308_v59  ;;  %6069 = vrsqrt.f32 %v3127_v8  ;;  %v10321_v28 = vmul.f32 %v6058_v14, %v3069_v45  ;;  %v14499_v16 = vld [vmem:[#allocation294_spill] sm:$0xff] }
 0x3ef   :  { %v3447_v54 = vmul.f32 %v10278_v40, %v14493_v57  ;;  %v10311_v29 = vmul.f32 0.0051020407, %v14495_v13  ;;  %v2818_v57 = vsub.f32 %v2602_v47, %v2710_v1  ;;  %v2591_v13 = vmul.f32 0.0051020407, %v14499_v16  ;;  %v14503_v45 = vld [vmem:[#allocation282_spill] sm:$0xff] }
 0x3f0   :  { %14498 = vst [vmem:[#allocation155_spill] sm:$0xff] %v10321_v28  ;;  %v3181_v55 = vadd.f32 0.001, %v2965_v21  ;;  %v2752_v42 = vmul.f32 %v10294_v44, %v10294_v44  ;;  %v3182_v40 = vadd.f32 0.001, %v2966_v23  ;;  %v3502_v8 = vmul.f32 %v10308_v59, %v10053_v58  ;;  %v14504_v58 = vld [vmem:[#allocation194_spill] sm:$0xff] }
 0x3f1   :  { %v10331_v6 = vmul.f32 0.0051020407, %v9762_v31  ;;  %v10335_v50 = vmul.f32 %v6060_v37, %v3017_v30  ;;  %v3129_v14 = vadd.f32 0.001, %v2913_v17  ;;  %v2699_v47 = vmul.f32 %v10311_v29, %v10311_v29  ;;  %v14511_v59 = vld [vmem:[#allocation297_spill] sm:$0xff] }
 0x3f2   :  { %3700 = vrot.lane.b32.xlu0 %v3458_v11, %s6305_s9  ;;  %3674 = vrot.lane.b32.xlu1 %v3445_v3, %s6305_s9  ;;  %v10326_v11 = vpop.xlane.xlu1 %1778  ;;  %v10328_v3 = vmul.f32 %v6062_v4, %v3028_v19  ;;  %v2860_v21 = vsub.f32 %v2644_v56, %v2752_v42  ;;  %v10340_v1 = vmul.f32 0.0051020407, %v14503_v45  ;;  %6071 = vrsqrt.f32 %v3140_v10  ;;  %v14507_v42 = vld [vmem:[#allocation285_spill] sm:$0xff] }
 0x3f3   :  { %14500 = vst [vmem:[#allocation270_spill] sm:$0xff] %v10326_v11  ;;  %14502 = vst [vmem:[#allocation192_spill] sm:$0xff] %v10335_v50  ;;  %v2926_v31 = vmax.f32 %v2818_v57, 0.0  ;;  %v2604_v4 = vmul.f32 0.0051020407, %v9785_v41  ;;  %6073 = vrsqrt.f32 %v3181_v55  ;;  %v2807_v23 = vsub.f32 %v2591_v13, %v2699_v47  ;;  %v10357_v57 = vpop.xlane.xlu0 %2330  ;;  %v3030_v55 = vld [vmem:[%s13469_s3 + $0xf0] sm:$0xff] }
 0x3f4   :  { %14501 = vst [vmem:[#allocation170_spill] sm:$0xff] %v10328_v3  ;;  %v10347_v37 = vmul.f32 0.0051020407, %v14504_v58  ;;  %v3460_v56 = vmul.f32 %v10328_v3, %v10087_v25  ;;  %v6306_v19 = vmov 0   ;;  %6075 = vrsqrt.f32 %v3182_v40  ;;  %v14509_v47 = vld [vmem:[#allocation271_spill] sm:$0xff]  ;;  %v3072_v58 = vld [vmem:[%s13469_s3 + $0x240] sm:$0xff] }
 0x3f5   :  { %5977 = vset.pattern.permute.xlu0 %v6306_v19  ;;  %5978 = vset.pattern.permute.xlu1 %v6306_v19  ;;  %v6064_v17 = vpop.eup %6063  ;;  %v2712_v41 = vmul.f32 %v10331_v6, %v10331_v6  ;;  %6077 = vrsqrt.f32 %v3129_v14  ;;  %v2643_v16 = vmul.f32 0.0051020407, %v14507_v42  ;;  %v2968_v13 = vmax.f32 %v2860_v21, 0.0  ;;  %v14510_v19 = vld [vmem:[#allocation214_spill] sm:$0xff] }
 0x3f6   :  { %3784 = vrot.lane.b32.xlu0 %v3500_v24, %s6305_s9  ;;  %3762 = vrot.lane.b32.xlu1 %v10129_v43, %s6305_s9  ;;  %v14505_v24 = vld [vmem:[#allocation290_spill] sm:$0xff]  ;;  %v6066_v25 = vpop.eup %6065  ;;  %v10363_v40 = vpop.xlane.xlu1 %2318  ;;  %v3449_v45 = vmul.f32 %v10335_v50, %v14509_v47  ;;  %v2754_v14 = vmul.f32 %v10340_v1, %v10340_v1  ;;  %v10380_v3 = vmul.f32 0.0051020407, %v14511_v59  ;;  %v10382_v47 = vmul.f32 %v6064_v17, %v3030_v55  ;;  %v14514_v59 = vld [vmem:[#allocation300_spill] sm:$0xff]  ;;  %v14515_v17 = vld [vmem:[#allocation293_spill] sm:$0xff] }
 0x3f7   :  { %v10352_v30 = vmul.f32 0.0051020407, %v14505_v24  ;;  %v14506_v43 = vld [vmem:[#allocation218_spill] sm:$0xff]  ;;  %14508 = vst [vmem:[#allocation129_spill] sm:$0xff] %v10363_v40  ;;  %v2645_v24 = vmul.f32 0.0051020407, %v14510_v19  ;;  %v2820_v21 = vsub.f32 %v2604_v4, %v2712_v41  ;;  %v10375_v42 = vpop.eup %6067 }
 0x3f8   :  { %v2646_v10 = vmul.f32 0.0051020407, %v14506_v43  ;;  %v3142_v43 = vadd.f32 0.001, %v2926_v31  ;;  %14512 = vst [vmem:[#allocation239_spill] sm:$0xff] %v10382_v47  ;;  %v6070_v50 = vpop.eup %6069  ;;  %v10389_v31 = vmul.f32 %v6066_v25, %v3072_v58  ;;  %v3019_v4 = vld [vmem:[%s13469_s3 + $0x98] sm:$0xff]  ;;  %v10402_v58 = vpop.xlane.xlu0 %2546 }
 0x3f9   :  { %v2753_v19 = vmul.f32 %v10352_v30, %v10352_v30  ;;  %v10387_v40 = vmul.f32 0.0051020407, %v9805_v2  ;;  %v3184_v41 = vadd.f32 0.001, %v2968_v13  ;;  %v2593_v53 = vmul.f32 0.0051020407, %v14514_v59 }
 0x3fa   :  { %3704 = vrot.lane.b32.xlu0 %v3460_v56, %s6305_s9  ;;  %3678 = vrot.lane.b32.xlu1 %v3447_v54, %s6305_s9  ;;  %v2751_v56 = vmul.f32 %v10347_v37, %v10347_v37  ;;  %v2915_v54 = vmax.f32 %v2807_v23, 0.0  ;;  %v2862_v11 = vsub.f32 %v2646_v10, %v2754_v14  ;;  %14513 = vst [vmem:[#allocation181_spill] sm:$0xff] %v10389_v31  ;;  %v10396_v55 = vmul.f32 0.0051020407, %v14515_v17  ;;  %v14516_v13 = vld [vmem:[#allocation296_spill] sm:$0xff]  ;;  %v10407_v59 = vpop.xlane.xlu1 %2534 }
 0x3fb   :  { %v2861_v2 = vsub.f32 %v2645_v24, %v2753_v19  ;;  %6079 = vrsqrt.f32 %v3142_v43  ;;  %v2928_v10 = vmax.f32 %v2820_v21, 0.0  ;;  %v2606_v25 = vmul.f32 0.0051020407, %v9821_v35  ;;  %14517 = vst [vmem:[#allocation273_spill] sm:$0xff] %v10407_v59  ;;  %v3032_v43 = vld [vmem:[%s13469_s3 + $0x100] sm:$0xff] }
 0x3fc   :  { %v2859_v23 = vsub.f32 %v2643_v16, %v2751_v56  ;;  %v3131_v14 = vadd.f32 0.001, %v2915_v54  ;;  %v2701_v16 = vmul.f32 %v10380_v3, %v10380_v3  ;;  %v2648_v56 = vmul.f32 0.0051020407, %v14516_v13  ;;  %v6072_v17 = vpop.eup %6071 }
 0x3fd   :  { %v2714_v24 = vmul.f32 %v10387_v40, %v10387_v40  ;;  %v3504_v35 = vmul.f32 %v10389_v31, %v10163_v34  ;;  %v10418_v21 = vmul.f32 %v6070_v50, %v3019_v4  ;;  %v10420_v54 = vpop.eup %6073  ;;  %6081 = vrsqrt.f32 %v3184_v41  ;;  %v14519_v31 = vld [vmem:[#allocation303_spill] sm:$0xff]  ;;  %v3074_v4 = vld [vmem:[%s13469_s3 + $0x250] sm:$0xff] }
 0x3fe   :  { %3788 = vrot.lane.b32.xlu0 %v3502_v8, %s6305_s9  ;;  %3766 = vrot.lane.b32.xlu1 %v10133_v49, %s6305_s9  ;;  %v3462_v8 = vmul.f32 %v10382_v47, %v10154_v9  ;;  %v2970_v49 = vmax.f32 %v2862_v11, 0.0  ;;  %v2967_v19 = vmax.f32 %v2859_v23, 0.0  ;;  %v2809_v13 = vsub.f32 %v2593_v53, %v2701_v16  ;;  %v6076_v11 = vpop.eup %6075  ;;  %v14520_v41 = vld [vmem:[#allocation299_spill] sm:$0xff] }
 0x3ff   :  { %14518 = vst [vmem:[#allocation198_spill] sm:$0xff] %v10418_v21  ;;  %v2756_v9 = vmul.f32 %v10396_v55, %v10396_v55  ;;  %v2969_v34 = vmax.f32 %v2861_v2, 0.0  ;;  %v10427_v47 = vmul.f32 0.0051020407, %v14519_v31  ;;  %v3144_v59 = vadd.f32 0.001, %v2928_v10  ;;  %v6078_v23 = vpop.eup %6077 }
 0x400   :  { %v2822_v50 = vsub.f32 %v2606_v25, %v2714_v24  ;;  %6083 = vrsqrt.f32 %v3131_v14  ;;  %v10433_v16 = vmul.f32 0.0051020407, %v14520_v41  ;;  %v3186_v31 = vadd.f32 0.001, %v2970_v49  ;;  %v14522_v2 = vld [vmem:[#allocation308_spill] sm:$0xff]  ;;  %v10444_v24 = vpop.permute.xlu0 %3664  ;;  %v14524_v41 = vld [vmem:[#allocation302_spill] sm:$0xff] }
 0x401   :  { %v2864_v53 = vsub.f32 %v2648_v56, %v2756_v9  ;;  %v2595_v10 = vmul.f32 0.0051020407, %v14522_v2  ;;  %v10442_v25 = vmul.f32 0.0051020407, %v9832_v33  ;;  %14523 = vst [vmem:[#allocation212_spill] sm:$0xff] %v10444_v24  ;;  %v3451_v14 = vmul.f32 %v10418_v21, %v10178_v60 }
 0x402   :  { %3708 = vrot.lane.b32.xlu0 %v3462_v8, %s6305_s9  ;;  %3682 = vrot.lane.b32.xlu1 %v3449_v45, %s6305_s9  ;;  %v10435_v8 = vmul.f32 %v6072_v17, %v3032_v43  ;;  %v3021_v45 = vld [vmem:[%s13469_s3 + $0xa8] sm:$0xff]  ;;  %v3183_v56 = vadd.f32 0.001, %v2967_v19  ;;  %v2917_v9 = vmax.f32 %v2809_v13, 0.0  ;;  %v2650_v17 = vmul.f32 0.0051020407, %v14524_v41  ;;  %v10449_v43 = vpop.permute.xlu1 %3658 }
 0x403   :  { %14525 = vst [vmem:[#allocation140_spill] sm:$0xff] %v10449_v43  ;;  %v10454_v49 = vmul.f32 %v6076_v11, %v3074_v4  ;;  %v2703_v33 = vmul.f32 %v10427_v47, %v10427_v47  ;;  %6085 = vrsqrt.f32 %v3144_v59  ;;  %v2930_v2 = vmax.f32 %v2822_v50, 0.0 }
 0x404   :  { %14521 = vst [vmem:[#allocation278_spill] sm:$0xff] %v10435_v8  ;;  %v2608_v60 = vmul.f32 0.0051020407, %v9840_v18  ;;  %v2972_v19 = vmax.f32 %v2864_v53, 0.0  ;;  %v2758_v13 = vmul.f32 %v10433_v16, %v10433_v16  ;;  %v3464_v41 = vmul.f32 %v10435_v8, %v10211_v20  ;;  %v10467_v59 = vpop.xlane.xlu0 %1582  ;;  %v3034_v18 = vld [vmem:[%s13469_s3 + $0x110] sm:$0xff] }
 0x405   :  { %14526 = vst [vmem:[#allocation281_spill] sm:$0xff] %v10454_v49  ;;  %v6080_v43 = vpop.eup %6079  ;;  %6087 = vrsqrt.f32 %v3186_v31  ;;  %v2811_v11 = vsub.f32 %v2595_v10, %v2703_v33  ;;  %v2716_v4 = vmul.f32 %v10442_v25, %v10442_v25  ;;  %v3133_v50 = vadd.f32 0.001, %v2917_v9  ;;  %v14529_v20 = vld [vmem:[#allocation248_spill] sm:$0xff] }
 0x406   :  { %3792 = vrot.lane.b32.xlu0 %v3504_v35, %s6305_s9  ;;  %3770 = vrot.lane.b32.xlu1 %v10142_v38, %s6305_s9  ;;  %v10463_v35 = vmul.f32 %v6078_v23, %v3021_v45  ;;  %v3185_v38 = vadd.f32 0.001, %v2969_v34  ;;  %v2866_v53 = vsub.f32 %v2650_v17, %v2758_v13  ;;  %v10472_v24 = vpop.xlane.xlu1 %1570  ;;  %v10478_v34 = vmul.f32 %v10290_v27, %v14529_v20  ;;  %v14530_v23 = vld [vmem:[#allocation265_spill] sm:$0xff]  ;;  %v14531_v13 = vld [vmem:[#allocation316_spill] sm:$0xff] }
 0x407   :  { %14528 = vst [vmem:[#allocation245_spill] sm:$0xff] %v10472_v24  ;;  %v10482_v45 = vmul.f32 %v10321_v28, %v14530_v23  ;;  %6089 = vrsqrt.f32 %v3183_v56  ;;  %v3146_v31 = vadd.f32 0.001, %v2930_v2  ;;  %v2824_v10 = vsub.f32 %v2608_v60, %v2716_v4  ;;  %v6082_v17 = vpop.eup %6081  ;;  %v3076_v23 = vld [vmem:[%s13469_s3 + $0x260] sm:$0xff]  ;;  %v14533_v56 = vld [vmem:[#allocation105_spill] sm:$0xff] }
 0x408   :  { %14527 = vst [vmem:[#allocation326_spill] sm:$0xff] %v10463_v35  ;;  %v3506_v9 = vmul.f32 %v10454_v49, %v10227_v26  ;;  %v3188_v33 = vadd.f32 0.001, %v2972_v19  ;;  %v3453_v20 = vmul.f32 %v10463_v35, %v10235_v39  ;;  %6091 = vrsqrt.f32 %v3185_v38  ;;  %v3023_v39 = vld [vmem:[%s13469_s3 + $0xb8] sm:$0xff] }
 0x409   :  { %v10497_v2 = vmul.f32 0.0051020407, %v14533_v56  ;;  %v2919_v60 = vmax.f32 %v2811_v11, 0.0  ;;  %v10500_v26 = vmul.f32 0.0051020407, %v9859_v0  ;;  %6093 = vrsqrt.f32 %v3133_v50  ;;  %v10513_v11 = vpop.xlane.xlu0 %1798 }
 0x40a   :  { %3712 = vrot.lane.b32.xlu0 %v3464_v41, %s6305_s9  ;;  %3686 = vrot.lane.b32.xlu1 %v3451_v14, %s6305_s9  ;;  %v10487_v41 = vmul.f32 0.0051020407, %v14531_v13  ;;  %v10489_v14 = vmul.f32 %v6080_v43, %v3034_v18  ;;  %v6084_v19 = vpop.eup %6083  ;;  %v2974_v4 = vmax.f32 %v2866_v53, 0.0  ;;  %v14534_v43 = vld [vmem:[#allocation321_spill] sm:$0xff]  ;;  %6095 = vrsqrt.f32 %v3146_v31 }
 0x40b   :  { %v2597_v18 = vmul.f32 0.0051020407, %v14534_v43  ;;  %v14535_v13 = vld [vmem:[#allocation305_spill] sm:$0xff]  ;;  %v2932_v0 = vmax.f32 %v2824_v10, 0.0  ;;  %v2610_v38 = vmul.f32 0.0051020407, %v9883_v51  ;;  %v10515_v50 = vmul.f32 %v6082_v17, %v3076_v23  ;;  %v10523_v43 = vpop.xlane.xlu1 %1786 }
 0x40c   :  { %14532 = vst [vmem:[#allocation259_spill] sm:$0xff] %v10489_v14  ;;  %v10504_v49 = vmul.f32 0.0051020407, %v14535_v13  ;;  %v3071_v53 = vld [vmem:[%s13469_s3 + $0x238] sm:$0xff]  ;;  %6097 = vrsqrt.f32 %v3188_v33  ;;  %14538 = vst [vmem:[#allocation279_spill] sm:$0xff] %v10523_v43  ;;  %v3466_v31 = vmul.f32 %v10489_v14, %v10272_v15  ;;  %v2718_v23 = vmul.f32 %v10500_v26, %v10500_v26  ;;  %v3036_v33 = vld [vmem:[%s13469_s3 + $0x120] sm:$0xff] }
 0x40d   :  { %14536 = vst [vmem:[#allocation330_spill] sm:$0xff] %v10515_v50  ;;  %v6086_v51 = vpop.eup %6085  ;;  %v14539_v10 = vld [vmem:[#allocation301_spill] sm:$0xff]  ;;  %v3135_v17 = vadd.f32 0.001, %v2919_v60  ;;  %v10533_v28 = vmul.f32 %v6084_v19, %v3023_v39  ;;  %v3190_v27 = vadd.f32 0.001, %v2974_v4  ;;  %v10540_v15 = vmul.f32 %v10375_v42, %v3071_v53 }
 0x40e   :  { %3796 = vrot.lane.b32.xlu0 %v3506_v9, %s6305_s9  ;;  %3774 = vrot.lane.b32.xlu1 %v10148_v46, %s6305_s9  ;;  %v2705_v46 = vmul.f32 %v10487_v41, %v10487_v41  ;;  %v14537_v9 = vld [vmem:[#allocation312_spill] sm:$0xff]  ;;  %v2647_v13 = vmul.f32 0.0051020407, %v14539_v10  ;;  %v2760_v8 = vmul.f32 %v10504_v49, %v10504_v49  ;;  %v3073_v60 = vld [vmem:[%s13469_s3 + $0x248] sm:$0xff]  ;;  %v2755_v19 = vmul.f32 %v10497_v2, %v10497_v2 }
 0x40f   :  { %v2652_v56 = vmul.f32 0.0051020407, %v14537_v9  ;;  %14540 = vst [vmem:[#allocation261_spill] sm:$0xff] %v10533_v28  ;;  %14541 = vst [vmem:[#allocation220_spill] sm:$0xff] %v10540_v15  ;;  %v6088_v10 = vpop.eup %6087  ;;  %v3148_v4 = vadd.f32 0.001, %v2932_v0  ;;  %v10558_v14 = vmul.f32 %v6086_v51, %v3036_v33  ;;  %6099 = vrsqrt.f32 %v3135_v17  ;;  %v10560_v0 = vpop.xlane.xlu0 %2338 }
 0x410   :  { %v2813_v9 = vsub.f32 %v2597_v18, %v2705_v46  ;;  %v2826_v18 = vsub.f32 %v2610_v38, %v2718_v23  ;;  %v10548_v39 = vmul.f32 0.0051020407, %v9917_v5  ;;  %v14542_v46 = vld [vmem:[#allocation325_spill] sm:$0xff]  ;;  %v2863_v21 = vsub.f32 %v2647_v13, %v2755_v19  ;;  %v3077_v19 = vld [vmem:[%s13469_s3 + $0x268] sm:$0xff]  ;;  %v14551_v43 = vld [vmem:[#allocation324_spill] sm:$0xff] }
 0x411   :  { %v10554_v42 = vmul.f32 0.0051020407, %v14542_v46  ;;  %v2868_v53 = vsub.f32 %v2652_v56, %v2760_v8  ;;  %14543 = vst [vmem:[#allocation209_spill] sm:$0xff] %v10558_v14  ;;  %v6090_v35 = vpop.eup %6089  ;;  %v3455_v5 = vmul.f32 %v10533_v28, %v10311_v29  ;;  %v10565_v38 = vmul.f32 %v10420_v54, %v3073_v60  ;;  %v14545_v46 = vld [vmem:[#allocation329_spill] sm:$0xff]  ;;  %v10568_v56 = vpop.xlane.xlu1 %2326 }
 0x412   :  { %3716 = vrot.lane.b32.xlu0 %v3466_v31, %s6305_s9  ;;  %3690 = vrot.lane.b32.xlu1 %v3453_v20, %s6305_s9  ;;  %v3078_v20 = vld [vmem:[%s13469_s3 + $0x270] sm:$0xff]  ;;  %v3508_v31 = vmul.f32 %v10515_v50, %v10294_v44  ;;  %6101 = vrsqrt.f32 %v3190_v27  ;;  %v2921_v23 = vmax.f32 %v2813_v9, 0.0  ;;  %v2599_v8 = vmul.f32 0.0051020407, %v14545_v46  ;;  %14546 = vst [vmem:[#allocation282_spill] sm:$0xff] %v10568_v56  ;;  %v3075_v29 = vld [vmem:[%s13469_s3 + $0x258] sm:$0xff]  ;;  %v6092_v51 = vpop.eup %6091 }
 0x413   :  { %14544 = vst [vmem:[#allocation294_spill] sm:$0xff] %v10565_v38  ;;  %v10573_v44 = vmul.f32 %v6088_v10, %v3078_v20  ;;  %6103 = vrsqrt.f32 %v3148_v4  ;;  %v2934_v54 = vmax.f32 %v2826_v18, 0.0  ;;  %v2720_v27 = vmul.f32 %v10548_v39, %v10548_v39  ;;  %v6094_v17 = vpop.eup %6093  ;;  %v3025_v20 = vld [vmem:[%s13469_s3 + $0xc8] sm:$0xff] }
 0x414   :  { %v2612_v13 = vmul.f32 0.0051020407, %v9975_v61  ;;  %v2707_v33 = vmul.f32 %v10554_v42, %v10554_v42  ;;  %v2976_v9 = vmax.f32 %v2868_v53, 0.0  ;;  %v3468_v10 = vmul.f32 %v10558_v14, %v10331_v6  ;;  %v6096_v4 = vpop.eup %6095  ;;  %v3038_v61 = vld [vmem:[%s13469_s3 + $0x130] sm:$0xff]  ;;  %v3080_v53 = vld [vmem:[%s13469_s3 + $0x280] sm:$0xff]  ;;  %v14550_v14 = vld [vmem:[#allocation337_spill] sm:$0xff] }
 0x415   :  { %14547 = vst [vmem:[#allocation194_spill] sm:$0xff] %v10573_v44  ;;  %v2971_v18 = vmax.f32 %v2863_v21, 0.0  ;;  %v10602_v6 = vmul.f32 %v10540_v15, %v10174_v63  ;;  %v10608_v21 = vmul.f32 %v6090_v35, %v3075_v29  ;;  %v10611_v28 = vmul.f32 0.0051020407, %v14550_v14 }
 0x416   :  { %3800 = vrot.lane.b32.xlu0 %v3508_v31, %s6305_s9  ;;  %3778 = vrot.lane.b32.xlu1 %v10217_v52, %s6305_s9  ;;  %v14548_v52 = vld [vmem:[#allocation320_spill] sm:$0xff]  ;;  %v10606_v31 = vmul.f32 %v10565_v38, %v10220_v22  ;;  %v6098_v46 = vpop.eup %6097  ;;  %v2815_v50 = vsub.f32 %v2599_v8, %v2707_v33  ;;  %v2654_v56 = vmul.f32 0.0051020407, %v14551_v43  ;;  %v3150_v63 = vadd.f32 0.001, %v2934_v54  ;;  %v10619_v22 = vpop.xlane.xlu0 %2554 }
 0x417   :  { %v10584_v60 = vmul.f32 0.0051020407, %v14548_v52  ;;  %14549 = vst [vmem:[#allocation290_spill] sm:$0xff] %v10608_v21  ;;  %v3137_v52 = vadd.f32 0.001, %v2921_v23  ;;  %v2828_v15 = vsub.f32 %v2612_v13, %v2720_v27  ;;  %v3510_v35 = vmul.f32 %v10573_v44, %v10340_v1  ;;  %v10625_v8 = vpop.xlane.xlu1 %2542 }
 0x418   :  { %v10617_v24 = vmul.f32 0.0051020407, %v10046_v7  ;;  %v3192_v23 = vadd.f32 0.001, %v2976_v9  ;;  %v10627_v43 = vmul.f32 %v6096_v4, %v3038_v61  ;;  %v10629_v29 = vmul.f32 %v6094_v17, %v3025_v20 }
 0x419   :  { %v2762_v14 = vmul.f32 %v10584_v60, %v10584_v60  ;;  %v2601_v54 = vmul.f32 0.0051020407, %v9783_v32  ;;  %v10632_v7 = vmul.f32 %v6098_v46, %v3080_v53  ;;  %v10634_v27 = vmul.f32 %v6092_v51, %v3077_v19  ;;  %v6100_v17 = vpop.eup %6099  ;;  %v3027_v53 = vld [vmem:[%s13469_s3 + $0xd8] sm:$0xff] }
 0x41a   :  { %3720 = vrot.lane.b32.xlu0 %v3468_v10, %s6305_s9  ;;  %3694 = vrot.lane.b32.xlu1 %v3455_v5, %s6305_s9  ;;  %14552 = vst [vmem:[#allocation218_spill] sm:$0xff] %v10627_v43  ;;  %v3187_v5 = vadd.f32 0.001, %v2971_v18  ;;  %6105 = vrsqrt.f32 %v3137_v52  ;;  %v2923_v13 = vmax.f32 %v2815_v50, 0.0  ;;  %v2709_v1 = vmul.f32 %v10611_v28, %v10611_v28  ;;  %v14555_v50 = vld [vmem:[#allocation328_spill] sm:$0xff]  ;;  %v10654_v20 = vpop.permute.xlu0 %3668 }
 0x41b   :  { %14553 = vst [vmem:[#allocation285_spill] sm:$0xff] %v10632_v7  ;;  %14554 = vst [vmem:[#allocation271_spill] sm:$0xff] %v10634_v27  ;;  %v2870_v33 = vsub.f32 %v2654_v56, %v2762_v14  ;;  %6107 = vrsqrt.f32 %v3150_v63  ;;  %v2936_v9 = vmax.f32 %v2828_v15, 0.0  ;;  %v2722_v32 = vmul.f32 %v10617_v24, %v10617_v24  ;;  %v14556_v18 = vld [vmem:[#allocation304_spill] sm:$0xff]  ;;  %v14558_v63 = vld [vmem:[#allocation333_spill] sm:$0xff] }
 0x41c   :  { %v2614_v51 = vmul.f32 0.0051020407, %v10156_v12  ;;  %v6102_v10 = vpop.eup %6101  ;;  %6109 = vrsqrt.f32 %v3192_v23  ;;  %v10645_v19 = vmul.f32 0.0051020407, %v14555_v50  ;;  %v3470_v56 = vmul.f32 %v10627_v43, %v10387_v40  ;;  %14557 = vst [vmem:[#allocation214_spill] sm:$0xff] %v10654_v20  ;;  %v3040_v12 = vld [vmem:[%s13469_s3 + $0x140] sm:$0xff]  ;;  %v10671_v23 = vpop.permute.xlu1 %3662 }
 0x41d   :  { %v3457_v4 = vmul.f32 %v10629_v29, %v10380_v3  ;;  %v10652_v61 = vmul.f32 0.0051020407, %v14556_v18  ;;  %v2817_v15 = vsub.f32 %v2601_v54, %v2709_v1  ;;  %v10664_v40 = vmul.f32 %v10608_v21, %v10347_v37  ;;  %14559 = vst [vmem:[#allocation297_spill] sm:$0xff] %v10671_v23  ;;  %v3082_v37 = vld [vmem:[%s13469_s3 + $0x290] sm:$0xff]  ;;  %v14567_v20 = vld [vmem:[#allocation341_spill] sm:$0xff] }
 0x41e   :  { %3804 = vrot.lane.b32.xlu0 %v3510_v35, %s6305_s9  ;;  %3782 = vrot.lane.b32.xlu1 %v10478_v34, %s6305_s9  ;;  %v6104_v34 = vpop.eup %6103  ;;  %v10668_v3 = vmul.f32 %v10634_v27, %v10352_v30  ;;  %6111 = vrsqrt.f32 %v3187_v5  ;;  %v3139_v46 = vadd.f32 0.001, %v2923_v13  ;;  %v2978_v52 = vmax.f32 %v2870_v33, 0.0 }
 0x41f   :  { %v2656_v35 = vmul.f32 0.0051020407, %v14558_v63  ;;  %v3152_v14 = vadd.f32 0.001, %v2936_v9  ;;  %v2830_v54 = vsub.f32 %v2614_v51, %v2722_v32  ;;  %v10679_v30 = vmul.f32 0.0051020407, %v10274_v48 }
 0x420   :  { %v3512_v5 = vmul.f32 %v10632_v7, %v10396_v55  ;;  %v2764_v13 = vmul.f32 %v10645_v19, %v10645_v19  ;;  %v10686_v1 = vmul.f32 0.0051020407, %v9803_v62  ;;  %v10688_v33 = vmul.f32 %v6104_v34, %v3040_v12  ;;  %v14562_v9 = vld [vmem:[#allocation319_spill] sm:$0xff]  ;;  %v14564_v62 = vld [vmem:[#allocation345_spill] sm:$0xff]  ;;  %v10703_v34 = vpop.xlane.xlu1 %1578 }
 0x421   :  { %v10690_v50 = vmul.f32 %v6100_v17, %v3027_v53  ;;  %v10696_v32 = vmul.f32 0.0051020407, %v14562_v9  ;;  %v2925_v48 = vmax.f32 %v2817_v15, 0.0  ;;  %v10700_v55 = vmul.f32 %v6102_v10, %v3082_v37  ;;  %v3042_v9 = vld [vmem:[%s13469_s3 + $0x150] sm:$0xff] }
 0x422   :  { %3724 = vrot.lane.b32.xlu0 %v3470_v56, %s6305_s9  ;;  %3698 = vrot.lane.b32.xlu1 %v3457_v4, %s6305_s9  ;;  %14560 = vst [vmem:[#allocation300_spill] sm:$0xff] %v10688_v33  ;;  %v14561_v56 = vld [vmem:[#allocation311_spill] sm:$0xff]  ;;  %6113 = vrsqrt.f32 %v3139_v46  ;;  %v3194_v18 = vadd.f32 0.001, %v2978_v52  ;;  %v2872_v63 = vsub.f32 %v2656_v35, %v2764_v13  ;;  %v2603_v23 = vmul.f32 0.0051020407, %v14564_v62 }
 0x423   :  { %v10693_v4 = vmul.f32 0.0051020407, %v14561_v56  ;;  %14563 = vst [vmem:[#allocation293_spill] sm:$0xff] %v10700_v55  ;;  %6115 = vrsqrt.f32 %v3152_v14  ;;  %v2938_v17 = vmax.f32 %v2830_v54, 0.0  ;;  %v2724_v15 = vmul.f32 %v10679_v30, %v10679_v30  ;;  %v14565_v46 = vld [vmem:[#allocation339_spill] sm:$0xff]  ;;  %v14566_v54 = vld [vmem:[#allocation322_spill] sm:$0xff] }
 0x424   :  { %v2616_v10 = vmul.f32 0.0051020407, %v10357_v57  ;;  %v6106_v12 = vpop.eup %6105  ;;  %v2711_v53 = vmul.f32 %v10686_v1, %v10686_v1  ;;  %v10714_v52 = vmul.f32 0.0051020407, %v14565_v46  ;;  %v3472_v35 = vmul.f32 %v10688_v33, %v10442_v25  ;;  %v14571_v33 = vld [vmem:[#allocation350_spill] sm:$0xff] }
 0x425   :  { %v10698_v51 = vpop.xlane.xlu0 %1590  ;;  %v6108_v37 = vpop.eup %6107  ;;  %v2757_v14 = vmul.f32 %v10652_v61, %v10652_v61  ;;  %v2759_v57 = vmul.f32 %v10696_v32, %v10696_v32  ;;  %v3141_v13 = vadd.f32 0.001, %v2925_v48  ;;  %v2980_v62 = vmax.f32 %v2872_v63, 0.0  ;;  %v14568_v63 = vld [vmem:[#allocation347_spill] sm:$0xff] }
 0x426   :  { %3808 = vrot.lane.b32.xlu0 %v3512_v5, %s6305_s9  ;;  %3786 = vrot.lane.b32.xlu1 %v10482_v45, %s6305_s9  ;;  %v3459_v45 = vmul.f32 %v10690_v50, %v10427_v47  ;;  %v2651_v5 = vmul.f32 0.0051020407, %v14566_v54  ;;  %v3029_v47 = vld [vmem:[%s13469_s3 + $0xe8] sm:$0xff]  ;;  %v6110_v25 = vpop.eup %6109  ;;  %v2819_v46 = vsub.f32 %v2603_v23, %v2711_v53  ;;  %v2658_v7 = vmul.f32 0.0051020407, %v14567_v20  ;;  %v3084_v54 = vld [vmem:[%s13469_s3 + $0x2a0] sm:$0xff] }
 0x427   :  { %v3514_v48 = vmul.f32 %v10700_v55, %v10433_v16  ;;  %6117 = vrsqrt.f32 %v3194_v18  ;;  %v3154_v44 = vadd.f32 0.001, %v2938_v17  ;;  %v2832_v27 = vsub.f32 %v2616_v10, %v2724_v15 }
 0x428   :  { %v10742_v21 = vmul.f32 0.0051020407, %v10467_v59  ;;  %v6112_v23 = vpop.eup %6111  ;;  %v2766_v20 = vmul.f32 %v10714_v52, %v10714_v52  ;;  %v10747_v53 = vmul.f32 0.0051020407, %v14568_v63  ;;  %v10751_v16 = vmul.f32 %v6108_v37, %v3042_v9 }
 0x429   :  { %v10725_v56 = vpop.xlane.xlu0 %1806  ;;  %v2865_v18 = vsub.f32 %v10693_v4, %v2757_v14  ;;  %v2867_v17 = vsub.f32 %v2651_v5, %v2759_v57  ;;  %6119 = vrsqrt.f32 %v3141_v13  ;;  %v10756_v59 = vmul.f32 %v6110_v25, %v3084_v54  ;;  %v3044_v25 = vld [vmem:[%s13469_s3 + $0x160] sm:$0xff] }
 0x42a   :  { %3728 = vrot.lane.b32.xlu0 %v3472_v35, %s6305_s9  ;;  %3702 = vrot.lane.b32.xlu1 %v3459_v45, %s6305_s9  ;;  %v10749_v35 = vpop.xlane.xlu1 %1794  ;;  %14569 = vst [vmem:[#allocation296_spill] sm:$0xff] %v10751_v16  ;;  %v10753_v45 = vmul.f32 %v6106_v12, %v3029_v47  ;;  %v3196_v10 = vadd.f32 0.001, %v2980_v62  ;;  %v2927_v55 = vmax.f32 %v2819_v46, 0.0  ;;  %v2874_v38 = vsub.f32 %v2658_v7, %v2766_v20  ;;  %v3079_v12 = vld [vmem:[%s13469_s3 + $0x278] sm:$0xff] }
 0x42b   :  { %14570 = vst [vmem:[#allocation303_spill] sm:$0xff] %v10756_v59  ;;  %v2605_v43 = vmul.f32 0.0051020407, %v14571_v33  ;;  %6121 = vrsqrt.f32 %v3154_v44  ;;  %v2940_v4 = vmax.f32 %v2832_v27, 0.0  ;;  %v2726_v37 = vmul.f32 %v10742_v21, %v10742_v21  ;;  %v14572_v33 = vld [vmem:[#allocation343_spill] sm:$0xff]  ;;  %v3031_v62 = vld [vmem:[%s13469_s3 + $0xf8] sm:$0xff] }
 0x42c   :  { %v2618_v14 = vmul.f32 0.0051020407, %v10560_v0  ;;  %v6114_v57 = vpop.eup %6113  ;;  %v2713_v7 = vmul.f32 %v10747_v53, %v10747_v53  ;;  %v10771_v5 = vmul.f32 0.0051020407, %v14572_v33  ;;  %v3461_v13 = vmul.f32 %v10753_v45, %v10487_v41  ;;  %v3086_v33 = vld [vmem:[%s13469_s3 + $0x2b0] sm:$0xff] }
 0x42d   :  { %v2347_v15 = vpop.xlane.xlu0 %2346  ;;  %v6116_v44 = vpop.eup %6115  ;;  %v2973_v27 = vmax.f32 %v2865_v18, 0.0  ;;  %v2975_v9 = vmax.f32 %v2867_v17, 0.0  ;;  %v10778_v47 = vmul.f32 0.0051020407, %v10698_v51  ;;  %v3143_v46 = vadd.f32 0.001, %v2927_v55 }
 0x42e   :  { %3812 = vrot.lane.b32.xlu0 %v3514_v48, %s6305_s9  ;;  %3790 = vrot.lane.b32.xlu1 %v10602_v6, %s6305_s9  ;;  %v3474_v6 = vmul.f32 %v10751_v16, %v10500_v26  ;;  %v10788_v26 = vmul.f32 %v6112_v23, %v3079_v12  ;;  %v2821_v41 = vsub.f32 %v2605_v43, %v2713_v7  ;;  %v14574_v48 = vld [vmem:[#allocation346_spill] sm:$0xff]  ;;  %v10791_v20 = vpop.xlane.xlu1 %2334  ;;  %6123 = vrsqrt.f32 %v3196_v10  ;;  %v14575_v55 = vld [vmem:[#allocation351_spill] sm:$0xff] }
 0x42f   :  { %v2660_v54 = vmul.f32 0.0051020407, %v14574_v48  ;;  %v3516_v51 = vmul.f32 %v10756_v59, %v10504_v49  ;;  %v2982_v63 = vmax.f32 %v2874_v38, 0.0  ;;  %v3156_v18 = vadd.f32 0.001, %v2940_v4  ;;  %v14577_v10 = vld [vmem:[#allocation327_spill] sm:$0xff] }
 0x430   :  { %14573 = vst [vmem:[#allocation299_spill] sm:$0xff] %v10788_v26  ;;  %v2834_v17 = vsub.f32 %v2618_v14, %v2726_v37  ;;  %v2768_v23 = vmul.f32 %v10771_v5, %v10771_v5  ;;  %v10800_v43 = vmul.f32 0.0051020407, %v14575_v55  ;;  %v10802_v12 = vmul.f32 %v6116_v44, %v3044_v25 }
 0x431   :  { %v10780_v0 = vpop.xlane.xlu0 %2562  ;;  %v10804_v7 = vmul.f32 %v6114_v57, %v3031_v62  ;;  %v3189_v49 = vadd.f32 0.001, %v2973_v27  ;;  %v10810_v38 = vmul.f32 0.0051020407, %v14577_v10  ;;  %v2728_v4 = vmul.f32 %v10778_v47, %v10778_v47  ;;  %v14579_v57 = vld [vmem:[#allocation244_spill] sm:$0xff] }
 0x432   :  { %3732 = vrot.lane.b32.xlu0 %v3474_v6, %s6305_s9  ;;  %3706 = vrot.lane.b32.xlu1 %v3461_v13, %s6305_s9  ;;  %14576 = vst [vmem:[#allocation308_spill] sm:$0xff] %v10802_v12  ;;  %v6118_v6 = vpop.eup %6117  ;;  %v2620_v37 = vmul.f32 0.0051020407, %v2347_v15  ;;  %6125 = vrsqrt.f32 %v3143_v46  ;;  %v2929_v13 = vmax.f32 %v2821_v41, 0.0  ;;  %v2876_v44 = vsub.f32 %v2660_v54, %v2768_v23  ;;  %v10822_v10 = vpop.xlane.xlu1 %2550 }
 0x433   :  { %v2607_v25 = vmul.f32 0.0051020407, %v14579_v57  ;;  %v6120_v27 = vpop.eup %6119  ;;  %v3191_v62 = vadd.f32 0.001, %v2975_v9  ;;  %v3198_v48 = vadd.f32 0.001, %v2982_v63  ;;  %6127 = vrsqrt.f32 %v3156_v18 }
 0x434   :  { %v2942_v55 = vmax.f32 %v2834_v17, 0.0  ;;  %v2715_v15 = vmul.f32 %v10800_v43, %v10800_v43  ;;  %v3476_v46 = vmul.f32 %v10802_v12, %v10548_v39  ;;  %v3463_v41 = vmul.f32 %v10804_v7, %v10554_v42  ;;  %v14582_v63 = vld [vmem:[#allocation349_spill] sm:$0xff]  ;;  %v3046_v39 = vld [vmem:[%s13469_s3 + $0x170] sm:$0xff]  ;;  %v3033_v42 = vld [vmem:[%s13469_s3 + $0x108] sm:$0xff] }
 0x435   :  { %v10814_v14 = vpop.permute.xlu0 %3672  ;;  %v10828_v54 = vmul.f32 %v6118_v6, %v3086_v33  ;;  %6129 = vrsqrt.f32 %v3189_v49  ;;  %v10834_v18 = vmul.f32 0.0051020407, %v14582_v63  ;;  %v2836_v17 = vsub.f32 %v2620_v37, %v2728_v4  ;;  %v14584_v4 = vld [vmem:[#allocation197_spill] sm:$0xff] }
 0x436   :  { %14578 = vst [vmem:[#allocation302_spill] sm:$0xff] %v10814_v14  ;;  %3816 = vrot.lane.b32.xlu0 %v3516_v51, %s6305_s9  ;;  %3794 = vrot.lane.b32.xlu1 %v10606_v31, %s6305_s9  ;;  %v6122_v51 = vpop.eup %6121  ;;  %v14581_v31 = vld [vmem:[#allocation331_spill] sm:$0xff]  ;;  %v2761_v33 = vmul.f32 %v10810_v38, %v10810_v38  ;;  %v3145_v6 = vadd.f32 0.001, %v2929_v13  ;;  %v2984_v49 = vmax.f32 %v2876_v44, 0.0  ;;  %v2823_v57 = vsub.f32 %v2607_v25, %v2715_v15  ;;  %v14586_v14 = vld [vmem:[#allocation246_spill] sm:$0xff] }
 0x437   :  { %14580 = vst [vmem:[#allocation248_spill] sm:$0xff] %v10828_v54  ;;  %v10831_v9 = vmul.f32 0.0051020407, %v14581_v31  ;;  %6131 = vrsqrt.f32 %v3198_v48  ;;  %v10849_v37 = vmul.f32 0.0051020407, %v14584_v4  ;;  %v14585_v31 = vld [vmem:[#allocation238_spill] sm:$0xff]  ;;  %v3518_v12 = vmul.f32 %v10828_v54, %v10584_v60 }
 0x438   :  { %v2662_v63 = vmul.f32 0.0051020407, %v14585_v31  ;;  %v10853_v59 = vmul.f32 0.0051020407, %v14586_v14  ;;  %v10857_v13 = vmul.f32 %v6122_v51, %v3046_v39  ;;  %v10859_v44 = vmul.f32 %v6120_v27, %v3033_v42  ;;  %v6124_v25 = vpop.eup %6123  ;;  %v3088_v14 = vld [vmem:[%s13469_s3 + $0x2c0] sm:$0xff]  ;;  %v14590_v51 = vld [vmem:[#allocation199_spill] sm:$0xff] }
 0x439   :  { %v10836_v23 = vpop.permute.xlu0 %3756  ;;  %v2869_v15 = vsub.f32 %v10831_v9, %v2761_v33  ;;  %v2770_v48 = vmul.f32 %v10834_v18, %v10834_v18  ;;  %v2944_v4 = vmax.f32 %v2836_v17, 0.0  ;;  %6133 = vrsqrt.f32 %v3145_v6  ;;  %v14591_v39 = vld [vmem:[#allocation243_spill] sm:$0xff]  ;;  %v10874_v9 = vpop.permute.xlu1 %3666 }
 0x43a   :  { %14583 = vst [vmem:[#allocation265_spill] sm:$0xff] %v10836_v23  ;;  %3736 = vrot.lane.b32.xlu0 %v3476_v46, %s6305_s9  ;;  %3710 = vrot.lane.b32.xlu1 %v3463_v41, %s6305_s9  ;;  %v3158_v23 = vadd.f32 0.001, %v2942_v55  ;;  %14587 = vst [vmem:[#allocation316_spill] sm:$0xff] %v10857_v13  ;;  %v14588_v46 = vld [vmem:[#allocation233_spill] sm:$0xff]  ;;  %v2931_v60 = vmax.f32 %v2823_v57, 0.0  ;;  %v2717_v33 = vmul.f32 %v10849_v37, %v10849_v37 }
 0x43b   :  { %v2609_v41 = vmul.f32 0.0051020407, %v14588_v46  ;;  %v2664_v27 = vmul.f32 0.0051020407, %v14590_v51  ;;  %v10872_v42 = vmul.f32 0.0051020407, %v14591_v39  ;;  %v2878_v31 = vsub.f32 %v2662_v63, %v2770_v48 }
 0x43c   :  { %14592 = vst [vmem:[#allocation321_spill] sm:$0xff] %v10874_v9  ;;  %v3200_v17 = vadd.f32 0.001, %v2984_v49  ;;  %6135 = vrsqrt.f32 %v3158_v23  ;;  %v6126_v6 = vpop.eup %6125  ;;  %v2772_v57 = vmul.f32 %v10853_v59, %v10853_v59  ;;  %v3478_v46 = vmul.f32 %v10857_v13, %v10617_v24  ;;  %v3048_v23 = vld [vmem:[%s13469_s3 + $0x180] sm:$0xff]  ;;  %v3035_v63 = vld [vmem:[%s13469_s3 + $0x118] sm:$0xff] }
 0x43d   :  { %v10865_v55 = vpop.permute.xlu0 %3676  ;;  %v3465_v51 = vmul.f32 %v10859_v44, %v10611_v28  ;;  %v6128_v39 = vpop.eup %6127  ;;  %6137 = vrsqrt.f32 %v3191_v62  ;;  %v3160_v49 = vadd.f32 0.001, %v2944_v4  ;;  %v10899_v24 = vmul.f32 %v10788_v26, %v10497_v2  ;;  %v14595_v48 = vld [vmem:[#allocation134_spill] sm:$0xff] }
 0x43e   :  { %14589 = vst [vmem:[#allocation105_spill] sm:$0xff] %v10865_v55  ;;  %3820 = vrot.lane.b32.xlu0 %v3518_v12, %s6305_s9  ;;  %3798 = vrot.lane.b32.xlu1 %v10664_v40, %s6305_s9  ;;  %v10887_v12 = vmul.f32 %v6124_v25, %v3088_v14  ;;  %v2825_v40 = vsub.f32 %v2609_v41, %v2717_v33  ;;  %v2666_v25 = vmul.f32 0.0051020407, %v9998_v36  ;;  %v10905_v41 = vmul.f32 0.0051020407, %v14595_v48  ;;  %v10907_v4 = vpop.xlane.xlu1 %1586  ;;  %v14598_v26 = vld [vmem:[#allocation338_spill] sm:$0xff] }
 0x43f   :  { %v2880_v28 = vsub.f32 %v2664_v27, %v2772_v57  ;;  %v2774_v62 = vmul.f32 %v10872_v42, %v10872_v42  ;;  %v6130_v14 = vpop.eup %6129  ;;  %6139 = vrsqrt.f32 %v3200_v17  ;;  %v3147_v33 = vadd.f32 0.001, %v2931_v60  ;;  %v14599_v13 = vld [vmem:[#allocation138_spill] sm:$0xff] }
 0x440   :  { %14593 = vst [vmem:[#allocation305_spill] sm:$0xff] %v10887_v12  ;;  %v2986_v2 = vmax.f32 %v2878_v31, 0.0  ;;  %v2977_v57 = vmax.f32 %v2869_v15, 0.0  ;;  %v3520_v36 = vmul.f32 %v10887_v12, %v10645_v19  ;;  %v10916_v55 = vmul.f32 %v6128_v39, %v3048_v23  ;;  %v3090_v15 = vld [vmem:[%s13469_s3 + $0x2d0] sm:$0xff] }
 0x441   :  { %v10889_v9 = vpop.permute.xlu0 %3760  ;;  %v10918_v48 = vmul.f32 %v6126_v6, %v3035_v63  ;;  %v6132_v54 = vpop.eup %6131  ;;  %v2611_v17 = vmul.f32 0.0051020407, %v14599_v13  ;;  %6141 = vrsqrt.f32 %v3160_v49  ;;  %v2882_v19 = vsub.f32 %v2666_v25, %v2774_v62  ;;  %v14601_v6 = vld [vmem:[#allocation250_spill] sm:$0xff]  ;;  %v14602_v49 = vld [vmem:[#allocation267_spill] sm:$0xff] }
 0x442   :  { %14594 = vst [vmem:[#allocation312_spill] sm:$0xff] %v10889_v9  ;;  %3740 = vrot.lane.b32.xlu0 %v3478_v46, %s6305_s9  ;;  %3714 = vrot.lane.b32.xlu1 %v3465_v51, %s6305_s9  ;;  %v14596_v9 = vld [vmem:[#allocation224_spill] sm:$0xff]  ;;  %14597 = vst [vmem:[#allocation301_spill] sm:$0xff] %v10916_v55  ;;  %v10921_v46 = vmul.f32 0.0051020407, %v14598_v26  ;;  %v2933_v51 = vmax.f32 %v2825_v40, 0.0  ;;  %v2776_v31 = vmul.f32 %v10905_v41, %v10905_v41  ;;  %6143 = vrsqrt.f32 %v3147_v33  ;;  %v10943_v62 = vpop.xlane.xlu1 %1802 }
 0x443   :  { %v10912_v27 = vmul.f32 0.0051020407, %v14596_v9  ;;  %v2988_v9 = vmax.f32 %v2880_v28, 0.0  ;;  %v2668_v39 = vmul.f32 0.0051020407, %v14601_v6  ;;  %v3081_v26 = vld [vmem:[%s13469_s3 + $0x288] sm:$0xff]  ;;  %v6134_v63 = vpop.eup %6133  ;;  %v3480_v25 = vmul.f32 %v10916_v55, %v10679_v30 }
 0x444   :  { %v3202_v13 = vadd.f32 0.001, %v2986_v2  ;;  %v10941_v23 = vmul.f32 0.0051020407, %v14602_v49  ;;  %v3193_v28 = vadd.f32 0.001, %v2977_v57  ;;  %v10960_v49 = vmul.f32 %v6130_v14, %v3081_v26 }
 0x445   :  { %v10924_v60 = vpop.permute.xlu0 %3680  ;;  %v2719_v40 = vmul.f32 %v10912_v27, %v10912_v27  ;;  %v14604_v2 = vld [vmem:[#allocation340_spill] sm:$0xff]  ;;  %v3037_v30 = vld [vmem:[%s13469_s3 + $0x128] sm:$0xff]  ;;  %v10970_v14 = vmul.f32 0.0051020407, %v10513_v11  ;;  %v3092_v11 = vld [vmem:[%s13469_s3 + $0x2e0] sm:$0xff] }
 0x446   :  { %14600 = vst [vmem:[#allocation325_spill] sm:$0xff] %v10924_v60  ;;  %3824 = vrot.lane.b32.xlu0 %v3520_v36, %s6305_s9  ;;  %3802 = vrot.lane.b32.xlu1 %v10668_v3, %s6305_s9  ;;  %v3467_v3 = vmul.f32 %v10918_v48, %v10686_v1  ;;  %v10949_v36 = vmul.f32 %v6132_v54, %v3090_v15  ;;  %v6136_v33 = vpop.eup %6135  ;;  %v2655_v6 = vmul.f32 0.0051020407, %v14604_v2  ;;  %v3149_v60 = vadd.f32 0.001, %v2933_v51  ;;  %v3050_v57 = vld [vmem:[%s13469_s3 + $0x190] sm:$0xff] }
 0x447   :  { %v2827_v12 = vsub.f32 %v2611_v17, %v2719_v40  ;;  %v2763_v1 = vmul.f32 %v10921_v46, %v10921_v46  ;;  %v3204_v54 = vadd.f32 0.001, %v2988_v9  ;;  %v2990_v15 = vmax.f32 %v2882_v19, 0.0  ;;  %v6138_v51 = vpop.eup %6137  ;;  %v14606_v26 = vld [vmem:[#allocation116_spill] sm:$0xff] }
 0x448   :  { %14603 = vst [vmem:[#allocation329_spill] sm:$0xff] %v10949_v36  ;;  %v2884_v2 = vsub.f32 %v2668_v39, %v2776_v31  ;;  %6145 = vrsqrt.f32 %v3202_v13  ;;  %v2778_v17 = vmul.f32 %v10941_v23, %v10941_v23  ;;  %v2670_v40 = vmul.f32 0.0051020407, %v10402_v58 }
 0x449   :  { %v10952_v16 = vpop.permute.xlu0 %3764  ;;  %v3522_v9 = vmul.f32 %v10949_v36, %v10714_v52  ;;  %v10977_v19 = vmul.f32 %v6136_v33, %v3050_v57  ;;  %v10979_v31 = vmul.f32 %v6134_v63, %v3037_v30  ;;  %v6140_v39 = vpop.eup %6139  ;;  %v2871_v13 = vsub.f32 %v2655_v6, %v2763_v1  ;;  %v14609_v52 = vld [vmem:[#allocation129_spill] sm:$0xff] }
 0x44a   :  { %14605 = vst [vmem:[#allocation320_spill] sm:$0xff] %v10952_v16  ;;  %3744 = vrot.lane.b32.xlu0 %v3480_v25, %s6305_s9  ;;  %3718 = vrot.lane.b32.xlu1 %v3467_v3, %s6305_s9  ;;  %v10973_v16 = vmul.f32 0.0051020407, %v14606_v26  ;;  %v14607_v25 = vld [vmem:[#allocation234_spill] sm:$0xff]  ;;  %6147 = vrsqrt.f32 %v3149_v60  ;;  %v2935_v58 = vmax.f32 %v2827_v12, 0.0  ;;  %v2992_v57 = vmax.f32 %v2884_v2, 0.0  ;;  %v10990_v63 = vpop.xlane.xlu1 %2342 }
 0x44b   :  { %v10982_v3 = vmul.f32 0.0051020407, %v14607_v25  ;;  %6149 = vrsqrt.f32 %v3204_v54  ;;  %v3206_v26 = vadd.f32 0.001, %v2990_v15  ;;  %v2613_v33 = vmul.f32 0.0051020407, %v14609_v52  ;;  %v6142_v60 = vpop.eup %6141 }
 0x44c   :  { %v2886_v12 = vsub.f32 %v2670_v40, %v2778_v17  ;;  %v2780_v6 = vmul.f32 %v10970_v14, %v10970_v14  ;;  %v2672_v30 = vmul.f32 0.0051020407, %v10619_v22  ;;  %v10999_v1 = vmul.f32 0.0051020407, %v10725_v56  ;;  %v3052_v54 = vld [vmem:[%s13469_s3 + $0x1a0] sm:$0xff]  ;;  %v6144_v40 = vpop.eup %6143  ;;  %v14611_v56 = vld [vmem:[#allocation128_spill] sm:$0xff] }
 0x44d   :  { %v10984_v55 = vpop.permute.xlu0 %3684  ;;  %v2721_v15 = vmul.f32 %v10973_v16, %v10973_v16  ;;  %v3469_v2 = vmul.f32 %v10979_v31, %v10747_v53  ;;  %v11010_v17 = vmul.f32 %v6140_v39, %v3092_v11  ;;  %6151 = vrsqrt.f32 %v3193_v28  ;;  %v3083_v28 = vld [vmem:[%s13469_s3 + $0x298] sm:$0xff] }
 0x44e   :  { %14608 = vst [vmem:[#allocation337_spill] sm:$0xff] %v10984_v55  ;;  %3828 = vrot.lane.b32.xlu0 %v3522_v9, %s6305_s9  ;;  %3806 = vrot.lane.b32.xlu1 %v10899_v24, %s6305_s9  ;;  %v3482_v24 = vmul.f32 %v10977_v19, %v10742_v21  ;;  %v2979_v22 = vmax.f32 %v2871_v13, 0.0  ;;  %v2657_v9 = vmul.f32 0.0051020407, %v14611_v56  ;;  %v3151_v25 = vadd.f32 0.001, %v2935_v58 }
 0x44f   :  { %14610 = vst [vmem:[#allocation324_spill] sm:$0xff] %v11010_v17  ;;  %v3039_v55 = vld [vmem:[%s13469_s3 + $0x138] sm:$0xff]  ;;  %6153 = vrsqrt.f32 %v3206_v26  ;;  %v2829_v36 = vsub.f32 %v2613_v33, %v2721_v15  ;;  %v3208_v21 = vadd.f32 0.001, %v2992_v57  ;;  %v11020_v53 = vmul.f32 %v6142_v60, %v3052_v54  ;;  %v11030_v33 = vpop.xlane.xlu1 %2558 }
 0x450   :  { %v2994_v39 = vmax.f32 %v2886_v12, 0.0  ;;  %v2888_v13 = vsub.f32 %v2672_v30, %v2780_v6  ;;  %v2782_v58 = vmul.f32 %v10999_v1, %v10999_v1  ;;  %v2674_v11 = vmul.f32 0.0051020407, %v10780_v0  ;;  %v14613_v30 = vld [vmem:[#allocation245_spill] sm:$0xff] }
 0x451   :  { %v11013_v52 = vpop.permute.xlu0 %3768  ;;  %v2765_v26 = vmul.f32 %v10982_v3, %v10982_v3  ;;  %v3524_v57 = vmul.f32 %v11010_v17, %v10771_v5  ;;  %v3513_v60 = vmul.f32 %v10960_v49, %v10652_v61  ;;  %v11036_v54 = vmul.f32 %v6144_v40, %v3039_v55  ;;  %v14615_v40 = vld [vmem:[#allocation282_spill] sm:$0xff]  ;;  %v14616_v17 = vld [vmem:[#allocation348_spill] sm:$0xff] }
 0x452   :  { %14612 = vst [vmem:[#allocation328_spill] sm:$0xff] %v11013_v52  ;;  %3748 = vrot.lane.b32.xlu0 %v3482_v24, %s6305_s9  ;;  %3722 = vrot.lane.b32.xlu1 %v3469_v2, %s6305_s9  ;;  %v6146_v12 = vpop.eup %6145  ;;  %v3195_v6 = vadd.f32 0.001, %v2979_v22  ;;  %6155 = vrsqrt.f32 %v3151_v25  ;;  %v11039_v15 = vmul.f32 0.0051020407, %v14613_v30  ;;  %v3094_v24 = vld [vmem:[%s13469_s3 + $0x2f0] sm:$0xff]  ;;  %v11046_v2 = vmul.f32 %v6138_v51, %v3083_v28 }
 0x453   :  { %v2873_v5 = vsub.f32 %v2657_v9, %v2765_v26  ;;  %v2937_v56 = vmax.f32 %v2829_v36, 0.0  ;;  %6157 = vrsqrt.f32 %v3208_v21  ;;  %v3484_v61 = vmul.f32 %v11020_v53, %v10778_v47  ;;  %v11073_v26 = vpop.permute.xlu1 %3670 }
 0x454   :  { %v6148_v55 = vpop.eup %6147  ;;  %v2615_v22 = vmul.f32 0.0051020407, %v14615_v40  ;;  %v3210_v25 = vadd.f32 0.001, %v2994_v39  ;;  %v2996_v30 = vmax.f32 %v2888_v13, 0.0  ;;  %v2890_v52 = vsub.f32 %v2674_v11, %v2782_v58  ;;  %v3096_v39 = vld [vmem:[%s13469_s3 + $0x300] sm:$0xff] }
 0x455   :  { %v11041_v0 = vpop.permute.xlu0 %3688  ;;  %v11054_v51 = vmul.f32 0.0051020407, %v14616_v17  ;;  %v3471_v36 = vmul.f32 %v11036_v54, %v10800_v43  ;;  %v11058_v9 = vmul.f32 %v6146_v12, %v3094_v24  ;;  %v2723_v21 = vmul.f32 %v11039_v15, %v11039_v15  ;;  %v3041_v17 = vld [vmem:[%s13469_s3 + $0x148] sm:$0xff]  ;;  %v14618_v13 = vld [vmem:[#allocation241_spill] sm:$0xff]  ;;  %14619 = vst [vmem:[#allocation311_spill] sm:$0xff] %v11073_v26 }
 0x456   :  { %14614 = vst [vmem:[#allocation304_spill] sm:$0xff] %v11041_v0  ;;  %3832 = vrot.lane.b32.xlu0 %v3524_v57, %s6305_s9  ;;  %3810 = vrot.lane.b32.xlu1 %v3513_v60, %s6305_s9  ;;  %v6150_v0 = vpop.eup %6149  ;;  %v3515_v47 = vmul.f32 %v11046_v2, %v10696_v32  ;;  %6159 = vrsqrt.f32 %v3195_v6  ;;  %v2981_v43 = vmax.f32 %v2873_v5, 0.0  ;;  %v2659_v58 = vmul.f32 0.0051020407, %v14618_v13  ;;  %v3085_v24 = vld [vmem:[%s13469_s3 + $0x2a8] sm:$0xff]  ;;  %v14620_v13 = vld [vmem:[#allocation353_spill] sm:$0xff] }
 0x457   :  { %v3153_v11 = vadd.f32 0.001, %v2937_v56  ;;  %v6152_v32 = vpop.eup %6151  ;;  %v2831_v57 = vsub.f32 %v2615_v22, %v2723_v21  ;;  %6161 = vrsqrt.f32 %v3210_v25  ;;  %v3212_v60 = vadd.f32 0.001, %v2996_v30 }
 0x458   :  { %v2998_v12 = vmax.f32 %v2890_v52, 0.0  ;;  %v2767_v5 = vmul.f32 %v11054_v51, %v11054_v51  ;;  %v3526_v56 = vmul.f32 %v11058_v9, %v10834_v18  ;;  %v11084_v40 = vmul.f32 %v6150_v0, %v3096_v39  ;;  %v3098_v52 = vld [vmem:[%s13469_s3 + $0x310] sm:$0xff] }
 0x459   :  { %v11062_v28 = vpop.permute.xlu0 %3772  ;;  %v6154_v6 = vpop.eup %6153  ;;  %v11089_v22 = vmul.f32 0.0051020407, %v10703_v34  ;;  %v3197_v30 = vadd.f32 0.001, %v2981_v43  ;;  %6163 = vrsqrt.f32 %v3153_v11  ;;  %v11100_v0 = vmul.f32 %v6152_v32, %v3085_v24 }
 0x45a   :  { %14617 = vst [vmem:[#allocation333_spill] sm:$0xff] %v11062_v28  ;;  %3752 = vrot.lane.b32.xlu0 %v3484_v61, %s6305_s9  ;;  %3726 = vrot.lane.b32.xlu1 %v3471_v36, %s6305_s9  ;;  %v11086_v61 = vmul.f32 %v6148_v55, %v3041_v17  ;;  %v2875_v36 = vsub.f32 %v2659_v58, %v2767_v5  ;;  %v2939_v34 = vmax.f32 %v2831_v57, 0.0  ;;  %v2617_v21 = vmul.f32 0.0051020407, %v10791_v20  ;;  %v3100_v20 = vld [vmem:[%s13469_s3 + $0x320] sm:$0xff]  ;;  %v3043_v57 = vld [vmem:[%s13469_s3 + $0x158] sm:$0xff] }
 0x45b   :  { %6165 = vrsqrt.f32 %v3212_v60  ;;  %v3214_v39 = vadd.f32 0.001, %v2998_v12  ;;  %v11104_v28 = vmul.f32 0.0051020407, %v14620_v13  ;;  %v3528_v43 = vmul.f32 %v11084_v40, %v10853_v59  ;;  %v14622_v59 = vld [vmem:[#allocation175_spill] sm:$0xff] }
 0x45c   :  { %v6156_v55 = vpop.eup %6155  ;;  %v11110_v58 = vmul.f32 %v6154_v6, %v3098_v52  ;;  %v2725_v11 = vmul.f32 %v11089_v22, %v11089_v22  ;;  %6167 = vrsqrt.f32 %v3197_v30  ;;  %v2661_v60 = vmul.f32 0.0051020407, %v14622_v59 }
 0x45d   :  { %v11091_v25 = vpop.permute.xlu0 %3692  ;;  %v6158_v17 = vpop.eup %6157  ;;  %v3517_v12 = vmul.f32 %v11100_v0, %v10810_v38  ;;  %v2983_v24 = vmax.f32 %v2875_v36, 0.0  ;;  %v3155_v6 = vadd.f32 0.001, %v2939_v34  ;;  %6169 = vrsqrt.f32 %v3214_v39  ;;  %v3102_v36 = vld [vmem:[%s13469_s3 + $0x330] sm:$0xff]  ;;  %v3087_v34 = vld [vmem:[%s13469_s3 + $0x2b8] sm:$0xff] }
 0x45e   :  { %3836 = vrot.lane.b32.xlu0 %v3526_v56, %s6305_s9  ;;  %3814 = vrot.lane.b32.xlu1 %v3515_v47, %s6305_s9  ;;  %v11098_v18 = vpop.xlane.xlu1 %1594  ;;  %v3473_v47 = vmul.f32 %v11086_v61, %v10849_v37  ;;  %v2833_v5 = vsub.f32 %v2617_v21, %v2725_v11  ;;  %v2769_v52 = vmul.f32 %v11104_v28, %v11104_v28  ;;  %v11138_v59 = vmul.f32 0.0051020407, %v10907_v4 }
 0x45f   :  { %v3530_v30 = vmul.f32 %v11110_v58, %v10872_v42  ;;  %v11133_v13 = vmul.f32 %v6158_v17, %v3100_v20  ;;  %6171 = vrsqrt.f32 %v3155_v6  ;;  %v2619_v39 = vmul.f32 0.0051020407, %v10990_v63 }
 0x460   :  { %v6160_v56 = vpop.eup %6159  ;;  %v2877_v21 = vsub.f32 %v2661_v60, %v2769_v52  ;;  %v2941_v4 = vmax.f32 %v2833_v5, 0.0 }
 0x461   :  { %v11114_v32 = vpop.permute.xlu0 %3776  ;;  %v3532_v11 = vmul.f32 %v11133_v13, %v10905_v41  ;;  %v11157_v60 = vmul.f32 %v6160_v56, %v3087_v34  ;;  %v3104_v41 = vld [vmem:[%s13469_s3 + $0x340] sm:$0xff] }
 0x462   :  { %14621 = vst [vmem:[#allocation319_spill] sm:$0xff] %v11114_v32  ;;  %3840 = vrot.lane.b32.xlu0 %v3528_v43, %s6305_s9  ;;  %3730 = vrot.lane.b32.xlu1 %v3473_v47, %s6305_s9  ;;  %v11125_v37 = vpop.xlane.xlu1 %1810  ;;  %v11135_v43 = vmul.f32 %v6156_v55, %v3043_v57  ;;  %v6162_v47 = vpop.eup %6161  ;;  %v3199_v55 = vadd.f32 0.001, %v2983_v24  ;;  %v2727_v24 = vmul.f32 %v11138_v59, %v11138_v59  ;;  %v2985_v63 = vmax.f32 %v2877_v21, 0.0  ;;  %v14626_v56 = vld [vmem:[#allocation174_spill] sm:$0xff] }
 0x463   :  { %v6164_v17 = vpop.eup %6163  ;;  %v11155_v57 = vmul.f32 %v6162_v47, %v3102_v36  ;;  %v2663_v47 = vmul.f32 0.0051020407, %v14626_v56  ;;  %v3157_v36 = vadd.f32 0.001, %v2941_v4  ;;  %v3519_v32 = vmul.f32 %v11157_v60, %v10921_v46  ;;  %v3089_v46 = vld [vmem:[%s13469_s3 + $0x2c8] sm:$0xff] }
 0x464   :  { %v3475_v20 = vmul.f32 %v11135_v43, %v10912_v27  ;;  %v3045_v27 = vld [vmem:[%s13469_s3 + $0x168] sm:$0xff]  ;;  %6173 = vrsqrt.f32 %v3199_v55  ;;  %v2835_v34 = vsub.f32 %v2619_v39, %v2727_v24  ;;  %v11188_v55 = vmul.f32 0.0051020407, %v11098_v18 }
 0x465   :  { %v11140_v38 = vpop.permute.xlu0 %3696  ;;  %v6166_v52 = vpop.eup %6165  ;;  %v11183_v21 = vmul.f32 %v6164_v17, %v3045_v27  ;;  %v3201_v39 = vadd.f32 0.001, %v2985_v63  ;;  %6175 = vrsqrt.f32 %v3157_v36  ;;  %v14632_v36 = vld [vmem:[#allocation249_spill] sm:$0xff] }
 0x466   :  { %14623 = vst [vmem:[#allocation345_spill] sm:$0xff] %v11140_v38  ;;  %3844 = vrot.lane.b32.xlu0 %v3530_v30, %s6305_s9  ;;  %3818 = vrot.lane.b32.xlu1 %v3517_v12, %s6305_s9  ;;  %v2351_v42 = vpop.xlane.xlu1 %2350  ;;  %v14624_v30 = vld [vmem:[#allocation219_spill] sm:$0xff]  ;;  %v11181_v26 = vmul.f32 %v6166_v52, %v3104_v41  ;;  %v2943_v18 = vmax.f32 %v2835_v34, 0.0  ;;  %v2665_v34 = vmul.f32 0.0051020407, %v14632_v36 }
 0x467   :  { %v11160_v12 = vmul.f32 0.0051020407, %v14624_v30  ;;  %v6168_v30 = vpop.eup %6167  ;;  %v2621_v24 = vmul.f32 0.0051020407, %v2351_v42  ;;  %v3477_v27 = vmul.f32 %v11183_v21, %v10973_v16  ;;  %6177 = vrsqrt.f32 %v3201_v39 }
 0x468   :  { %v3536_v41 = vmul.f32 %v11181_v26, %v10970_v14  ;;  %v3047_v14 = vld [vmem:[%s13469_s3 + $0x178] sm:$0xff] }
 0x469   :  { %v11164_v6 = vpop.permute.xlu0 %3780 }
 0x46a   :  { %14625 = vst [vmem:[#allocation339_spill] sm:$0xff] %v11164_v6  ;;  %3848 = vrot.lane.b32.xlu0 %v3532_v11, %s6305_s9  ;;  %3734 = vrot.lane.b32.xlu1 %v3475_v20, %s6305_s9  ;;  %v11174_v5 = vpop.xlane.xlu1 %2566  ;;  %v3534_v6 = vmul.f32 %v11155_v57, %v10941_v23  ;;  %v6170_v11 = vpop.eup %6169  ;;  %v2771_v20 = vmul.f32 %v11160_v12, %v11160_v12  ;;  %v3106_v23 = vld [vmem:[%s13469_s3 + $0x350] sm:$0xff] }
 0x46b   :  { %v11206_v56 = vmul.f32 %v6170_v11, %v3106_v23  ;;  %v6172_v63 = vpop.eup %6171 }
 0x46c   :  { %v2879_v52 = vsub.f32 %v2663_v47, %v2771_v20  ;;  %v14633_v20 = vld [vmem:[#allocation270_spill] sm:$0xff] }
 0x46d   :  { %v11190_v4 = vpop.permute.xlu0 %3700  ;;  %v11226_v23 = vmul.f32 0.0051020407, %v14633_v20 }
 0x46e   :  { %14627 = vst [vmem:[#allocation322_spill] sm:$0xff] %v11190_v4  ;;  %3852 = vrot.lane.b32.xlu0 %v3534_v6, %s6305_s9  ;;  %3822 = vrot.lane.b32.xlu1 %v3519_v32, %s6305_s9  ;;  %v11200_v17 = vpop.permute.xlu1 %3758  ;;  %v11208_v4 = vmul.f32 %v6168_v30, %v3089_v46  ;;  %v14629_v6 = vld [vmem:[#allocation257_spill] sm:$0xff]  ;;  %v2729_v32 = vmul.f32 %v11188_v55, %v11188_v55  ;;  %v2987_v42 = vmax.f32 %v2879_v52, 0.0  ;;  %v3159_v30 = vadd.f32 0.001, %v2943_v18 }
 0x46f   :  { %14628 = vst [vmem:[#allocation341_spill] sm:$0xff] %v11200_v17  ;;  %v11211_v38 = vmul.f32 0.0051020407, %v14629_v6  ;;  %v3538_v46 = vmul.f32 %v11206_v56, %v10999_v1  ;;  %v11232_v6 = vmul.f32 %v6172_v63, %v3047_v14  ;;  %v3091_v18 = vld [vmem:[%s13469_s3 + $0x2d8] sm:$0xff]  ;;  %v2775_v36 = vmul.f32 %v11226_v23, %v11226_v23 }
 0x470   :  { %v2837_v11 = vsub.f32 %v2621_v24, %v2729_v32  ;;  %v3521_v39 = vmul.f32 %v11208_v4, %v10982_v3  ;;  %v14634_v24 = vld [vmem:[#allocation273_spill] sm:$0xff]  ;;  %v3203_v3 = vadd.f32 0.001, %v2987_v42  ;;  %6179 = vrsqrt.f32 %v3159_v30  ;;  %v3049_v42 = vld [vmem:[%s13469_s3 + $0x188] sm:$0xff]  ;;  %v14638_v30 = vld [vmem:[#allocation172_spill] sm:$0xff] }
 0x471   :  { %v11215_v47 = vpop.permute.xlu0 %3784  ;;  %v2667_v32 = vmul.f32 0.0051020407, %v14634_v24  ;;  %v3479_v20 = vmul.f32 %v11232_v6, %v11039_v15  ;;  %v14636_v24 = vld [vmem:[#allocation279_spill] sm:$0xff] }
 0x472   :  { %14630 = vst [vmem:[#allocation347_spill] sm:$0xff] %v11215_v47  ;;  %3856 = vrot.lane.b32.xlu0 %v3536_v41, %s6305_s9  ;;  %3738 = vrot.lane.b32.xlu1 %v3477_v27, %s6305_s9  ;;  %v11222_v16 = vpop.permute.xlu1 %3674  ;;  %v6174_v41 = vpop.eup %6173  ;;  %v2773_v27 = vmul.f32 %v11211_v38, %v11211_v38  ;;  %v2945_v14 = vmax.f32 %v2837_v11, 0.0  ;;  %6181 = vrsqrt.f32 %v3203_v3  ;;  %v3093_v3 = vld [vmem:[%s13469_s3 + $0x2e8] sm:$0xff] }
 0x473   :  { %14631 = vst [vmem:[#allocation350_spill] sm:$0xff] %v11222_v16  ;;  %v11250_v17 = vmul.f32 %v6174_v41, %v3091_v18  ;;  %v6176_v47 = vpop.eup %6175  ;;  %v11253_v16 = vmul.f32 0.0051020407, %v14636_v24 }
 0x474   :  { %v2881_v63 = vsub.f32 %v2665_v34, %v2773_v27  ;;  %v2883_v34 = vsub.f32 %v2667_v32, %v2775_v36  ;;  %v3161_v41 = vadd.f32 0.001, %v2945_v14  ;;  %v6178_v27 = vpop.eup %6177  ;;  %v11267_v24 = vmul.f32 %v6176_v47, %v3049_v42 }
 0x475   :  { %v11236_v52 = vpop.permute.xlu0 %3704  ;;  %v3523_v18 = vmul.f32 %v11250_v17, %v11054_v51  ;;  %v2777_v32 = vmul.f32 %v11253_v16, %v11253_v16  ;;  %v11272_v36 = vmul.f32 0.0051020407, %v10749_v35  ;;  %v2671_v42 = vmul.f32 0.0051020407, %v10822_v10 }
 0x476   :  { %3860 = vrot.lane.b32.xlu0 %v3538_v46, %s6305_s9  ;;  %3826 = vrot.lane.b32.xlu1 %v3521_v39, %s6305_s9  ;;  %v11244_v1 = vpop.permute.xlu1 %3762  ;;  %v2989_v15 = vmax.f32 %v2881_v63, 0.0  ;;  %v2669_v39 = vmul.f32 0.0051020407, %v10625_v8  ;;  %v2991_v8 = vmax.f32 %v2883_v34, 0.0  ;;  %v14639_v63 = vld [vmem:[#allocation188_spill] sm:$0xff]  ;;  %6183 = vrsqrt.f32 %v3161_v41 }
 0x477   :  { %14635 = vst [vmem:[#allocation343_spill] sm:$0xff] %v11244_v1  ;;  %v3481_v35 = vmul.f32 %v11267_v24, %v11089_v22  ;;  %v2779_v34 = vmul.f32 %v11272_v36, %v11272_v36 }
 0x478   :  { %v3205_v47 = vadd.f32 0.001, %v2989_v15  ;;  %v2885_v14 = vsub.f32 %v2669_v39, %v2777_v32  ;;  %v3051_v15 = vld [vmem:[%s13469_s3 + $0x198] sm:$0xff]  ;;  %v3207_v10 = vadd.f32 0.001, %v2991_v8  ;;  %v14642_v39 = vld [vmem:[#allocation295_spill] sm:$0xff] }
 0x479   :  { %v11255_v46 = vpop.permute.xlu0 %3788  ;;  %v2673_v32 = vmul.f32 0.0051020407, %v11030_v33  ;;  %v14643_v33 = vld [vmem:[#allocation318_spill] sm:$0xff] }
 0x47a   :  { %14637 = vst [vmem:[#allocation346_spill] sm:$0xff] %v11255_v46  ;;  %4082 = vperm.xlu0 %5977, %v14638_v30   ;;  %3742 = vrot.lane.b32.xlu1 %v3479_v20, %s6305_s9  ;;  %v11262_v11 = vpop.permute.xlu1 %3678  ;;  %v11286_v30 = vmul.f32 %v6178_v27, %v3093_v3  ;;  %v6180_v1 = vpop.eup %6179  ;;  %6185 = vrsqrt.f32 %v3205_v47  ;;  %v2993_v41 = vmax.f32 %v2885_v14, 0.0  ;;  %v2887_v27 = vsub.f32 %v2671_v42, %v2779_v34  ;;  %v3095_v47 = vld [vmem:[%s13469_s3 + $0x2f8] sm:$0xff] }
 0x47b   :  { %v11305_v3 = vmul.f32 %v6180_v1, %v3051_v15  ;;  %6187 = vrsqrt.f32 %v3207_v10  ;;  %v2675_v34 = vmul.f32 0.0051020407, %v11174_v5 }
 0x47c   :  { %v3209_v1 = vadd.f32 0.001, %v2993_v41  ;;  %v2995_v14 = vmax.f32 %v2887_v27, 0.0  ;;  %v14645_v41 = vld [vmem:[#allocation342_spill] sm:$0xff] }
 0x47d   :  { %v11274_v20 = vpop.permute.xlu0 %3708 }
 0x47e   :  { %4097 = vperm.xlu0 %5977, %v14639_v63   ;;  %3830 = vrot.lane.b32.xlu1 %v3523_v18, %s6305_s9  ;;  %v11281_v51 = vpop.permute.xlu1 %3766  ;;  %v11291_v63 = vmul.f32 0.0051020407, %v10943_v62  ;;  %v3525_v62 = vmul.f32 %v11286_v30, %v11104_v28  ;;  %6189 = vrsqrt.f32 %v3209_v1 }
 0x47f   :  { %14640 = vst [vmem:[#allocation351_spill] sm:$0xff] %v11281_v51  ;;  %v6182_v51 = vpop.eup %6181 }
 0x480   :  { %v2781_v8 = vmul.f32 %v11291_v63, %v11291_v63  ;;  %v11324_v15 = vmul.f32 %v6182_v51, %v3095_v47 }
 0x481   :  { %v11293_v18 = vpop.permute.xlu0 %3792 }
 0x482   :  { %14641 = vst [vmem:[#allocation327_spill] sm:$0xff] %v11293_v18  ;;  %4107 = vperm.xlu0 %5977, %v14642_v39   ;;  %3746 = vrot.lane.b32.xlu1 %v3481_v35, %s6305_s9  ;;  %v11300_v22 = vpop.permute.xlu1 %3682  ;;  %v11310_v39 = vmul.f32 0.0051020407, %v11125_v37  ;;  %v2889_v42 = vsub.f32 %v2673_v32, %v2781_v8  ;;  %v3483_v37 = vmul.f32 %v11305_v3, %v11138_v59  ;;  %v6184_v18 = vpop.eup %6183  ;;  %v3211_v59 = vadd.f32 0.001, %v2995_v14 }
 0x483   :  { %v3527_v32 = vmul.f32 %v11324_v15, %v11160_v12 }
 0x484   :  { %v2783_v10 = vmul.f32 %v11310_v39, %v11310_v39  ;;  %v2997_v51 = vmax.f32 %v2889_v42, 0.0  ;;  %v6186_v47 = vpop.eup %6185  ;;  %6191 = vrsqrt.f32 %v3211_v59 }
 0x485   :  { %v11312_v35 = vpop.permute.xlu0 %3712 }
 0x486   :  { %4117 = vperm.xlu0 %5977, %v14643_v33   ;;  %3834 = vrot.lane.b32.xlu1 %v3525_v62, %s6305_s9  ;;  %v11319_v28 = vpop.permute.xlu1 %3770  ;;  %v3053_v62 = vld [vmem:[%s13469_s3 + $0x1a8] sm:$0xff]  ;;  %v2891_v27 = vsub.f32 %v2675_v34, %v2783_v10  ;;  %v3213_v14 = vadd.f32 0.001, %v2997_v51  ;;  %v6188_v34 = vpop.eup %6187  ;;  %v3099_v10 = vld [vmem:[%s13469_s3 + $0x318] sm:$0xff] }
 0x487   :  { %14644 = vst [vmem:[#allocation244_spill] sm:$0xff] %v11319_v28  ;;  %v11339_v8 = vmul.f32 %v6184_v18, %v3053_v62  ;;  %v14646_v28 = vld [vmem:[#allocation176_spill] sm:$0xff] }
 0x488   :  { %v2999_v42 = vmax.f32 %v2891_v27, 0.0  ;;  %6193 = vrsqrt.f32 %v3213_v14  ;;  %v6190_v27 = vpop.eup %6189 }
 0x489   :  { %v11328_v46 = vpop.permute.xlu0 %3796  ;;  %v3485_v12 = vmul.f32 %v11339_v8, %v11188_v55  ;;  %v11365_v55 = vmul.f32 %v6188_v34, %v3099_v10  ;;  %v3103_v10 = vld [vmem:[%s13469_s3 + $0x338] sm:$0xff] }
 0x48a   :  { %4127 = vperm.xlu0 %5977, %v14645_v41   ;;  %3750 = vrot.lane.b32.xlu1 %v3483_v37, %s6305_s9  ;;  %v11335_v5 = vpop.permute.xlu1 %3686  ;;  %v3097_v41 = vld [vmem:[%s13469_s3 + $0x308] sm:$0xff]  ;;  %v3215_v59 = vadd.f32 0.001, %v2999_v42 }
 0x48b   :  { %v11352_v18 = vmul.f32 %v6186_v47, %v3097_v41  ;;  %v3101_v47 = vld [vmem:[%s13469_s3 + $0x328] sm:$0xff]  ;;  %v14650_v41 = vld [vmem:[#allocation216_spill] sm:$0xff]  ;;  %v3531_v14 = vmul.f32 %v11365_v55, %v11226_v23 }
 0x48c   :  { %6195 = vrsqrt.f32 %v3215_v59 }
 0x48d   :  { %v11341_v33 = vpop.permute.xlu0 %3716  ;;  %v3529_v51 = vmul.f32 %v11352_v18, %v11211_v38  ;;  %v11378_v38 = vmul.f32 %v6190_v27, %v3101_v47  ;;  %v3105_v47 = vld [vmem:[%s13469_s3 + $0x348] sm:$0xff] }
 0x48e   :  { %4137 = vperm.xlu0 %5977, %v14646_v28   ;;  %3838 = vrot.lane.b32.xlu1 %v3527_v32, %s6305_s9  ;;  %v11348_v1 = vpop.permute.xlu1 %3774  ;;  %v14649_v28 = vld [vmem:[#allocation253_spill] sm:$0xff]  ;;  %v6192_v42 = vpop.eup %6191 }
 0x48f   :  { %14647 = vst [vmem:[#allocation331_spill] sm:$0xff] %v11348_v1  ;;  %v3533_v59 = vmul.f32 %v11378_v38, %v11253_v16 }
 0x491   :  { %v11354_v37 = vpop.permute.xlu0 %3800 }
 0x492   :  { %14648 = vst [vmem:[#allocation349_spill] sm:$0xff] %v11354_v37  ;;  %4147 = vperm.xlu0 %5977, %v14649_v28   ;;  %3754 = vrot.lane.b32.xlu1 %v3485_v12, %s6305_s9  ;;  %v11361_v62 = vpop.permute.xlu1 %3690  ;;  %v14653_v28 = vld [vmem:[#allocation192_spill] sm:$0xff]  ;;  %v6194_v23 = vpop.eup %6193 }
 0x493   :  { %v11404_v1 = vmul.f32 %v6194_v23, %v3105_v47  ;;  %v14658_v23 = vld [vmem:[#allocation261_spill] sm:$0xff] }
 0x495   :  { %v11367_v32 = vpop.permute.xlu0 %3720 }
 0x496   :  { %4157 = vperm.xlu0 %5977, %v14650_v41   ;;  %3842 = vrot.lane.b32.xlu1 %v3529_v51, %s6305_s9  ;;  %v11374_v12 = vpop.permute.xlu1 %3778  ;;  %v11391_v41 = vmul.f32 %v6192_v42, %v3103_v10  ;;  %v6196_v16 = vpop.eup %6195  ;;  %v3107_v10 = vld [vmem:[%s13469_s3 + $0x358] sm:$0xff] }
 0x497   :  { %14651 = vst [vmem:[#allocation197_spill] sm:$0xff] %v11374_v12  ;;  %v14654_v12 = vld [vmem:[#allocation198_spill] sm:$0xff] }
 0x499   :  { %v11380_v34 = vpop.permute.xlu0 %3804 }
 0x49a   :  { %14652 = vst [vmem:[#allocation238_spill] sm:$0xff] %v11380_v34  ;;  %4167 = vperm.xlu0 %5977, %v14653_v28   ;;  %3846 = vrot.lane.b32.xlu1 %v3531_v14, %s6305_s9  ;;  %v11387_v51 = vpop.permute.xlu1 %3694  ;;  %v3535_v14 = vmul.f32 %v11391_v41, %v11272_v36  ;;  %v14657_v34 = vld [vmem:[#allocation326_spill] sm:$0xff] }
 0x49d   :  { %v11393_v27 = vpop.permute.xlu0 %3724 }
 0x49e   :  { %4177 = vperm.xlu0 %5977, %v14654_v12   ;;  %3850 = vrot.lane.b32.xlu1 %v3533_v59, %s6305_s9  ;;  %v11400_v28 = vpop.permute.xlu1 %3782  ;;  %v3537_v59 = vmul.f32 %v11404_v1, %v11291_v63 }
 0x49f   :  { %14655 = vst [vmem:[#allocation246_spill] sm:$0xff] %v11400_v28  ;;  %v11417_v28 = vmul.f32 %v6196_v16, %v3107_v10  ;;  %v14661_v16 = vld [vmem:[#allocation187_spill] sm:$0xff] }
 0x4a1   :  { %v11406_v42 = vpop.permute.xlu0 %3808 }
 0x4a2   :  { %14656 = vst [vmem:[#allocation233_spill] sm:$0xff] %v11406_v42  ;;  %4187 = vperm.xlu0 %5977, %v14657_v34   ;;  %3854 = vrot.lane.b32.xlu1 %v3535_v14, %s6305_s9  ;;  %v11413_v12 = vpop.permute.xlu1 %3698  ;;  %v3539_v34 = vmul.f32 %v11417_v28, %v11310_v39  ;;  %v14664_v39 = vld [vmem:[#allocation215_spill] sm:$0xff] }
 0x4a5   :  { %v11419_v36 = vpop.permute.xlu0 %3728 }
 0x4a6   :  { %4197 = vperm.xlu0 %5977, %v14658_v23   ;;  %3858 = vrot.lane.b32.xlu1 %v3537_v59, %s6305_s9  ;;  %v11423_v47 = vpop.permute.xlu1 %3786 }
 0x4a7   :  { %14659 = vst [vmem:[#allocation199_spill] sm:$0xff] %v11423_v47 }
 0x4a9   :  { %v11427_v42 = vpop.permute.xlu0 %3812 }
 0x4aa   :  { %14660 = vst [vmem:[#allocation243_spill] sm:$0xff] %v11427_v42  ;;  %4207 = vperm.xlu0 %5977, %v10629_v29   ;;  %3862 = vrot.lane.b32.xlu1 %v3539_v34, %s6305_s9  ;;  %v11431_v63 = vpop.permute.xlu1 %3702  ;;  %v14665_v34 = vld [vmem:[#allocation280_spill] sm:$0xff] }
 0x4ad   :  { %v11433_v14 = vpop.permute.xlu0 %3732 }
 0x4ae   :  { %4217 = vperm.xlu0 %5977, %v10690_v50   ;;  %4087 = vperm.xlu1 %5978, %v14661_v16   ;;  %v11437_v10 = vpop.permute.xlu1 %3790  ;;  %v14668_v16 = vld [vmem:[#allocation298_spill] sm:$0xff] }
 0x4af   :  { %14662 = vst [vmem:[#allocation134_spill] sm:$0xff] %v11437_v10 }
 0x4b1   :  { %v11439_v59 = vpop.permute.xlu0 %3816 }
 0x4b2   :  { %14663 = vst [vmem:[#allocation224_spill] sm:$0xff] %v11439_v59  ;;  %4227 = vperm.xlu0 %5977, %v10753_v45   ;;  %4092 = vperm.xlu1 %5978, %v14664_v39   ;;  %v11443_v23 = vpop.permute.xlu1 %3706  ;;  %v14669_v39 = vld [vmem:[#allocation323_spill] sm:$0xff] }
 0x4b5   :  { %v11445_v29 = vpop.permute.xlu0 %3736 }
 0x4b6   :  { %4237 = vperm.xlu0 %5977, %v10804_v7   ;;  %4102 = vperm.xlu1 %5978, %v14665_v34   ;;  %v11449_v47 = vpop.permute.xlu1 %3794  ;;  %v14672_v34 = vld [vmem:[#allocation344_spill] sm:$0xff] }
 0x4b7   :  { %14666 = vst [vmem:[#allocation338_spill] sm:$0xff] %v11449_v47 }
 0x4b9   :  { %v11451_v50 = vpop.permute.xlu0 %3820 }
 0x4ba   :  { %14667 = vst [vmem:[#allocation138_spill] sm:$0xff] %v11451_v50  ;;  %4247 = vperm.xlu0 %5977, %v10859_v44   ;;  %4112 = vperm.xlu1 %5978, %v14668_v16   ;;  %v11455_v10 = vpop.permute.xlu1 %3710  ;;  %v14673_v16 = vld [vmem:[#allocation237_spill] sm:$0xff] }
 0x4bd   :  { %v11457_v45 = vpop.permute.xlu0 %3740 }
 0x4be   :  { %4257 = vperm.xlu0 %5977, %v10918_v48   ;;  %4122 = vperm.xlu1 %5978, %v14669_v39   ;;  %v11461_v59 = vpop.permute.xlu1 %3798  ;;  %v14676_v39 = vld [vmem:[#allocation103_spill] sm:$0xff] }
 0x4bf   :  { %14670 = vst [vmem:[#allocation250_spill] sm:$0xff] %v11461_v59 }
 0x4c1   :  { %v11463_v7 = vpop.permute.xlu0 %3824 }
 0x4c2   :  { %14671 = vst [vmem:[#allocation267_spill] sm:$0xff] %v11463_v7  ;;  %4267 = vperm.xlu0 %5977, %v10979_v31   ;;  %4132 = vperm.xlu1 %5978, %v14672_v34   ;;  %v11467_v47 = vpop.permute.xlu1 %3714  ;;  %v14677_v34 = vld [vmem:[#allocation171_spill] sm:$0xff] }
 0x4c5   :  { %v11469_v44 = vpop.permute.xlu0 %3744 }
 0x4c6   :  { %4277 = vperm.xlu0 %5977, %v11036_v54   ;;  %4142 = vperm.xlu1 %5978, %v14673_v16   ;;  %v11473_v50 = vpop.permute.xlu1 %3802  ;;  %v14680_v16 = vld [vmem:[#allocation223_spill] sm:$0xff] }
 0x4c7   :  { %14674 = vst [vmem:[#allocation340_spill] sm:$0xff] %v11473_v50 }
 0x4c9   :  { %v11475_v48 = vpop.permute.xlu0 %3828 }
 0x4ca   :  { %14675 = vst [vmem:[#allocation116_spill] sm:$0xff] %v11475_v48  ;;  %4287 = vperm.xlu0 %5977, %v11086_v61   ;;  %4152 = vperm.xlu1 %5978, %v14676_v39   ;;  %v11479_v59 = vpop.permute.xlu1 %3718  ;;  %v14681_v39 = vld [vmem:[#allocation121_spill] sm:$0xff] }
 0x4cd   :  { %v11481_v31 = vpop.permute.xlu0 %3748 }
 0x4ce   :  { %4297 = vperm.xlu0 %5977, %v11135_v43   ;;  %4162 = vperm.xlu1 %5978, %v14677_v34   ;;  %v11485_v7 = vpop.permute.xlu1 %3806  ;;  %v14684_v34 = vld [vmem:[#allocation213_spill] sm:$0xff] }
 0x4cf   :  { %14678 = vst [vmem:[#allocation234_spill] sm:$0xff] %v11485_v7 }
 0x4d1   :  { %v11487_v54 = vpop.permute.xlu0 %3832 }
 0x4d2   :  { %14679 = vst [vmem:[#allocation129_spill] sm:$0xff] %v11487_v54  ;;  %4307 = vperm.xlu0 %5977, %v11183_v21   ;;  %4172 = vperm.xlu1 %5978, %v14680_v16   ;;  %v11491_v50 = vpop.permute.xlu1 %3722  ;;  %v14686_v16 = vld [vmem:[#allocation264_spill] sm:$0xff] }
 0x4d5   :  { %v11493_v61 = vpop.permute.xlu0 %3752 }
 0x4d6   :  { %4317 = vperm.xlu0 %5977, %v11232_v6   ;;  %4182 = vperm.xlu1 %5978, %v14681_v39   ;;  %v11497_v48 = vpop.permute.xlu1 %3810  ;;  %v14689_v39 = vld [vmem:[#allocation196_spill] sm:$0xff] }
 0x4d7   :  { %14682 = vst [vmem:[#allocation128_spill] sm:$0xff] %v11497_v48 }
 0x4d9   :  { %v11499_v43 = vpop.permute.xlu0 %3836 }
 0x4da   :  { %14683 = vst [vmem:[#allocation245_spill] sm:$0xff] %v11499_v43  ;;  %4327 = vperm.xlu0 %5977, %v11267_v24   ;;  %4192 = vperm.xlu1 %5978, %v14684_v34   ;;  %v11503_v7 = vpop.permute.xlu1 %3726  ;;  %v14691_v34 = vld [vmem:[#allocation236_spill] sm:$0xff]  ;;  %v14692_v43 = vld [vmem:[#allocation170_spill] sm:$0xff] }
 0x4dd   :  { %v11505_v21 = vpop.permute.xlu0 %3840 }
 0x4de   :  { %14685 = vst [vmem:[#allocation282_spill] sm:$0xff] %v11505_v21  ;;  %4337 = vperm.xlu0 %5977, %v11305_v3   ;;  %4202 = vperm.xlu1 %5978, %v14686_v16   ;;  %v11509_v54 = vpop.permute.xlu1 %3814  ;;  %v14695_v16 = vld [vmem:[#allocation126_spill] sm:$0xff] }
 0x4df   :  { %14687 = vst [vmem:[#allocation348_spill] sm:$0xff] %v11509_v54  ;;  %v14696_v54 = vld [vmem:[#allocation239_spill] sm:$0xff] }
 0x4e1   :  { %v11511_v6 = vpop.permute.xlu0 %3844 }
 0x4e2   :  { %14688 = vst [vmem:[#allocation241_spill] sm:$0xff] %v11511_v6  ;;  %4347 = vperm.xlu0 %5977, %v11339_v8   ;;  %4212 = vperm.xlu1 %5978, %v14689_v39   ;;  %v11515_v48 = vpop.permute.xlu1 %3730  ;;  %v14697_v8 = vld [vmem:[#allocation122_spill] sm:$0xff] }
 0x4e3   :  { %v14698_v39 = vld [vmem:[#allocation278_spill] sm:$0xff] }
 0x4e5   :  { %v11517_v24 = vpop.permute.xlu0 %3848 }
 0x4e6   :  { %14690 = vst [vmem:[#allocation353_spill] sm:$0xff] %v11517_v24  ;;  %4357 = vperm.xlu0 %5977, %v14691_v34   ;;  %4222 = vperm.xlu1 %5978, %v14692_v43   ;;  %v11521_v21 = vpop.permute.xlu1 %3818  ;;  %v14701_v34 = vld [vmem:[#allocation240_spill] sm:$0xff]  ;;  %v14702_v43 = vld [vmem:[#allocation259_spill] sm:$0xff] }
 0x4e7   :  { %14693 = vst [vmem:[#allocation175_spill] sm:$0xff] %v11521_v21 }
 0x4e9   :  { %v11523_v3 = vpop.permute.xlu0 %3852 }
 0x4ea   :  { %14694 = vst [vmem:[#allocation219_spill] sm:$0xff] %v11523_v3  ;;  %4367 = vperm.xlu0 %5977, %v14695_v16   ;;  %4232 = vperm.xlu1 %5978, %v14696_v54   ;;  %v11527_v6 = vpop.permute.xlu1 %3734  ;;  %v14705_v16 = vld [vmem:[#allocation242_spill] sm:$0xff]  ;;  %v14706_v54 = vld [vmem:[#allocation209_spill] sm:$0xff] }
 0x4ed   :  { %v11533_v24 = vpop.permute.xlu0 %3856 }
 0x4ee   :  { %4377 = vperm.xlu0 %5977, %v14697_v8   ;;  %4242 = vperm.xlu1 %5978, %v14698_v39   ;;  %v11531_v42 = vpop.permute.xlu1 %3822  ;;  %14700 = vst [vmem:[#allocation257_spill] sm:$0xff] %v11533_v24  ;;  %v14709_v39 = vld [vmem:[#allocation232_spill] sm:$0xff] }
 0x4ef   :  { %14699 = vst [vmem:[#allocation174_spill] sm:$0xff] %v11531_v42  ;;  %v14710_v42 = vld [vmem:[#allocation218_spill] sm:$0xff] }
 0x4f1   :  { %v11539_v3 = vpop.permute.xlu0 %3860 }
 0x4f2   :  { %4387 = vperm.xlu0 %5977, %v14701_v34   ;;  %4252 = vperm.xlu1 %5978, %v14702_v43   ;;  %v11537_v21 = vpop.permute.xlu1 %3738  ;;  %14704 = vst [vmem:[#allocation270_spill] sm:$0xff] %v11539_v3  ;;  %v14713_v43 = vld [vmem:[#allocation109_spill] sm:$0xff] }
 0x4f3   :  { %14703 = vst [vmem:[#allocation249_spill] sm:$0xff] %v11537_v21  ;;  %v14714_v21 = vld [vmem:[#allocation300_spill] sm:$0xff] }
 0x4f6   :  { %4397 = vperm.xlu0 %5977, %v14705_v16   ;;  %4262 = vperm.xlu1 %5978, %v14706_v54   ;;  %v11543_v37 = vpop.permute.xlu1 %3826  ;;  %v14717_v54 = vld [vmem:[#allocation155_spill] sm:$0xff] }
 0x4f7   :  { %14707 = vst [vmem:[#allocation273_spill] sm:$0xff] %v11543_v37  ;;  %v14718_v37 = vld [vmem:[#allocation296_spill] sm:$0xff] }
 0x4f9   :  { %v11545_v8 = vpop.permute.xlu0 %4082 }
 0x4fa   :  { %14708 = vst [vmem:[#allocation279_spill] sm:$0xff] %v11545_v8  ;;  %4407 = vperm.xlu0 %5977, %v14709_v39   ;;  %4272 = vperm.xlu1 %5978, %v14710_v42   ;;  %v11549_v24 = vpop.permute.xlu1 %3742  ;;  %v14721_v42 = vld [vmem:[#allocation220_spill] sm:$0xff] }
 0x4fb   :  { %14711 = vst [vmem:[#allocation172_spill] sm:$0xff] %v11549_v24  ;;  %v14722_v24 = vld [vmem:[#allocation308_spill] sm:$0xff] }
 0x4fd   :  { %v11551_v34 = vpop.permute.xlu0 %4097 }
 0x4fe   :  { %14712 = vst [vmem:[#allocation188_spill] sm:$0xff] %v11551_v34  ;;  %4417 = vperm.xlu0 %5977, %v14713_v43   ;;  %4282 = vperm.xlu1 %5978, %v14714_v21   ;;  %v11555_v3 = vpop.permute.xlu1 %3830  ;;  %v14725_v21 = vld [vmem:[#allocation294_spill] sm:$0xff] }
 0x4ff   :  { %14715 = vst [vmem:[#allocation295_spill] sm:$0xff] %v11555_v3  ;;  %v14726_v3 = vld [vmem:[#allocation316_spill] sm:$0xff] }
 0x501   :  { %v11557_v16 = vpop.permute.xlu0 %4107 }
 0x502   :  { %14716 = vst [vmem:[#allocation318_spill] sm:$0xff] %v11557_v16  ;;  %4427 = vperm.xlu0 %5977, %v14717_v54   ;;  %4292 = vperm.xlu1 %5978, %v14718_v37   ;;  %v11561_v8 = vpop.permute.xlu1 %3746  ;;  %v14728_v37 = vld [vmem:[#allocation290_spill] sm:$0xff] }
 0x503   :  { %14719 = vst [vmem:[#allocation342_spill] sm:$0xff] %v11561_v8  ;;  %v14729_v8 = vld [vmem:[#allocation301_spill] sm:$0xff] }
 0x505   :  { %v11563_v39 = vpop.permute.xlu0 %4117 }
 0x506   :  { %14720 = vst [vmem:[#allocation176_spill] sm:$0xff] %v11563_v39  ;;  %4437 = vperm.xlu0 %5977, %v14721_v42   ;;  %4302 = vperm.xlu1 %5978, %v14722_v24   ;;  %v11567_v34 = vpop.permute.xlu1 %3834  ;;  %v14732_v24 = vld [vmem:[#allocation271_spill] sm:$0xff] }
 0x507   :  { %14723 = vst [vmem:[#allocation253_spill] sm:$0xff] %v11567_v34 }
 0x509   :  { %v11569_v43 = vpop.permute.xlu0 %4127 }
 0x50a   :  { %14724 = vst [vmem:[#allocation216_spill] sm:$0xff] %v11569_v43  ;;  %4447 = vperm.xlu0 %5977, %v14725_v21   ;;  %4312 = vperm.xlu1 %5978, %v14726_v3   ;;  %v11573_v16 = vpop.permute.xlu1 %3750  ;;  %v14734_v3 = vld [vmem:[#allocation299_spill] sm:$0xff] }
 0x50d   :  { %v11575_v54 = vpop.permute.xlu0 %4137 }
 0x50e   :  { %14727 = vst [vmem:[#allocation192_spill] sm:$0xff] %v11575_v54  ;;  %4457 = vperm.xlu0 %5977, %v14728_v37   ;;  %4322 = vperm.xlu1 %5978, %v14729_v8   ;;  %v11579_v39 = vpop.permute.xlu1 %3838  ;;  %v14737_v8 = vld [vmem:[#allocation217_spill] sm:$0xff] }
 0x50f   :  { %14730 = vst [vmem:[#allocation198_spill] sm:$0xff] %v11579_v39 }
 0x511   :  { %v11581_v42 = vpop.permute.xlu0 %4147 }
 0x512   :  { %14731 = vst [vmem:[#allocation326_spill] sm:$0xff] %v11581_v42  ;;  %4467 = vperm.xlu0 %5977, %v14732_v24   ;;  %4332 = vperm.xlu1 %5978, %v10977_v19   ;;  %v11585_v34 = vpop.permute.xlu1 %3754  ;;  %v14740_v19 = vld [vmem:[#allocation177_spill] sm:$0xff] }
 0x515   :  { %v11587_v21 = vpop.permute.xlu0 %4157 }
 0x516   :  { %14733 = vst [vmem:[#allocation261_spill] sm:$0xff] %v11587_v21  ;;  %4477 = vperm.xlu0 %5977, %v14734_v3   ;;  %4342 = vperm.xlu1 %5978, %v11020_v53   ;;  %v11591_v54 = vpop.permute.xlu1 %3842  ;;  %v14743_v53 = vld [vmem:[#allocation203_spill] sm:$0xff] }
 0x517   :  { %14735 = vst [vmem:[#allocation187_spill] sm:$0xff] %v11591_v54 }
 0x519   :  { %v11593_v37 = vpop.permute.xlu0 %4167 }
 0x51a   :  { %14736 = vst [vmem:[#allocation215_spill] sm:$0xff] %v11593_v37  ;;  %4487 = vperm.xlu0 %5977, %v10960_v49   ;;  %4352 = vperm.xlu1 %5978, %v14737_v8   ;;  %v11597_v39 = vpop.permute.xlu1 %3846  ;;  %v14746_v8 = vld [vmem:[#allocation110_spill] sm:$0xff] }
 0x51b   :  { %14738 = vst [vmem:[#allocation280_spill] sm:$0xff] %v11597_v39 }
 0x51d   :  { %v11599_v24 = vpop.permute.xlu0 %4177 }
 0x51e   :  { %14739 = vst [vmem:[#allocation298_spill] sm:$0xff] %v11599_v24  ;;  %4497 = vperm.xlu0 %5977, %v11046_v2   ;;  %4362 = vperm.xlu1 %5978, %v14740_v19   ;;  %v11603_v21 = vpop.permute.xlu1 %3850  ;;  %v14749_v19 = vld [vmem:[#allocation193_spill] sm:$0xff] }
 0x51f   :  { %14741 = vst [vmem:[#allocation323_spill] sm:$0xff] %v11603_v21 }
 0x521   :  { %v11605_v3 = vpop.permute.xlu0 %4187 }
 0x522   :  { %14742 = vst [vmem:[#allocation344_spill] sm:$0xff] %v11605_v3  ;;  %4507 = vperm.xlu0 %5977, %v11100_v0   ;;  %4372 = vperm.xlu1 %5978, %v14743_v53   ;;  %v11609_v54 = vpop.permute.xlu1 %3854  ;;  %v14752_v53 = vld [vmem:[#allocation145_spill] sm:$0xff]  ;;  %v14774_v3 = vld [vmem:[#allocation303_spill] sm:$0xff] }
 0x523   :  { %14744 = vst [vmem:[#allocation237_spill] sm:$0xff] %v11609_v54 }
 0x525   :  { %v11611_v49 = vpop.permute.xlu0 %4197 }
 0x526   :  { %14745 = vst [vmem:[#allocation103_spill] sm:$0xff] %v11611_v49  ;;  %4517 = vperm.xlu0 %5977, %v11157_v60   ;;  %4382 = vperm.xlu1 %5978, %v14746_v8   ;;  %v11615_v39 = vpop.permute.xlu1 %3858  ;;  %v14754_v8 = vld [vmem:[#allocation266_spill] sm:$0xff] }
 0x527   :  { %14747 = vst [vmem:[#allocation171_spill] sm:$0xff] %v11615_v39 }
 0x529   :  { %v11617_v2 = vpop.permute.xlu0 %4207 }
 0x52a   :  { %14748 = vst [vmem:[#allocation223_spill] sm:$0xff] %v11617_v2  ;;  %4527 = vperm.xlu0 %5977, %v11208_v4   ;;  %4392 = vperm.xlu1 %5978, %v14749_v19   ;;  %v11621_v21 = vpop.permute.xlu1 %3862  ;;  %v14756_v19 = vld [vmem:[#allocation169_spill] sm:$0xff] }
 0x52b   :  { %14750 = vst [vmem:[#allocation121_spill] sm:$0xff] %v11621_v21 }
 0x52d   :  { %v11623_v0 = vpop.permute.xlu0 %4217 }
 0x52e   :  { %14751 = vst [vmem:[#allocation213_spill] sm:$0xff] %v11623_v0  ;;  %4537 = vperm.xlu0 %5977, %v11250_v17   ;;  %4402 = vperm.xlu1 %5978, %v14752_v53   ;;  %v11627_v54 = vpop.permute.xlu1 %4087  ;;  %v14758_v53 = vld [vmem:[#allocation235_spill] sm:$0xff] }
 0x531   :  { %v11629_v60 = vpop.permute.xlu0 %4227 }
 0x532   :  { %14753 = vst [vmem:[#allocation264_spill] sm:$0xff] %v11629_v60  ;;  %4547 = vperm.xlu0 %5977, %v11286_v30   ;;  %4412 = vperm.xlu1 %5978, %v14754_v8   ;;  %v11633_v39 = vpop.permute.xlu1 %4092  ;;  %v14760_v8 = vld [vmem:[#allocation181_spill] sm:$0xff] }
 0x535   :  { %v11635_v4 = vpop.permute.xlu0 %4237 }
 0x536   :  { %14755 = vst [vmem:[#allocation196_spill] sm:$0xff] %v11635_v4  ;;  %4557 = vperm.xlu0 %5977, %v11324_v15   ;;  %4422 = vperm.xlu1 %5978, %v14756_v19   ;;  %v11639_v21 = vpop.permute.xlu1 %4102  ;;  %v14762_v19 = vld [vmem:[#allocation281_spill] sm:$0xff] }
 0x539   :  { %v11641_v17 = vpop.permute.xlu0 %4247 }
 0x53a   :  { %14757 = vst [vmem:[#allocation236_spill] sm:$0xff] %v11641_v17  ;;  %4567 = vperm.xlu0 %5977, %v11352_v18   ;;  %4432 = vperm.xlu1 %5978, %v14758_v53   ;;  %v11645_v60 = vpop.permute.xlu1 %4112  ;;  %v14764_v53 = vld [vmem:[#allocation330_spill] sm:$0xff] }
 0x53d   :  { %v11647_v30 = vpop.permute.xlu0 %4257 }
 0x53e   :  { %14759 = vst [vmem:[#allocation170_spill] sm:$0xff] %v11647_v30  ;;  %4577 = vperm.xlu0 %5977, %v11365_v55   ;;  %4442 = vperm.xlu1 %5978, %v14760_v8   ;;  %v11651_v4 = vpop.permute.xlu1 %4122  ;;  %v14766_v8 = vld [vmem:[#allocation194_spill] sm:$0xff] }
 0x541   :  { %v11653_v15 = vpop.permute.xlu0 %4267 }
 0x542   :  { %14761 = vst [vmem:[#allocation126_spill] sm:$0xff] %v11653_v15  ;;  %4587 = vperm.xlu0 %5977, %v11378_v38   ;;  %4452 = vperm.xlu1 %5978, %v14762_v19   ;;  %v11657_v17 = vpop.permute.xlu1 %4132  ;;  %v14768_v19 = vld [vmem:[#allocation285_spill] sm:$0xff] }
 0x545   :  { %v11659_v18 = vpop.permute.xlu0 %4277 }
 0x546   :  { %14763 = vst [vmem:[#allocation239_spill] sm:$0xff] %v11659_v18  ;;  %4597 = vperm.xlu0 %5977, %v11391_v41   ;;  %4462 = vperm.xlu1 %5978, %v14764_v53   ;;  %v11663_v30 = vpop.permute.xlu1 %4142  ;;  %v6197_v41 = vld [vmem:[%s13469_s3 + $0x8] sm:$0xff]  ;;  %v14769_v53 = vld [vmem:[#allocation204_spill] sm:$0xff] }
 0x549   :  { %v11665_v55 = vpop.permute.xlu0 %4287 }
 0x54a   :  { %14765 = vst [vmem:[#allocation122_spill] sm:$0xff] %v11665_v55  ;;  %4607 = vperm.xlu0 %5977, %v11404_v1   ;;  %4472 = vperm.xlu1 %5978, %v14766_v8   ;;  %v11669_v15 = vpop.permute.xlu1 %4152  ;;  %v3973_v55 = vsub.f32 %v6197_v41, %v14769_v53  ;;  %v13857_v1 = vmov 1   ;;  %v14771_v8 = vld [vmem:[#allocation293_spill] sm:$0xff]  ;;  %v6199_v53 = vld [vmem:[%s13469_s3 + $0x30] sm:$0xff] }
 0x54d   :  { %v11671_v38 = vpop.permute.xlu0 %4297 }
 0x54e   :  { %14767 = vst [vmem:[#allocation278_spill] sm:$0xff] %v11671_v38  ;;  %4617 = vperm.xlu0 %5977, %v11417_v28   ;;  %4482 = vperm.xlu1 %5978, %v14768_v19   ;;  %v11675_v18 = vpop.permute.xlu1 %4162  ;;  %v6198_v28 = vld [vmem:[%s13469_s3 + $0x20] sm:$0xff] }
 0x54f   :  { %v14772_v19 = vld [vmem:[#allocation114_spill] sm:$0xff] }
 0x550   :  { %v3976_v2 = vsub.f32 %v6198_v28, %v14772_v19  ;;  %v14778_v28 = vld [vmem:[#allocation212_spill] sm:$0xff] }
 0x551   :  { %v11681_v0 = vpop.permute.xlu0 %4307 }
 0x552   :  { %14770 = vst [vmem:[#allocation240_spill] sm:$0xff] %v11681_v0  ;;  %5980 = vset.pattern.permute.xlu0 %v13857_v1  ;;  %4492 = vperm.xlu1 %5978, %v14771_v8   ;;  %v11685_v38 = vpop.permute.xlu1 %4172  ;;  %v14775_v8 = vld [vmem:[#allocation152_spill] sm:$0xff] }
 0x553   :  { %4843 = vperm.xlu0 %5980, %v3973_v55   ;;  %v3978_v1 = vsub.f32 %v6199_v53, %v14775_v8  ;;  %v14777_v0 = vld [vmem:[#allocation248_spill] sm:$0xff]  ;;  %v14781_v53 = vld [vmem:[#allocation214_spill] sm:$0xff] }
 0x555   :  { %v11691_v49 = vpop.permute.xlu0 %4317 }
 0x556   :  { %14773 = vst [vmem:[#allocation259_spill] sm:$0xff] %v11691_v49  ;;  %4502 = vperm.xlu1 %5978, %v14774_v3   ;;  %v11694_v41 = vpop.permute.xlu1 %4182  ;;  %v6200_v3 = vld [vmem:[%s13469_s3 + $0x40] sm:$0xff]  ;;  %v14780_v49 = vld [vmem:[#allocation305_spill] sm:$0xff] }
 0x557   :  { %4858 = vperm.xlu0 %5980, %v3976_v2   ;;  %v3980_v19 = vsub.f32 %v6200_v3, %v14778_v28  ;;  %v14784_v3 = vld [vmem:[#allocation302_spill] sm:$0xff] }
 0x559   :  { %v11700_v55 = vpop.permute.xlu0 %4327 }
 0x55a   :  { %14776 = vst [vmem:[#allocation242_spill] sm:$0xff] %v11700_v55  ;;  %4512 = vperm.xlu1 %5978, %v14777_v0   ;;  %v11703_v24 = vpop.permute.xlu1 %4192  ;;  %v6201_v0 = vld [vmem:[%s13469_s3 + $0x50] sm:$0xff]  ;;  %v14783_v55 = vld [vmem:[#allocation329_spill] sm:$0xff] }
 0x55b   :  { %4868 = vperm.xlu0 %5980, %v3978_v1   ;;  %v3982_v8 = vsub.f32 %v6201_v0, %v14781_v53  ;;  %v14787_v0 = vld [vmem:[#allocation105_spill] sm:$0xff] }
 0x55d   :  { %v11709_v2 = vpop.permute.xlu0 %4337 }
 0x55e   :  { %14779 = vst [vmem:[#allocation209_spill] sm:$0xff] %v11709_v2  ;;  %4522 = vperm.xlu1 %5978, %v14780_v49   ;;  %v11712_v37 = vpop.permute.xlu1 %4202  ;;  %v6202_v49 = vld [vmem:[%s13469_s3 + $0x60] sm:$0xff]  ;;  %v14786_v2 = vld [vmem:[#allocation324_spill] sm:$0xff] }
 0x55f   :  { %4878 = vperm.xlu0 %5980, %v3980_v19   ;;  %v3984_v28 = vsub.f32 %v6202_v49, %v14784_v3  ;;  %v14789_v49 = vld [vmem:[#allocation325_spill] sm:$0xff] }
 0x561   :  { %v11718_v1 = vpop.permute.xlu0 %4347 }
 0x562   :  { %14782 = vst [vmem:[#allocation232_spill] sm:$0xff] %v11718_v1  ;;  %4532 = vperm.xlu1 %5978, %v14783_v55   ;;  %v11721_v42 = vpop.permute.xlu1 %4212  ;;  %v6203_v55 = vld [vmem:[%s13469_s3 + $0x70] sm:$0xff] }
 0x563   :  { %4888 = vperm.xlu0 %5980, %v3982_v8   ;;  %v3986_v53 = vsub.f32 %v6203_v55, %v14787_v0  ;;  %v14791_v55 = vld [vmem:[#allocation337_spill] sm:$0xff] }
 0x565   :  { %v11727_v19 = vpop.permute.xlu0 %4357 }
 0x566   :  { %14785 = vst [vmem:[#allocation218_spill] sm:$0xff] %v11727_v19  ;;  %4542 = vperm.xlu1 %5978, %v14786_v2   ;;  %v11730_v43 = vpop.permute.xlu1 %4222  ;;  %v6204_v2 = vld [vmem:[%s13469_s3 + $0x80] sm:$0xff] }
 0x567   :  { %4898 = vperm.xlu0 %5980, %v3984_v28   ;;  %v3988_v3 = vsub.f32 %v6204_v2, %v14789_v49  ;;  %v14793_v2 = vld [vmem:[#allocation304_spill] sm:$0xff] }
 0x569   :  { %v11736_v8 = vpop.permute.xlu0 %4367 }
 0x56a   :  { %14788 = vst [vmem:[#allocation109_spill] sm:$0xff] %v11736_v8  ;;  %4552 = vperm.xlu1 %5978, %v11058_v9   ;;  %v11739_v1 = vpop.permute.xlu1 %4232  ;;  %v6205_v9 = vld [vmem:[%s13469_s3 + $0x90] sm:$0xff] }
 0x56b   :  { %4908 = vperm.xlu0 %5980, %v3986_v53   ;;  %v3990_v0 = vsub.f32 %v6205_v9, %v14791_v55 }
 0x56d   :  { %v11745_v28 = vpop.permute.xlu0 %4377 }
 0x56e   :  { %14790 = vst [vmem:[#allocation300_spill] sm:$0xff] %v11745_v28  ;;  %4562 = vperm.xlu1 %5978, %v11084_v40   ;;  %v11748_v19 = vpop.permute.xlu1 %4242  ;;  %v6206_v40 = vld [vmem:[%s13469_s3 + $0xa0] sm:$0xff] }
 0x56f   :  { %4918 = vperm.xlu0 %5980, %v3988_v3   ;;  %v3992_v49 = vsub.f32 %v6206_v40, %v14793_v2  ;;  %v14796_v40 = vld [vmem:[#allocation345_spill] sm:$0xff] }
 0x571   :  { %v11754_v53 = vpop.permute.xlu0 %4387 }
 0x572   :  { %14792 = vst [vmem:[#allocation155_spill] sm:$0xff] %v11754_v53  ;;  %4572 = vperm.xlu1 %5978, %v11110_v58   ;;  %v11757_v8 = vpop.permute.xlu1 %4252  ;;  %v6207_v58 = vld [vmem:[%s13469_s3 + $0xb0] sm:$0xff] }
 0x573   :  { %4928 = vperm.xlu0 %5980, %v3990_v0   ;;  %v3994_v9 = vsub.f32 %v6207_v58, %v11091_v25  ;;  %v6209_v25 = vld [vmem:[%s13469_s3 + $0xd0] sm:$0xff] }
 0x575   :  { %v11763_v3 = vpop.permute.xlu0 %4397 }
 0x576   :  { %14794 = vst [vmem:[#allocation296_spill] sm:$0xff] %v11763_v3  ;;  %4582 = vperm.xlu1 %5978, %v11133_v13   ;;  %v11766_v28 = vpop.permute.xlu1 %4262  ;;  %v6208_v13 = vld [vmem:[%s13469_s3 + $0xc0] sm:$0xff] }
 0x577   :  { %4938 = vperm.xlu0 %5980, %v3992_v49   ;;  %v3996_v2 = vsub.f32 %v6208_v13, %v14796_v40  ;;  %v14800_v13 = vld [vmem:[#allocation352_spill] sm:$0xff] }
 0x579   :  { %v11772_v55 = vpop.permute.xlu0 %4407 }
 0x57a   :  { %14795 = vst [vmem:[#allocation220_spill] sm:$0xff] %v11772_v55  ;;  %4592 = vperm.xlu1 %5978, %v11155_v57   ;;  %v11775_v0 = vpop.permute.xlu1 %4272  ;;  %v14798_v57 = vld [vmem:[#allocation322_spill] sm:$0xff] }
 0x57b   :  { %4948 = vperm.xlu0 %5980, %v3994_v9   ;;  %v3998_v58 = vsub.f32 %v6209_v25, %v14798_v57  ;;  %v14802_v57 = vmov 1  }
 0x57d   :  { %v11781_v49 = vpop.permute.xlu0 %4417 }
 0x57e   :  { %14797 = vst [vmem:[#allocation308_spill] sm:$0xff] %v11781_v49  ;;  %4602 = vperm.xlu1 %5978, %v11181_v26   ;;  %v11784_v3 = vpop.permute.xlu1 %4282  ;;  %v6210_v26 = vld [vmem:[%s13469_s3] sm:$0xff] }
 0x57f   :  { %4958 = vperm.xlu0 %5980, %v3996_v2   ;;  %v3972_v40 = vsub.f32 %v6210_v26, %v14800_v13  ;;  %v6211_v2 = vld [vmem:[%s13469_s3 + $0xe0] sm:$0xff]  ;;  %v6213_v13 = vld [vmem:[%s13469_s3 + $0xf0] sm:$0xff] }
 0x580   :  { %v4000_v49 = vsub.f32 %v6211_v2, %v11236_v52  ;;  %v4002_v52 = vsub.f32 %v6213_v13, %v11274_v20  ;;  %v14807_v13 = vld [vmem:[#allocation140_spill] sm:$0xff] }
 0x581   :  { %v11790_v9 = vpop.permute.xlu0 %4427 }
 0x582   :  { %14799 = vst [vmem:[#allocation294_spill] sm:$0xff] %v11790_v9  ;;  %4612 = vperm.xlu1 %5978, %v11206_v56   ;;  %v11793_v55 = vpop.permute.xlu1 %4292  ;;  %v14803_v9 = vld [vmem:[#allocation247_spill] sm:$0xff] }
 0x583   :  { %4968 = vperm.xlu0 %5980, %v3998_v58   ;;  %v6212_v58 = vld [vmem:[%s13469_s3 + $0x10] sm:$0xff] }
 0x584   :  { %v3974_v26 = vsub.f32 %v6212_v58, %v14803_v9  ;;  %v6215_v9 = vld [vmem:[%s13469_s3 + $0x100] sm:$0xff] }
 0x585   :  { %v11803_v25 = vpop.permute.xlu0 %4437  ;;  %v4004_v58 = vsub.f32 %v6215_v9, %v11312_v35  ;;  %v14809_v9 = vld [vmem:[#allocation297_spill] sm:$0xff] }
 0x586   :  { %14801 = vst [vmem:[#allocation316_spill] sm:$0xff] %v11803_v25  ;;  %5979 = vset.pattern.permute.xlu1 %v14802_v57  ;;  %v11806_v56 = vpop.permute.xlu1 %4302 }
 0x587   :  { %4978 = vperm.xlu0 %5980, %v4000_v49   ;;  %4838 = vperm.xlu1 %5979, %v3972_v40   ;;  %v6214_v49 = vld [vmem:[%s13469_s3 + $0x18] sm:$0xff]  ;;  %v14805_v40 = vld [vmem:[#allocation252_spill] sm:$0xff] }
 0x588   :  { %v3975_v57 = vsub.f32 %v6214_v49, %v14805_v40  ;;  %v6217_v49 = vld [vmem:[%s13469_s3 + $0x110] sm:$0xff] }
 0x589   :  { %v11816_v2 = vpop.permute.xlu0 %4447  ;;  %v4006_v40 = vsub.f32 %v6217_v49, %v11341_v33  ;;  %v14811_v49 = vld [vmem:[#allocation321_spill] sm:$0xff] }
 0x58a   :  { %14804 = vst [vmem:[#allocation290_spill] sm:$0xff] %v11816_v2  ;;  %v11818_v25 = vpop.permute.xlu1 %4312 }
 0x58b   :  { %4988 = vperm.xlu0 %5980, %v4002_v52   ;;  %4848 = vperm.xlu1 %5979, %v3974_v26   ;;  %v6216_v26 = vld [vmem:[%s13469_s3 + $0x28] sm:$0xff] }
 0x58c   :  { %v3977_v52 = vsub.f32 %v6216_v26, %v14807_v13  ;;  %v6219_v26 = vld [vmem:[%s13469_s3 + $0x120] sm:$0xff] }
 0x58d   :  { %v11828_v53 = vpop.permute.xlu0 %4457  ;;  %v4008_v13 = vsub.f32 %v6219_v26, %v11367_v32  ;;  %v14813_v26 = vld [vmem:[#allocation311_spill] sm:$0xff] }
 0x58e   :  { %14806 = vst [vmem:[#allocation301_spill] sm:$0xff] %v11828_v53  ;;  %v11830_v20 = vpop.permute.xlu1 %4322 }
 0x58f   :  { %4998 = vperm.xlu0 %5980, %v4004_v58   ;;  %4853 = vperm.xlu1 %5979, %v3975_v57   ;;  %v6218_v57 = vld [vmem:[%s13469_s3 + $0x38] sm:$0xff] }
 0x590   :  { %v3979_v58 = vsub.f32 %v6218_v57, %v14809_v9  ;;  %v6221_v57 = vld [vmem:[%s13469_s3 + $0x130] sm:$0xff] }
 0x591   :  { %v11840_v2 = vpop.permute.xlu0 %4467  ;;  %v4010_v9 = vsub.f32 %v6221_v57, %v11393_v27  ;;  %v14814_v57 = vld [vmem:[#allocation350_spill] sm:$0xff] }
 0x592   :  { %14808 = vst [vmem:[#allocation271_spill] sm:$0xff] %v11840_v2  ;;  %v11842_v35 = vpop.permute.xlu1 %4332 }
 0x593   :  { %5008 = vperm.xlu0 %5980, %v4006_v40   ;;  %4863 = vperm.xlu1 %5979, %v3977_v52   ;;  %v6220_v52 = vld [vmem:[%s13469_s3 + $0x48] sm:$0xff] }
 0x594   :  { %v3981_v40 = vsub.f32 %v6220_v52, %v14811_v49  ;;  %v6223_v52 = vld [vmem:[%s13469_s3 + $0x140] sm:$0xff] }
 0x595   :  { %v11852_v53 = vpop.permute.xlu0 %4477  ;;  %v4012_v49 = vsub.f32 %v6223_v52, %v11419_v36 }
 0x596   :  { %14810 = vst [vmem:[#allocation299_spill] sm:$0xff] %v11852_v53  ;;  %v11854_v33 = vpop.permute.xlu1 %4342 }
 0x597   :  { %5018 = vperm.xlu0 %5980, %v4008_v13   ;;  %4873 = vperm.xlu1 %5979, %v3979_v58   ;;  %v6222_v58 = vld [vmem:[%s13469_s3 + $0x58] sm:$0xff] }
 0x598   :  { %v3983_v13 = vsub.f32 %v6222_v58, %v14813_v26  ;;  %v6225_v58 = vld [vmem:[%s13469_s3 + $0x150] sm:$0xff] }
 0x599   :  { %v11864_v2 = vpop.permute.xlu0 %4487  ;;  %v4014_v26 = vsub.f32 %v6225_v58, %v11433_v14 }
 0x59a   :  { %14812 = vst [vmem:[#allocation217_spill] sm:$0xff] %v11864_v2  ;;  %v11866_v32 = vpop.permute.xlu1 %4352 }
 0x59b   :  { %5028 = vperm.xlu0 %5980, %v4010_v9   ;;  %4883 = vperm.xlu1 %5979, %v3981_v40   ;;  %v6224_v40 = vld [vmem:[%s13469_s3 + $0x68] sm:$0xff] }
 0x59c   :  { %v3985_v9 = vsub.f32 %v6224_v40, %v14814_v57 }
 0x59d   :  { %v11876_v53 = vpop.permute.xlu0 %4497 }
 0x59e   :  { %v11878_v27 = vpop.permute.xlu1 %4362 }
 0x59f   :  { %5038 = vperm.xlu0 %5980, %v4012_v49   ;;  %4893 = vperm.xlu1 %5979, %v3983_v13   ;;  %v6226_v13 = vld [vmem:[%s13469_s3 + $0x78] sm:$0xff]  ;;  %v6227_v49 = vld [vmem:[%s13469_s3 + $0x160] sm:$0xff] }
 0x5a0   :  { %v3987_v52 = vsub.f32 %v6226_v13, %v11262_v11  ;;  %v4016_v40 = vsub.f32 %v6227_v49, %v11445_v29  ;;  %v6229_v11 = vld [vmem:[%s13469_s3 + $0x170] sm:$0xff] }
 0x5a1   :  { %v11888_v2 = vpop.permute.xlu0 %4507 }
 0x5a2   :  { %14815 = vst [vmem:[#allocation177_spill] sm:$0xff] %v11888_v2  ;;  %v11890_v36 = vpop.permute.xlu1 %4372 }
 0x5a3   :  { %5048 = vperm.xlu0 %5980, %v4014_v26   ;;  %4903 = vperm.xlu1 %5979, %v3985_v9   ;;  %v6228_v9 = vld [vmem:[%s13469_s3 + $0x88] sm:$0xff]  ;;  %v4018_v26 = vsub.f32 %v6229_v11, %v11457_v45 }
 0x5a4   :  { %v3989_v58 = vsub.f32 %v6228_v9, %v11300_v22  ;;  %v6231_v22 = vld [vmem:[%s13469_s3 + $0x180] sm:$0xff] }
 0x5a5   :  { %v11900_v57 = vpop.permute.xlu0 %4517 }
 0x5a6   :  { %14816 = vst [vmem:[#allocation203_spill] sm:$0xff] %v11900_v57  ;;  %v11902_v14 = vpop.permute.xlu1 %4382  ;;  %v14838_v57 = vld [vmem:[#allocation20_spill] sm:$0xff] }
 0x5a7   :  { %5058 = vperm.xlu0 %5980, %v4016_v40   ;;  %4913 = vperm.xlu1 %5979, %v3987_v52   ;;  %v6230_v52 = vld [vmem:[%s13469_s3 + $0x98] sm:$0xff]  ;;  %v4020_v40 = vsub.f32 %v6231_v22, %v11469_v44  ;;  %v4629_v2 = vmul.f32 %v11639_v21, %v14838_v57  ;;  %v6252_v57 = vld [vmem:[%s13469_s3 + $0x230] sm:$0xff] }
 0x5a8   :  { %v3991_v49 = vsub.f32 %v6230_v52, %v11335_v5  ;;  %v6233_v5 = vld [vmem:[%s13469_s3 + $0x190] sm:$0xff] }
 0x5a9   :  { %v11912_v13 = vpop.permute.xlu0 %4527 }
 0x5aa   :  { %14817 = vst [vmem:[#allocation110_spill] sm:$0xff] %v11912_v13  ;;  %v11914_v29 = vpop.permute.xlu1 %4392 }
 0x5ab   :  { %5068 = vperm.xlu0 %5980, %v4018_v26   ;;  %4923 = vperm.xlu1 %5979, %v3989_v58   ;;  %v6232_v58 = vld [vmem:[%s13469_s3 + $0xa8] sm:$0xff]  ;;  %v4022_v26 = vsub.f32 %v6233_v5, %v11481_v31  ;;  %v14821_v5 = vld [vmem:[#allocation265_spill] sm:$0xff] }
 0x5ac   :  { %v3993_v11 = vsub.f32 %v6232_v58, %v11361_v62  ;;  %v6235_v62 = vld [vmem:[%s13469_s3 + $0x1a0] sm:$0xff] }
 0x5ad   :  { %v11924_v9 = vpop.permute.xlu0 %4537 }
 0x5ae   :  { %14818 = vst [vmem:[#allocation193_spill] sm:$0xff] %v11924_v9  ;;  %v11926_v45 = vpop.permute.xlu1 %4402 }
 0x5af   :  { %5078 = vperm.xlu0 %5980, %v4020_v40   ;;  %4933 = vperm.xlu1 %5979, %v3991_v49   ;;  %v6234_v49 = vld [vmem:[%s13469_s3 + $0xb8] sm:$0xff]  ;;  %v4024_v40 = vsub.f32 %v6235_v62, %v11493_v61  ;;  %v14823_v62 = vld [vmem:[#allocation312_spill] sm:$0xff] }
 0x5b0   :  { %v3995_v22 = vsub.f32 %v6234_v49, %v11387_v51  ;;  %v6237_v51 = vld [vmem:[%s13469_s3 + $0xc8] sm:$0xff] }
 0x5b1   :  { %v11936_v52 = vpop.permute.xlu0 %4547  ;;  %v3997_v49 = vsub.f32 %v6237_v51, %v11413_v12  ;;  %v14825_v51 = vld [vmem:[#allocation320_spill] sm:$0xff] }
 0x5b2   :  { %14819 = vst [vmem:[#allocation145_spill] sm:$0xff] %v11936_v52  ;;  %v11938_v44 = vpop.permute.xlu1 %4412 }
 0x5b3   :  { %5088 = vperm.xlu0 %5980, %v4022_v26   ;;  %4943 = vperm.xlu1 %5979, %v3993_v11   ;;  %v6236_v11 = vld [vmem:[%s13469_s3 + $0x1b0] sm:$0xff] }
 0x5b4   :  { %v4026_v26 = vsub.f32 %v6236_v11, %v14821_v5  ;;  %v6239_v11 = vld [vmem:[%s13469_s3 + $0xd8] sm:$0xff] }
 0x5b5   :  { %v11948_v58 = vpop.permute.xlu0 %4557  ;;  %v3999_v5 = vsub.f32 %v6239_v11, %v11431_v63  ;;  %v14827_v11 = vld [vmem:[#allocation328_spill] sm:$0xff] }
 0x5b6   :  { %14820 = vst [vmem:[#allocation266_spill] sm:$0xff] %v11948_v58  ;;  %v11950_v31 = vpop.permute.xlu1 %4422 }
 0x5b7   :  { %5098 = vperm.xlu0 %5980, %v4024_v40   ;;  %4953 = vperm.xlu1 %5979, %v3995_v22   ;;  %v6238_v22 = vld [vmem:[%s13469_s3 + $0x1c0] sm:$0xff] }
 0x5b8   :  { %v4028_v40 = vsub.f32 %v6238_v22, %v14823_v62  ;;  %v6241_v22 = vld [vmem:[%s13469_s3 + $0xe8] sm:$0xff] }
 0x5b9   :  { %v11960_v52 = vpop.permute.xlu0 %4567  ;;  %v4001_v62 = vsub.f32 %v6241_v22, %v11443_v23  ;;  %v14829_v22 = vld [vmem:[#allocation333_spill] sm:$0xff] }
 0x5ba   :  { %14822 = vst [vmem:[#allocation169_spill] sm:$0xff] %v11960_v52  ;;  %v11962_v61 = vpop.permute.xlu1 %4432 }
 0x5bb   :  { %5108 = vperm.xlu0 %5980, %v4026_v26   ;;  %4963 = vperm.xlu1 %5979, %v3997_v49   ;;  %v6240_v26 = vld [vmem:[%s13469_s3 + $0x1d0] sm:$0xff] }
 0x5bc   :  { %v4030_v49 = vsub.f32 %v6240_v26, %v14825_v51  ;;  %v6243_v26 = vld [vmem:[%s13469_s3 + $0xf8] sm:$0xff] }
 0x5bd   :  { %v11972_v58 = vpop.permute.xlu0 %4577  ;;  %v4003_v51 = vsub.f32 %v6243_v26, %v11455_v10  ;;  %v14831_v26 = vld [vmem:[#allocation319_spill] sm:$0xff] }
 0x5be   :  { %14824 = vst [vmem:[#allocation235_spill] sm:$0xff] %v11972_v58  ;;  %v11974_v12 = vpop.permute.xlu1 %4442 }
 0x5bf   :  { %5118 = vperm.xlu0 %5980, %v4028_v40   ;;  %4973 = vperm.xlu1 %5979, %v3999_v5   ;;  %v6242_v40 = vld [vmem:[%s13469_s3 + $0x1e0] sm:$0xff] }
 0x5c0   :  { %v4032_v5 = vsub.f32 %v6242_v40, %v14827_v11  ;;  %v6245_v40 = vld [vmem:[%s13469_s3 + $0x108] sm:$0xff] }
 0x5c1   :  { %v11984_v52 = vpop.permute.xlu0 %4587  ;;  %v4005_v11 = vsub.f32 %v6245_v40, %v11467_v47  ;;  %v14833_v40 = vld [vmem:[#allocation339_spill] sm:$0xff] }
 0x5c2   :  { %14826 = vst [vmem:[#allocation181_spill] sm:$0xff] %v11984_v52  ;;  %v11986_v63 = vpop.permute.xlu1 %4452 }
 0x5c3   :  { %5128 = vperm.xlu0 %5980, %v4030_v49   ;;  %4983 = vperm.xlu1 %5979, %v4001_v62   ;;  %v6244_v49 = vld [vmem:[%s13469_s3 + $0x1f0] sm:$0xff] }
 0x5c4   :  { %v4034_v62 = vsub.f32 %v6244_v49, %v14829_v22  ;;  %v6247_v49 = vld [vmem:[%s13469_s3 + $0x118] sm:$0xff] }
 0x5c5   :  { %v11996_v58 = vpop.permute.xlu0 %4597  ;;  %v4007_v22 = vsub.f32 %v6247_v49, %v11479_v59  ;;  %v6249_v59 = vld [vmem:[%s13469_s3 + $0x128] sm:$0xff] }
 0x5c6   :  { %14828 = vst [vmem:[#allocation281_spill] sm:$0xff] %v11996_v58  ;;  %v11998_v23 = vpop.permute.xlu1 %4462  ;;  %v4009_v49 = vsub.f32 %v6249_v59, %v11491_v50  ;;  %v6251_v50 = vld [vmem:[%s13469_s3 + $0x138] sm:$0xff] }
 0x5c7   :  { %5138 = vperm.xlu0 %5980, %v4032_v5   ;;  %4993 = vperm.xlu1 %5979, %v4003_v51   ;;  %v6246_v5 = vld [vmem:[%s13469_s3 + $0x200] sm:$0xff] }
 0x5c8   :  { %v4036_v51 = vsub.f32 %v6246_v5, %v14831_v26  ;;  %v14835_v26 = vld [vmem:[#allocation9_spill] sm:$0xff] }
 0x5c9   :  { %v12008_v52 = vpop.permute.xlu0 %4607  ;;  %v4623_v9 = vmul.f32 %v11627_v54, %v14835_v26 }
 0x5ca   :  { %14830 = vst [vmem:[#allocation330_spill] sm:$0xff] %v12008_v52  ;;  %v12010_v10 = vpop.permute.xlu1 %4472  ;;  %v14834_v52 = vld [vmem:[#allocation6_spill] sm:$0xff] }
 0x5cb   :  { %5148 = vperm.xlu0 %5980, %v4034_v62   ;;  %5003 = vperm.xlu1 %5979, %v4005_v11   ;;  %v6248_v62 = vld [vmem:[%s13469_s3 + $0x210] sm:$0xff]  ;;  %v4622_v5 = vmul.f32 %v11627_v54, %v14834_v52  ;;  %v6250_v52 = vld [vmem:[%s13469_s3 + $0x220] sm:$0xff] }
 0x5cc   :  { %v4038_v11 = vsub.f32 %v6248_v62, %v14833_v40  ;;  %v14836_v62 = vld [vmem:[#allocation347_spill] sm:$0xff]  ;;  %v14837_v54 = vld [vmem:[#allocation18_spill] sm:$0xff] }
 0x5cd   :  { %v12020_v58 = vpop.permute.xlu0 %4617  ;;  %v4040_v40 = vsub.f32 %v6250_v52, %v14836_v62  ;;  %v4628_v26 = vmul.f32 %v11639_v21, %v14837_v54  ;;  %v14841_v52 = vld [vmem:[#allocation28_spill] sm:$0xff] }
 0x5ce   :  { %14832 = vst [vmem:[#allocation194_spill] sm:$0xff] %v12020_v58  ;;  %v12022_v47 = vpop.permute.xlu1 %4482  ;;  %v4633_v62 = vmul.f32 %v11645_v60, %v14841_v52 }
 0x5cf   :  { %5158 = vperm.xlu0 %5980, %v4036_v51   ;;  %5013 = vperm.xlu1 %5979, %v4007_v22  }
 0x5d2   :  { %v4844_v51 = vpop.permute.xlu0 %4843  ;;  %v12036_v22 = vpop.permute.xlu1 %4492 }
 0x5d3   :  { %v5378_v58 = vadd.f32 %v4844_v51, %v4622_v5  ;;  %v5379_v13 = vadd.f32 %v4844_v51, %v4623_v9  ;;  %5168 = vperm.xlu0 %5980, %v4038_v11   ;;  %5023 = vperm.xlu1 %5979, %v4009_v49   ;;  %v4011_v9 = vsub.f32 %v6251_v50, %v11503_v7  ;;  %v6253_v7 = vld [vmem:[%s13469_s3 + $0x148] sm:$0xff]  ;;  %v6254_v50 = vld [vmem:[%s13469_s3 + $0x240] sm:$0xff] }
 0x5d5   :  { %5594 = vst [vmem:[%s13470_s4 + $0x10] sm:$0xff] %v5378_v58  ;;  %5595 = vst.msk [vmem:[%s13470_s4 + $0x18] sm:$0xff] %vm1379_vm1, %v5379_v13  ;;  %v14839_v58 = vld [vmem:[#allocation346_spill] sm:$0xff] }
 0x5d6   :  { %v4859_v11 = vpop.permute.xlu0 %4858  ;;  %v12057_v5 = vpop.permute.xlu1 %4502  ;;  %v4042_v49 = vsub.f32 %v6252_v57, %v14839_v58  ;;  %v14840_v13 = vld [vmem:[#allocation26_spill] sm:$0xff]  ;;  %v14844_v57 = vld [vmem:[#allocation36_spill] sm:$0xff] }
 0x5d7   :  { %v5384_v59 = vadd.f32 %v4859_v11, %v4628_v26  ;;  %v5385_v21 = vadd.f32 %v4859_v11, %v4629_v2  ;;  %5178 = vperm.xlu0 %5980, %v4040_v40   ;;  %5033 = vperm.xlu1 %5979, %v4011_v9   ;;  %v4632_v51 = vmul.f32 %v11645_v60, %v14840_v13  ;;  %v14842_v9 = vld [vmem:[#allocation327_spill] sm:$0xff] }
 0x5d8   :  { %v4013_v2 = vsub.f32 %v6253_v7, %v11515_v48  ;;  %v4044_v11 = vsub.f32 %v6254_v50, %v14842_v9  ;;  %v4637_v58 = vmul.f32 %v11651_v4, %v14844_v57  ;;  %v6255_v48 = vld [vmem:[%s13469_s3 + $0x158] sm:$0xff] }
 0x5d9   :  { %5600 = vst [vmem:[%s13470_s4 + $0x40] sm:$0xff] %v5384_v59  ;;  %5601 = vst.msk [vmem:[%s13470_s4 + $0x48] sm:$0xff] %vm1379_vm1, %v5385_v21  ;;  %v14843_v59 = vld [vmem:[#allocation34_spill] sm:$0xff]  ;;  %v14848_v57 = vld [vmem:[#allocation349_spill] sm:$0xff] }
 0x5da   :  { %v4869_v40 = vpop.permute.xlu0 %4868  ;;  %v12078_v54 = vpop.permute.xlu1 %4512  ;;  %v4636_v21 = vmul.f32 %v11651_v4, %v14843_v59 }
 0x5db   :  { %v5388_v26 = vadd.f32 %v4869_v40, %v4632_v51  ;;  %v5389_v60 = vadd.f32 %v4869_v40, %v4633_v62  ;;  %5188 = vperm.xlu0 %5980, %v4042_v49   ;;  %5043 = vperm.xlu1 %5979, %v4013_v2   ;;  %v4015_v49 = vsub.f32 %v6255_v48, %v11527_v6  ;;  %v6256_v62 = vld [vmem:[%s13469_s3 + $0x250] sm:$0xff]  ;;  %v14845_v2 = vld [vmem:[#allocation42_spill] sm:$0xff]  ;;  %v6257_v6 = vld [vmem:[%s13469_s3 + $0x168] sm:$0xff] }
 0x5dc   :  { %v4046_v7 = vsub.f32 %v6256_v62, %v11328_v46  ;;  %v4640_v40 = vmul.f32 %v11657_v17, %v14845_v2  ;;  %v14847_v46 = vld [vmem:[#allocation249_spill] sm:$0xff]  ;;  %v14849_v48 = vld [vmem:[#allocation50_spill] sm:$0xff]  ;;  %v14851_v62 = vld [vmem:[#allocation172_spill] sm:$0xff] }
 0x5dd   :  { %5604 = vst [vmem:[%s13470_s4 + $0x60] sm:$0xff] %v5388_v26  ;;  %5605 = vst.msk [vmem:[%s13470_s4 + $0x68] sm:$0xff] %vm1379_vm1, %v5389_v60  ;;  %v14846_v26 = vld [vmem:[#allocation44_spill] sm:$0xff]  ;;  %v4017_v50 = vsub.f32 %v6257_v6, %v14847_v46  ;;  %v14852_v6 = vld [vmem:[#allocation238_spill] sm:$0xff] }
 0x5de   :  { %v4879_v13 = vpop.permute.xlu0 %4878  ;;  %v12099_v51 = vpop.permute.xlu1 %4522  ;;  %v4641_v60 = vmul.f32 %v11657_v17, %v14846_v26 }
 0x5df   :  { %v5392_v52 = vadd.f32 %v4879_v13, %v4636_v21  ;;  %v5393_v4 = vadd.f32 %v4879_v13, %v4637_v58  ;;  %5198 = vperm.xlu0 %5980, %v4044_v11   ;;  %5053 = vperm.xlu1 %5979, %v4015_v49   ;;  %v6258_v21 = vld [vmem:[%s13469_s3 + $0x260] sm:$0xff]  ;;  %v4644_v49 = vmul.f32 %v11663_v30, %v14849_v48  ;;  %v14850_v13 = vld [vmem:[#allocation52_spill] sm:$0xff] }
 0x5e0   :  { %v4048_v58 = vsub.f32 %v6258_v21, %v14848_v57  ;;  %v6261_v21 = vld [vmem:[%s13469_s3 + $0x188] sm:$0xff]  ;;  %v14855_v57 = vld [vmem:[#allocation342_spill] sm:$0xff] }
 0x5e1   :  { %5608 = vst [vmem:[%s13470_s4 + $0x80] sm:$0xff] %v5392_v52  ;;  %5609 = vst.msk [vmem:[%s13470_s4 + $0x88] sm:$0xff] %vm1379_vm1, %v5393_v4  ;;  %v4645_v52 = vmul.f32 %v11663_v30, %v14850_v13  ;;  %v6259_v4 = vld [vmem:[%s13469_s3 + $0x178] sm:$0xff] }
 0x5e2   :  { %v4889_v9 = vpop.permute.xlu0 %4888  ;;  %v12120_v11 = vpop.permute.xlu1 %4532 }
 0x5e3   :  { %v5396_v59 = vadd.f32 %v4889_v9, %v4640_v40  ;;  %v5397_v17 = vadd.f32 %v4889_v9, %v4641_v60  ;;  %5208 = vperm.xlu0 %5980, %v4046_v7   ;;  %5063 = vperm.xlu1 %5979, %v4017_v50   ;;  %v4019_v7 = vsub.f32 %v6259_v4, %v14851_v62  ;;  %v6260_v60 = vld [vmem:[%s13469_s3 + $0x270] sm:$0xff]  ;;  %v14853_v50 = vld [vmem:[#allocation58_spill] sm:$0xff]  ;;  %v14856_v4 = vld [vmem:[#allocation233_spill] sm:$0xff] }
 0x5e4   :  { %v4050_v46 = vsub.f32 %v6260_v60, %v14852_v6  ;;  %v4648_v9 = vmul.f32 %v11669_v15, %v14853_v50  ;;  %v6263_v60 = vld [vmem:[%s13469_s3 + $0x198] sm:$0xff] }
 0x5e5   :  { %5612 = vst [vmem:[%s13470_s4 + $0xa0] sm:$0xff] %v5396_v59  ;;  %5613 = vst.msk [vmem:[%s13470_s4 + $0xa8] sm:$0xff] %vm1379_vm1, %v5397_v17  ;;  %v14854_v59 = vld [vmem:[#allocation60_spill] sm:$0xff]  ;;  %v4023_v6 = vsub.f32 %v6263_v60, %v11573_v16  ;;  %v6265_v16 = vld [vmem:[%s13469_s3 + $0x1a8] sm:$0xff] }
 0x5e6   :  { %v4899_v2 = vpop.permute.xlu0 %4898  ;;  %v12141_v40 = vpop.permute.xlu1 %4542  ;;  %v4649_v17 = vmul.f32 %v11669_v15, %v14854_v59  ;;  %v6264_v59 = vld [vmem:[%s13469_s3 + $0x290] sm:$0xff] }
 0x5e7   :  { %v5400_v26 = vadd.f32 %v4899_v2, %v4644_v49  ;;  %v5401_v30 = vadd.f32 %v4899_v2, %v4645_v52  ;;  %5218 = vperm.xlu0 %5980, %v4048_v58   ;;  %5073 = vperm.xlu1 %5979, %v4019_v7   ;;  %v4021_v58 = vsub.f32 %v6261_v21, %v14855_v57  ;;  %v6262_v52 = vld [vmem:[%s13469_s3 + $0x280] sm:$0xff] }
 0x5e8   :  { %v4052_v62 = vsub.f32 %v6262_v52, %v14856_v4  ;;  %v14857_v7 = vld [vmem:[#allocation66_spill] sm:$0xff] }
 0x5e9   :  { %5616 = vst [vmem:[%s13470_s4 + $0xc0] sm:$0xff] %v5400_v26  ;;  %5617 = vst.msk [vmem:[%s13470_s4 + $0xc8] sm:$0xff] %vm1379_vm1, %v5401_v30  ;;  %v4652_v2 = vmul.f32 %v11675_v18, %v14857_v7  ;;  %v14858_v26 = vld [vmem:[#allocation68_spill] sm:$0xff]  ;;  %v14860_v57 = vld [vmem:[#allocation74_spill] sm:$0xff] }
 0x5ea   :  { %v4909_v48 = vpop.permute.xlu0 %4908  ;;  %v12162_v49 = vpop.permute.xlu1 %4552  ;;  %v4653_v30 = vmul.f32 %v11675_v18, %v14858_v26  ;;  %v6266_v7 = vld [vmem:[%s13469_s3 + $0x2a0] sm:$0xff] }
 0x5eb   :  { %v5404_v13 = vadd.f32 %v4909_v48, %v4648_v9  ;;  %v5405_v15 = vadd.f32 %v4909_v48, %v4649_v17  ;;  %5228 = vperm.xlu0 %5980, %v4050_v46   ;;  %5083 = vperm.xlu1 %5979, %v4021_v58   ;;  %v14859_v17 = vld [vmem:[#allocation243_spill] sm:$0xff]  ;;  %v4656_v58 = vmul.f32 %v11685_v38, %v14860_v57  ;;  %v14861_v48 = vld [vmem:[#allocation76_spill] sm:$0xff] }
 0x5ec   :  { %v4054_v21 = vsub.f32 %v6264_v59, %v14859_v17  ;;  %v6268_v57 = vld [vmem:[%s13469_s3 + $0x2b0] sm:$0xff] }
 0x5ed   :  { %5620 = vst [vmem:[%s13470_s4 + $0xe0] sm:$0xff] %v5404_v13  ;;  %5621 = vst.msk [vmem:[%s13470_s4 + $0xe8] sm:$0xff] %vm1379_vm1, %v5405_v15  ;;  %v4657_v13 = vmul.f32 %v11685_v38, %v14861_v48  ;;  %v4025_v15 = vsub.f32 %v6265_v16, %v11585_v34  ;;  %v6267_v34 = vld [vmem:[%s13469_s3 + $0x1b8] sm:$0xff] }
 0x5ee   :  { %v4919_v46 = vpop.permute.xlu0 %4918  ;;  %v12183_v50 = vpop.permute.xlu1 %4562 }
 0x5ef   :  { %v5408_v9 = vadd.f32 %v4919_v46, %v4652_v2  ;;  %v5409_v18 = vadd.f32 %v4919_v46, %v4653_v30  ;;  %5238 = vperm.xlu0 %5980, %v4052_v62   ;;  %5093 = vperm.xlu1 %5979, %v4023_v6   ;;  %v14862_v2 = vld [vmem:[#allocation224_spill] sm:$0xff]  ;;  %v14863_v30 = vld [vmem:[#allocation82_spill] sm:$0xff] }
 0x5f0   :  { %v4056_v26 = vsub.f32 %v6266_v7, %v14862_v2  ;;  %v4660_v60 = vmul.f32 %v11694_v41, %v14863_v30  ;;  %v14864_v6 = vld [vmem:[#allocation84_spill] sm:$0xff] }
 0x5f1   :  { %5624 = vst [vmem:[%s13470_s4 + $0x100] sm:$0xff] %v5408_v9  ;;  %5625 = vst.msk [vmem:[%s13470_s4 + $0x108] sm:$0xff] %vm1379_vm1, %v5409_v18  ;;  %v4661_v46 = vmul.f32 %v11694_v41, %v14864_v6  ;;  %v14865_v9 = vld [vmem:[#allocation341_spill] sm:$0xff]  ;;  %v14870_v6 = vld [vmem:[#allocation267_spill] sm:$0xff] }
 0x5f2   :  { %v4929_v52 = vpop.permute.xlu0 %4928  ;;  %v12204_v4 = vpop.permute.xlu1 %4572  ;;  %v4027_v18 = vsub.f32 %v6267_v34, %v14865_v9  ;;  %v14871_v34 = vld [vmem:[#allocation98_spill] sm:$0xff] }
 0x5f3   :  { %v5412_v62 = vadd.f32 %v4929_v52, %v4656_v58  ;;  %v5413_v38 = vadd.f32 %v4929_v52, %v4657_v13  ;;  %5248 = vperm.xlu0 %5980, %v4054_v21   ;;  %5103 = vperm.xlu1 %5979, %v4025_v15   ;;  %v14866_v58 = vld [vmem:[#allocation138_spill] sm:$0xff]  ;;  %v14868_v15 = vld [vmem:[#allocation92_spill] sm:$0xff]  ;;  %v4668_v9 = vmul.f32 %v11712_v37, %v14871_v34 }
 0x5f4   :  { %v4058_v48 = vsub.f32 %v6268_v57, %v14866_v58  ;;  %v14867_v13 = vld [vmem:[#allocation90_spill] sm:$0xff]  ;;  %v4665_v52 = vmul.f32 %v11703_v24, %v14868_v15  ;;  %v14874_v15 = vld [vmem:[#allocation116_spill] sm:$0xff] }
 0x5f5   :  { %5628 = vst [vmem:[%s13470_s4 + $0x120] sm:$0xff] %v5412_v62  ;;  %5629 = vst.msk [vmem:[%s13470_s4 + $0x128] sm:$0xff] %vm1379_vm1, %v5413_v38  ;;  %v4664_v16 = vmul.f32 %v11703_v24, %v14867_v13  ;;  %v6269_v62 = vld [vmem:[%s13469_s3 + $0x1c8] sm:$0xff] }
 0x5f6   :  { %v4939_v59 = vpop.permute.xlu0 %4938  ;;  %v12225_v17 = vpop.permute.xlu1 %4582  ;;  %v14869_v38 = vld [vmem:[#allocation343_spill] sm:$0xff] }
 0x5f7   :  { %v5416_v21 = vadd.f32 %v4939_v59, %v4660_v60  ;;  %v5417_v41 = vadd.f32 %v4939_v59, %v4661_v46  ;;  %5258 = vperm.xlu0 %5980, %v4056_v26   ;;  %5113 = vperm.xlu1 %5979, %v4027_v18   ;;  %v4029_v7 = vsub.f32 %v6269_v62, %v14869_v38  ;;  %v6270_v60 = vld [vmem:[%s13469_s3 + $0x2c0] sm:$0xff]  ;;  %v14872_v18 = vld [vmem:[#allocation100_spill] sm:$0xff]  ;;  %v14875_v62 = vld [vmem:[#allocation111_spill] sm:$0xff] }
 0x5f8   :  { %v4060_v46 = vsub.f32 %v6270_v60, %v14870_v6  ;;  %v4669_v59 = vmul.f32 %v11712_v37, %v14872_v18  ;;  %v4672_v38 = vmul.f32 %v11721_v42, %v14875_v62  ;;  %v14878_v18 = vld [vmem:[#allocation129_spill] sm:$0xff] }
 0x5f9   :  { %5632 = vst [vmem:[%s13470_s4 + $0x140] sm:$0xff] %v5416_v21  ;;  %5633 = vst.msk [vmem:[%s13470_s4 + $0x148] sm:$0xff] %vm1379_vm1, %v5417_v41  ;;  %v6271_v21 = vld [vmem:[%s13469_s3 + $0x1d8] sm:$0xff]  ;;  %v14873_v41 = vld [vmem:[#allocation351_spill] sm:$0xff] }
 0x5fa   :  { %v4949_v2 = vpop.permute.xlu0 %4948  ;;  %v12246_v26 = vpop.permute.xlu1 %4592  ;;  %v4031_v57 = vsub.f32 %v6271_v21, %v14873_v41  ;;  %v14879_v21 = vld [vmem:[#allocation2_spill] sm:$0xff]  ;;  %v14880_v41 = vld [vmem:[#allocation279_spill] sm:$0xff] }
 0x5fb   :  { %v5420_v30 = vadd.f32 %v4949_v2, %v4664_v16  ;;  %v5421_v24 = vadd.f32 %v4949_v2, %v4665_v52  ;;  %5268 = vperm.xlu0 %5980, %v4058_v48   ;;  %5123 = vperm.xlu1 %5979, %v4029_v7   ;;  %v6272_v16 = vld [vmem:[%s13469_s3 + $0x2d0] sm:$0xff]  ;;  %v14876_v7 = vld [vmem:[#allocation113_spill] sm:$0xff] }
 0x5fc   :  { %v4062_v52 = vsub.f32 %v6272_v16, %v14874_v15  ;;  %v4673_v2 = vmul.f32 %v11721_v42, %v14876_v7  ;;  %v14883_v15 = vld [vmem:[#allocation125_spill] sm:$0xff] }
 0x5fd   :  { %5636 = vst [vmem:[%s13470_s4 + $0x160] sm:$0xff] %v5420_v30  ;;  %5637 = vst.msk [vmem:[%s13470_s4 + $0x168] sm:$0xff] %vm1379_vm1, %v5421_v24  ;;  %v6273_v30 = vld [vmem:[%s13469_s3 + $0x1e8] sm:$0xff]  ;;  %v14877_v24 = vld [vmem:[#allocation244_spill] sm:$0xff]  ;;  %v4677_v62 = vmul.f32 %v11730_v43, %v14883_v15 }
 0x5fe   :  { %v4959_v58 = vpop.permute.xlu0 %4958  ;;  %v12267_v48 = vpop.permute.xlu1 %4602  ;;  %v4033_v60 = vsub.f32 %v6273_v30, %v14877_v24  ;;  %v14889_v15 = vld [vmem:[#allocation137_spill] sm:$0xff] }
 0x5ff   :  { %v5424_v13 = vadd.f32 %v4959_v58, %v4668_v9  ;;  %v5425_v37 = vadd.f32 %v4959_v58, %v4669_v59  ;;  %5278 = vperm.xlu0 %5980, %v4060_v46   ;;  %5133 = vperm.xlu1 %5979, %v4031_v57   ;;  %v6274_v9 = vld [vmem:[%s13469_s3 + $0x2e0] sm:$0xff]  ;;  %v4620_v57 = vmul.f32 %v14880_v41, %v14879_v21  ;;  %v14881_v58 = vld [vmem:[#allocation4_spill] sm:$0xff] }
 0x600   :  { %v4064_v59 = vsub.f32 %v6274_v9, %v14878_v18  ;;  %v14885_v9 = vld [vmem:[#allocation245_spill] sm:$0xff] }
 0x601   :  { %5640 = vst [vmem:[%s13470_s4 + $0x180] sm:$0xff] %v5424_v13  ;;  %5641 = vst.msk [vmem:[%s13470_s4 + $0x188] sm:$0xff] %vm1379_vm1, %v5425_v37  ;;  %v4621_v13 = vmul.f32 %v14880_v41, %v14881_v58  ;;  %v14882_v37 = vld [vmem:[#allocation123_spill] sm:$0xff]  ;;  %v14887_v41 = vld [vmem:[#allocation12_spill] sm:$0xff] }
 0x602   :  { %v4969_v6 = vpop.permute.xlu0 %4968  ;;  %v12288_v46 = vpop.permute.xlu1 %4612  ;;  %v4676_v16 = vmul.f32 %v11730_v43, %v14882_v37  ;;  %v4625_v58 = vmul.f32 %v11633_v39, %v14887_v41  ;;  %v14888_v37 = vld [vmem:[#allocation135_spill] sm:$0xff]  ;;  %v14895_v41 = vld [vmem:[#allocation146_spill] sm:$0xff] }
 0x603   :  { %v5428_v34 = vadd.f32 %v4969_v6, %v4672_v38  ;;  %v5429_v42 = vadd.f32 %v4969_v6, %v4673_v2  ;;  %5288 = vperm.xlu0 %5980, %v4062_v52   ;;  %5143 = vperm.xlu1 %5979, %v4033_v60   ;;  %v6275_v52 = vld [vmem:[%s13469_s3 + $0x1f8] sm:$0xff]  ;;  %v14884_v38 = vld [vmem:[#allocation331_spill] sm:$0xff] }
 0x604   :  { %v4035_v7 = vsub.f32 %v6275_v52, %v14884_v38 }
 0x605   :  { %5644 = vst [vmem:[%s13470_s4 + $0x1a0] sm:$0xff] %v5428_v34  ;;  %5645 = vst.msk [vmem:[%s13470_s4 + $0x1a8] sm:$0xff] %vm1379_vm1, %v5429_v42  ;;  %v6276_v34 = vld [vmem:[%s13469_s3 + $0x2f0] sm:$0xff]  ;;  %v14886_v42 = vld [vmem:[#allocation10_spill] sm:$0xff] }
 0x606   :  { %v4979_v2 = vpop.permute.xlu0 %4978  ;;  %v4839_v30 = vpop.permute.xlu1 %4838  ;;  %v4066_v18 = vsub.f32 %v6276_v34, %v14885_v9  ;;  %v4624_v21 = vmul.f32 %v11633_v39, %v14886_v42  ;;  %v6277_v39 = vld [vmem:[%s13469_s3 + $0x208] sm:$0xff]  ;;  %v14894_v9 = vld [vmem:[#allocation16_spill] sm:$0xff] }
 0x607   :  { %v5432_v24 = vadd.f32 %v4979_v2, %v4676_v16  ;;  %v5433_v60 = vadd.f32 %v4979_v2, %v4677_v62  ;;  %v5376_v43 = vadd.f32 %v4839_v30, %v4620_v57  ;;  %v5377_v6 = vadd.f32 %v4839_v30, %v4621_v13  ;;  %5298 = vperm.xlu0 %5980, %v4064_v59   ;;  %v6278_v30 = vld [vmem:[%s13469_s3 + $0x300] sm:$0xff] }
 0x608   :  { %5153 = vperm.xlu1 %5979, %v4035_v7   ;;  %v4680_v16 = vmul.f32 %v11739_v1, %v14888_v37  ;;  %v4681_v57 = vmul.f32 %v11739_v1, %v14889_v15  ;;  %v14890_v1 = vld [vmem:[#allocation197_spill] sm:$0xff]  ;;  %v4684_v37 = vmul.f32 %v11748_v19, %v14895_v41  ;;  %v14903_v41 = vld [vmem:[#allocation158_spill] sm:$0xff] }
 0x609   :  { %5648 = vst [vmem:[%s13470_s4 + $0x1c0] sm:$0xff] %v5432_v24  ;;  %5649 = vst.msk [vmem:[%s13470_s4 + $0x1c8] sm:$0xff] %vm1379_vm1, %v5433_v60  ;;  %v4037_v59 = vsub.f32 %v6277_v39, %v14890_v1  ;;  %v14891_v24 = vld [vmem:[#allocation282_spill] sm:$0xff] }
 0x60a   :  { %5592 = vst [vmem:[%s13470_s4] sm:$0xff] %v5376_v43  ;;  %5593 = vst.msk [vmem:[%s13470_s4 + $0x8] sm:$0xff] %vm1379_vm1, %v5377_v6  ;;  %v4989_v13 = vpop.permute.xlu0 %4988  ;;  %v4849_v62 = vpop.permute.xlu1 %4848  ;;  %v4068_v60 = vsub.f32 %v6278_v30, %v14891_v24  ;;  %v14892_v43 = vld [vmem:[#allocation14_spill] sm:$0xff]  ;;  %v14893_v6 = vld [vmem:[#allocation188_spill] sm:$0xff] }
 0x60b   :  { %v5436_v52 = vadd.f32 %v4989_v13, %v4680_v16  ;;  %v5437_v38 = vadd.f32 %v4989_v13, %v4681_v57  ;;  %v5380_v7 = vadd.f32 %v4849_v62, %v4624_v21  ;;  %v5381_v2 = vadd.f32 %v4849_v62, %v4625_v58  ;;  %5308 = vperm.xlu0 %5980, %v4066_v18   ;;  %v14896_v16 = vld [vmem:[#allocation147_spill] sm:$0xff]  ;;  %v14897_v18 = vld [vmem:[#allocation246_spill] sm:$0xff]  ;;  %v6280_v62 = vld [vmem:[%s13469_s3 + $0x310] sm:$0xff] }
 0x60c   :  { %5163 = vperm.xlu1 %5979, %v4037_v59   ;;  %v4626_v34 = vmul.f32 %v14893_v6, %v14892_v43  ;;  %v4627_v42 = vmul.f32 %v14893_v6, %v14894_v9  ;;  %v4685_v21 = vmul.f32 %v11748_v19, %v14896_v16  ;;  %v6279_v19 = vld [vmem:[%s13469_s3 + $0x218] sm:$0xff]  ;;  %v14901_v24 = vld [vmem:[#allocation24_spill] sm:$0xff] }
 0x60d   :  { %5652 = vst [vmem:[%s13470_s4 + $0x1e0] sm:$0xff] %v5436_v52  ;;  %5653 = vst.msk [vmem:[%s13470_s4 + $0x1e8] sm:$0xff] %vm1379_vm1, %v5437_v38  ;;  %v4039_v58 = vsub.f32 %v6279_v19, %v14897_v18  ;;  %v14898_v52 = vld [vmem:[#allocation241_spill] sm:$0xff] }
 0x60e   :  { %5596 = vst [vmem:[%s13470_s4 + $0x20] sm:$0xff] %v5380_v7  ;;  %5597 = vst.msk [vmem:[%s13470_s4 + $0x28] sm:$0xff] %vm1379_vm1, %v5381_v2  ;;  %v4999_v15 = vpop.permute.xlu0 %4998  ;;  %v4854_v57 = vpop.permute.xlu1 %4853  ;;  %v4070_v38 = vsub.f32 %v6280_v62, %v14898_v52  ;;  %v14899_v7 = vld [vmem:[#allocation22_spill] sm:$0xff]  ;;  %v14902_v6 = vld [vmem:[#allocation157_spill] sm:$0xff] }
 0x60f   :  { %v5440_v39 = vadd.f32 %v4999_v15, %v4684_v37  ;;  %v5441_v1 = vadd.f32 %v4999_v15, %v4685_v21  ;;  %v5382_v59 = vadd.f32 %v4854_v57, %v4626_v34  ;;  %v5383_v13 = vadd.f32 %v4854_v57, %v4627_v42  ;;  %5318 = vperm.xlu0 %5980, %v4068_v60   ;;  %v14900_v2 = vld [vmem:[#allocation318_spill] sm:$0xff]  ;;  %v14904_v60 = vld [vmem:[#allocation199_spill] sm:$0xff]  ;;  %v14905_v57 = vld [vmem:[#allocation353_spill] sm:$0xff] }
 0x610   :  { %5173 = vperm.xlu1 %5979, %v4039_v58   ;;  %v4630_v30 = vmul.f32 %v14900_v2, %v14899_v7  ;;  %v4631_v43 = vmul.f32 %v14900_v2, %v14901_v24  ;;  %v4688_v9 = vmul.f32 %v11757_v8, %v14902_v6  ;;  %v4689_v34 = vmul.f32 %v11757_v8, %v14903_v41  ;;  %v6281_v8 = vld [vmem:[%s13469_s3 + $0x228] sm:$0xff]  ;;  %v6282_v15 = vld [vmem:[%s13469_s3 + $0x320] sm:$0xff]  ;;  %v14908_v62 = vld [vmem:[#allocation32_spill] sm:$0xff] }
 0x611   :  { %5656 = vst [vmem:[%s13470_s4 + $0x200] sm:$0xff] %v5440_v39  ;;  %5657 = vst.msk [vmem:[%s13470_s4 + $0x208] sm:$0xff] %vm1379_vm1, %v5441_v1  ;;  %v4041_v42 = vsub.f32 %v6281_v8, %v14904_v60  ;;  %v4072_v39 = vsub.f32 %v6282_v15, %v14905_v57  ;;  %v14906_v1 = vld [vmem:[#allocation30_spill] sm:$0xff]  ;;  %v14910_v24 = vld [vmem:[#allocation179_spill] sm:$0xff] }
 0x612   :  { %5598 = vst [vmem:[%s13470_s4 + $0x30] sm:$0xff] %v5382_v59  ;;  %5599 = vst.msk [vmem:[%s13470_s4 + $0x38] sm:$0xff] %vm1379_vm1, %v5383_v13  ;;  %v5009_v37 = vpop.permute.xlu0 %5008  ;;  %v4864_v16 = vpop.permute.xlu1 %4863  ;;  %v14907_v59 = vld [vmem:[#allocation176_spill] sm:$0xff]  ;;  %v14909_v7 = vld [vmem:[#allocation178_spill] sm:$0xff] }
 0x613   :  { %v5444_v21 = vadd.f32 %v5009_v37, %v4688_v9  ;;  %v5445_v19 = vadd.f32 %v5009_v37, %v4689_v34  ;;  %v5386_v18 = vadd.f32 %v4864_v16, %v4630_v30  ;;  %v5387_v58 = vadd.f32 %v4864_v16, %v4631_v43  ;;  %5328 = vperm.xlu0 %5980, %v4070_v38   ;;  %v14911_v38 = vld [vmem:[#allocation134_spill] sm:$0xff]  ;;  %v14912_v37 = vld [vmem:[#allocation219_spill] sm:$0xff]  ;;  %v14916_v57 = vld [vmem:[#allocation201_spill] sm:$0xff] }
 0x614   :  { %5183 = vperm.xlu1 %5979, %v4041_v42   ;;  %v4634_v13 = vmul.f32 %v14907_v59, %v14906_v1  ;;  %v4635_v52 = vmul.f32 %v14907_v59, %v14908_v62  ;;  %v4692_v2 = vmul.f32 %v11766_v28, %v14909_v7  ;;  %v4693_v30 = vmul.f32 %v11766_v28, %v14910_v24  ;;  %v6283_v28 = vld [vmem:[%s13469_s3 + $0x238] sm:$0xff]  ;;  %v6284_v42 = vld [vmem:[%s13469_s3 + $0x330] sm:$0xff]  ;;  %v14917_v59 = vld [vmem:[#allocation202_spill] sm:$0xff] }
 0x615   :  { %5660 = vst [vmem:[%s13470_s4 + $0x220] sm:$0xff] %v5444_v21  ;;  %5661 = vst.msk [vmem:[%s13470_s4 + $0x228] sm:$0xff] %vm1379_vm1, %v5445_v19  ;;  %v4043_v43 = vsub.f32 %v6283_v28, %v14911_v38  ;;  %v4074_v16 = vsub.f32 %v6284_v42, %v14912_v37  ;;  %v14913_v21 = vld [vmem:[#allocation38_spill] sm:$0xff]  ;;  %v14914_v19 = vld [vmem:[#allocation216_spill] sm:$0xff]  ;;  %v4696_v1 = vmul.f32 %v11775_v0, %v14916_v57 }
 0x616   :  { %5602 = vst [vmem:[%s13470_s4 + $0x50] sm:$0xff] %v5386_v18  ;;  %5603 = vst.msk [vmem:[%s13470_s4 + $0x58] sm:$0xff] %vm1379_vm1, %v5387_v58  ;;  %v5019_v6 = vpop.permute.xlu0 %5018  ;;  %v4874_v9 = vpop.permute.xlu1 %4873  ;;  %v4638_v18 = vmul.f32 %v14914_v19, %v14913_v21  ;;  %v14915_v58 = vld [vmem:[#allocation40_spill] sm:$0xff]  ;;  %v6286_v38 = vld [vmem:[%s13469_s3 + $0x340] sm:$0xff] }
 0x617   :  { %v5448_v41 = vadd.f32 %v5019_v6, %v4692_v2  ;;  %v5449_v34 = vadd.f32 %v5019_v6, %v4693_v30  ;;  %v5390_v8 = vadd.f32 %v4874_v9, %v4634_v13  ;;  %v5391_v60 = vadd.f32 %v4874_v9, %v4635_v52  ;;  %5338 = vperm.xlu0 %5980, %v4072_v39   ;;  %v14918_v39 = vld [vmem:[#allocation338_spill] sm:$0xff]  ;;  %v14923_v42 = vld [vmem:[#allocation221_spill] sm:$0xff] }
 0x618   :  { %5193 = vperm.xlu1 %5979, %v4043_v43   ;;  %v4639_v15 = vmul.f32 %v14914_v19, %v14915_v58  ;;  %v4697_v13 = vmul.f32 %v11775_v0, %v14917_v59  ;;  %v6285_v0 = vld [vmem:[%s13469_s3 + $0x248] sm:$0xff]  ;;  %v14919_v43 = vld [vmem:[#allocation257_spill] sm:$0xff]  ;;  %v14920_v9 = vld [vmem:[#allocation46_spill] sm:$0xff]  ;;  %v4700_v37 = vmul.f32 %v11784_v3, %v14923_v42 }
 0x619   :  { %5664 = vst [vmem:[%s13470_s4 + $0x240] sm:$0xff] %v5448_v41  ;;  %5665 = vst.msk [vmem:[%s13470_s4 + $0x248] sm:$0xff] %vm1379_vm1, %v5449_v34  ;;  %v4045_v62 = vsub.f32 %v6285_v0, %v14918_v39  ;;  %v4076_v6 = vsub.f32 %v6286_v38, %v14919_v43  ;;  %v14921_v41 = vld [vmem:[#allocation192_spill] sm:$0xff]  ;;  %v14924_v21 = vld [vmem:[#allocation222_spill] sm:$0xff] }
 0x61a   :  { %5606 = vst [vmem:[%s13470_s4 + $0x70] sm:$0xff] %v5390_v8  ;;  %5607 = vst.msk [vmem:[%s13470_s4 + $0x78] sm:$0xff] %vm1379_vm1, %v5391_v60  ;;  %v5029_v52 = vpop.permute.xlu0 %5028  ;;  %v4884_v7 = vpop.permute.xlu1 %4883  ;;  %v4642_v34 = vmul.f32 %v14921_v41, %v14920_v9  ;;  %v14922_v8 = vld [vmem:[#allocation48_spill] sm:$0xff]  ;;  %v4701_v19 = vmul.f32 %v11784_v3, %v14924_v21  ;;  %v6287_v3 = vld [vmem:[%s13469_s3 + $0x258] sm:$0xff] }
 0x61b   :  { %v5452_v2 = vadd.f32 %v5029_v52, %v4696_v1  ;;  %v5453_v24 = vadd.f32 %v5029_v52, %v4697_v13  ;;  %v5394_v30 = vadd.f32 %v4884_v7, %v4638_v18  ;;  %v5395_v28 = vadd.f32 %v4884_v7, %v4639_v15  ;;  %5348 = vperm.xlu0 %5980, %v4074_v16   ;;  %v14925_v16 = vld [vmem:[#allocation250_spill] sm:$0xff]  ;;  %v6288_v0 = vld [vmem:[%s13469_s3 + $0x350] sm:$0xff] }
 0x61c   :  { %5203 = vperm.xlu1 %5979, %v4045_v62   ;;  %v4643_v60 = vmul.f32 %v14921_v41, %v14922_v8  ;;  %v4047_v18 = vsub.f32 %v6287_v3, %v14925_v16  ;;  %v14926_v39 = vld [vmem:[#allocation270_spill] sm:$0xff]  ;;  %v14934_v3 = vld [vmem:[#allocation261_spill] sm:$0xff] }
 0x61d   :  { %5668 = vst [vmem:[%s13470_s4 + $0x260] sm:$0xff] %v5452_v2  ;;  %5669 = vst.msk [vmem:[%s13470_s4 + $0x268] sm:$0xff] %vm1379_vm1, %v5453_v24  ;;  %v4078_v62 = vsub.f32 %v6288_v0, %v14926_v39  ;;  %v14927_v52 = vld [vmem:[#allocation54_spill] sm:$0xff]  ;;  %v14929_v24 = vld [vmem:[#allocation56_spill] sm:$0xff] }
 0x61e   :  { %5610 = vst [vmem:[%s13470_s4 + $0x90] sm:$0xff] %v5394_v30  ;;  %5611 = vst.msk [vmem:[%s13470_s4 + $0x98] sm:$0xff] %vm1379_vm1, %v5395_v28  ;;  %v5039_v58 = vpop.permute.xlu0 %5038  ;;  %v4894_v15 = vpop.permute.xlu1 %4893  ;;  %v14928_v7 = vld [vmem:[#allocation326_spill] sm:$0xff]  ;;  %v14930_v28 = vld [vmem:[#allocation251_spill] sm:$0xff] }
 0x61f   :  { %v5456_v57 = vadd.f32 %v5039_v58, %v4700_v37  ;;  %v5457_v1 = vadd.f32 %v5039_v58, %v4701_v19  ;;  %v5398_v59 = vadd.f32 %v4894_v15, %v4642_v34  ;;  %v5399_v13 = vadd.f32 %v4894_v15, %v4643_v60  ;;  %5358 = vperm.xlu0 %5980, %v4076_v6   ;;  %v14931_v43 = vld [vmem:[#allocation254_spill] sm:$0xff]  ;;  %v14932_v6 = vld [vmem:[#allocation340_spill] sm:$0xff] }
 0x620   :  { %5213 = vperm.xlu1 %5979, %v4047_v18   ;;  %v4646_v2 = vmul.f32 %v14928_v7, %v14927_v52  ;;  %v4647_v30 = vmul.f32 %v14928_v7, %v14929_v24  ;;  %v4704_v38 = vmul.f32 %v11793_v55, %v14930_v28  ;;  %v4705_v9 = vmul.f32 %v11793_v55, %v14931_v43  ;;  %v6289_v55 = vld [vmem:[%s13469_s3 + $0x268] sm:$0xff]  ;;  %v14933_v19 = vld [vmem:[#allocation62_spill] sm:$0xff]  ;;  %v14935_v18 = vld [vmem:[#allocation64_spill] sm:$0xff] }
 0x621   :  { %5672 = vst [vmem:[%s13470_s4 + $0x280] sm:$0xff] %v5456_v57  ;;  %5673 = vst.msk [vmem:[%s13470_s4 + $0x288] sm:$0xff] %vm1379_vm1, %v5457_v1  ;;  %v4049_v41 = vsub.f32 %v6289_v55, %v14932_v6  ;;  %v4650_v16 = vmul.f32 %v14934_v3, %v14933_v19  ;;  %v4651_v58 = vmul.f32 %v14934_v3, %v14935_v18  ;;  %v14936_v15 = vld [vmem:[#allocation268_spill] sm:$0xff]  ;;  %v14937_v1 = vld [vmem:[#allocation269_spill] sm:$0xff] }
 0x622   :  { %5614 = vst [vmem:[%s13470_s4 + $0xb0] sm:$0xff] %v5398_v59  ;;  %5615 = vst.msk [vmem:[%s13470_s4 + $0xb8] sm:$0xff] %vm1379_vm1, %v5399_v13  ;;  %v5049_v34 = vpop.permute.xlu0 %5048  ;;  %v4904_v8 = vpop.permute.xlu1 %4903  ;;  %v4708_v57 = vmul.f32 %v11806_v56, %v14936_v15  ;;  %v4709_v59 = vmul.f32 %v11806_v56, %v14937_v1  ;;  %v6290_v56 = vld [vmem:[%s13469_s3 + $0x278] sm:$0xff]  ;;  %v14938_v13 = vld [vmem:[#allocation234_spill] sm:$0xff] }
 0x623   :  { %v5460_v60 = vadd.f32 %v5049_v34, %v4704_v38  ;;  %v5461_v42 = vadd.f32 %v5049_v34, %v4705_v9  ;;  %v5402_v37 = vadd.f32 %v4904_v8, %v4646_v2  ;;  %v5403_v21 = vadd.f32 %v4904_v8, %v4647_v30  ;;  %5368 = vperm.xlu0 %5980, %v4078_v62   ;;  %v14939_v30 = vld [vmem:[#allocation70_spill] sm:$0xff]  ;;  %v14940_v28 = vld [vmem:[#allocation215_spill] sm:$0xff]  ;;  %v14941_v43 = vld [vmem:[#allocation72_spill] sm:$0xff] }
 0x624   :  { %5223 = vperm.xlu1 %5979, %v4049_v41   ;;  %v4051_v0 = vsub.f32 %v6290_v56, %v14938_v13  ;;  %v4654_v38 = vmul.f32 %v14940_v28, %v14939_v30  ;;  %v4655_v9 = vmul.f32 %v14940_v28, %v14941_v43  ;;  %v14942_v55 = vld [vmem:[#allocation191_spill] sm:$0xff]  ;;  %v14944_v8 = vld [vmem:[#allocation128_spill] sm:$0xff]  ;;  %v14945_v18 = vld [vmem:[#allocation78_spill] sm:$0xff] }
 0x625   :  { %5676 = vst [vmem:[%s13470_s4 + $0x2a0] sm:$0xff] %v5460_v60  ;;  %5677 = vst.msk [vmem:[%s13470_s4 + $0x2a8] sm:$0xff] %vm1379_vm1, %v5461_v42  ;;  %v4712_v6 = vmul.f32 %v11818_v25, %v14942_v55  ;;  %v14943_v41 = vld [vmem:[#allocation231_spill] sm:$0xff]  ;;  %v14952_v43 = vld [vmem:[#allocation344_spill] sm:$0xff] }
 0x626   :  { %5618 = vst [vmem:[%s13470_s4 + $0xd0] sm:$0xff] %v5402_v37  ;;  %5619 = vst.msk [vmem:[%s13470_s4 + $0xd8] sm:$0xff] %vm1379_vm1, %v5403_v21  ;;  %v5059_v39 = vpop.permute.xlu0 %5058  ;;  %v4914_v62 = vpop.permute.xlu1 %4913  ;;  %v4713_v34 = vmul.f32 %v11818_v25, %v14943_v41  ;;  %v6291_v25 = vld [vmem:[%s13469_s3 + $0x288] sm:$0xff]  ;;  %v14953_v55 = vld [vmem:[#allocation88_spill] sm:$0xff] }
 0x627   :  { %v5464_v52 = vadd.f32 %v5059_v39, %v4708_v57  ;;  %v5465_v7 = vadd.f32 %v5059_v39, %v4709_v59  ;;  %v5406_v2 = vadd.f32 %v4914_v62, %v4650_v16  ;;  %v5407_v24 = vadd.f32 %v4914_v62, %v4651_v58  ;;  %v14946_v58 = vld [vmem:[#allocation298_spill] sm:$0xff]  ;;  %v14947_v57 = vld [vmem:[#allocation80_spill] sm:$0xff]  ;;  %v14949_v13 = vld [vmem:[#allocation275_spill] sm:$0xff] }
 0x628   :  { %5233 = vperm.xlu1 %5979, %v4051_v0   ;;  %v4053_v60 = vsub.f32 %v6291_v25, %v14944_v8  ;;  %v4658_v15 = vmul.f32 %v14946_v58, %v14945_v18  ;;  %v4659_v1 = vmul.f32 %v14946_v58, %v14947_v57  ;;  %v14948_v59 = vld [vmem:[#allocation274_spill] sm:$0xff]  ;;  %v4717_v0 = vmul.f32 %v11830_v20, %v14949_v13  ;;  %v14950_v39 = vld [vmem:[#allocation348_spill] sm:$0xff]  ;;  %v14955_v25 = vld [vmem:[#allocation289_spill] sm:$0xff] }
 0x629   :  { %5680 = vst [vmem:[%s13470_s4 + $0x2c0] sm:$0xff] %v5464_v52  ;;  %5681 = vst.msk [vmem:[%s13470_s4 + $0x2c8] sm:$0xff] %vm1379_vm1, %v5465_v7  ;;  %v4716_v56 = vmul.f32 %v11830_v20, %v14948_v59  ;;  %v6292_v20 = vld [vmem:[%s13469_s3 + $0x298] sm:$0xff]  ;;  %v14954_v41 = vld [vmem:[#allocation288_spill] sm:$0xff]  ;;  %v4721_v8 = vmul.f32 %v11842_v35, %v14955_v25 }
 0x62a   :  { %5622 = vst [vmem:[%s13470_s4 + $0xf0] sm:$0xff] %v5406_v2  ;;  %5623 = vst.msk [vmem:[%s13470_s4 + $0xf8] sm:$0xff] %vm1379_vm1, %v5407_v24  ;;  %v5069_v42 = vpop.permute.xlu0 %5068  ;;  %v4924_v37 = vpop.permute.xlu1 %4923  ;;  %v4055_v62 = vsub.f32 %v6292_v20, %v14950_v39  ;;  %v14957_v58 = vld [vmem:[#allocation94_spill] sm:$0xff]  ;;  %v14967_v25 = vld [vmem:[#allocation5_spill] sm:$0xff] }
 0x62b   :  { %v5468_v21 = vadd.f32 %v5069_v42, %v4712_v6  ;;  %v5469_v19 = vadd.f32 %v5069_v42, %v4713_v34  ;;  %v5410_v3 = vadd.f32 %v4924_v37, %v4654_v38  ;;  %v5411_v16 = vadd.f32 %v4924_v37, %v4655_v9  ;;  %v14951_v38 = vld [vmem:[#allocation86_spill] sm:$0xff] }
 0x62c   :  { %5243 = vperm.xlu1 %5979, %v4053_v60   ;;  %v4662_v9 = vmul.f32 %v14952_v43, %v14951_v38  ;;  %v4663_v6 = vmul.f32 %v14952_v43, %v14953_v55  ;;  %v4720_v34 = vmul.f32 %v11842_v35, %v14954_v41  ;;  %v6293_v35 = vld [vmem:[%s13469_s3 + $0x2a8] sm:$0xff]  ;;  %v14962_v39 = vld [vmem:[#allocation174_spill] sm:$0xff]  ;;  %v14963_v38 = vld [vmem:[#allocation104_spill] sm:$0xff] }
 0x62d   :  { %5684 = vst [vmem:[%s13470_s4 + $0x2e0] sm:$0xff] %v5468_v21  ;;  %5685 = vst.msk [vmem:[%s13470_s4 + $0x2e8] sm:$0xff] %vm1379_vm1, %v5469_v19  ;;  %v14956_v60 = vld [vmem:[#allocation175_spill] sm:$0xff] }
 0x62e   :  { %5626 = vst [vmem:[%s13470_s4 + $0x110] sm:$0xff] %v5410_v3  ;;  %5627 = vst.msk [vmem:[%s13470_s4 + $0x118] sm:$0xff] %vm1379_vm1, %v5411_v16  ;;  %v5079_v52 = vpop.permute.xlu0 %5078  ;;  %v4934_v7 = vpop.permute.xlu1 %4933  ;;  %v4057_v42 = vsub.f32 %v6293_v35, %v14956_v60  ;;  %v14964_v43 = vld [vmem:[#allocation223_spill] sm:$0xff]  ;;  %v14968_v35 = vld [vmem:[#allocation273_spill] sm:$0xff] }
 0x62f   :  { %v5472_v2 = vadd.f32 %v5079_v52, %v4716_v56  ;;  %v5473_v24 = vadd.f32 %v5079_v52, %v4717_v0  ;;  %v5414_v30 = vadd.f32 %v4934_v7, %v4658_v15  ;;  %v5415_v28 = vadd.f32 %v4934_v7, %v4659_v1  ;;  %v14958_v15 = vld [vmem:[#allocation103_spill] sm:$0xff]  ;;  %v14959_v1 = vld [vmem:[#allocation96_spill] sm:$0xff]  ;;  %v14960_v56 = vld [vmem:[#allocation313_spill] sm:$0xff] }
 0x630   :  { %5253 = vperm.xlu1 %5979, %v4055_v62   ;;  %v4666_v57 = vmul.f32 %v14958_v15, %v14957_v58  ;;  %v4667_v59 = vmul.f32 %v14958_v15, %v14959_v1  ;;  %v4724_v13 = vmul.f32 %v11854_v33, %v14960_v56  ;;  %v14961_v0 = vld [vmem:[#allocation314_spill] sm:$0xff]  ;;  %v14965_v55 = vld [vmem:[#allocation107_spill] sm:$0xff]  ;;  %v14970_v58 = vld [vmem:[#allocation213_spill] sm:$0xff] }
 0x631   :  { %5688 = vst [vmem:[%s13470_s4 + $0x300] sm:$0xff] %v5472_v2  ;;  %5689 = vst.msk [vmem:[%s13470_s4 + $0x308] sm:$0xff] %vm1379_vm1, %v5473_v24  ;;  %v4725_v20 = vmul.f32 %v11854_v33, %v14961_v0  ;;  %v6294_v33 = vld [vmem:[%s13469_s3 + $0x2b8] sm:$0xff]  ;;  %v14966_v41 = vld [vmem:[#allocation3_spill] sm:$0xff] }
 0x632   :  { %5630 = vst [vmem:[%s13470_s4 + $0x130] sm:$0xff] %v5414_v30  ;;  %5631 = vst.msk [vmem:[%s13470_s4 + $0x138] sm:$0xff] %vm1379_vm1, %v5415_v28  ;;  %v5089_v37 = vpop.permute.xlu0 %5088  ;;  %v4944_v21 = vpop.permute.xlu1 %4943  ;;  %v4059_v62 = vsub.f32 %v6294_v33, %v14962_v39 }
 0x633   :  { %v5476_v19 = vadd.f32 %v5089_v37, %v4720_v34  ;;  %v5477_v3 = vadd.f32 %v5089_v37, %v4721_v8  ;;  %v5418_v16 = vadd.f32 %v4944_v21, %v4662_v9  ;;  %v5419_v18 = vadd.f32 %v4944_v21, %v4663_v6 }
 0x634   :  { %5263 = vperm.xlu1 %5979, %v4057_v42   ;;  %v4670_v9 = vmul.f32 %v14964_v43, %v14963_v38  ;;  %v4671_v6 = vmul.f32 %v14964_v43, %v14965_v55  ;;  %v4728_v34 = vmul.f32 %v11866_v32, %v14966_v41  ;;  %v4729_v8 = vmul.f32 %v11866_v32, %v14967_v25  ;;  %v6295_v32 = vld [vmem:[%s13469_s3 + $0x2c8] sm:$0xff]  ;;  %v14977_v43 = vld [vmem:[#allocation132_spill] sm:$0xff]  ;;  %v14979_v41 = vld [vmem:[#allocation21_spill] sm:$0xff] }
 0x635   :  { %5692 = vst [vmem:[%s13470_s4 + $0x320] sm:$0xff] %v5476_v19  ;;  %5693 = vst.msk [vmem:[%s13470_s4 + $0x328] sm:$0xff] %vm1379_vm1, %v5477_v3  ;;  %v4061_v60 = vsub.f32 %v6295_v32, %v14968_v35  ;;  %v14978_v55 = vld [vmem:[#allocation19_spill] sm:$0xff]  ;;  %v14980_v25 = vld [vmem:[#allocation253_spill] sm:$0xff] }
 0x636   :  { %5634 = vst [vmem:[%s13470_s4 + $0x150] sm:$0xff] %v5418_v16  ;;  %5635 = vst.msk [vmem:[%s13470_s4 + $0x158] sm:$0xff] %vm1379_vm1, %v5419_v18  ;;  %v5099_v52 = vpop.permute.xlu0 %5098  ;;  %v4954_v7 = vpop.permute.xlu1 %4953  ;;  %v14969_v18 = vld [vmem:[#allocation117_spill] sm:$0xff] }
 0x637   :  { %v5480_v2 = vadd.f32 %v5099_v52, %v4724_v13  ;;  %v5481_v24 = vadd.f32 %v5099_v52, %v4725_v20  ;;  %v5422_v30 = vadd.f32 %v4954_v7, %v4666_v57  ;;  %v5423_v28 = vadd.f32 %v4954_v7, %v4667_v59  ;;  %v14971_v57 = vld [vmem:[#allocation119_spill] sm:$0xff]  ;;  %v14973_v13 = vld [vmem:[#allocation13_spill] sm:$0xff] }
 0x638   :  { %5273 = vperm.xlu1 %5979, %v4059_v62   ;;  %v4674_v15 = vmul.f32 %v14970_v58, %v14969_v18  ;;  %v4675_v1 = vmul.f32 %v14970_v58, %v14971_v57  ;;  %v14972_v59 = vld [vmem:[#allocation11_spill] sm:$0xff]  ;;  %v4733_v0 = vmul.f32 %v11878_v27, %v14973_v13 }
 0x639   :  { %5696 = vst [vmem:[%s13470_s4 + $0x340] sm:$0xff] %v5480_v2  ;;  %5697 = vst.msk [vmem:[%s13470_s4 + $0x348] sm:$0xff] %vm1379_vm1, %v5481_v24  ;;  %v4732_v56 = vmul.f32 %v11878_v27, %v14972_v59  ;;  %v6296_v27 = vld [vmem:[%s13469_s3 + $0x2d8] sm:$0xff]  ;;  %v14974_v20 = vld [vmem:[#allocation295_spill] sm:$0xff] }
 0x63a   :  { %5638 = vst [vmem:[%s13470_s4 + $0x170] sm:$0xff] %v5422_v30  ;;  %5639 = vst.msk [vmem:[%s13470_s4 + $0x178] sm:$0xff] %vm1379_vm1, %v5423_v28  ;;  %v5109_v42 = vpop.permute.xlu0 %5108  ;;  %v4964_v37 = vpop.permute.xlu1 %4963  ;;  %v4063_v33 = vsub.f32 %v6296_v27, %v14974_v20  ;;  %v14975_v30 = vld [vmem:[#allocation130_spill] sm:$0xff]  ;;  %v14976_v28 = vld [vmem:[#allocation264_spill] sm:$0xff] }
 0x63b   :  { %v5484_v21 = vadd.f32 %v5109_v42, %v4728_v34  ;;  %v5485_v19 = vadd.f32 %v5109_v42, %v4729_v8  ;;  %v5426_v3 = vadd.f32 %v4964_v37, %v4670_v9  ;;  %v5427_v16 = vadd.f32 %v4964_v37, %v4671_v6  ;;  %v14983_v18 = vld [vmem:[#allocation143_spill] sm:$0xff] }
 0x63c   :  { %5283 = vperm.xlu1 %5979, %v4061_v60   ;;  %v4678_v38 = vmul.f32 %v14976_v28, %v14975_v30  ;;  %v4679_v9 = vmul.f32 %v14976_v28, %v14977_v43  ;;  %v4736_v6 = vmul.f32 %v11890_v36, %v14978_v55  ;;  %v4737_v34 = vmul.f32 %v11890_v36, %v14979_v41  ;;  %v6297_v36 = vld [vmem:[%s13469_s3 + $0x2e8] sm:$0xff]  ;;  %v14991_v43 = vld [vmem:[#allocation37_spill] sm:$0xff] }
 0x63d   :  { %5700 = vst [vmem:[%s13470_s4 + $0x360] sm:$0xff] %v5484_v21  ;;  %5701 = vst.msk [vmem:[%s13470_s4 + $0x368] sm:$0xff] %vm1379_vm1, %v5485_v19  ;;  %v4065_v8 = vsub.f32 %v6297_v36, %v14980_v25  ;;  %v14981_v19 = vld [vmem:[#allocation141_spill] sm:$0xff]  ;;  %v14990_v28 = vld [vmem:[#allocation35_spill] sm:$0xff] }
 0x63e   :  { %5642 = vst [vmem:[%s13470_s4 + $0x190] sm:$0xff] %v5426_v3  ;;  %5643 = vst.msk [vmem:[%s13470_s4 + $0x198] sm:$0xff] %vm1379_vm1, %v5427_v16  ;;  %v5119_v39 = vpop.permute.xlu0 %5118  ;;  %v4974_v62 = vpop.permute.xlu1 %4973  ;;  %v14982_v3 = vld [vmem:[#allocation196_spill] sm:$0xff]  ;;  %v14992_v55 = vld [vmem:[#allocation187_spill] sm:$0xff] }
 0x63f   :  { %v5488_v52 = vadd.f32 %v5119_v39, %v4732_v56  ;;  %v5489_v7 = vadd.f32 %v5119_v39, %v4733_v0  ;;  %v5430_v2 = vadd.f32 %v4974_v62, %v4674_v15  ;;  %v5431_v24 = vadd.f32 %v4974_v62, %v4675_v1  ;;  %v14984_v15 = vld [vmem:[#allocation27_spill] sm:$0xff]  ;;  %v14985_v1 = vld [vmem:[#allocation29_spill] sm:$0xff]  ;;  %v14986_v56 = vld [vmem:[#allocation198_spill] sm:$0xff] }
 0x640   :  { %5293 = vperm.xlu1 %5979, %v4063_v33   ;;  %v4682_v16 = vmul.f32 %v14982_v3, %v14981_v19  ;;  %v4683_v58 = vmul.f32 %v14982_v3, %v14983_v18  ;;  %v4740_v57 = vmul.f32 %v11902_v14, %v14984_v15  ;;  %v4741_v59 = vmul.f32 %v11902_v14, %v14985_v1  ;;  %v6298_v14 = vld [vmem:[%s13469_s3 + $0x2f8] sm:$0xff]  ;;  %v14996_v19 = vld [vmem:[#allocation43_spill] sm:$0xff] }
 0x641   :  { %5704 = vst [vmem:[%s13470_s4 + $0x380] sm:$0xff] %v5488_v52  ;;  %5705 = vst.msk [vmem:[%s13470_s4 + $0x388] sm:$0xff] %vm1379_vm1, %v5489_v7  ;;  %v4067_v13 = vsub.f32 %v6298_v14, %v14986_v56  ;;  %v14987_v52 = vld [vmem:[#allocation149_spill] sm:$0xff]  ;;  %v14988_v7 = vld [vmem:[#allocation236_spill] sm:$0xff]  ;;  %v4748_v3 = vmul.f32 %v11926_v45, %v14996_v19 }
 0x642   :  { %5646 = vst [vmem:[%s13470_s4 + $0x1b0] sm:$0xff] %v5430_v2  ;;  %5647 = vst.msk [vmem:[%s13470_s4 + $0x1b8] sm:$0xff] %vm1379_vm1, %v5431_v24  ;;  %v5129_v32 = vpop.permute.xlu0 %5128  ;;  %v4984_v35 = vpop.permute.xlu1 %4983  ;;  %v4686_v2 = vmul.f32 %v14988_v7, %v14987_v52  ;;  %v14989_v24 = vld [vmem:[#allocation151_spill] sm:$0xff] }
 0x643   :  { %v5492_v60 = vadd.f32 %v5129_v32, %v4736_v6  ;;  %v5493_v42 = vadd.f32 %v5129_v32, %v4737_v34  ;;  %v5434_v37 = vadd.f32 %v4984_v35, %v4678_v38  ;;  %v5435_v21 = vadd.f32 %v4984_v35, %v4679_v9  ;;  %v14993_v35 = vld [vmem:[#allocation161_spill] sm:$0xff]  ;;  %v15002_v52 = vld [vmem:[#allocation183_spill] sm:$0xff] }
 0x644   :  { %5303 = vperm.xlu1 %5979, %v4065_v8   ;;  %v4687_v30 = vmul.f32 %v14988_v7, %v14989_v24  ;;  %v4744_v38 = vmul.f32 %v11914_v29, %v14990_v28  ;;  %v4745_v9 = vmul.f32 %v11914_v29, %v14991_v43  ;;  %v6299_v29 = vld [vmem:[%s13469_s3 + $0x308] sm:$0xff]  ;;  %v15003_v7 = vld [vmem:[#allocation126_spill] sm:$0xff]  ;;  %v15004_v24 = vld [vmem:[#allocation184_spill] sm:$0xff] }
 0x645   :  { %5708 = vst [vmem:[%s13470_s4 + $0x3a0] sm:$0xff] %v5492_v60  ;;  %5709 = vst.msk [vmem:[%s13470_s4 + $0x3a8] sm:$0xff] %vm1379_vm1, %v5493_v42  ;;  %v4069_v6 = vsub.f32 %v6299_v29, %v14992_v55  ;;  %v14994_v60 = vld [vmem:[#allocation170_spill] sm:$0xff] }
 0x646   :  { %5650 = vst [vmem:[%s13470_s4 + $0x1d0] sm:$0xff] %v5434_v37  ;;  %5651 = vst.msk [vmem:[%s13470_s4 + $0x1d8] sm:$0xff] %vm1379_vm1, %v5435_v21  ;;  %v5139_v0 = vpop.permute.xlu0 %5138  ;;  %v4994_v27 = vpop.permute.xlu1 %4993  ;;  %v4690_v42 = vmul.f32 %v14994_v60, %v14993_v35  ;;  %v14995_v37 = vld [vmem:[#allocation162_spill] sm:$0xff] }
 0x647   :  { %v5496_v20 = vadd.f32 %v5139_v0, %v4740_v57  ;;  %v5497_v33 = vadd.f32 %v5139_v0, %v4741_v59  ;;  %v5438_v39 = vadd.f32 %v4994_v27, %v4682_v16  ;;  %v5439_v62 = vadd.f32 %v4994_v27, %v4683_v58  ;;  %v14997_v16 = vld [vmem:[#allocation45_spill] sm:$0xff]  ;;  %v14998_v58 = vld [vmem:[#allocation280_spill] sm:$0xff]  ;;  %v14999_v0 = vld [vmem:[#allocation51_spill] sm:$0xff] }
 0x648   :  { %5313 = vperm.xlu1 %5979, %v4067_v13   ;;  %v4691_v21 = vmul.f32 %v14994_v60, %v14995_v37  ;;  %v4749_v18 = vmul.f32 %v11926_v45, %v14997_v16  ;;  %v6300_v45 = vld [vmem:[%s13469_s3 + $0x318] sm:$0xff]  ;;  %v4752_v27 = vmul.f32 %v11938_v44, %v14999_v0  ;;  %v15008_v35 = vld [vmem:[#allocation206_spill] sm:$0xff]  ;;  %v15009_v60 = vld [vmem:[#allocation239_spill] sm:$0xff] }
 0x649   :  { %5712 = vst [vmem:[%s13470_s4 + $0x3c0] sm:$0xff] %v5496_v20  ;;  %5713 = vst.msk [vmem:[%s13470_s4 + $0x3c8] sm:$0xff] %vm1379_vm1, %v5497_v33  ;;  %v4071_v15 = vsub.f32 %v6300_v45, %v14998_v58  ;;  %v15000_v20 = vld [vmem:[#allocation53_spill] sm:$0xff]  ;;  %v15010_v37 = vld [vmem:[#allocation207_spill] sm:$0xff] }
 0x64a   :  { %5654 = vst [vmem:[%s13470_s4 + $0x1f0] sm:$0xff] %v5438_v39  ;;  %5655 = vst.msk [vmem:[%s13470_s4 + $0x1f8] sm:$0xff] %vm1379_vm1, %v5439_v62  ;;  %v5149_v41 = vpop.permute.xlu0 %5148  ;;  %v5004_v34 = vpop.permute.xlu1 %5003  ;;  %v4753_v33 = vmul.f32 %v11938_v44, %v15000_v20  ;;  %v6301_v44 = vld [vmem:[%s13469_s3 + $0x328] sm:$0xff]  ;;  %v15015_v0 = vld [vmem:[#allocation122_spill] sm:$0xff] }
 0x64b   :  { %v5500_v36 = vadd.f32 %v5149_v41, %v4744_v38  ;;  %v5501_v25 = vadd.f32 %v5149_v41, %v4745_v9  ;;  %v5442_v8 = vadd.f32 %v5004_v34, %v4686_v2  ;;  %v5443_v32 = vadd.f32 %v5004_v34, %v4687_v30  ;;  %v15001_v39 = vld [vmem:[#allocation323_spill] sm:$0xff]  ;;  %v15006_v34 = vld [vmem:[#allocation61_spill] sm:$0xff] }
 0x64c   :  { %5323 = vperm.xlu1 %5979, %v4069_v6   ;;  %v4073_v62 = vsub.f32 %v6301_v44, %v15001_v39  ;;  %v4694_v2 = vmul.f32 %v15003_v7, %v15002_v52  ;;  %v4695_v30 = vmul.f32 %v15003_v7, %v15004_v24  ;;  %v15005_v6 = vld [vmem:[#allocation59_spill] sm:$0xff] }
 0x64d   :  { %5716 = vst [vmem:[%s13470_s4 + $0x3e0] sm:$0xff] %v5500_v36  ;;  %5717 = vst.msk [vmem:[%s13470_s4 + $0x3e8] sm:$0xff] %vm1379_vm1, %v5501_v25  ;;  %v4756_v41 = vmul.f32 %v11950_v31, %v15005_v6  ;;  %v4757_v36 = vmul.f32 %v11950_v31, %v15006_v34  ;;  %v6302_v25 = vld [vmem:[%s13469_s3 + $0x338] sm:$0xff]  ;;  %v4699_v31 = vmul.f32 %v15009_v60, %v15010_v37  ;;  %v15011_v58 = vld [vmem:[#allocation67_spill] sm:$0xff] }
 0x64e   :  { %5658 = vst [vmem:[%s13470_s4 + $0x210] sm:$0xff] %v5442_v8  ;;  %5659 = vst.msk [vmem:[%s13470_s4 + $0x218] sm:$0xff] %vm1379_vm1, %v5443_v32  ;;  %v5159_v57 = vpop.permute.xlu0 %5158  ;;  %v5014_v1 = vpop.permute.xlu1 %5013  ;;  %v15007_v8 = vld [vmem:[#allocation237_spill] sm:$0xff]  ;;  %v15016_v20 = vld [vmem:[#allocation227_spill] sm:$0xff] }
 0x64f   :  { %v5504_v59 = vadd.f32 %v5159_v57, %v4748_v3  ;;  %v5505_v14 = vadd.f32 %v5159_v57, %v4749_v18  ;;  %v5446_v56 = vadd.f32 %v5014_v1, %v4690_v42  ;;  %v5447_v13 = vadd.f32 %v5014_v1, %v4691_v21  ;;  %v15012_v57 = vld [vmem:[#allocation69_spill] sm:$0xff] }
 0x650   :  { %5333 = vperm.xlu1 %5979, %v4071_v15   ;;  %v4075_v32 = vsub.f32 %v6302_v25, %v15007_v8  ;;  %v4698_v42 = vmul.f32 %v15009_v60, %v15008_v35  ;;  %v4760_v15 = vmul.f32 %v11962_v61, %v15011_v58  ;;  %v4761_v1 = vmul.f32 %v11962_v61, %v15012_v57  ;;  %v15023_v60 = vld [vmem:[#allocation83_spill] sm:$0xff]  ;;  %v15024_v37 = vld [vmem:[#allocation85_spill] sm:$0xff] }
 0x651   :  { %5720 = vst [vmem:[%s13470_s4 + $0x400] sm:$0xff] %v5504_v59  ;;  %5721 = vst.msk [vmem:[%s13470_s4 + $0x408] sm:$0xff] %vm1379_vm1, %v5505_v14  ;;  %v6303_v59 = vld [vmem:[%s13469_s3 + $0x348] sm:$0xff]  ;;  %v4703_v61 = vmul.f32 %v15015_v0, %v15016_v20 }
 0x652   :  { %5662 = vst [vmem:[%s13470_s4 + $0x230] sm:$0xff] %v5446_v56  ;;  %5663 = vst.msk [vmem:[%s13470_s4 + $0x238] sm:$0xff] %vm1379_vm1, %v5447_v13  ;;  %v5169_v28 = vpop.permute.xlu0 %5168  ;;  %v5024_v9 = vpop.permute.xlu1 %5023  ;;  %v15013_v14 = vld [vmem:[#allocation171_spill] sm:$0xff]  ;;  %v15014_v13 = vld [vmem:[#allocation226_spill] sm:$0xff] }
 0x653   :  { %v5508_v38 = vadd.f32 %v5169_v28, %v4752_v27  ;;  %v5509_v43 = vadd.f32 %v5169_v28, %v4753_v33  ;;  %v5450_v29 = vadd.f32 %v5024_v9, %v4694_v2  ;;  %v5451_v55 = vadd.f32 %v5024_v9, %v4695_v30  ;;  %v15017_v2 = vld [vmem:[#allocation75_spill] sm:$0xff]  ;;  %v15018_v30 = vld [vmem:[#allocation77_spill] sm:$0xff] }
 0x654   :  { %5343 = vperm.xlu1 %5979, %v4073_v62   ;;  %v4077_v56 = vsub.f32 %v6303_v59, %v15013_v14  ;;  %v4702_v27 = vmul.f32 %v15015_v0, %v15014_v13  ;;  %v4764_v24 = vmul.f32 %v11974_v12, %v15017_v2  ;;  %v4765_v28 = vmul.f32 %v11974_v12, %v15018_v30  ;;  %v15028_v59 = vld [vmem:[#allocation91_spill] sm:$0xff]  ;;  %v15030_v0 = vld [vmem:[#allocation165_spill] sm:$0xff]  ;;  %v15034_v30 = vld [vmem:[#allocation102_spill] sm:$0xff] }
 0x655   :  { %5724 = vst [vmem:[%s13470_s4 + $0x420] sm:$0xff] %v5508_v38  ;;  %5725 = vst.msk [vmem:[%s13470_s4 + $0x428] sm:$0xff] %vm1379_vm1, %v5509_v43  ;;  %v6304_v38 = vld [vmem:[%s13469_s3 + $0x358] sm:$0xff]  ;;  %v4772_v14 = vmul.f32 %v11998_v23, %v15028_v59  ;;  %v15033_v2 = vld [vmem:[#allocation99_spill] sm:$0xff] }
 0x656   :  { %5666 = vst [vmem:[%s13470_s4 + $0x250] sm:$0xff] %v5450_v29  ;;  %5667 = vst.msk [vmem:[%s13470_s4 + $0x258] sm:$0xff] %vm1379_vm1, %v5451_v55  ;;  %v5179_v21 = vpop.permute.xlu0 %5178  ;;  %v5034_v16 = vpop.permute.xlu1 %5033  ;;  %v15019_v43 = vld [vmem:[#allocation121_spill] sm:$0xff]  ;;  %v15020_v29 = vld [vmem:[#allocation255_spill] sm:$0xff] }
 0x657   :  { %v5512_v19 = vadd.f32 %v5179_v21, %v4756_v41  ;;  %v5513_v3 = vadd.f32 %v5179_v21, %v4757_v36  ;;  %v5454_v18 = vadd.f32 %v5034_v16, %v4698_v42  ;;  %v5455_v45 = vadd.f32 %v5034_v16, %v4699_v31  ;;  %v15021_v55 = vld [vmem:[#allocation278_spill] sm:$0xff]  ;;  %v15025_v21 = vld [vmem:[#allocation164_spill] sm:$0xff] }
 0x658   :  { %5353 = vperm.xlu1 %5979, %v4075_v32   ;;  %v4079_v9 = vsub.f32 %v6304_v38, %v15019_v43  ;;  %v4706_v6 = vmul.f32 %v15021_v55, %v15020_v29  ;;  %v15022_v41 = vld [vmem:[#allocation258_spill] sm:$0xff]  ;;  %v4768_v42 = vmul.f32 %v11986_v63, %v15023_v60  ;;  %v4769_v31 = vmul.f32 %v11986_v63, %v15024_v37  ;;  %v15027_v16 = vld [vmem:[#allocation168_spill] sm:$0xff]  ;;  %v15035_v38 = vld [vmem:[#allocation283_spill] sm:$0xff] }
 0x659   :  { %5728 = vst [vmem:[%s13470_s4 + $0x440] sm:$0xff] %v5512_v19  ;;  %5729 = vst.msk [vmem:[%s13470_s4 + $0x448] sm:$0xff] %vm1379_vm1, %v5513_v3  ;;  %v4707_v12 = vmul.f32 %v15021_v55, %v15022_v41  ;;  %v15026_v19 = vld [vmem:[#allocation240_spill] sm:$0xff]  ;;  %v15036_v43 = vld [vmem:[#allocation242_spill] sm:$0xff] }
 0x65a   :  { %5670 = vst [vmem:[%s13470_s4 + $0x270] sm:$0xff] %v5454_v18  ;;  %5671 = vst.msk [vmem:[%s13470_s4 + $0x278] sm:$0xff] %vm1379_vm1, %v5455_v45  ;;  %v5189_v33 = vpop.permute.xlu0 %5188  ;;  %v5044_v62 = vpop.permute.xlu1 %5043  ;;  %v4710_v3 = vmul.f32 %v15026_v19, %v15025_v21  ;;  %v4711_v18 = vmul.f32 %v15026_v19, %v15027_v16  ;;  %v15037_v29 = vld [vmem:[#allocation284_spill] sm:$0xff]  ;;  %v15040_v60 = vld [vmem:[#allocation306_spill] sm:$0xff] }
 0x65b   :  { %v5516_v44 = vadd.f32 %v5189_v33, %v4760_v15  ;;  %v5517_v39 = vadd.f32 %v5189_v33, %v4761_v1  ;;  %v5458_v52 = vadd.f32 %v5044_v62, %v4702_v27  ;;  %v5459_v7 = vadd.f32 %v5044_v62, %v4703_v61  ;;  %v15031_v27 = vld [vmem:[#allocation259_spill] sm:$0xff]  ;;  %v15046_v59 = vld [vmem:[#allocation232_spill] sm:$0xff] }
 0x65c   :  { %5363 = vperm.xlu1 %5979, %v4077_v56   ;;  %v15029_v56 = vld [vmem:[#allocation93_spill] sm:$0xff]  ;;  %v4714_v20 = vmul.f32 %v15031_v27, %v15030_v0  ;;  %v15032_v61 = vld [vmem:[#allocation195_spill] sm:$0xff]  ;;  %v4719_v55 = vmul.f32 %v15036_v43, %v15037_v29 }
 0x65d   :  { %5732 = vst [vmem:[%s13470_s4 + $0x460] sm:$0xff] %v5516_v44  ;;  %5733 = vst.msk [vmem:[%s13470_s4 + $0x468] sm:$0xff] %vm1379_vm1, %v5517_v39  ;;  %v4773_v13 = vmul.f32 %v11998_v23, %v15029_v56  ;;  %v4715_v33 = vmul.f32 %v15031_v27, %v15032_v61  ;;  %v15047_v56 = vld [vmem:[#allocation334_spill] sm:$0xff] }
 0x65e   :  { %5674 = vst [vmem:[%s13470_s4 + $0x290] sm:$0xff] %v5458_v52  ;;  %5675 = vst.msk [vmem:[%s13470_s4 + $0x298] sm:$0xff] %vm1379_vm1, %v5459_v7  ;;  %v5199_v34 = vpop.permute.xlu0 %5198  ;;  %v5054_v8 = vpop.permute.xlu1 %5053 }
 0x65f   :  { %v5520_v36 = vadd.f32 %v5199_v34, %v4764_v24  ;;  %v5521_v25 = vadd.f32 %v5199_v34, %v4765_v28  ;;  %v5462_v32 = vadd.f32 %v5054_v8, %v4706_v6  ;;  %v5463_v35 = vadd.f32 %v5054_v8, %v4707_v12 }
 0x660   :  { %5373 = vperm.xlu1 %5979, %v4079_v9   ;;  %v4776_v24 = vmul.f32 %v12010_v10, %v15033_v2  ;;  %v4777_v28 = vmul.f32 %v12010_v10, %v15034_v30  ;;  %v4718_v9 = vmul.f32 %v15036_v43, %v15035_v38 }
 0x661   :  { %5736 = vst [vmem:[%s13470_s4 + $0x480] sm:$0xff] %v5520_v36  ;;  %5737 = vst.msk [vmem:[%s13470_s4 + $0x488] sm:$0xff] %vm1379_vm1, %v5521_v25  ;;  %v15038_v25 = vld [vmem:[#allocation112_spill] sm:$0xff] }
 0x662   :  { %5678 = vst [vmem:[%s13470_s4 + $0x2b0] sm:$0xff] %v5462_v32  ;;  %5679 = vst.msk [vmem:[%s13470_s4 + $0x2b8] sm:$0xff] %vm1379_vm1, %v5463_v35  ;;  %v5209_v63 = vpop.permute.xlu0 %5208  ;;  %v5064_v15 = vpop.permute.xlu1 %5063  ;;  %v4780_v8 = vmul.f32 %v12022_v47, %v15038_v25  ;;  %v15039_v32 = vld [vmem:[#allocation115_spill] sm:$0xff]  ;;  %v15057_v25 = vld [vmem:[#allocation17_spill] sm:$0xff] }
 0x663   :  { %v5524_v45 = vadd.f32 %v5209_v63, %v4768_v42  ;;  %v5525_v58 = vadd.f32 %v5209_v63, %v4769_v31  ;;  %v5466_v57 = vadd.f32 %v5064_v15, %v4710_v3  ;;  %v5467_v1 = vadd.f32 %v5064_v15, %v4711_v18  ;;  %v15041_v42 = vld [vmem:[#allocation209_spill] sm:$0xff]  ;;  %v15042_v31 = vld [vmem:[#allocation307_spill] sm:$0xff] }
 0x664   :  { %v4781_v35 = vmul.f32 %v12022_v47, %v15039_v32  ;;  %v4722_v37 = vmul.f32 %v15041_v42, %v15040_v60  ;;  %v4723_v21 = vmul.f32 %v15041_v42, %v15042_v31  ;;  %v15044_v15 = vld [vmem:[#allocation127_spill] sm:$0xff]  ;;  %v15058_v31 = vld [vmem:[#allocation160_spill] sm:$0xff] }
 0x665   :  { %5740 = vst [vmem:[%s13470_s4 + $0x4a0] sm:$0xff] %v5524_v45  ;;  %5741 = vst.msk [vmem:[%s13470_s4 + $0x4a8] sm:$0xff] %vm1379_vm1, %v5525_v58  ;;  %v15043_v45 = vld [vmem:[#allocation124_spill] sm:$0xff] }
 0x666   :  { %5682 = vst [vmem:[%s13470_s4 + $0x2d0] sm:$0xff] %v5466_v57  ;;  %5683 = vst.msk [vmem:[%s13470_s4 + $0x2d8] sm:$0xff] %vm1379_vm1, %v5467_v1  ;;  %v5219_v23 = vpop.permute.xlu0 %5218  ;;  %v5074_v62 = vpop.permute.xlu1 %5073  ;;  %v4784_v58 = vmul.f32 %v12036_v22, %v15043_v45  ;;  %v4785_v57 = vmul.f32 %v12036_v22, %v15044_v15  ;;  %v15045_v1 = vld [vmem:[#allocation332_spill] sm:$0xff] }
 0x667   :  { %v5528_v44 = vadd.f32 %v5219_v23, %v4772_v14  ;;  %v5529_v39 = vadd.f32 %v5219_v23, %v4773_v13  ;;  %v5470_v52 = vadd.f32 %v5074_v62, %v4714_v20  ;;  %v5471_v7 = vadd.f32 %v5074_v62, %v4715_v33  ;;  %v15048_v23 = vld [vmem:[#allocation136_spill] sm:$0xff] }
 0x668   :  { %v4726_v14 = vmul.f32 %v15046_v59, %v15045_v1  ;;  %v4727_v13 = vmul.f32 %v15046_v59, %v15047_v56 }
 0x669   :  { %5744 = vst [vmem:[%s13470_s4 + $0x4c0] sm:$0xff] %v5528_v44  ;;  %5745 = vst.msk [vmem:[%s13470_s4 + $0x4c8] sm:$0xff] %vm1379_vm1, %v5529_v39  ;;  %v4788_v44 = vmul.f32 %v12057_v5, %v15048_v23  ;;  %v15049_v39 = vld [vmem:[#allocation139_spill] sm:$0xff] }
 0x66a   :  { %5686 = vst [vmem:[%s13470_s4 + $0x2f0] sm:$0xff] %v5470_v52  ;;  %5687 = vst.msk [vmem:[%s13470_s4 + $0x2f8] sm:$0xff] %vm1379_vm1, %v5471_v7  ;;  %v5229_v10 = vpop.permute.xlu0 %5228  ;;  %v5084_v12 = vpop.permute.xlu1 %5083  ;;  %v4789_v62 = vmul.f32 %v12057_v5, %v15049_v39  ;;  %v15050_v52 = vld [vmem:[#allocation7_spill] sm:$0xff]  ;;  %v15051_v7 = vld [vmem:[#allocation218_spill] sm:$0xff] }
 0x66b   :  { %v5532_v6 = vadd.f32 %v5229_v10, %v4776_v24  ;;  %v5533_v41 = vadd.f32 %v5229_v10, %v4777_v28  ;;  %v5474_v34 = vadd.f32 %v5084_v12, %v4718_v9  ;;  %v5475_v36 = vadd.f32 %v5084_v12, %v4719_v55  ;;  %v15052_v24 = vld [vmem:[#allocation8_spill] sm:$0xff]  ;;  %v15055_v12 = vld [vmem:[#allocation15_spill] sm:$0xff] }
 0x66c   :  { %v4730_v2 = vmul.f32 %v15051_v7, %v15050_v52  ;;  %v4731_v30 = vmul.f32 %v15051_v7, %v15052_v24  ;;  %v15053_v55 = vld [vmem:[#allocation148_spill] sm:$0xff]  ;;  %v15068_v7 = vld [vmem:[#allocation205_spill] sm:$0xff] }
 0x66d   :  { %5748 = vst [vmem:[%s13470_s4 + $0x4e0] sm:$0xff] %v5532_v6  ;;  %5749 = vst.msk [vmem:[%s13470_s4 + $0x4e8] sm:$0xff] %vm1379_vm1, %v5533_v41  ;;  %v4792_v10 = vmul.f32 %v12078_v54, %v15053_v55  ;;  %v15054_v6 = vld [vmem:[#allocation150_spill] sm:$0xff]  ;;  %v15069_v24 = vld [vmem:[#allocation208_spill] sm:$0xff] }
 0x66e   :  { %5690 = vst [vmem:[%s13470_s4 + $0x310] sm:$0xff] %v5474_v34  ;;  %5691 = vst.msk [vmem:[%s13470_s4 + $0x318] sm:$0xff] %vm1379_vm1, %v5475_v36  ;;  %v5239_v47 = vpop.permute.xlu0 %5238  ;;  %v5094_v16 = vpop.permute.xlu1 %5093  ;;  %v4793_v41 = vmul.f32 %v12078_v54, %v15054_v6  ;;  %v15056_v34 = vld [vmem:[#allocation109_spill] sm:$0xff] }
 0x66f   :  { %v5536_v19 = vadd.f32 %v5239_v47, %v4780_v8  ;;  %v5537_v3 = vadd.f32 %v5239_v47, %v4781_v35  ;;  %v5478_v18 = vadd.f32 %v5094_v16, %v4722_v37  ;;  %v5479_v63 = vadd.f32 %v5094_v16, %v4723_v21  ;;  %v15059_v47 = vld [vmem:[#allocation163_spill] sm:$0xff]  ;;  %v15061_v16 = vld [vmem:[#allocation300_spill] sm:$0xff] }
 0x670   :  { %v4734_v36 = vmul.f32 %v15056_v34, %v15055_v12  ;;  %v4735_v8 = vmul.f32 %v15056_v34, %v15057_v25  ;;  %v4796_v21 = vmul.f32 %v12099_v51, %v15058_v31  ;;  %v15073_v12 = vld [vmem:[#allocation225_spill] sm:$0xff] }
 0x671   :  { %5752 = vst [vmem:[%s13470_s4 + $0x500] sm:$0xff] %v5536_v19  ;;  %5753 = vst.msk [vmem:[%s13470_s4 + $0x508] sm:$0xff] %vm1379_vm1, %v5537_v3  ;;  %v4797_v19 = vmul.f32 %v12099_v51, %v15059_v47  ;;  %v15060_v3 = vld [vmem:[#allocation23_spill] sm:$0xff]  ;;  %v4808_v34 = vmul.f32 %v12162_v49, %v15073_v12  ;;  %v15093_v12 = vld [vmem:[#allocation276_spill] sm:$0xff] }
 0x672   :  { %5694 = vst [vmem:[%s13470_s4 + $0x330] sm:$0xff] %v5478_v18  ;;  %5695 = vst.msk [vmem:[%s13470_s4 + $0x338] sm:$0xff] %vm1379_vm1, %v5479_v63  ;;  %v5249_v22 = vpop.permute.xlu0 %5248  ;;  %v5104_v20 = vpop.permute.xlu1 %5103  ;;  %v4738_v18 = vmul.f32 %v15061_v16, %v15060_v3  ;;  %v15062_v63 = vld [vmem:[#allocation25_spill] sm:$0xff] }
 0x673   :  { %v5540_v0 = vadd.f32 %v5249_v22, %v4784_v58  ;;  %v5541_v27 = vadd.f32 %v5249_v22, %v4785_v57  ;;  %v5482_v61 = vadd.f32 %v5104_v20, %v4726_v14  ;;  %v5483_v33 = vadd.f32 %v5104_v20, %v4727_v13  ;;  %v15063_v14 = vld [vmem:[#allocation182_spill] sm:$0xff]  ;;  %v15064_v13 = vld [vmem:[#allocation185_spill] sm:$0xff] }
 0x674   :  { %v4739_v45 = vmul.f32 %v15061_v16, %v15062_v63  ;;  %v4800_v56 = vmul.f32 %v12120_v11, %v15063_v14  ;;  %v4801_v22 = vmul.f32 %v12120_v11, %v15064_v13  ;;  %v15079_v16 = vld [vmem:[#allocation260_spill] sm:$0xff]  ;;  %v15080_v63 = vld [vmem:[#allocation55_spill] sm:$0xff] }
 0x675   :  { %5756 = vst [vmem:[%s13470_s4 + $0x520] sm:$0xff] %v5540_v0  ;;  %5757 = vst.msk [vmem:[%s13470_s4 + $0x528] sm:$0xff] %vm1379_vm1, %v5541_v27  ;;  %v15065_v0 = vld [vmem:[#allocation31_spill] sm:$0xff]  ;;  %v15083_v13 = vld [vmem:[#allocation156_spill] sm:$0xff] }
 0x676   :  { %5698 = vst [vmem:[%s13470_s4 + $0x350] sm:$0xff] %v5482_v61  ;;  %5699 = vst.msk [vmem:[%s13470_s4 + $0x358] sm:$0xff] %vm1379_vm1, %v5483_v33  ;;  %v5259_v5 = vpop.permute.xlu0 %5258  ;;  %v5114_v43 = vpop.permute.xlu1 %5113  ;;  %v15066_v27 = vld [vmem:[#allocation155_spill] sm:$0xff]  ;;  %v15067_v61 = vld [vmem:[#allocation33_spill] sm:$0xff] }
 0x677   :  { %v5544_v28 = vadd.f32 %v5259_v5, %v4788_v44  ;;  %v5545_v38 = vadd.f32 %v5259_v5, %v4789_v62  ;;  %v5486_v9 = vadd.f32 %v5114_v43, %v4730_v2  ;;  %v5487_v29 = vadd.f32 %v5114_v43, %v4731_v30  ;;  %v15070_v5 = vld [vmem:[#allocation39_spill] sm:$0xff]  ;;  %v15072_v43 = vld [vmem:[#allocation41_spill] sm:$0xff] }
 0x678   :  { %v4742_v20 = vmul.f32 %v15066_v27, %v15065_v0  ;;  %v4743_v33 = vmul.f32 %v15066_v27, %v15067_v61  ;;  %v4804_v2 = vmul.f32 %v12141_v40, %v15068_v7  ;;  %v4805_v30 = vmul.f32 %v12141_v40, %v15069_v24  ;;  %v15084_v0 = vld [vmem:[#allocation159_spill] sm:$0xff]  ;;  %v15086_v61 = vld [vmem:[#allocation294_spill] sm:$0xff] }
 0x679   :  { %5760 = vst [vmem:[%s13470_s4 + $0x540] sm:$0xff] %v5544_v28  ;;  %5761 = vst.msk [vmem:[%s13470_s4 + $0x548] sm:$0xff] %vm1379_vm1, %v5545_v38  ;;  %v15071_v28 = vld [vmem:[#allocation296_spill] sm:$0xff]  ;;  %v4817_v27 = vmul.f32 %v12204_v4, %v15084_v0  ;;  %v15105_v0 = vld [vmem:[#allocation95_spill] sm:$0xff] }
 0x67a   :  { %5702 = vst [vmem:[%s13470_s4 + $0x370] sm:$0xff] %v5486_v9  ;;  %5703 = vst.msk [vmem:[%s13470_s4 + $0x378] sm:$0xff] %vm1379_vm1, %v5487_v29  ;;  %v5269_v54 = vpop.permute.xlu0 %5268  ;;  %v5124_v60 = vpop.permute.xlu1 %5123  ;;  %v4746_v38 = vmul.f32 %v15071_v28, %v15070_v5  ;;  %v4747_v9 = vmul.f32 %v15071_v28, %v15072_v43  ;;  %v15090_v28 = vld [vmem:[#allocation71_spill] sm:$0xff] }
 0x67b   :  { %v5548_v32 = vadd.f32 %v5269_v54, %v4792_v10  ;;  %v5549_v35 = vadd.f32 %v5269_v54, %v4793_v41  ;;  %v5490_v42 = vadd.f32 %v5124_v60, %v4734_v36  ;;  %v5491_v37 = vadd.f32 %v5124_v60, %v4735_v8  ;;  %v15074_v36 = vld [vmem:[#allocation228_spill] sm:$0xff]  ;;  %v15075_v8 = vld [vmem:[#allocation47_spill] sm:$0xff] }
 0x67c   :  { %v4809_v25 = vmul.f32 %v12162_v49, %v15074_v36  ;;  %v15076_v54 = vld [vmem:[#allocation220_spill] sm:$0xff]  ;;  %v15094_v36 = vld [vmem:[#allocation277_spill] sm:$0xff] }
 0x67d   :  { %5764 = vst [vmem:[%s13470_s4 + $0x560] sm:$0xff] %v5548_v32  ;;  %5765 = vst.msk [vmem:[%s13470_s4 + $0x568] sm:$0xff] %vm1379_vm1, %v5549_v35  ;;  %v4750_v32 = vmul.f32 %v15076_v54, %v15075_v8  ;;  %v15077_v35 = vld [vmem:[#allocation49_spill] sm:$0xff]  ;;  %v15095_v8 = vld [vmem:[#allocation79_spill] sm:$0xff] }
 0x67e   :  { %5706 = vst [vmem:[%s13470_s4 + $0x390] sm:$0xff] %v5490_v42  ;;  %5707 = vst.msk [vmem:[%s13470_s4 + $0x398] sm:$0xff] %vm1379_vm1, %v5491_v37  ;;  %v5279_v51 = vpop.permute.xlu0 %5278  ;;  %v5134_v57 = vpop.permute.xlu1 %5133  ;;  %v4751_v60 = vmul.f32 %v15076_v54, %v15077_v35  ;;  %v15096_v54 = vld [vmem:[#allocation290_spill] sm:$0xff]  ;;  %v15097_v35 = vld [vmem:[#allocation81_spill] sm:$0xff] }
 0x67f   :  { %v5552_v58 = vadd.f32 %v5279_v51, %v4796_v21  ;;  %v5553_v15 = vadd.f32 %v5279_v51, %v4797_v19  ;;  %v5494_v1 = vadd.f32 %v5134_v57, %v4738_v18  ;;  %v5495_v59 = vadd.f32 %v5134_v57, %v4739_v45  ;;  %v15078_v19 = vld [vmem:[#allocation256_spill] sm:$0xff] }
 0x680   :  { %v4812_v3 = vmul.f32 %v12183_v50, %v15078_v19  ;;  %v4813_v18 = vmul.f32 %v12183_v50, %v15079_v16  ;;  %v15081_v45 = vld [vmem:[#allocation308_spill] sm:$0xff] }
 0x681   :  { %5768 = vst [vmem:[%s13470_s4 + $0x580] sm:$0xff] %v5552_v58  ;;  %5769 = vst.msk [vmem:[%s13470_s4 + $0x588] sm:$0xff] %vm1379_vm1, %v5553_v15  ;;  %v4754_v51 = vmul.f32 %v15081_v45, %v15080_v63  ;;  %v15082_v58 = vld [vmem:[#allocation57_spill] sm:$0xff] }
 0x682   :  { %5710 = vst [vmem:[%s13470_s4 + $0x3b0] sm:$0xff] %v5494_v1  ;;  %5711 = vst.msk [vmem:[%s13470_s4 + $0x3b8] sm:$0xff] %vm1379_vm1, %v5495_v59  ;;  %v5289_v11 = vpop.permute.xlu0 %5288  ;;  %v5144_v39 = vpop.permute.xlu1 %5143  ;;  %v4755_v15 = vmul.f32 %v15081_v45, %v15082_v58  ;;  %v15101_v63 = vld [vmem:[#allocation301_spill] sm:$0xff] }
 0x683   :  { %v5556_v23 = vadd.f32 %v5289_v11, %v4800_v56  ;;  %v5557_v44 = vadd.f32 %v5289_v11, %v4801_v22  ;;  %v5498_v62 = vadd.f32 %v5144_v39, %v4742_v20  ;;  %v5499_v52 = vadd.f32 %v5144_v39, %v4743_v33  ;;  %v15085_v20 = vld [vmem:[#allocation63_spill] sm:$0xff]  ;;  %v15087_v11 = vld [vmem:[#allocation65_spill] sm:$0xff] }
 0x684   :  { %v4816_v22 = vmul.f32 %v12204_v4, %v15083_v13  ;;  %v4758_v33 = vmul.f32 %v15086_v61, %v15085_v20  ;;  %v15104_v13 = vld [vmem:[#allocation317_spill] sm:$0xff] }
 0x685   :  { %5772 = vst [vmem:[%s13470_s4 + $0x5a0] sm:$0xff] %v5556_v23  ;;  %5773 = vst.msk [vmem:[%s13470_s4 + $0x5a8] sm:$0xff] %vm1379_vm1, %v5557_v44  ;;  %v4759_v23 = vmul.f32 %v15086_v61, %v15087_v11  ;;  %v15107_v61 = vld [vmem:[#allocation97_spill] sm:$0xff] }
 0x686   :  { %5714 = vst [vmem:[%s13470_s4 + $0x3d0] sm:$0xff] %v5498_v62  ;;  %5715 = vst.msk [vmem:[%s13470_s4 + $0x3d8] sm:$0xff] %vm1379_vm1, %v5499_v52  ;;  %v5299_v40 = vpop.permute.xlu0 %5298 }
 0x687   :  { %v5560_v29 = vadd.f32 %v5299_v40, %v4804_v2  ;;  %v5561_v55 = vadd.f32 %v5299_v40, %v4805_v30  ;;  %v5154_v10 = vpop.permute.xlu1 %5153  ;;  %v15088_v2 = vld [vmem:[#allocation101_spill] sm:$0xff]  ;;  %v15089_v30 = vld [vmem:[#allocation186_spill] sm:$0xff] }
 0x688   :  { %v5502_v6 = vadd.f32 %v5154_v10, %v4746_v38  ;;  %v5503_v41 = vadd.f32 %v5154_v10, %v4747_v9  ;;  %v4820_v24 = vmul.f32 %v12225_v17, %v15088_v2  ;;  %v4821_v5 = vmul.f32 %v12225_v17, %v15089_v30  ;;  %v15091_v38 = vld [vmem:[#allocation316_spill] sm:$0xff]  ;;  %v15092_v9 = vld [vmem:[#allocation73_spill] sm:$0xff] }
 0x689   :  { %5776 = vst [vmem:[%s13470_s4 + $0x5c0] sm:$0xff] %v5560_v29  ;;  %5777 = vst.msk [vmem:[%s13470_s4 + $0x5c8] sm:$0xff] %vm1379_vm1, %v5561_v55  ;;  %v4762_v43 = vmul.f32 %v15091_v38, %v15090_v28  ;;  %v4763_v40 = vmul.f32 %v15091_v38, %v15092_v9  ;;  %v15110_v2 = vld [vmem:[#allocation108_spill] sm:$0xff]  ;;  %v15111_v38 = vld [vmem:[#allocation118_spill] sm:$0xff] }
 0x68a   :  { %5718 = vst [vmem:[%s13470_s4 + $0x3f0] sm:$0xff] %v5502_v6  ;;  %5719 = vst.msk [vmem:[%s13470_s4 + $0x3f8] sm:$0xff] %vm1379_vm1, %v5503_v41  ;;  %v5309_v49 = vpop.permute.xlu0 %5308 }
 0x68b   :  { %v5564_v42 = vadd.f32 %v5309_v49, %v4808_v34  ;;  %v5565_v37 = vadd.f32 %v5309_v49, %v4809_v25  ;;  %v5164_v31 = vpop.permute.xlu1 %5163  ;;  %v4824_v34 = vmul.f32 %v12246_v26, %v15093_v12  ;;  %v4825_v25 = vmul.f32 %v12246_v26, %v15094_v36  ;;  %v15115_v12 = vld [vmem:[#allocation133_spill] sm:$0xff] }
 0x68c   :  { %v5506_v21 = vadd.f32 %v5164_v31, %v4750_v32  ;;  %v5507_v47 = vadd.f32 %v5164_v31, %v4751_v60  ;;  %v4766_v32 = vmul.f32 %v15096_v54, %v15095_v8  ;;  %v4767_v60 = vmul.f32 %v15096_v54, %v15097_v35  ;;  %v15116_v54 = vld [vmem:[#allocation142_spill] sm:$0xff] }
 0x68d   :  { %5780 = vst [vmem:[%s13470_s4 + $0x5e0] sm:$0xff] %v5564_v42  ;;  %5781 = vst.msk [vmem:[%s13470_s4 + $0x5e8] sm:$0xff] %vm1379_vm1, %v5565_v37 }
 0x68e   :  { %5722 = vst [vmem:[%s13470_s4 + $0x410] sm:$0xff] %v5506_v21  ;;  %5723 = vst.msk [vmem:[%s13470_s4 + $0x418] sm:$0xff] %vm1379_vm1, %v5507_v47  ;;  %v5319_v50 = vpop.permute.xlu0 %5318  ;;  %v15098_v47 = vld [vmem:[#allocation291_spill] sm:$0xff] }
 0x68f   :  { %v5568_v57 = vadd.f32 %v5319_v50, %v4812_v3  ;;  %v5569_v1 = vadd.f32 %v5319_v50, %v4813_v18  ;;  %v5174_v59 = vpop.permute.xlu1 %5173  ;;  %v4828_v19 = vmul.f32 %v12267_v48, %v15098_v47  ;;  %v15099_v3 = vld [vmem:[#allocation292_spill] sm:$0xff]  ;;  %v15100_v18 = vld [vmem:[#allocation87_spill] sm:$0xff]  ;;  %v15121_v47 = vld [vmem:[#allocation154_spill] sm:$0xff] }
 0x690   :  { %v5510_v14 = vadd.f32 %v5174_v59, %v4754_v51  ;;  %v5511_v56 = vadd.f32 %v5174_v59, %v4755_v15  ;;  %v4829_v16 = vmul.f32 %v12267_v48, %v15099_v3  ;;  %v4770_v45 = vmul.f32 %v15101_v63, %v15100_v18  ;;  %v15102_v51 = vld [vmem:[#allocation89_spill] sm:$0xff] }
 0x691   :  { %5784 = vst [vmem:[%s13470_s4 + $0x600] sm:$0xff] %v5568_v57  ;;  %5785 = vst.msk [vmem:[%s13470_s4 + $0x608] sm:$0xff] %vm1379_vm1, %v5569_v1  ;;  %v4771_v58 = vmul.f32 %v15101_v63, %v15102_v51  ;;  %v15122_v63 = vld [vmem:[#allocation166_spill] sm:$0xff] }
 0x692   :  { %5726 = vst [vmem:[%s13470_s4 + $0x430] sm:$0xff] %v5510_v14  ;;  %5727 = vst.msk [vmem:[%s13470_s4 + $0x438] sm:$0xff] %vm1379_vm1, %v5511_v56  ;;  %v5329_v4 = vpop.permute.xlu0 %5328  ;;  %v15103_v14 = vld [vmem:[#allocation315_spill] sm:$0xff] }
 0x693   :  { %v5572_v44 = vadd.f32 %v5329_v4, %v4816_v22  ;;  %v5573_v39 = vadd.f32 %v5329_v4, %v4817_v27  ;;  %v5184_v62 = vpop.permute.xlu1 %5183  ;;  %v4832_v56 = vmul.f32 %v12288_v46, %v15103_v14  ;;  %v4833_v22 = vmul.f32 %v12288_v46, %v15104_v13  ;;  %v15106_v27 = vld [vmem:[#allocation271_spill] sm:$0xff] }
 0x694   :  { %v5514_v52 = vadd.f32 %v5184_v62, %v4758_v33  ;;  %v5515_v7 = vadd.f32 %v5184_v62, %v4759_v23  ;;  %v4774_v20 = vmul.f32 %v15106_v27, %v15105_v0  ;;  %v4775_v33 = vmul.f32 %v15106_v27, %v15107_v61  ;;  %v15108_v62 = vld [vmem:[#allocation106_spill] sm:$0xff]  ;;  %v15129_v61 = vld [vmem:[#allocation145_spill] sm:$0xff] }
 0x695   :  { %5788 = vst [vmem:[%s13470_s4 + $0x620] sm:$0xff] %v5572_v44  ;;  %5789 = vst.msk [vmem:[%s13470_s4 + $0x628] sm:$0xff] %vm1379_vm1, %v5573_v39 }
 0x696   :  { %5730 = vst [vmem:[%s13470_s4 + $0x450] sm:$0xff] %v5514_v52  ;;  %5731 = vst.msk [vmem:[%s13470_s4 + $0x458] sm:$0xff] %vm1379_vm1, %v5515_v7  ;;  %v5339_v17 = vpop.permute.xlu0 %5338  ;;  %v15109_v52 = vld [vmem:[#allocation299_spill] sm:$0xff] }
 0x697   :  { %v5576_v29 = vadd.f32 %v5339_v17, %v4820_v24  ;;  %v5577_v55 = vadd.f32 %v5339_v17, %v4821_v5  ;;  %v5194_v10 = vpop.permute.xlu1 %5193  ;;  %v4778_v7 = vmul.f32 %v15109_v52, %v15108_v62  ;;  %v4779_v24 = vmul.f32 %v15109_v52, %v15110_v2  ;;  %v15132_v62 = vld [vmem:[#allocation266_spill] sm:$0xff] }
 0x698   :  { %v5518_v6 = vadd.f32 %v5194_v10, %v4762_v43  ;;  %v5519_v41 = vadd.f32 %v5194_v10, %v4763_v40  ;;  %v15112_v43 = vld [vmem:[#allocation217_spill] sm:$0xff]  ;;  %v15113_v40 = vld [vmem:[#allocation120_spill] sm:$0xff] }
 0x699   :  { %5792 = vst [vmem:[%s13470_s4 + $0x640] sm:$0xff] %v5576_v29  ;;  %5793 = vst.msk [vmem:[%s13470_s4 + $0x648] sm:$0xff] %vm1379_vm1, %v5577_v55  ;;  %v4782_v9 = vmul.f32 %v15112_v43, %v15111_v38  ;;  %v4783_v17 = vmul.f32 %v15112_v43, %v15113_v40  ;;  %v15135_v38 = vld [vmem:[#allocation169_spill] sm:$0xff] }
 0x69a   :  { %5734 = vst [vmem:[%s13470_s4 + $0x470] sm:$0xff] %v5518_v6  ;;  %5735 = vst.msk [vmem:[%s13470_s4 + $0x478] sm:$0xff] %vm1379_vm1, %v5519_v41  ;;  %v5349_v26 = vpop.permute.xlu0 %5348  ;;  %v15114_v6 = vld [vmem:[#allocation131_spill] sm:$0xff] }
 0x69b   :  { %v5580_v49 = vadd.f32 %v5349_v26, %v4824_v34  ;;  %v5581_v42 = vadd.f32 %v5349_v26, %v4825_v25  ;;  %v5204_v37 = vpop.permute.xlu1 %5203  ;;  %v4786_v41 = vmul.f32 %v11876_v53, %v15114_v6  ;;  %v4787_v34 = vmul.f32 %v11876_v53, %v15115_v12  ;;  %v15138_v6 = vld [vmem:[#allocation235_spill] sm:$0xff]  ;;  %v15139_v12 = vld [vmem:[#allocation180_spill] sm:$0xff] }
 0x69c   :  { %v5522_v31 = vadd.f32 %v5204_v37, %v4766_v32  ;;  %v5523_v21 = vadd.f32 %v5204_v37, %v4767_v60  ;;  %v15117_v32 = vld [vmem:[#allocation177_spill] sm:$0xff]  ;;  %v15118_v60 = vld [vmem:[#allocation144_spill] sm:$0xff] }
 0x69d   :  { %5796 = vst [vmem:[%s13470_s4 + $0x660] sm:$0xff] %v5580_v49  ;;  %5797 = vst.msk [vmem:[%s13470_s4 + $0x668] sm:$0xff] %vm1379_vm1, %v5581_v42  ;;  %v4790_v35 = vmul.f32 %v15117_v32, %v15116_v54  ;;  %v4791_v26 = vmul.f32 %v15117_v32, %v15118_v60  ;;  %v15119_v37 = vld [vmem:[#allocation153_spill] sm:$0xff]  ;;  %v15140_v54 = vld [vmem:[#allocation272_spill] sm:$0xff] }
 0x69e   :  { %5738 = vst [vmem:[%s13470_s4 + $0x490] sm:$0xff] %v5522_v31  ;;  %5739 = vst.msk [vmem:[%s13470_s4 + $0x498] sm:$0xff] %vm1379_vm1, %v5523_v21  ;;  %v5359_v48 = vpop.permute.xlu0 %5358  ;;  %v15120_v31 = vld [vmem:[#allocation203_spill] sm:$0xff]  ;;  %v15141_v32 = vld [vmem:[#allocation181_spill] sm:$0xff] }
 0x69f   :  { %v5584_v15 = vadd.f32 %v5359_v48, %v4828_v19  ;;  %v5585_v50 = vadd.f32 %v5359_v48, %v4829_v16  ;;  %v5214_v57 = vpop.permute.xlu1 %5213  ;;  %v4794_v21 = vmul.f32 %v15120_v31, %v15119_v37  ;;  %v4795_v19 = vmul.f32 %v15120_v31, %v15121_v47  ;;  %v15142_v60 = vld [vmem:[#allocation200_spill] sm:$0xff]  ;;  %v15143_v37 = vld [vmem:[#allocation286_spill] sm:$0xff]  ;;  %v15144_v31 = vld [vmem:[#allocation281_spill] sm:$0xff] }
 0x6a0   :  { %v5526_v1 = vadd.f32 %v5214_v57, %v4770_v45  ;;  %v5527_v59 = vadd.f32 %v5214_v57, %v4771_v58  ;;  %v15123_v45 = vld [vmem:[#allocation110_spill] sm:$0xff]  ;;  %v15124_v58 = vld [vmem:[#allocation167_spill] sm:$0xff] }
 0x6a1   :  { %5800 = vst [vmem:[%s13470_s4 + $0x680] sm:$0xff] %v5584_v15  ;;  %5801 = vst.msk [vmem:[%s13470_s4 + $0x688] sm:$0xff] %vm1379_vm1, %v5585_v50  ;;  %v4798_v51 = vmul.f32 %v15123_v45, %v15122_v63  ;;  %v4799_v48 = vmul.f32 %v15123_v45, %v15124_v58  ;;  %v15145_v47 = vld [vmem:[#allocation287_spill] sm:$0xff]  ;;  %v15146_v63 = vld [vmem:[#allocation309_spill] sm:$0xff] }
 0x6a2   :  { %5742 = vst [vmem:[%s13470_s4 + $0x4b0] sm:$0xff] %v5526_v1  ;;  %5743 = vst.msk [vmem:[%s13470_s4 + $0x4b8] sm:$0xff] %vm1379_vm1, %v5527_v59  ;;  %v5369_v11 = vpop.permute.xlu0 %5368  ;;  %v15125_v1 = vld [vmem:[#allocation189_spill] sm:$0xff]  ;;  %v15147_v45 = vld [vmem:[#allocation330_spill] sm:$0xff] }
 0x6a3   :  { %v5588_v23 = vadd.f32 %v5369_v11, %v4832_v56  ;;  %v5589_v4 = vadd.f32 %v5369_v11, %v4833_v22  ;;  %v5224_v44 = vpop.permute.xlu1 %5223  ;;  %v15126_v59 = vld [vmem:[#allocation193_spill] sm:$0xff]  ;;  %v15127_v56 = vld [vmem:[#allocation190_spill] sm:$0xff]  ;;  %v15130_v11 = vld [vmem:[#allocation211_spill] sm:$0xff] }
 0x6a4   :  { %v5530_v46 = vadd.f32 %v5224_v44, %v4774_v20  ;;  %v5531_v39 = vadd.f32 %v5224_v44, %v4775_v33  ;;  %v4802_v14 = vmul.f32 %v15126_v59, %v15125_v1  ;;  %v4803_v13 = vmul.f32 %v15126_v59, %v15127_v56  ;;  %v15128_v20 = vld [vmem:[#allocation210_spill] sm:$0xff]  ;;  %v15149_v1 = vld [vmem:[#allocation335_spill] sm:$0xff]  ;;  %v15151_v56 = vld [vmem:[#allocation336_spill] sm:$0xff] }
 0x6a5   :  { %5804 = vst [vmem:[%s13470_s4 + $0x6a0] sm:$0xff] %v5588_v23  ;;  %5805 = vst.msk [vmem:[%s13470_s4 + $0x6a8] sm:$0xff] %vm1379_vm1, %v5589_v4  ;;  %v4806_v33 = vmul.f32 %v15129_v61, %v15128_v20  ;;  %v4807_v23 = vmul.f32 %v15129_v61, %v15130_v11  ;;  %v15148_v58 = vld [vmem:[#allocation310_spill] sm:$0xff] }
 0x6a6   :  { %5746 = vst [vmem:[%s13470_s4 + $0x4d0] sm:$0xff] %v5530_v46  ;;  %5747 = vst.msk [vmem:[%s13470_s4 + $0x4d8] sm:$0xff] %vm1379_vm1, %v5531_v39  ;;  %v15131_v39 = vld [vmem:[#allocation229_spill] sm:$0xff]  ;;  %v15150_v59 = vld [vmem:[#allocation194_spill] sm:$0xff] }
 0x6a7   :  { %v5234_v30 = vpop.permute.xlu1 %5233  ;;  %v4810_v52 = vmul.f32 %v15132_v62, %v15131_v39 }
 0x6a8   :  { %v5534_v5 = vadd.f32 %v5234_v30, %v4778_v7  ;;  %v5535_v28 = vadd.f32 %v5234_v30, %v4779_v24  ;;  %v15133_v7 = vld [vmem:[#allocation230_spill] sm:$0xff] }
 0x6a9   :  { %v4811_v2 = vmul.f32 %v15132_v62, %v15133_v7 }
 0x6aa   :  { %5750 = vst [vmem:[%s13470_s4 + $0x4f0] sm:$0xff] %v5534_v5  ;;  %5751 = vst.msk [vmem:[%s13470_s4 + $0x4f8] sm:$0xff] %vm1379_vm1, %v5535_v28  ;;  %v15134_v28 = vld [vmem:[#allocation262_spill] sm:$0xff] }
 0x6ab   :  { %v5244_v29 = vpop.permute.xlu1 %5243  ;;  %v4814_v43 = vmul.f32 %v15135_v38, %v15134_v28 }
 0x6ac   :  { %v5538_v55 = vadd.f32 %v5244_v29, %v4782_v9  ;;  %v5539_v10 = vadd.f32 %v5244_v29, %v4783_v17  ;;  %v15136_v9 = vld [vmem:[#allocation263_spill] sm:$0xff] }
 0x6ad   :  { %v4815_v40 = vmul.f32 %v15135_v38, %v15136_v9 }
 0x6ae   :  { %5754 = vst [vmem:[%s13470_s4 + $0x510] sm:$0xff] %v5538_v55  ;;  %5755 = vst.msk [vmem:[%s13470_s4 + $0x518] sm:$0xff] %vm1379_vm1, %v5539_v10  ;;  %v15137_v10 = vld [vmem:[#allocation173_spill] sm:$0xff] }
 0x6af   :  { %v5254_v36 = vpop.permute.xlu1 %5253 }
 0x6b0   :  { %v5542_v25 = vadd.f32 %v5254_v36, %v4786_v41  ;;  %v5543_v8 = vadd.f32 %v5254_v36, %v4787_v34  ;;  %v4818_v41 = vmul.f32 %v15138_v6, %v15137_v10  ;;  %v4819_v34 = vmul.f32 %v15138_v6, %v15139_v12 }
 0x6b2   :  { %5758 = vst [vmem:[%s13470_s4 + $0x530] sm:$0xff] %v5542_v25  ;;  %5759 = vst.msk [vmem:[%s13470_s4 + $0x538] sm:$0xff] %vm1379_vm1, %v5543_v8 }
 0x6b3   :  { %v5264_v53 = vpop.permute.xlu1 %5263 }
 0x6b4   :  { %v5546_v49 = vadd.f32 %v5264_v53, %v4790_v35  ;;  %v5547_v42 = vadd.f32 %v5264_v53, %v4791_v26  ;;  %v4822_v35 = vmul.f32 %v15141_v32, %v15140_v54  ;;  %v4823_v26 = vmul.f32 %v15141_v32, %v15142_v60 }
 0x6b6   :  { %5762 = vst [vmem:[%s13470_s4 + $0x550] sm:$0xff] %v5546_v49  ;;  %5763 = vst.msk [vmem:[%s13470_s4 + $0x558] sm:$0xff] %vm1379_vm1, %v5547_v42 }
 0x6b7   :  { %v5274_v3 = vpop.permute.xlu1 %5273 }
 0x6b8   :  { %v5550_v16 = vadd.f32 %v5274_v3, %v4794_v21  ;;  %v5551_v18 = vadd.f32 %v5274_v3, %v4795_v19  ;;  %v4826_v21 = vmul.f32 %v15144_v31, %v15143_v37  ;;  %v4827_v19 = vmul.f32 %v15144_v31, %v15145_v47 }
 0x6ba   :  { %5766 = vst [vmem:[%s13470_s4 + $0x570] sm:$0xff] %v5550_v16  ;;  %5767 = vst.msk [vmem:[%s13470_s4 + $0x578] sm:$0xff] %vm1379_vm1, %v5551_v18 }
 0x6bb   :  { %v5284_v15 = vpop.permute.xlu1 %5283 }
 0x6bc   :  { %v5554_v50 = vadd.f32 %v5284_v15, %v4798_v51  ;;  %v5555_v57 = vadd.f32 %v5284_v15, %v4799_v48  ;;  %v4830_v51 = vmul.f32 %v15147_v45, %v15146_v63  ;;  %v4831_v48 = vmul.f32 %v15147_v45, %v15148_v58 }
 0x6be   :  { %5770 = vst [vmem:[%s13470_s4 + $0x590] sm:$0xff] %v5554_v50  ;;  %5771 = vst.msk [vmem:[%s13470_s4 + $0x598] sm:$0xff] %vm1379_vm1, %v5555_v57 }
 0x6bf   :  { %v5294_v22 = vpop.permute.xlu1 %5293 }
 0x6c0   :  { %v5558_v0 = vadd.f32 %v5294_v22, %v4802_v14  ;;  %v5559_v27 = vadd.f32 %v5294_v22, %v4803_v13  ;;  %v4834_v14 = vmul.f32 %v15150_v59, %v15149_v1  ;;  %v4835_v13 = vmul.f32 %v15150_v59, %v15151_v56 }
 0x6c2   :  { %5774 = vst [vmem:[%s13470_s4 + $0x5b0] sm:$0xff] %v5558_v0  ;;  %5775 = vst.msk [vmem:[%s13470_s4 + $0x5b8] sm:$0xff] %vm1379_vm1, %v5559_v27 }
 0x6c3   :  { %v5304_v4 = vpop.permute.xlu1 %5303 }
 0x6c4   :  { %v5562_v44 = vadd.f32 %v5304_v4, %v4806_v33  ;;  %v5563_v46 = vadd.f32 %v5304_v4, %v4807_v23 }
 0x6c6   :  { %5778 = vst [vmem:[%s13470_s4 + $0x5d0] sm:$0xff] %v5562_v44  ;;  %5779 = vst.msk [vmem:[%s13470_s4 + $0x5d8] sm:$0xff] %vm1379_vm1, %v5563_v46 }
 0x6c7   :  { %v5314_v24 = vpop.permute.xlu1 %5313 }
 0x6c8   :  { %v5566_v30 = vadd.f32 %v5314_v24, %v4810_v52  ;;  %v5567_v5 = vadd.f32 %v5314_v24, %v4811_v2 }
 0x6ca   :  { %5782 = vst [vmem:[%s13470_s4 + $0x5f0] sm:$0xff] %v5566_v30  ;;  %5783 = vst.msk [vmem:[%s13470_s4 + $0x5f8] sm:$0xff] %vm1379_vm1, %v5567_v5 }
 0x6cb   :  { %v5324_v17 = vpop.permute.xlu1 %5323 }
 0x6cc   :  { %v5570_v29 = vadd.f32 %v5324_v17, %v4814_v43  ;;  %v5571_v55 = vadd.f32 %v5324_v17, %v4815_v40 }
 0x6ce   :  { %5786 = vst [vmem:[%s13470_s4 + $0x610] sm:$0xff] %v5570_v29  ;;  %5787 = vst.msk [vmem:[%s13470_s4 + $0x618] sm:$0xff] %vm1379_vm1, %v5571_v55 }
 0x6cf   :  { %v5334_v36 = vpop.permute.xlu1 %5333 }
 0x6d0   :  { %v5574_v25 = vadd.f32 %v5334_v36, %v4818_v41  ;;  %v5575_v8 = vadd.f32 %v5334_v36, %v4819_v34 }
 0x6d2   :  { %5790 = vst [vmem:[%s13470_s4 + $0x630] sm:$0xff] %v5574_v25  ;;  %5791 = vst.msk [vmem:[%s13470_s4 + $0x638] sm:$0xff] %vm1379_vm1, %v5575_v8 }
 0x6d3   :  { %v5344_v53 = vpop.permute.xlu1 %5343 }
 0x6d4   :  { %v5578_v49 = vadd.f32 %v5344_v53, %v4822_v35  ;;  %v5579_v42 = vadd.f32 %v5344_v53, %v4823_v26 }
 0x6d6   :  { %5794 = vst [vmem:[%s13470_s4 + $0x650] sm:$0xff] %v5578_v49  ;;  %5795 = vst.msk [vmem:[%s13470_s4 + $0x658] sm:$0xff] %vm1379_vm1, %v5579_v42 }
 0x6d7   :  { %v5354_v3 = vpop.permute.xlu1 %5353 }
 0x6d8   :  { %v5582_v16 = vadd.f32 %v5354_v3, %v4826_v21  ;;  %v5583_v18 = vadd.f32 %v5354_v3, %v4827_v19 }
 0x6da   :  { %5798 = vst [vmem:[%s13470_s4 + $0x670] sm:$0xff] %v5582_v16  ;;  %5799 = vst.msk [vmem:[%s13470_s4 + $0x678] sm:$0xff] %vm1379_vm1, %v5583_v18 }
 0x6db   :  { %v5364_v15 = vpop.permute.xlu1 %5363 }
 0x6dc   :  { %v5586_v50 = vadd.f32 %v5364_v15, %v4830_v51  ;;  %v5587_v57 = vadd.f32 %v5364_v15, %v4831_v48 }
 0x6de   :  { %5802 = vst [vmem:[%s13470_s4 + $0x690] sm:$0xff] %v5586_v50  ;;  %5803 = vst.msk [vmem:[%s13470_s4 + $0x698] sm:$0xff] %vm1379_vm1, %v5587_v57 }
 0x6df   :  { %v5374_v22 = vpop.permute.xlu1 %5373 }
 0x6e0   :  { %v5590_v0 = vadd.f32 %v5374_v22, %v4834_v14  ;;  %v5591_v27 = vadd.f32 %v5374_v22, %v4835_v13 }
 0x6e2   :  { %5806 = vst [vmem:[%s13470_s4 + $0x6b0] sm:$0xff] %v5590_v0  ;;  %5807 = vst.msk [vmem:[%s13470_s4 + $0x6b8] sm:$0xff] %vm1379_vm1, %v5591_v27 }

</bundles_post_ra>
